<compile_context>
chip_gen: v6e
topology: v6e:2x2x1
jax: 0.10.0
libtpu: 0.0.40
codegen_flags: <defaults>
</compile_context>

<pallas_src>
import functools

import jax
import jax.numpy as jnp
from jax.experimental import pallas as pl
from jax.experimental.pallas import tpu as pltpu

BN_EPS = 1e-5
DROP_P = 0.2
CT = 128                       # output-channel tile (one lane tile)
VMEM_LIMIT = 32 * 1024 * 1024


# ----------------------------- Pallas kernels ------------------------------ #

def _conv_block_kernel(H, W, N, ct, eps,
                       xs_ref, w_ref, g_ref, be_ref, d_ref, o_ref):
    """Fused 3x3 conv + BatchNorm(train) + ReLU + dropout2d for one Cout tile.

    xs_ref : (3, N, (H+2)*W, Cin) f32   zero-padded input, pre-shifted along W
    w_ref  : (9, Cin, ct)         bf16  conv taps, k = dy*3 + dx
    g_ref, be_ref : (1, ct)       f32   BN gamma / beta
    d_ref  : (N, ct)              f32   dropout2d scale (0 or 1/(1-p))
    o_ref  : (N, H*W, ct)         f32
    """
    HW = H * W
    inv_m = 1.0 / (N * HW)

    # 3x3 conv as 9 shifted taps: bf16 MXU matmuls accumulated in f32.
    accs = [jnp.zeros((HW, ct), jnp.float32) for _ in range(N)]
    for dy in range(3):
        for dx in range(3):
            wk = w_ref[dy * 3 + dx]                              # (Cin, ct) bf16
            for n in range(N):
                tap = xs_ref[dx, n, dy * W:dy * W + HW, :]       # (HW, Cin) f32
                accs[n] = accs[n] + jnp.dot(
                    tap.astype(jnp.bfloat16), wk,
                    preferred_element_type=jnp.float32)

    # Training-mode BatchNorm statistics (biased variance), per channel.
    s1 = jnp.zeros((1, ct), jnp.float32)
    for n in range(N):
        s1 = s1 + jnp.sum(accs[n], axis=0, keepdims=True)
    mean = s1 * inv_m
    s2 = jnp.zeros((1, ct), jnp.float32)
    for n in range(N):
        c = accs[n] - mean
        s2 = s2 + jnp.sum(c * c, axis=0, keepdims=True)
    var = s2 * inv_m

    rstd = jax.lax.rsqrt(var + eps)
    sc = g_ref[...] * rstd
    bc = be_ref[...] - mean * sc

    d = d_ref[...]                                               # (N, ct)
    for n in range(N):
        dn = d[n:n + 1, :]
        # relu(y*sc + bc) * dn == relu(y*(sc*dn) + bc*dn) since dn >= 0
        o_ref[n] = jnp.maximum(accs[n] * (sc * dn) + bc * dn, 0.0)


def _deconv_block_kernel(H, W, N, ct, eps,
                         x_ref, w_ref, g_ref, be_ref, d_ref, o_ref, y_ref):
    """Fused 2x2-stride-2 deconv + BatchNorm(train) + ReLU + dropout2d.

    x_ref  : (N*H*W, Cin)    bf16
    w_ref  : (Cin, 4*ct)     bf16  the 4 deconv taps of this channel tile
    g_ref, be_ref : (1, ct)  f32
    d_ref  : (N, ct)         f32
    o_ref  : (4, N, H*W, ct) bf16  tap-indexed output (k = ky*2 + kx)
    y_ref  : (N*H*W, 4*ct)   f32   VMEM scratch for the wide matmul result
    """
    HW = H * W
    inv_rows = 1.0 / (4 * N * HW)

    # One wide MXU matmul produces all 4 taps of this channel tile at once.
    y_ref[...] = jnp.dot(x_ref[...], w_ref[...],
                         preferred_element_type=jnp.float32)

    # BN statistics over every output pixel (all 4 taps, all samples).
    s1 = jnp.zeros((1, ct), jnp.float32)
    for k in range(4):
        s1 = s1 + jnp.sum(y_ref[:, k * ct:(k + 1) * ct], axis=0, keepdims=True)
    mean = s1 * inv_rows
    s2 = jnp.zeros((1, ct), jnp.float32)
    for k in range(4):
        c = y_ref[:, k * ct:(k + 1) * ct] - mean
        s2 = s2 + jnp.sum(c * c, axis=0, keepdims=True)
    var = s2 * inv_rows

    rstd = jax.lax.rsqrt(var + eps)
    sc = g_ref[...] * rstd
    bc = be_ref[...] - mean * sc

    d = d_ref[...]
    for k in range(4):
        for n in range(N):
            dn = d[n:n + 1, :]
            ynk = y_ref[n * HW:(n + 1) * HW, k * ct:(k + 1) * ct]
            o_ref[k, n] = jnp.maximum(
                ynk * (sc * dn) + bc * dn, 0.0).astype(o_ref.dtype)


def _matmul_bias_kernel(x_ref, w_ref, b_ref, o_ref):
    # x: (tm, Cin) bf16, w: (Cin, 128) bf16, b: (1, 128) f32 -> o: (tm, 128) f32
    o_ref[...] = jnp.dot(x_ref[...], w_ref[...],
                         preferred_element_type=jnp.float32) + b_ref[...]


# ------------------------------ Pallas wrappers ----------------------------- #

def _shifted_padded(x_nhwc):
    # (N, H, W, C) -> (3, N, (H+2)*W, C): zero 'same' padding for the 3x3 conv,
    # pre-shifted along W so every in-kernel tap slice is sublane-aligned.
    # (3x the input bytes instead of the 9x of a materialized im2col.)
    N, H, W, C = x_nhwc.shape
    xp = jnp.pad(x_nhwc, ((0, 0), (1, 1), (1, 1), (0, 0)))
    cols = [xp[:, :, dx:dx + W, :].reshape(N, (H + 2) * W, C) for dx in range(3)]
    return jnp.stack(cols, axis=0)


def conv_block(x_nhwc, w_hwio, gamma, beta, drop_scale):
    # conv3x3(pad=1) -> BN(train) -> ReLU -> dropout2d, one fused pallas_call.
    N, H, W, cin = x_nhwc.shape
    cout = w_hwio.shape[-1]
    assert cout % CT == 0
    nct = cout // CT
    HW = H * W

    xs = _shifted_padded(x_nhwc.astype(jnp.float32))
    w = w_hwio.reshape(9, cin, cout).astype(jnp.bfloat16)
    g = gamma.reshape(1, cout)
    be = beta.reshape(1, cout)

    kernel = functools.partial(_conv_block_kernel, H, W, N, CT, BN_EPS)
    out = pl.pallas_call(
        kernel,
        out_shape=jax.ShapeDtypeStruct((N, HW, cout), jnp.float32),
        grid=(nct,),
        in_specs=[
            pl.BlockSpec((3, N, (H + 2) * W, cin), lambda i: (0, 0, 0, 0)),
            pl.BlockSpec((9, cin, CT), lambda i: (0, 0, i)),
            pl.BlockSpec((1, CT), lambda i: (0, i)),
            pl.BlockSpec((1, CT), lambda i: (0, i)),
            pl.BlockSpec((N, CT), lambda i: (0, i)),
        ],
        out_specs=pl.BlockSpec((N, HW, CT), lambda i: (0, 0, i)),
        compiler_params=pltpu.CompilerParams(
            dimension_semantics=("parallel",),
            vmem_limit_bytes=VMEM_LIMIT,
        ),
    )(xs, w, g, be, drop_scale)
    return out.reshape(N, H, W, cout)


def deconv_block(x_nhwc, w_kkio, gamma, beta, drop_scale):
    # conv_transpose(2x2, stride 2) -> BN(train) -> ReLU -> dropout2d, fused.
    N, H, W, cin = x_nhwc.shape
    cout = w_kkio.shape[-1]
    assert cout % CT == 0
    nct = cout // CT
    HW = H * W
    M = N * HW

    x_flat = x_nhwc.reshape(M, cin).astype(jnp.bfloat16)
    # Arrange the weight so a (Cin, 4*CT) lane block holds the 4 taps of one
    # channel tile side by side: one wide matmul fills the 256-wide MXU.
    w4 = w_kkio.reshape(4, cin, cout)                       # k = ky*2 + kx
    w_arr = (w4.reshape(4, cin, nct, CT)
               .transpose(1, 2, 0, 3)
               .reshape(cin, nct * 4 * CT)
               .astype(jnp.bfloat16))
    g = gamma.reshape(1, cout)
    be = beta.reshape(1, cout)

    kernel = functools.partial(_deconv_block_kernel, H, W, N, CT, BN_EPS)
    out4 = pl.pallas_call(
        kernel,
        out_shape=jax.ShapeDtypeStruct((4, N, HW, cout), jnp.bfloat16),
        grid=(nct,),
        in_specs=[
            pl.BlockSpec((M, cin), lambda i: (0, 0)),
            pl.BlockSpec((cin, 4 * CT), lambda i: (0, i)),
            pl.BlockSpec((1, CT), lambda i: (0, i)),
            pl.BlockSpec((1, CT), lambda i: (0, i)),
            pl.BlockSpec((N, CT), lambda i: (0, i)),
        ],
        out_specs=pl.BlockSpec((4, N, HW, CT), lambda i: (0, 0, 0, i)),
        scratch_shapes=[pltpu.VMEM((M, 4 * CT), jnp.float32)],
        compiler_params=pltpu.CompilerParams(
            dimension_semantics=("parallel",),
            vmem_limit_bytes=VMEM_LIMIT,
        ),
    )(x_flat, w_arr, g, be, drop_scale)
    return out4   # (4, N, H*W, cout) bf16, tap-indexed (k = ky*2 + kx)


def predictor(act_flat, wp, bp, *, lane_pad=128, tm=256):
    # 1x1 conv as a matmul; output channels zero-padded to a full lane tile so
    # stores are dense, sliced back to num_classes outside the kernel.
    M, cin = act_flat.shape
    ncls = wp.shape[-1]
    assert M % tm == 0
    w_pad = jnp.pad(wp, ((0, 0), (0, lane_pad - ncls))).astype(jnp.bfloat16)
    b_pad = jnp.pad(bp, (0, lane_pad - ncls)).reshape(1, lane_pad)

    out = pl.pallas_call(
        _matmul_bias_kernel,
        out_shape=jax.ShapeDtypeStruct((M, lane_pad), jnp.float32),
        grid=(M // tm,),
        in_specs=[
            pl.BlockSpec((tm, cin), lambda i: (i, 0)),
            pl.BlockSpec((cin, lane_pad), lambda i: (0, 0)),
            pl.BlockSpec((1, lane_pad), lambda i: (0, 0)),
        ],
        out_specs=pl.BlockSpec((tm, lane_pad), lambda i: (i, 0)),
        compiler_params=pltpu.CompilerParams(
            dimension_semantics=("parallel",),
            vmem_limit_bytes=VMEM_LIMIT,
        ),
    )(act_flat.astype(jnp.bfloat16), w_pad, b_pad)
    return out[:, :ncls]


# ------------------------------- forward ------------------------------------ #

def dropout_head_forward(x, params, drop_scales):
    p = params
    x = conv_block(x, p["w1"], p["g1"], p["be1"], drop_scales[0])
    x = conv_block(x, p["w2"], p["g2"], p["be2"], drop_scales[1])
    x = conv_block(x, p["w3"], p["g3"], p["be3"], drop_scales[2])
    x = conv_block(x, p["w4"], p["g4"], p["be4"], drop_scales[3])
    N, H, W, C = x.shape
    y4 = deconv_block(x, p["wd"], p["g5"], p["be5"], drop_scales[4])  # (4,N,HW,C)
    logits = predictor(y4.reshape(4 * N * H * W, C), p["wp"], p["bp"])
    ncls = logits.shape[-1]
    # De-interleave the 2x upsample once, on the tiny class logits:
    # rows are ordered (ky, kx, n, h, w) -> out[n, 2h+ky, 2w+kx, :]
    out = (logits.reshape(2, 2, N, H, W, ncls)
                 .transpose(2, 3, 0, 4, 1, 5)
                 .reshape(N, 2 * H, 2 * W, ncls))
    return out


def init_params(key, input_dim, num_classes, hidden=256):
    ks = jax.random.split(key, 12)
    n01 = lambda k, s, sc: sc * jax.random.normal(k, s, jnp.float32)
    params = {
        "w1": n01(ks[0], (3, 3, input_dim, hidden), 0.02),
        "b1": n01(ks[1], (hidden,), 0.01),
        "w2": n01(ks[2], (3, 3, hidden, hidden), 0.02),
        "b2": n01(ks[3], (hidden,), 0.01),
        "w3": n01(ks[4], (3, 3, hidden, hidden), 0.02),
        "b3": n01(ks[5], (hidden,), 0.01),
        "w4": n01(ks[6], (3, 3, hidden, hidden), 0.02),
        "b4": n01(ks[7], (hidden,), 0.01),
        "wd": n01(ks[8], (2, 2, hidden, hidden), 0.02),   # (ky, kx, cin, cout)
        "bd": n01(ks[9], (hidden,), 0.01),
        "wp": n01(ks[10], (hidden, num_classes), 0.02),
        "bp": n01(ks[11], (num_classes,), 0.01),
    }
    # BatchNorm affine params (PyTorch default init: weight=1, bias=0).
    for i in range(1, 6):
        params[f"g{i}"] = jnp.ones((hidden,), jnp.float32)
        params[f"be{i}"] = jnp.zeros((hidden,), jnp.float32)
    # NOTE: b1..b4 / bd are kept only for parameter parity with the PyTorch
    # module: conv/deconv biases cancel exactly under training-mode BatchNorm,
    # so the fused kernels do not consume them.  bp (predictor) IS used.
    return params


if __name__ == "__main__":
    N, H, W = 2, 8, 8
    input_dim, num_classes, hidden = 128, 8, 256

    key = jax.random.PRNGKey(0)
    k_x, k_p, k_d = jax.random.split(key, 3)

    # NHWC input (PyTorch equivalent would be NCHW (2, 128, 8, 8)).
    x = jax.random.normal(k_x, (N, H, W, input_dim), jnp.float32)
    params = init_params(k_p, input_dim, num_classes, hidden)

    # dropout2d(p=0.2, training=True): zero whole channels per sample,
    # scale survivors by 1/(1-p).  Deterministic masks via jax.random.
    dkeys = jax.random.split(k_d, 5)
    drop_scales = [
        jax.random.bernoulli(dk, 1.0 - DROP_P, (N, hidden)).astype(jnp.float32)
        / (1.0 - DROP_P)
        for dk in dkeys
    ]

    fwd = jax.jit(dropout_head_forward)
    out = jax.block_until_ready(fwd(x, params, drop_scales))

    assert out.shape == (N, 2 * H, 2 * W, num_classes), out.shape
    assert bool(jnp.all(jnp.isfinite(out)))
    print("KERNEL_OK")
</pallas_src>

<mosaic_0001>
module attributes {stable_mosaic.version = 11 : i64} {
  func.func @_conv_block_kernel(%arg0: i32, %arg1: memref<3x2x80x128xf32, #tpu.memory_space<vmem>>, %arg2: memref<9x128x128xbf16, #tpu.memory_space<vmem>>, %arg3: memref<1x128xf32, #tpu.memory_space<vmem>>, %arg4: memref<1x128xf32, #tpu.memory_space<vmem>>, %arg5: memref<2x128xf32, #tpu.memory_space<vmem>>, %arg6: memref<2x64x128xf32, #tpu.memory_space<vmem>>) attributes {dimension_semantics = [#tpu.dimension_semantics<parallel>], iteration_bounds = array<i64: 2>, scalar_prefetch = 0 : i64, scratch_operands = 0 : i64, tpu.core_type = #tpu.core_type<tc>, window_params = [{pipeline_mode = #tpu.pipeline_mode<synchronous>, transform_indices = @transform_0, window_bounds = array<i64: 3, 2, 80, 128>}, {transform_indices = @transform_1, window_bounds = array<i64: 9, 128, 128>}, {transform_indices = @transform_2, window_bounds = array<i64: 1, 128>}, {transform_indices = @transform_3, window_bounds = array<i64: 1, 128>}, {transform_indices = @transform_4, window_bounds = array<i64: 2, 128>}, {transform_indices = @transform_5, window_bounds = array<i64: 2, 64, 128>}]} {
    %cst = arith.constant 0.000000e+00 : f32
    %0 = vector.broadcast %cst : f32 to vector<64x128xf32>
    %cst_0 = arith.constant 0.000000e+00 : f32
    %1 = vector.broadcast %cst_0 : f32 to vector<64x128xf32>
    %c0 = arith.constant 0 : index
    %c0_1 = arith.constant 0 : index
    %c0_2 = arith.constant 0 : index
    %2 = vector.load %arg2[%c0, %c0_1, %c0_2] : memref<9x128x128xbf16, #tpu.memory_space<vmem>>, vector<1x128x128xbf16>
    %3 = vector.shape_cast %2 : vector<1x128x128xbf16> to vector<128x128xbf16>
    %c0_3 = arith.constant 0 : index
    %c0_4 = arith.constant 0 : index
    %c0_5 = arith.constant 0 : index
    %c0_6 = arith.constant 0 : index
    %4 = vector.load %arg1[%c0_3, %c0_4, %c0_5, %c0_6] : memref<3x2x80x128xf32, #tpu.memory_space<vmem>>, vector<1x1x64x128xf32>
    %5 = vector.shape_cast %4 : vector<1x1x64x128xf32> to vector<64x128xf32>
    %6 = arith.truncf %5 : vector<64x128xf32> to vector<64x128xbf16>
    %cst_7 = arith.constant dense<0.000000e+00> : vector<64x128xf32>
    %7 = tpu.matmul %6, %3, %cst_7 {dimension_numbers = #tpu.dot_dimension_numbers<[1], [0], [0], [1], [0, 0, 1, 1], [], []>} : vector<64x128xbf16>, vector<128x128xbf16>, vector<64x128xf32> -> vector<64x128xf32>
    %8 = arith.addf %0, %7 : vector<64x128xf32>
    %c0_8 = arith.constant 0 : index
    %c1 = arith.constant 1 : index
    %c0_9 = arith.constant 0 : index
    %c0_10 = arith.constant 0 : index
    %9 = vector.load %arg1[%c0_8, %c1, %c0_9, %c0_10] : memref<3x2x80x128xf32, #tpu.memory_space<vmem>>, vector<1x1x64x128xf32>
    %10 = vector.shape_cast %9 : vector<1x1x64x128xf32> to vector<64x128xf32>
    %11 = arith.truncf %10 : vector<64x128xf32> to vector<64x128xbf16>
    %cst_11 = arith.constant dense<0.000000e+00> : vector<64x128xf32>
    %12 = tpu.matmul %11, %3, %cst_11 {dimension_numbers = #tpu.dot_dimension_numbers<[1], [0], [0], [1], [0, 0, 1, 1], [], []>} : vector<64x128xbf16>, vector<128x128xbf16>, vector<64x128xf32> -> vector<64x128xf32>
    %13 = arith.addf %1, %12 : vector<64x128xf32>
    %c1_12 = arith.constant 1 : index
    %c0_13 = arith.constant 0 : index
    %c0_14 = arith.constant 0 : index
    %14 = vector.load %arg2[%c1_12, %c0_13, %c0_14] : memref<9x128x128xbf16, #tpu.memory_space<vmem>>, vector<1x128x128xbf16>
    %15 = vector.shape_cast %14 : vector<1x128x128xbf16> to vector<128x128xbf16>
    %c1_15 = arith.constant 1 : index
    %c0_16 = arith.constant 0 : index
    %c0_17 = arith.constant 0 : index
    %c0_18 = arith.constant 0 : index
    %16 = vector.load %arg1[%c1_15, %c0_16, %c0_17, %c0_18] : memref<3x2x80x128xf32, #tpu.memory_space<vmem>>, vector<1x1x64x128xf32>
    %17 = vector.shape_cast %16 : vector<1x1x64x128xf32> to vector<64x128xf32>
    %18 = arith.truncf %17 : vector<64x128xf32> to vector<64x128xbf16>
    %cst_19 = arith.constant dense<0.000000e+00> : vector<64x128xf32>
    %19 = tpu.matmul %18, %15, %cst_19 {dimension_numbers = #tpu.dot_dimension_numbers<[1], [0], [0], [1], [0, 0, 1, 1], [], []>} : vector<64x128xbf16>, vector<128x128xbf16>, vector<64x128xf32> -> vector<64x128xf32>
    %20 = arith.addf %8, %19 : vector<64x128xf32>
    %c1_20 = arith.constant 1 : index
    %c1_21 = arith.constant 1 : index
    %c0_22 = arith.constant 0 : index
    %c0_23 = arith.constant 0 : index
    %21 = vector.load %arg1[%c1_20, %c1_21, %c0_22, %c0_23] : memref<3x2x80x128xf32, #tpu.memory_space<vmem>>, vector<1x1x64x128xf32>
    %22 = vector.shape_cast %21 : vector<1x1x64x128xf32> to vector<64x128xf32>
    %23 = arith.truncf %22 : vector<64x128xf32> to vector<64x128xbf16>
    %cst_24 = arith.constant dense<0.000000e+00> : vector<64x128xf32>
    %24 = tpu.matmul %23, %15, %cst_24 {dimension_numbers = #tpu.dot_dimension_numbers<[1], [0], [0], [1], [0, 0, 1, 1], [], []>} : vector<64x128xbf16>, vector<128x128xbf16>, vector<64x128xf32> -> vector<64x128xf32>
    %25 = arith.addf %13, %24 : vector<64x128xf32>
    %c2 = arith.constant 2 : index
    %c0_25 = arith.constant 0 : index
    %c0_26 = arith.constant 0 : index
    %26 = vector.load %arg2[%c2, %c0_25, %c0_26] : memref<9x128x128xbf16, #tpu.memory_space<vmem>>, vector<1x128x128xbf16>
    %27 = vector.shape_cast %26 : vector<1x128x128xbf16> to vector<128x128xbf16>
    %c2_27 = arith.constant 2 : index
    %c0_28 = arith.constant 0 : index
    %c0_29 = arith.constant 0 : index
    %c0_30 = arith.constant 0 : index
    %28 = vector.load %arg1[%c2_27, %c0_28, %c0_29, %c0_30] : memref<3x2x80x128xf32, #tpu.memory_space<vmem>>, vector<1x1x64x128xf32>
    %29 = vector.shape_cast %28 : vector<1x1x64x128xf32> to vector<64x128xf32>
    %30 = arith.truncf %29 : vector<64x128xf32> to vector<64x128xbf16>
    %cst_31 = arith.constant dense<0.000000e+00> : vector<64x128xf32>
    %31 = tpu.matmul %30, %27, %cst_31 {dimension_numbers = #tpu.dot_dimension_numbers<[1], [0], [0], [1], [0, 0, 1, 1], [], []>} : vector<64x128xbf16>, vector<128x128xbf16>, vector<64x128xf32> -> vector<64x128xf32>
    %32 = arith.addf %20, %31 : vector<64x128xf32>
    %c2_32 = arith.constant 2 : index
    %c1_33 = arith.constant 1 : index
    %c0_34 = arith.constant 0 : index
    %c0_35 = arith.constant 0 : index
    %33 = vector.load %arg1[%c2_32, %c1_33, %c0_34, %c0_35] : memref<3x2x80x128xf32, #tpu.memory_space<vmem>>, vector<1x1x64x128xf32>
    %34 = vector.shape_cast %33 : vector<1x1x64x128xf32> to vector<64x128xf32>
    %35 = arith.truncf %34 : vector<64x128xf32> to vector<64x128xbf16>
    %cst_36 = arith.constant dense<0.000000e+00> : vector<64x128xf32>
    %36 = tpu.matmul %35, %27, %cst_36 {dimension_numbers = #tpu.dot_dimension_numbers<[1], [0], [0], [1], [0, 0, 1, 1], [], []>} : vector<64x128xbf16>, vector<128x128xbf16>, vector<64x128xf32> -> vector<64x128xf32>
    %37 = arith.addf %25, %36 : vector<64x128xf32>
    %c3 = arith.constant 3 : index
    %c0_37 = arith.constant 0 : index
    %c0_38 = arith.constant 0 : index
    %38 = vector.load %arg2[%c3, %c0_37, %c0_38] : memref<9x128x128xbf16, #tpu.memory_space<vmem>>, vector<1x128x128xbf16>
    %39 = vector.shape_cast %38 : vector<1x128x128xbf16> to vector<128x128xbf16>
    %c0_39 = arith.constant 0 : index
    %c0_40 = arith.constant 0 : index
    %c8 = arith.constant 8 : index
    %c0_41 = arith.constant 0 : index
    %40 = vector.load %arg1[%c0_39, %c0_40, %c8, %c0_41] : memref<3x2x80x128xf32, #tpu.memory_space<vmem>>, vector<1x1x64x128xf32>
    %41 = vector.shape_cast %40 : vector<1x1x64x128xf32> to vector<64x128xf32>
    %42 = arith.truncf %41 : vector<64x128xf32> to vector<64x128xbf16>
    %cst_42 = arith.constant dense<0.000000e+00> : vector<64x128xf32>
    %43 = tpu.matmul %42, %39, %cst_42 {dimension_numbers = #tpu.dot_dimension_numbers<[1], [0], [0], [1], [0, 0, 1, 1], [], []>} : vector<64x128xbf16>, vector<128x128xbf16>, vector<64x128xf32> -> vector<64x128xf32>
    %44 = arith.addf %32, %43 : vector<64x128xf32>
    %c0_43 = arith.constant 0 : index
    %c1_44 = arith.constant 1 : index
    %c8_45 = arith.constant 8 : index
    %c0_46 = arith.constant 0 : index
    %45 = vector.load %arg1[%c0_43, %c1_44, %c8_45, %c0_46] : memref<3x2x80x128xf32, #tpu.memory_space<vmem>>, vector<1x1x64x128xf32>
    %46 = vector.shape_cast %45 : vector<1x1x64x128xf32> to vector<64x128xf32>
    %47 = arith.truncf %46 : vector<64x128xf32> to vector<64x128xbf16>
    %cst_47 = arith.constant dense<0.000000e+00> : vector<64x128xf32>
    %48 = tpu.matmul %47, %39, %cst_47 {dimension_numbers = #tpu.dot_dimension_numbers<[1], [0], [0], [1], [0, 0, 1, 1], [], []>} : vector<64x128xbf16>, vector<128x128xbf16>, vector<64x128xf32> -> vector<64x128xf32>
    %49 = arith.addf %37, %48 : vector<64x128xf32>
    %c4 = arith.constant 4 : index
    %c0_48 = arith.constant 0 : index
    %c0_49 = arith.constant 0 : index
    %50 = vector.load %arg2[%c4, %c0_48, %c0_49] : memref<9x128x128xbf16, #tpu.memory_space<vmem>>, vector<1x128x128xbf16>
    %51 = vector.shape_cast %50 : vector<1x128x128xbf16> to vector<128x128xbf16>
    %c1_50 = arith.constant 1 : index
    %c0_51 = arith.constant 0 : index
    %c8_52 = arith.constant 8 : index
    %c0_53 = arith.constant 0 : index
    %52 = vector.load %arg1[%c1_50, %c0_51, %c8_52, %c0_53] : memref<3x2x80x128xf32, #tpu.memory_space<vmem>>, vector<1x1x64x128xf32>
    %53 = vector.shape_cast %52 : vector<1x1x64x128xf32> to vector<64x128xf32>
    %54 = arith.truncf %53 : vector<64x128xf32> to vector<64x128xbf16>
    %cst_54 = arith.constant dense<0.000000e+00> : vector<64x128xf32>
    %55 = tpu.matmul %54, %51, %cst_54 {dimension_numbers = #tpu.dot_dimension_numbers<[1], [0], [0], [1], [0, 0, 1, 1], [], []>} : vector<64x128xbf16>, vector<128x128xbf16>, vector<64x128xf32> -> vector<64x128xf32>
    %56 = arith.addf %44, %55 : vector<64x128xf32>
    %c1_55 = arith.constant 1 : index
    %c1_56 = arith.constant 1 : index
    %c8_57 = arith.constant 8 : index
    %c0_58 = arith.constant 0 : index
    %57 = vector.load %arg1[%c1_55, %c1_56, %c8_57, %c0_58] : memref<3x2x80x128xf32, #tpu.memory_space<vmem>>, vector<1x1x64x128xf32>
    %58 = vector.shape_cast %57 : vector<1x1x64x128xf32> to vector<64x128xf32>
    %59 = arith.truncf %58 : vector<64x128xf32> to vector<64x128xbf16>
    %cst_59 = arith.constant dense<0.000000e+00> : vector<64x128xf32>
    %60 = tpu.matmul %59, %51, %cst_59 {dimension_numbers = #tpu.dot_dimension_numbers<[1], [0], [0], [1], [0, 0, 1, 1], [], []>} : vector<64x128xbf16>, vector<128x128xbf16>, vector<64x128xf32> -> vector<64x128xf32>
    %61 = arith.addf %49, %60 : vector<64x128xf32>
    %c5 = arith.constant 5 : index
    %c0_60 = arith.constant 0 : index
    %c0_61 = arith.constant 0 : index
    %62 = vector.load %arg2[%c5, %c0_60, %c0_61] : memref<9x128x128xbf16, #tpu.memory_space<vmem>>, vector<1x128x128xbf16>
    %63 = vector.shape_cast %62 : vector<1x128x128xbf16> to vector<128x128xbf16>
    %c2_62 = arith.constant 2 : index
    %c0_63 = arith.constant 0 : index
    %c8_64 = arith.constant 8 : index
    %c0_65 = arith.constant 0 : index
    %64 = vector.load %arg1[%c2_62, %c0_63, %c8_64, %c0_65] : memref<3x2x80x128xf32, #tpu.memory_space<vmem>>, vector<1x1x64x128xf32>
    %65 = vector.shape_cast %64 : vector<1x1x64x128xf32> to vector<64x128xf32>
    %66 = arith.truncf %65 : vector<64x128xf32> to vector<64x128xbf16>
    %cst_66 = arith.constant dense<0.000000e+00> : vector<64x128xf32>
    %67 = tpu.matmul %66, %63, %cst_66 {dimension_numbers = #tpu.dot_dimension_numbers<[1], [0], [0], [1], [0, 0, 1, 1], [], []>} : vector<64x128xbf16>, vector<128x128xbf16>, vector<64x128xf32> -> vector<64x128xf32>
    %68 = arith.addf %56, %67 : vector<64x128xf32>
    %c2_67 = arith.constant 2 : index
    %c1_68 = arith.constant 1 : index
    %c8_69 = arith.constant 8 : index
    %c0_70 = arith.constant 0 : index
    %69 = vector.load %arg1[%c2_67, %c1_68, %c8_69, %c0_70] : memref<3x2x80x128xf32, #tpu.memory_space<vmem>>, vector<1x1x64x128xf32>
    %70 = vector.shape_cast %69 : vector<1x1x64x128xf32> to vector<64x128xf32>
    %71 = arith.truncf %70 : vector<64x128xf32> to vector<64x128xbf16>
    %cst_71 = arith.constant dense<0.000000e+00> : vector<64x128xf32>
    %72 = tpu.matmul %71, %63, %cst_71 {dimension_numbers = #tpu.dot_dimension_numbers<[1], [0], [0], [1], [0, 0, 1, 1], [], []>} : vector<64x128xbf16>, vector<128x128xbf16>, vector<64x128xf32> -> vector<64x128xf32>
    %73 = arith.addf %61, %72 : vector<64x128xf32>
    %c6 = arith.constant 6 : index
    %c0_72 = arith.constant 0 : index
    %c0_73 = arith.constant 0 : index
    %74 = vector.load %arg2[%c6, %c0_72, %c0_73] : memref<9x128x128xbf16, #tpu.memory_space<vmem>>, vector<1x128x128xbf16>
    %75 = vector.shape_cast %74 : vector<1x128x128xbf16> to vector<128x128xbf16>
    %c0_74 = arith.constant 0 : index
    %c0_75 = arith.constant 0 : index
    %c16 = arith.constant 16 : index
    %c0_76 = arith.constant 0 : index
    %76 = vector.load %arg1[%c0_74, %c0_75, %c16, %c0_76] : memref<3x2x80x128xf32, #tpu.memory_space<vmem>>, vector<1x1x64x128xf32>
    %77 = vector.shape_cast %76 : vector<1x1x64x128xf32> to vector<64x128xf32>
    %78 = arith.truncf %77 : vector<64x128xf32> to vector<64x128xbf16>
    %cst_77 = arith.constant dense<0.000000e+00> : vector<64x128xf32>
    %79 = tpu.matmul %78, %75, %cst_77 {dimension_numbers = #tpu.dot_dimension_numbers<[1], [0], [0], [1], [0, 0, 1, 1], [], []>} : vector<64x128xbf16>, vector<128x128xbf16>, vector<64x128xf32> -> vector<64x128xf32>
    %80 = arith.addf %68, %79 : vector<64x128xf32>
    %c0_78 = arith.constant 0 : index
    %c1_79 = arith.constant 1 : index
    %c16_80 = arith.constant 16 : index
    %c0_81 = arith.constant 0 : index
    %81 = vector.load %arg1[%c0_78, %c1_79, %c16_80, %c0_81] : memref<3x2x80x128xf32, #tpu.memory_space<vmem>>, vector<1x1x64x128xf32>
    %82 = vector.shape_cast %81 : vector<1x1x64x128xf32> to vector<64x128xf32>
    %83 = arith.truncf %82 : vector<64x128xf32> to vector<64x128xbf16>
    %cst_82 = arith.constant dense<0.000000e+00> : vector<64x128xf32>
    %84 = tpu.matmul %83, %75, %cst_82 {dimension_numbers = #tpu.dot_dimension_numbers<[1], [0], [0], [1], [0, 0, 1, 1], [], []>} : vector<64x128xbf16>, vector<128x128xbf16>, vector<64x128xf32> -> vector<64x128xf32>
    %85 = arith.addf %73, %84 : vector<64x128xf32>
    %c7 = arith.constant 7 : index
    %c0_83 = arith.constant 0 : index
    %c0_84 = arith.constant 0 : index
    %86 = vector.load %arg2[%c7, %c0_83, %c0_84] : memref<9x128x128xbf16, #tpu.memory_space<vmem>>, vector<1x128x128xbf16>
    %87 = vector.shape_cast %86 : vector<1x128x128xbf16> to vector<128x128xbf16>
    %c1_85 = arith.constant 1 : index
    %c0_86 = arith.constant 0 : index
    %c16_87 = arith.constant 16 : index
    %c0_88 = arith.constant 0 : index
    %88 = vector.load %arg1[%c1_85, %c0_86, %c16_87, %c0_88] : memref<3x2x80x128xf32, #tpu.memory_space<vmem>>, vector<1x1x64x128xf32>
    %89 = vector.shape_cast %88 : vector<1x1x64x128xf32> to vector<64x128xf32>
    %90 = arith.truncf %89 : vector<64x128xf32> to vector<64x128xbf16>
    %cst_89 = arith.constant dense<0.000000e+00> : vector<64x128xf32>
    %91 = tpu.matmul %90, %87, %cst_89 {dimension_numbers = #tpu.dot_dimension_numbers<[1], [0], [0], [1], [0, 0, 1, 1], [], []>} : vector<64x128xbf16>, vector<128x128xbf16>, vector<64x128xf32> -> vector<64x128xf32>
    %92 = arith.addf %80, %91 : vector<64x128xf32>
    %c1_90 = arith.constant 1 : index
    %c1_91 = arith.constant 1 : index
    %c16_92 = arith.constant 16 : index
    %c0_93 = arith.constant 0 : index
    %93 = vector.load %arg1[%c1_90, %c1_91, %c16_92, %c0_93] : memref<3x2x80x128xf32, #tpu.memory_space<vmem>>, vector<1x1x64x128xf32>
    %94 = vector.shape_cast %93 : vector<1x1x64x128xf32> to vector<64x128xf32>
    %95 = arith.truncf %94 : vector<64x128xf32> to vector<64x128xbf16>
    %cst_94 = arith.constant dense<0.000000e+00> : vector<64x128xf32>
    %96 = tpu.matmul %95, %87, %cst_94 {dimension_numbers = #tpu.dot_dimension_numbers<[1], [0], [0], [1], [0, 0, 1, 1], [], []>} : vector<64x128xbf16>, vector<128x128xbf16>, vector<64x128xf32> -> vector<64x128xf32>
    %97 = arith.addf %85, %96 : vector<64x128xf32>
    %c8_95 = arith.constant 8 : index
    %c0_96 = arith.constant 0 : index
    %c0_97 = arith.constant 0 : index
    %98 = vector.load %arg2[%c8_95, %c0_96, %c0_97] : memref<9x128x128xbf16, #tpu.memory_space<vmem>>, vector<1x128x128xbf16>
    %99 = vector.shape_cast %98 : vector<1x128x128xbf16> to vector<128x128xbf16>
    %c2_98 = arith.constant 2 : index
    %c0_99 = arith.constant 0 : index
    %c16_100 = arith.constant 16 : index
    %c0_101 = arith.constant 0 : index
    %100 = vector.load %arg1[%c2_98, %c0_99, %c16_100, %c0_101] : memref<3x2x80x128xf32, #tpu.memory_space<vmem>>, vector<1x1x64x128xf32>
    %101 = vector.shape_cast %100 : vector<1x1x64x128xf32> to vector<64x128xf32>
    %102 = arith.truncf %101 : vector<64x128xf32> to vector<64x128xbf16>
    %cst_102 = arith.constant dense<0.000000e+00> : vector<64x128xf32>
    %103 = tpu.matmul %102, %99, %cst_102 {dimension_numbers = #tpu.dot_dimension_numbers<[1], [0], [0], [1], [0, 0, 1, 1], [], []>} : vector<64x128xbf16>, vector<128x128xbf16>, vector<64x128xf32> -> vector<64x128xf32>
    %104 = arith.addf %92, %103 : vector<64x128xf32>
    %c2_103 = arith.constant 2 : index
    %c1_104 = arith.constant 1 : index
    %c16_105 = arith.constant 16 : index
    %c0_106 = arith.constant 0 : index
    %105 = vector.load %arg1[%c2_103, %c1_104, %c16_105, %c0_106] : memref<3x2x80x128xf32, #tpu.memory_space<vmem>>, vector<1x1x64x128xf32>
    %106 = vector.shape_cast %105 : vector<1x1x64x128xf32> to vector<64x128xf32>
    %107 = arith.truncf %106 : vector<64x128xf32> to vector<64x128xbf16>
    %cst_107 = arith.constant dense<0.000000e+00> : vector<64x128xf32>
    %108 = tpu.matmul %107, %99, %cst_107 {dimension_numbers = #tpu.dot_dimension_numbers<[1], [0], [0], [1], [0, 0, 1, 1], [], []>} : vector<64x128xbf16>, vector<128x128xbf16>, vector<64x128xf32> -> vector<64x128xf32>
    %109 = arith.addf %97, %108 : vector<64x128xf32>
    %cst_108 = arith.constant 0.000000e+00 : f32
    %110 = vector.broadcast %cst_108 : f32 to vector<1x128xf32>
    %cst_109 = arith.constant dense<0.000000e+00> : vector<128xf32>
    %111 = vector.multi_reduction <add>, %104, %cst_109 [0] : vector<64x128xf32> to vector<128xf32>
    %112 = vector.shape_cast %111 : vector<128xf32> to vector<1x128xf32>
    %113 = arith.addf %110, %112 : vector<1x128xf32>
    %cst_110 = arith.constant dense<0.000000e+00> : vector<128xf32>
    %114 = vector.multi_reduction <add>, %109, %cst_110 [0] : vector<64x128xf32> to vector<128xf32>
    %115 = vector.shape_cast %114 : vector<128xf32> to vector<1x128xf32>
    %116 = arith.addf %113, %115 : vector<1x128xf32>
    %cst_111 = arith.constant 7.812500e-03 : f32
    %117 = vector.broadcast %cst_111 : f32 to vector<1x128xf32>
    %118 = arith.mulf %116, %117 : vector<1x128xf32>
    %cst_112 = arith.constant 0.000000e+00 : f32
    %119 = vector.broadcast %cst_112 : f32 to vector<1x128xf32>
    %120 = vector.broadcast %118 : vector<1x128xf32> to vector<64x128xf32>
    %121 = arith.subf %104, %120 : vector<64x128xf32>
    %122 = arith.mulf %121, %121 : vector<64x128xf32>
    %cst_113 = arith.constant dense<0.000000e+00> : vector<128xf32>
    %123 = vector.multi_reduction <add>, %122, %cst_113 [0] : vector<64x128xf32> to vector<128xf32>
    %124 = vector.shape_cast %123 : vector<128xf32> to vector<1x128xf32>
    %125 = arith.addf %119, %124 : vector<1x128xf32>
    %126 = vector.broadcast %118 : vector<1x128xf32> to vector<64x128xf32>
    %127 = arith.subf %109, %126 : vector<64x128xf32>
    %128 = arith.mulf %127, %127 : vector<64x128xf32>
    %cst_114 = arith.constant dense<0.000000e+00> : vector<128xf32>
    %129 = vector.multi_reduction <add>, %128, %cst_114 [0] : vector<64x128xf32> to vector<128xf32>
    %130 = vector.shape_cast %129 : vector<128xf32> to vector<1x128xf32>
    %131 = arith.addf %125, %130 : vector<1x128xf32>
    %cst_115 = arith.constant 7.812500e-03 : f32
    %132 = vector.broadcast %cst_115 : f32 to vector<1x128xf32>
    %133 = arith.mulf %131, %132 : vector<1x128xf32>
    %cst_116 = arith.constant 9.99999974E-6 : f32
    %134 = vector.broadcast %cst_116 : f32 to vector<1x128xf32>
    %135 = arith.addf %133, %134 : vector<1x128xf32>
    %136 = math.rsqrt %135 : vector<1x128xf32>
    %c0_117 = arith.constant 0 : index
    %c0_118 = arith.constant 0 : index
    %137 = vector.load %arg3[%c0_117, %c0_118] : memref<1x128xf32, #tpu.memory_space<vmem>>, vector<1x128xf32>
    %138 = arith.mulf %137, %136 : vector<1x128xf32>
    %c0_119 = arith.constant 0 : index
    %c0_120 = arith.constant 0 : index
    %139 = vector.load %arg4[%c0_119, %c0_120] : memref<1x128xf32, #tpu.memory_space<vmem>>, vector<1x128xf32>
    %140 = arith.mulf %118, %138 : vector<1x128xf32>
    %141 = arith.subf %139, %140 : vector<1x128xf32>
    %c0_121 = arith.constant 0 : index
    %c0_122 = arith.constant 0 : index
    %142 = vector.load %arg5[%c0_121, %c0_122] : memref<2x128xf32, #tpu.memory_space<vmem>>, vector<2x128xf32>
    %143 = vector.extract_strided_slice %142 {offsets = [0, 0], sizes = [1, 128], strides = [1, 1]} : vector<2x128xf32> to vector<1x128xf32>
    %144 = arith.mulf %138, %143 : vector<1x128xf32>
    %145 = vector.broadcast %144 : vector<1x128xf32> to vector<64x128xf32>
    %146 = arith.mulf %104, %145 : vector<64x128xf32>
    %147 = arith.mulf %141, %143 : vector<1x128xf32>
    %148 = vector.broadcast %147 : vector<1x128xf32> to vector<64x128xf32>
    %149 = arith.addf %146, %148 : vector<64x128xf32>
    %cst_123 = arith.constant 0.000000e+00 : f32
    %150 = vector.broadcast %cst_123 : f32 to vector<64x128xf32>
    %151 = arith.maximumf %149, %150 : vector<64x128xf32>
    %c0_124 = arith.constant 0 : index
    %c0_125 = arith.constant 0 : index
    %c0_126 = arith.constant 0 : index
    %152 = vector.load %arg6[%c0_124, %c0_125, %c0_126] : memref<2x64x128xf32, #tpu.memory_space<vmem>>, vector<1x64x128xf32>
    %153 = vector.shape_cast %152 : vector<1x64x128xf32> to vector<64x128xf32>
    %154 = vector.shape_cast %151 : vector<64x128xf32> to vector<1x64x128xf32>
    tpu.vector_store %arg6[%c0_124, %c0_125, %c0_126], %154 {strides = array<i32>} : memref<2x64x128xf32, #tpu.memory_space<vmem>>, vector<1x64x128xf32>,
    %155 = vector.extract_strided_slice %142 {offsets = [1, 0], sizes = [1, 128], strides = [1, 1]} : vector<2x128xf32> to vector<1x128xf32>
    %156 = arith.mulf %138, %155 : vector<1x128xf32>
    %157 = vector.broadcast %156 : vector<1x128xf32> to vector<64x128xf32>
    %158 = arith.mulf %109, %157 : vector<64x128xf32>
    %159 = arith.mulf %141, %155 : vector<1x128xf32>
    %160 = vector.broadcast %159 : vector<1x128xf32> to vector<64x128xf32>
    %161 = arith.addf %158, %160 : vector<64x128xf32>
    %cst_127 = arith.constant 0.000000e+00 : f32
    %162 = vector.broadcast %cst_127 : f32 to vector<64x128xf32>
    %163 = arith.maximumf %161, %162 : vector<64x128xf32>
    %c1_128 = arith.constant 1 : index
    %c0_129 = arith.constant 0 : index
    %c0_130 = arith.constant 0 : index
    %164 = vector.load %arg6[%c1_128, %c0_129, %c0_130] : memref<2x64x128xf32, #tpu.memory_space<vmem>>, vector<1x64x128xf32>
    %165 = vector.shape_cast %164 : vector<1x64x128xf32> to vector<64x128xf32>
    %166 = vector.shape_cast %163 : vector<64x128xf32> to vector<1x64x128xf32>
    tpu.vector_store %arg6[%c1_128, %c0_129, %c0_130], %166 {strides = array<i32>} : memref<2x64x128xf32, #tpu.memory_space<vmem>>, vector<1x64x128xf32>,
    return
  }
  func.func @transform_0(%arg0: i32) -> (i32, i32, i32, i32) {
    %c0_i32 = arith.constant 0 : i32
    %c0_i32_0 = arith.constant 0 : i32
    %c0_i32_1 = arith.constant 0 : i32
    %c0_i32_2 = arith.constant 0 : i32
    %c0_i32_3 = arith.constant 0 : i32
    return %c0_i32, %c0_i32_0, %c0_i32_1, %c0_i32_2 : i32, i32, i32, i32
  }
  func.func @transform_1(%arg0: i32) -> (i32, i32, i32) {
    %c0_i32 = arith.constant 0 : i32
    %c0_i32_0 = arith.constant 0 : i32
    %c0_i32_1 = arith.constant 0 : i32
    return %c0_i32, %c0_i32_0, %arg0 : i32, i32, i32
  }
  func.func @transform_2(%arg0: i32) -> (i32, i32) {
    %c0_i32 = arith.constant 0 : i32
    %c0_i32_0 = arith.constant 0 : i32
    return %c0_i32, %arg0 : i32, i32
  }
  func.func @transform_3(%arg0: i32) -> (i32, i32) {
    %c0_i32 = arith.constant 0 : i32
    %c0_i32_0 = arith.constant 0 : i32
    return %c0_i32, %arg0 : i32, i32
  }
  func.func @transform_4(%arg0: i32) -> (i32, i32) {
    %c0_i32 = arith.constant 0 : i32
    %c0_i32_0 = arith.constant 0 : i32
    return %c0_i32, %arg0 : i32, i32
  }
  func.func @transform_5(%arg0: i32) -> (i32, i32, i32) {
    %c0_i32 = arith.constant 0 : i32
    %c0_i32_0 = arith.constant 0 : i32
    %c0_i32_1 = arith.constant 0 : i32
    return %c0_i32, %c0_i32_0, %arg0 : i32, i32, i32
  }
}

module attributes {stable_mosaic.version = 11 : i64} {
  func.func @_conv_block_kernel(%arg0: i32, %arg1: memref<3x2x80x256xf32, #tpu.memory_space<vmem>>, %arg2: memref<9x256x128xbf16, #tpu.memory_space<vmem>>, %arg3: memref<1x128xf32, #tpu.memory_space<vmem>>, %arg4: memref<1x128xf32, #tpu.memory_space<vmem>>, %arg5: memref<2x128xf32, #tpu.memory_space<vmem>>, %arg6: memref<2x64x128xf32, #tpu.memory_space<vmem>>) attributes {dimension_semantics = [#tpu.dimension_semantics<parallel>], iteration_bounds = array<i64: 2>, scalar_prefetch = 0 : i64, scratch_operands = 0 : i64, tpu.core_type = #tpu.core_type<tc>, window_params = [{pipeline_mode = #tpu.pipeline_mode<synchronous>, transform_indices = @transform_0, window_bounds = array<i64: 3, 2, 80, 256>}, {transform_indices = @transform_1, window_bounds = array<i64: 9, 256, 128>}, {transform_indices = @transform_2, window_bounds = array<i64: 1, 128>}, {transform_indices = @transform_3, window_bounds = array<i64: 1, 128>}, {transform_indices = @transform_4, window_bounds = array<i64: 2, 128>}, {transform_indices = @transform_5, window_bounds = array<i64: 2, 64, 128>}]} {
    %cst = arith.constant 0.000000e+00 : f32
    %0 = vector.broadcast %cst : f32 to vector<64x128xf32>
    %cst_0 = arith.constant 0.000000e+00 : f32
    %1 = vector.broadcast %cst_0 : f32 to vector<64x128xf32>
    %c0 = arith.constant 0 : index
    %c0_1 = arith.constant 0 : index
    %c0_2 = arith.constant 0 : index
    %2 = vector.load %arg2[%c0, %c0_1, %c0_2] : memref<9x256x128xbf16, #tpu.memory_space<vmem>>, vector<1x256x128xbf16>
    %3 = vector.shape_cast %2 : vector<1x256x128xbf16> to vector<256x128xbf16>
    %c0_3 = arith.constant 0 : index
    %c0_4 = arith.constant 0 : index
    %c0_5 = arith.constant 0 : index
    %c0_6 = arith.constant 0 : index
    %4 = vector.load %arg1[%c0_3, %c0_4, %c0_5, %c0_6] : memref<3x2x80x256xf32, #tpu.memory_space<vmem>>, vector<1x1x64x256xf32>
    %5 = vector.shape_cast %4 : vector<1x1x64x256xf32> to vector<64x256xf32>
    %6 = arith.truncf %5 : vector<64x256xf32> to vector<64x256xbf16>
    %cst_7 = arith.constant dense<0.000000e+00> : vector<64x128xf32>
    %7 = tpu.matmul %6, %3, %cst_7 {dimension_numbers = #tpu.dot_dimension_numbers<[1], [0], [0], [1], [0, 0, 1, 1], [], []>} : vector<64x256xbf16>, vector<256x128xbf16>, vector<64x128xf32> -> vector<64x128xf32>
    %8 = arith.addf %0, %7 : vector<64x128xf32>
    %c0_8 = arith.constant 0 : index
    %c1 = arith.constant 1 : index
    %c0_9 = arith.constant 0 : index
    %c0_10 = arith.constant 0 : index
    %9 = vector.load %arg1[%c0_8, %c1, %c0_9, %c0_10] : memref<3x2x80x256xf32, #tpu.memory_space<vmem>>, vector<1x1x64x256xf32>
    %10 = vector.shape_cast %9 : vector<1x1x64x256xf32> to vector<64x256xf32>
    %11 = arith.truncf %10 : vector<64x256xf32> to vector<64x256xbf16>
    %cst_11 = arith.constant dense<0.000000e+00> : vector<64x128xf32>
    %12 = tpu.matmul %11, %3, %cst_11 {dimension_numbers = #tpu.dot_dimension_numbers<[1], [0], [0], [1], [0, 0, 1, 1], [], []>} : vector<64x256xbf16>, vector<256x128xbf16>, vector<64x128xf32> -> vector<64x128xf32>
    %13 = arith.addf %1, %12 : vector<64x128xf32>
    %c1_12 = arith.constant 1 : index
    %c0_13 = arith.constant 0 : index
    %c0_14 = arith.constant 0 : index
    %14 = vector.load %arg2[%c1_12, %c0_13, %c0_14] : memref<9x256x128xbf16, #tpu.memory_space<vmem>>, vector<1x256x128xbf16>
    %15 = vector.shape_cast %14 : vector<1x256x128xbf16> to vector<256x128xbf16>
    %c1_15 = arith.constant 1 : index
    %c0_16 = arith.constant 0 : index
    %c0_17 = arith.constant 0 : index
    %c0_18 = arith.constant 0 : index
    %16 = vector.load %arg1[%c1_15, %c0_16, %c0_17, %c0_18] : memref<3x2x80x256xf32, #tpu.memory_space<vmem>>, vector<1x1x64x256xf32>
    %17 = vector.shape_cast %16 : vector<1x1x64x256xf32> to vector<64x256xf32>
    %18 = arith.truncf %17 : vector<64x256xf32> to vector<64x256xbf16>
    %cst_19 = arith.constant dense<0.000000e+00> : vector<64x128xf32>
    %19 = tpu.matmul %18, %15, %cst_19 {dimension_numbers = #tpu.dot_dimension_numbers<[1], [0], [0], [1], [0, 0, 1, 1], [], []>} : vector<64x256xbf16>, vector<256x128xbf16>, vector<64x128xf32> -> vector<64x128xf32>
    %20 = arith.addf %8, %19 : vector<64x128xf32>
    %c1_20 = arith.constant 1 : index
    %c1_21 = arith.constant 1 : index
    %c0_22 = arith.constant 0 : index
    %c0_23 = arith.constant 0 : index
    %21 = vector.load %arg1[%c1_20, %c1_21, %c0_22, %c0_23] : memref<3x2x80x256xf32, #tpu.memory_space<vmem>>, vector<1x1x64x256xf32>
    %22 = vector.shape_cast %21 : vector<1x1x64x256xf32> to vector<64x256xf32>
    %23 = arith.truncf %22 : vector<64x256xf32> to vector<64x256xbf16>
    %cst_24 = arith.constant dense<0.000000e+00> : vector<64x128xf32>
    %24 = tpu.matmul %23, %15, %cst_24 {dimension_numbers = #tpu.dot_dimension_numbers<[1], [0], [0], [1], [0, 0, 1, 1], [], []>} : vector<64x256xbf16>, vector<256x128xbf16>, vector<64x128xf32> -> vector<64x128xf32>
    %25 = arith.addf %13, %24 : vector<64x128xf32>
    %c2 = arith.constant 2 : index
    %c0_25 = arith.constant 0 : index
    %c0_26 = arith.constant 0 : index
    %26 = vector.load %arg2[%c2, %c0_25, %c0_26] : memref<9x256x128xbf16, #tpu.memory_space<vmem>>, vector<1x256x128xbf16>
    %27 = vector.shape_cast %26 : vector<1x256x128xbf16> to vector<256x128xbf16>
    %c2_27 = arith.constant 2 : index
    %c0_28 = arith.constant 0 : index
    %c0_29 = arith.constant 0 : index
    %c0_30 = arith.constant 0 : index
    %28 = vector.load %arg1[%c2_27, %c0_28, %c0_29, %c0_30] : memref<3x2x80x256xf32, #tpu.memory_space<vmem>>, vector<1x1x64x256xf32>
    %29 = vector.shape_cast %28 : vector<1x1x64x256xf32> to vector<64x256xf32>
    %30 = arith.truncf %29 : vector<64x256xf32> to vector<64x256xbf16>
    %cst_31 = arith.constant dense<0.000000e+00> : vector<64x128xf32>
    %31 = tpu.matmul %30, %27, %cst_31 {dimension_numbers = #tpu.dot_dimension_numbers<[1], [0], [0], [1], [0, 0, 1, 1], [], []>} : vector<64x256xbf16>, vector<256x128xbf16>, vector<64x128xf32> -> vector<64x128xf32>
    %32 = arith.addf %20, %31 : vector<64x128xf32>
    %c2_32 = arith.constant 2 : index
    %c1_33 = arith.constant 1 : index
    %c0_34 = arith.constant 0 : index
    %c0_35 = arith.constant 0 : index
    %33 = vector.load %arg1[%c2_32, %c1_33, %c0_34, %c0_35] : memref<3x2x80x256xf32, #tpu.memory_space<vmem>>, vector<1x1x64x256xf32>
    %34 = vector.shape_cast %33 : vector<1x1x64x256xf32> to vector<64x256xf32>
    %35 = arith.truncf %34 : vector<64x256xf32> to vector<64x256xbf16>
    %cst_36 = arith.constant dense<0.000000e+00> : vector<64x128xf32>
    %36 = tpu.matmul %35, %27, %cst_36 {dimension_numbers = #tpu.dot_dimension_numbers<[1], [0], [0], [1], [0, 0, 1, 1], [], []>} : vector<64x256xbf16>, vector<256x128xbf16>, vector<64x128xf32> -> vector<64x128xf32>
    %37 = arith.addf %25, %36 : vector<64x128xf32>
    %c3 = arith.constant 3 : index
    %c0_37 = arith.constant 0 : index
    %c0_38 = arith.constant 0 : index
    %38 = vector.load %arg2[%c3, %c0_37, %c0_38] : memref<9x256x128xbf16, #tpu.memory_space<vmem>>, vector<1x256x128xbf16>
    %39 = vector.shape_cast %38 : vector<1x256x128xbf16> to vector<256x128xbf16>
    %c0_39 = arith.constant 0 : index
    %c0_40 = arith.constant 0 : index
    %c8 = arith.constant 8 : index
    %c0_41 = arith.constant 0 : index
    %40 = vector.load %arg1[%c0_39, %c0_40, %c8, %c0_41] : memref<3x2x80x256xf32, #tpu.memory_space<vmem>>, vector<1x1x64x256xf32>
    %41 = vector.shape_cast %40 : vector<1x1x64x256xf32> to vector<64x256xf32>
    %42 = arith.truncf %41 : vector<64x256xf32> to vector<64x256xbf16>
    %cst_42 = arith.constant dense<0.000000e+00> : vector<64x128xf32>
    %43 = tpu.matmul %42, %39, %cst_42 {dimension_numbers = #tpu.dot_dimension_numbers<[1], [0], [0], [1], [0, 0, 1, 1], [], []>} : vector<64x256xbf16>, vector<256x128xbf16>, vector<64x128xf32> -> vector<64x128xf32>
    %44 = arith.addf %32, %43 : vector<64x128xf32>
    %c0_43 = arith.constant 0 : index
    %c1_44 = arith.constant 1 : index
    %c8_45 = arith.constant 8 : index
    %c0_46 = arith.constant 0 : index
    %45 = vector.load %arg1[%c0_43, %c1_44, %c8_45, %c0_46] : memref<3x2x80x256xf32, #tpu.memory_space<vmem>>, vector<1x1x64x256xf32>
    %46 = vector.shape_cast %45 : vector<1x1x64x256xf32> to vector<64x256xf32>
    %47 = arith.truncf %46 : vector<64x256xf32> to vector<64x256xbf16>
    %cst_47 = arith.constant dense<0.000000e+00> : vector<64x128xf32>
    %48 = tpu.matmul %47, %39, %cst_47 {dimension_numbers = #tpu.dot_dimension_numbers<[1], [0], [0], [1], [0, 0, 1, 1], [], []>} : vector<64x256xbf16>, vector<256x128xbf16>, vector<64x128xf32> -> vector<64x128xf32>
    %49 = arith.addf %37, %48 : vector<64x128xf32>
    %c4 = arith.constant 4 : index
    %c0_48 = arith.constant 0 : index
    %c0_49 = arith.constant 0 : index
    %50 = vector.load %arg2[%c4, %c0_48, %c0_49] : memref<9x256x128xbf16, #tpu.memory_space<vmem>>, vector<1x256x128xbf16>
    %51 = vector.shape_cast %50 : vector<1x256x128xbf16> to vector<256x128xbf16>
    %c1_50 = arith.constant 1 : index
    %c0_51 = arith.constant 0 : index
    %c8_52 = arith.constant 8 : index
    %c0_53 = arith.constant 0 : index
    %52 = vector.load %arg1[%c1_50, %c0_51, %c8_52, %c0_53] : memref<3x2x80x256xf32, #tpu.memory_space<vmem>>, vector<1x1x64x256xf32>
    %53 = vector.shape_cast %52 : vector<1x1x64x256xf32> to vector<64x256xf32>
    %54 = arith.truncf %53 : vector<64x256xf32> to vector<64x256xbf16>
    %cst_54 = arith.constant dense<0.000000e+00> : vector<64x128xf32>
    %55 = tpu.matmul %54, %51, %cst_54 {dimension_numbers = #tpu.dot_dimension_numbers<[1], [0], [0], [1], [0, 0, 1, 1], [], []>} : vector<64x256xbf16>, vector<256x128xbf16>, vector<64x128xf32> -> vector<64x128xf32>
    %56 = arith.addf %44, %55 : vector<64x128xf32>
    %c1_55 = arith.constant 1 : index
    %c1_56 = arith.constant 1 : index
    %c8_57 = arith.constant 8 : index
    %c0_58 = arith.constant 0 : index
    %57 = vector.load %arg1[%c1_55, %c1_56, %c8_57, %c0_58] : memref<3x2x80x256xf32, #tpu.memory_space<vmem>>, vector<1x1x64x256xf32>
    %58 = vector.shape_cast %57 : vector<1x1x64x256xf32> to vector<64x256xf32>
    %59 = arith.truncf %58 : vector<64x256xf32> to vector<64x256xbf16>
    %cst_59 = arith.constant dense<0.000000e+00> : vector<64x128xf32>
    %60 = tpu.matmul %59, %51, %cst_59 {dimension_numbers = #tpu.dot_dimension_numbers<[1], [0], [0], [1], [0, 0, 1, 1], [], []>} : vector<64x256xbf16>, vector<256x128xbf16>, vector<64x128xf32> -> vector<64x128xf32>
    %61 = arith.addf %49, %60 : vector<64x128xf32>
    %c5 = arith.constant 5 : index
    %c0_60 = arith.constant 0 : index
    %c0_61 = arith.constant 0 : index
    %62 = vector.load %arg2[%c5, %c0_60, %c0_61] : memref<9x256x128xbf16, #tpu.memory_space<vmem>>, vector<1x256x128xbf16>
    %63 = vector.shape_cast %62 : vector<1x256x128xbf16> to vector<256x128xbf16>
    %c2_62 = arith.constant 2 : index
    %c0_63 = arith.constant 0 : index
    %c8_64 = arith.constant 8 : index
    %c0_65 = arith.constant 0 : index
    %64 = vector.load %arg1[%c2_62, %c0_63, %c8_64, %c0_65] : memref<3x2x80x256xf32, #tpu.memory_space<vmem>>, vector<1x1x64x256xf32>
    %65 = vector.shape_cast %64 : vector<1x1x64x256xf32> to vector<64x256xf32>
    %66 = arith.truncf %65 : vector<64x256xf32> to vector<64x256xbf16>
    %cst_66 = arith.constant dense<0.000000e+00> : vector<64x128xf32>
    %67 = tpu.matmul %66, %63, %cst_66 {dimension_numbers = #tpu.dot_dimension_numbers<[1], [0], [0], [1], [0, 0, 1, 1], [], []>} : vector<64x256xbf16>, vector<256x128xbf16>, vector<64x128xf32> -> vector<64x128xf32>
    %68 = arith.addf %56, %67 : vector<64x128xf32>
    %c2_67 = arith.constant 2 : index
    %c1_68 = arith.constant 1 : index
    %c8_69 = arith.constant 8 : index
    %c0_70 = arith.constant 0 : index
    %69 = vector.load %arg1[%c2_67, %c1_68, %c8_69, %c0_70] : memref<3x2x80x256xf32, #tpu.memory_space<vmem>>, vector<1x1x64x256xf32>
    %70 = vector.shape_cast %69 : vector<1x1x64x256xf32> to vector<64x256xf32>
    %71 = arith.truncf %70 : vector<64x256xf32> to vector<64x256xbf16>
    %cst_71 = arith.constant dense<0.000000e+00> : vector<64x128xf32>
    %72 = tpu.matmul %71, %63, %cst_71 {dimension_numbers = #tpu.dot_dimension_numbers<[1], [0], [0], [1], [0, 0, 1, 1], [], []>} : vector<64x256xbf16>, vector<256x128xbf16>, vector<64x128xf32> -> vector<64x128xf32>
    %73 = arith.addf %61, %72 : vector<64x128xf32>
    %c6 = arith.constant 6 : index
    %c0_72 = arith.constant 0 : index
    %c0_73 = arith.constant 0 : index
    %74 = vector.load %arg2[%c6, %c0_72, %c0_73] : memref<9x256x128xbf16, #tpu.memory_space<vmem>>, vector<1x256x128xbf16>
    %75 = vector.shape_cast %74 : vector<1x256x128xbf16> to vector<256x128xbf16>
    %c0_74 = arith.constant 0 : index
    %c0_75 = arith.constant 0 : index
    %c16 = arith.constant 16 : index
    %c0_76 = arith.constant 0 : index
    %76 = vector.load %arg1[%c0_74, %c0_75, %c16, %c0_76] : memref<3x2x80x256xf32, #tpu.memory_space<vmem>>, vector<1x1x64x256xf32>
    %77 = vector.shape_cast %76 : vector<1x1x64x256xf32> to vector<64x256xf32>
    %78 = arith.truncf %77 : vector<64x256xf32> to vector<64x256xbf16>
    %cst_77 = arith.constant dense<0.000000e+00> : vector<64x128xf32>
    %79 = tpu.matmul %78, %75, %cst_77 {dimension_numbers = #tpu.dot_dimension_numbers<[1], [0], [0], [1], [0, 0, 1, 1], [], []>} : vector<64x256xbf16>, vector<256x128xbf16>, vector<64x128xf32> -> vector<64x128xf32>
    %80 = arith.addf %68, %79 : vector<64x128xf32>
    %c0_78 = arith.constant 0 : index
    %c1_79 = arith.constant 1 : index
    %c16_80 = arith.constant 16 : index
    %c0_81 = arith.constant 0 : index
    %81 = vector.load %arg1[%c0_78, %c1_79, %c16_80, %c0_81] : memref<3x2x80x256xf32, #tpu.memory_space<vmem>>, vector<1x1x64x256xf32>
    %82 = vector.shape_cast %81 : vector<1x1x64x256xf32> to vector<64x256xf32>
    %83 = arith.truncf %82 : vector<64x256xf32> to vector<64x256xbf16>
    %cst_82 = arith.constant dense<0.000000e+00> : vector<64x128xf32>
    %84 = tpu.matmul %83, %75, %cst_82 {dimension_numbers = #tpu.dot_dimension_numbers<[1], [0], [0], [1], [0, 0, 1, 1], [], []>} : vector<64x256xbf16>, vector<256x128xbf16>, vector<64x128xf32> -> vector<64x128xf32>
    %85 = arith.addf %73, %84 : vector<64x128xf32>
    %c7 = arith.constant 7 : index
    %c0_83 = arith.constant 0 : index
    %c0_84 = arith.constant 0 : index
    %86 = vector.load %arg2[%c7, %c0_83, %c0_84] : memref<9x256x128xbf16, #tpu.memory_space<vmem>>, vector<1x256x128xbf16>
    %87 = vector.shape_cast %86 : vector<1x256x128xbf16> to vector<256x128xbf16>
    %c1_85 = arith.constant 1 : index
    %c0_86 = arith.constant 0 : index
    %c16_87 = arith.constant 16 : index
    %c0_88 = arith.constant 0 : index
    %88 = vector.load %arg1[%c1_85, %c0_86, %c16_87, %c0_88] : memref<3x2x80x256xf32, #tpu.memory_space<vmem>>, vector<1x1x64x256xf32>
    %89 = vector.shape_cast %88 : vector<1x1x64x256xf32> to vector<64x256xf32>
    %90 = arith.truncf %89 : vector<64x256xf32> to vector<64x256xbf16>
    %cst_89 = arith.constant dense<0.000000e+00> : vector<64x128xf32>
    %91 = tpu.matmul %90, %87, %cst_89 {dimension_numbers = #tpu.dot_dimension_numbers<[1], [0], [0], [1], [0, 0, 1, 1], [], []>} : vector<64x256xbf16>, vector<256x128xbf16>, vector<64x128xf32> -> vector<64x128xf32>
    %92 = arith.addf %80, %91 : vector<64x128xf32>
    %c1_90 = arith.constant 1 : index
    %c1_91 = arith.constant 1 : index
    %c16_92 = arith.constant 16 : index
    %c0_93 = arith.constant 0 : index
    %93 = vector.load %arg1[%c1_90, %c1_91, %c16_92, %c0_93] : memref<3x2x80x256xf32, #tpu.memory_space<vmem>>, vector<1x1x64x256xf32>
    %94 = vector.shape_cast %93 : vector<1x1x64x256xf32> to vector<64x256xf32>
    %95 = arith.truncf %94 : vector<64x256xf32> to vector<64x256xbf16>
    %cst_94 = arith.constant dense<0.000000e+00> : vector<64x128xf32>
    %96 = tpu.matmul %95, %87, %cst_94 {dimension_numbers = #tpu.dot_dimension_numbers<[1], [0], [0], [1], [0, 0, 1, 1], [], []>} : vector<64x256xbf16>, vector<256x128xbf16>, vector<64x128xf32> -> vector<64x128xf32>
    %97 = arith.addf %85, %96 : vector<64x128xf32>
    %c8_95 = arith.constant 8 : index
    %c0_96 = arith.constant 0 : index
    %c0_97 = arith.constant 0 : index
    %98 = vector.load %arg2[%c8_95, %c0_96, %c0_97] : memref<9x256x128xbf16, #tpu.memory_space<vmem>>, vector<1x256x128xbf16>
    %99 = vector.shape_cast %98 : vector<1x256x128xbf16> to vector<256x128xbf16>
    %c2_98 = arith.constant 2 : index
    %c0_99 = arith.constant 0 : index
    %c16_100 = arith.constant 16 : index
    %c0_101 = arith.constant 0 : index
    %100 = vector.load %arg1[%c2_98, %c0_99, %c16_100, %c0_101] : memref<3x2x80x256xf32, #tpu.memory_space<vmem>>, vector<1x1x64x256xf32>
    %101 = vector.shape_cast %100 : vector<1x1x64x256xf32> to vector<64x256xf32>
    %102 = arith.truncf %101 : vector<64x256xf32> to vector<64x256xbf16>
    %cst_102 = arith.constant dense<0.000000e+00> : vector<64x128xf32>
    %103 = tpu.matmul %102, %99, %cst_102 {dimension_numbers = #tpu.dot_dimension_numbers<[1], [0], [0], [1], [0, 0, 1, 1], [], []>} : vector<64x256xbf16>, vector<256x128xbf16>, vector<64x128xf32> -> vector<64x128xf32>
    %104 = arith.addf %92, %103 : vector<64x128xf32>
    %c2_103 = arith.constant 2 : index
    %c1_104 = arith.constant 1 : index
    %c16_105 = arith.constant 16 : index
    %c0_106 = arith.constant 0 : index
    %105 = vector.load %arg1[%c2_103, %c1_104, %c16_105, %c0_106] : memref<3x2x80x256xf32, #tpu.memory_space<vmem>>, vector<1x1x64x256xf32>
    %106 = vector.shape_cast %105 : vector<1x1x64x256xf32> to vector<64x256xf32>
    %107 = arith.truncf %106 : vector<64x256xf32> to vector<64x256xbf16>
    %cst_107 = arith.constant dense<0.000000e+00> : vector<64x128xf32>
    %108 = tpu.matmul %107, %99, %cst_107 {dimension_numbers = #tpu.dot_dimension_numbers<[1], [0], [0], [1], [0, 0, 1, 1], [], []>} : vector<64x256xbf16>, vector<256x128xbf16>, vector<64x128xf32> -> vector<64x128xf32>
    %109 = arith.addf %97, %108 : vector<64x128xf32>
    %cst_108 = arith.constant 0.000000e+00 : f32
    %110 = vector.broadcast %cst_108 : f32 to vector<1x128xf32>
    %cst_109 = arith.constant dense<0.000000e+00> : vector<128xf32>
    %111 = vector.multi_reduction <add>, %104, %cst_109 [0] : vector<64x128xf32> to vector<128xf32>
    %112 = vector.shape_cast %111 : vector<128xf32> to vector<1x128xf32>
    %113 = arith.addf %110, %112 : vector<1x128xf32>
    %cst_110 = arith.constant dense<0.000000e+00> : vector<128xf32>
    %114 = vector.multi_reduction <add>, %109, %cst_110 [0] : vector<64x128xf32> to vector<128xf32>
    %115 = vector.shape_cast %114 : vector<128xf32> to vector<1x128xf32>
    %116 = arith.addf %113, %115 : vector<1x128xf32>
    %cst_111 = arith.constant 7.812500e-03 : f32
    %117 = vector.broadcast %cst_111 : f32 to vector<1x128xf32>
    %118 = arith.mulf %116, %117 : vector<1x128xf32>
    %cst_112 = arith.constant 0.000000e+00 : f32
    %119 = vector.broadcast %cst_112 : f32 to vector<1x128xf32>
    %120 = vector.broadcast %118 : vector<1x128xf32> to vector<64x128xf32>
    %121 = arith.subf %104, %120 : vector<64x128xf32>
    %122 = arith.mulf %121, %121 : vector<64x128xf32>
    %cst_113 = arith.constant dense<0.000000e+00> : vector<128xf32>
    %123 = vector.multi_reduction <add>, %122, %cst_113 [0] : vector<64x128xf32> to vector<128xf32>
    %124 = vector.shape_cast %123 : vector<128xf32> to vector<1x128xf32>
    %125 = arith.addf %119, %124 : vector<1x128xf32>
    %126 = vector.broadcast %118 : vector<1x128xf32> to vector<64x128xf32>
    %127 = arith.subf %109, %126 : vector<64x128xf32>
    %128 = arith.mulf %127, %127 : vector<64x128xf32>
    %cst_114 = arith.constant dense<0.000000e+00> : vector<128xf32>
    %129 = vector.multi_reduction <add>, %128, %cst_114 [0] : vector<64x128xf32> to vector<128xf32>
    %130 = vector.shape_cast %129 : vector<128xf32> to vector<1x128xf32>
    %131 = arith.addf %125, %130 : vector<1x128xf32>
    %cst_115 = arith.constant 7.812500e-03 : f32
    %132 = vector.broadcast %cst_115 : f32 to vector<1x128xf32>
    %133 = arith.mulf %131, %132 : vector<1x128xf32>
    %cst_116 = arith.constant 9.99999974E-6 : f32
    %134 = vector.broadcast %cst_116 : f32 to vector<1x128xf32>
    %135 = arith.addf %133, %134 : vector<1x128xf32>
    %136 = math.rsqrt %135 : vector<1x128xf32>
    %c0_117 = arith.constant 0 : index
    %c0_118 = arith.constant 0 : index
    %137 = vector.load %arg3[%c0_117, %c0_118] : memref<1x128xf32, #tpu.memory_space<vmem>>, vector<1x128xf32>
    %138 = arith.mulf %137, %136 : vector<1x128xf32>
    %c0_119 = arith.constant 0 : index
    %c0_120 = arith.constant 0 : index
    %139 = vector.load %arg4[%c0_119, %c0_120] : memref<1x128xf32, #tpu.memory_space<vmem>>, vector<1x128xf32>
    %140 = arith.mulf %118, %138 : vector<1x128xf32>
    %141 = arith.subf %139, %140 : vector<1x128xf32>
    %c0_121 = arith.constant 0 : index
    %c0_122 = arith.constant 0 : index
    %142 = vector.load %arg5[%c0_121, %c0_122] : memref<2x128xf32, #tpu.memory_space<vmem>>, vector<2x128xf32>
    %143 = vector.extract_strided_slice %142 {offsets = [0, 0], sizes = [1, 128], strides = [1, 1]} : vector<2x128xf32> to vector<1x128xf32>
    %144 = arith.mulf %138, %143 : vector<1x128xf32>
    %145 = vector.broadcast %144 : vector<1x128xf32> to vector<64x128xf32>
    %146 = arith.mulf %104, %145 : vector<64x128xf32>
    %147 = arith.mulf %141, %143 : vector<1x128xf32>
    %148 = vector.broadcast %147 : vector<1x128xf32> to vector<64x128xf32>
    %149 = arith.addf %146, %148 : vector<64x128xf32>
    %cst_123 = arith.constant 0.000000e+00 : f32
    %150 = vector.broadcast %cst_123 : f32 to vector<64x128xf32>
    %151 = arith.maximumf %149, %150 : vector<64x128xf32>
    %c0_124 = arith.constant 0 : index
    %c0_125 = arith.constant 0 : index
    %c0_126 = arith.constant 0 : index
    %152 = vector.load %arg6[%c0_124, %c0_125, %c0_126] : memref<2x64x128xf32, #tpu.memory_space<vmem>>, vector<1x64x128xf32>
    %153 = vector.shape_cast %152 : vector<1x64x128xf32> to vector<64x128xf32>
    %154 = vector.shape_cast %151 : vector<64x128xf32> to vector<1x64x128xf32>
    tpu.vector_store %arg6[%c0_124, %c0_125, %c0_126], %154 {strides = array<i32>} : memref<2x64x128xf32, #tpu.memory_space<vmem>>, vector<1x64x128xf32>,
    %155 = vector.extract_strided_slice %142 {offsets = [1, 0], sizes = [1, 128], strides = [1, 1]} : vector<2x128xf32> to vector<1x128xf32>
    %156 = arith.mulf %138, %155 : vector<1x128xf32>
    %157 = vector.broadcast %156 : vector<1x128xf32> to vector<64x128xf32>
    %158 = arith.mulf %109, %157 : vector<64x128xf32>
    %159 = arith.mulf %141, %155 : vector<1x128xf32>
    %160 = vector.broadcast %159 : vector<1x128xf32> to vector<64x128xf32>
    %161 = arith.addf %158, %160 : vector<64x128xf32>
    %cst_127 = arith.constant 0.000000e+00 : f32
    %162 = vector.broadcast %cst_127 : f32 to vector<64x128xf32>
    %163 = arith.maximumf %161, %162 : vector<64x128xf32>
    %c1_128 = arith.constant 1 : index
    %c0_129 = arith.constant 0 : index
    %c0_130 = arith.constant 0 : index
    %164 = vector.load %arg6[%c1_128, %c0_129, %c0_130] : memref<2x64x128xf32, #tpu.memory_space<vmem>>, vector<1x64x128xf32>
    %165 = vector.shape_cast %164 : vector<1x64x128xf32> to vector<64x128xf32>
    %166 = vector.shape_cast %163 : vector<64x128xf32> to vector<1x64x128xf32>
    tpu.vector_store %arg6[%c1_128, %c0_129, %c0_130], %166 {strides = array<i32>} : memref<2x64x128xf32, #tpu.memory_space<vmem>>, vector<1x64x128xf32>,
    return
  }
  func.func @transform_0(%arg0: i32) -> (i32, i32, i32, i32) {
    %c0_i32 = arith.constant 0 : i32
    %c0_i32_0 = arith.constant 0 : i32
    %c0_i32_1 = arith.constant 0 : i32
    %c0_i32_2 = arith.constant 0 : i32
    %c0_i32_3 = arith.constant 0 : i32
    return %c0_i32, %c0_i32_0, %c0_i32_1, %c0_i32_2 : i32, i32, i32, i32
  }
  func.func @transform_1(%arg0: i32) -> (i32, i32, i32) {
    %c0_i32 = arith.constant 0 : i32
    %c0_i32_0 = arith.constant 0 : i32
    %c0_i32_1 = arith.constant 0 : i32
    return %c0_i32, %c0_i32_0, %arg0 : i32, i32, i32
  }
  func.func @transform_2(%arg0: i32) -> (i32, i32) {
    %c0_i32 = arith.constant 0 : i32
    %c0_i32_0 = arith.constant 0 : i32
    return %c0_i32, %arg0 : i32, i32
  }
  func.func @transform_3(%arg0: i32) -> (i32, i32) {
    %c0_i32 = arith.constant 0 : i32
    %c0_i32_0 = arith.constant 0 : i32
    return %c0_i32, %arg0 : i32, i32
  }
  func.func @transform_4(%arg0: i32) -> (i32, i32) {
    %c0_i32 = arith.constant 0 : i32
    %c0_i32_0 = arith.constant 0 : i32
    return %c0_i32, %arg0 : i32, i32
  }
  func.func @transform_5(%arg0: i32) -> (i32, i32, i32) {
    %c0_i32 = arith.constant 0 : i32
    %c0_i32_0 = arith.constant 0 : i32
    %c0_i32_1 = arith.constant 0 : i32
    return %c0_i32, %c0_i32_0, %arg0 : i32, i32, i32
  }
}

module attributes {stable_mosaic.version = 11 : i64} {
  func.func @_deconv_block_kernel(%arg0: i32, %arg1: memref<128x256xbf16, #tpu.memory_space<vmem>>, %arg2: memref<256x512xbf16, #tpu.memory_space<vmem>>, %arg3: memref<1x128xf32, #tpu.memory_space<vmem>>, %arg4: memref<1x128xf32, #tpu.memory_space<vmem>>, %arg5: memref<2x128xf32, #tpu.memory_space<vmem>>, %arg6: memref<4x2x64x128xbf16, #tpu.memory_space<vmem>>, %arg7: memref<128x512xf32, #tpu.memory_space<vmem>>) attributes {dimension_semantics = [#tpu.dimension_semantics<parallel>], iteration_bounds = array<i64: 2>, scalar_prefetch = 0 : i64, scratch_operands = 1 : i64, tpu.core_type = #tpu.core_type<tc>, window_params = [{pipeline_mode = #tpu.pipeline_mode<synchronous>, transform_indices = @transform_0, window_bounds = array<i64: 128, 256>}, {transform_indices = @transform_1, window_bounds = array<i64: 256, 512>}, {transform_indices = @transform_2, window_bounds = array<i64: 1, 128>}, {transform_indices = @transform_3, window_bounds = array<i64: 1, 128>}, {transform_indices = @transform_4, window_bounds = array<i64: 2, 128>}, {transform_indices = @transform_5, window_bounds = array<i64: 4, 2, 64, 128>}]} {
    %c0 = arith.constant 0 : index
    %c0_0 = arith.constant 0 : index
    %0 = vector.load %arg1[%c0, %c0_0] : memref<128x256xbf16, #tpu.memory_space<vmem>>, vector<128x256xbf16>
    %c0_1 = arith.constant 0 : index
    %c0_2 = arith.constant 0 : index
    %1 = vector.load %arg2[%c0_1, %c0_2] : memref<256x512xbf16, #tpu.memory_space<vmem>>, vector<256x512xbf16>
    %cst = arith.constant dense<0.000000e+00> : vector<128x512xf32>
    %2 = tpu.matmul %0, %1, %cst {dimension_numbers = #tpu.dot_dimension_numbers<[1], [0], [0], [1], [0, 0, 1, 1], [], []>} : vector<128x256xbf16>, vector<256x512xbf16>, vector<128x512xf32> -> vector<128x512xf32>
    %c0_3 = arith.constant 0 : index
    %c0_4 = arith.constant 0 : index
    %3 = vector.load %arg7[%c0_3, %c0_4] : memref<128x512xf32, #tpu.memory_space<vmem>>, vector<128x512xf32>
    tpu.vector_store %arg7[%c0_3, %c0_4], %2 {strides = array<i32>} : memref<128x512xf32, #tpu.memory_space<vmem>>, vector<128x512xf32>,
    %cst_5 = arith.constant 0.000000e+00 : f32
    %4 = vector.broadcast %cst_5 : f32 to vector<1x128xf32>
    %c0_6 = arith.constant 0 : index
    %c0_7 = arith.constant 0 : index
    %5 = vector.load %arg7[%c0_6, %c0_7] : memref<128x512xf32, #tpu.memory_space<vmem>>, vector<128x128xf32>
    %cst_8 = arith.constant dense<0.000000e+00> : vector<128xf32>
    %6 = vector.multi_reduction <add>, %5, %cst_8 [0] : vector<128x128xf32> to vector<128xf32>
    %7 = vector.shape_cast %6 : vector<128xf32> to vector<1x128xf32>
    %8 = arith.addf %4, %7 : vector<1x128xf32>
    %c0_9 = arith.constant 0 : index
    %c128 = arith.constant 128 : index
    %9 = vector.load %arg7[%c0_9, %c128] : memref<128x512xf32, #tpu.memory_space<vmem>>, vector<128x128xf32>
    %cst_10 = arith.constant dense<0.000000e+00> : vector<128xf32>
    %10 = vector.multi_reduction <add>, %9, %cst_10 [0] : vector<128x128xf32> to vector<128xf32>
    %11 = vector.shape_cast %10 : vector<128xf32> to vector<1x128xf32>
    %12 = arith.addf %8, %11 : vector<1x128xf32>
    %c0_11 = arith.constant 0 : index
    %c256 = arith.constant 256 : index
    %13 = vector.load %arg7[%c0_11, %c256] : memref<128x512xf32, #tpu.memory_space<vmem>>, vector<128x128xf32>
    %cst_12 = arith.constant dense<0.000000e+00> : vector<128xf32>
    %14 = vector.multi_reduction <add>, %13, %cst_12 [0] : vector<128x128xf32> to vector<128xf32>
    %15 = vector.shape_cast %14 : vector<128xf32> to vector<1x128xf32>
    %16 = arith.addf %12, %15 : vector<1x128xf32>
    %c0_13 = arith.constant 0 : index
    %c384 = arith.constant 384 : index
    %17 = vector.load %arg7[%c0_13, %c384] : memref<128x512xf32, #tpu.memory_space<vmem>>, vector<128x128xf32>
    %cst_14 = arith.constant dense<0.000000e+00> : vector<128xf32>
    %18 = vector.multi_reduction <add>, %17, %cst_14 [0] : vector<128x128xf32> to vector<128xf32>
    %19 = vector.shape_cast %18 : vector<128xf32> to vector<1x128xf32>
    %20 = arith.addf %16, %19 : vector<1x128xf32>
    %cst_15 = arith.constant 0.001953125 : f32
    %21 = vector.broadcast %cst_15 : f32 to vector<1x128xf32>
    %22 = arith.mulf %20, %21 : vector<1x128xf32>
    %cst_16 = arith.constant 0.000000e+00 : f32
    %23 = vector.broadcast %cst_16 : f32 to vector<1x128xf32>
    %c0_17 = arith.constant 0 : index
    %c0_18 = arith.constant 0 : index
    %24 = vector.load %arg7[%c0_17, %c0_18] : memref<128x512xf32, #tpu.memory_space<vmem>>, vector<128x128xf32>
    %25 = vector.broadcast %22 : vector<1x128xf32> to vector<128x128xf32>
    %26 = arith.subf %24, %25 : vector<128x128xf32>
    %27 = arith.mulf %26, %26 : vector<128x128xf32>
    %cst_19 = arith.constant dense<0.000000e+00> : vector<128xf32>
    %28 = vector.multi_reduction <add>, %27, %cst_19 [0] : vector<128x128xf32> to vector<128xf32>
    %29 = vector.shape_cast %28 : vector<128xf32> to vector<1x128xf32>
    %30 = arith.addf %23, %29 : vector<1x128xf32>
    %c0_20 = arith.constant 0 : index
    %c128_21 = arith.constant 128 : index
    %31 = vector.load %arg7[%c0_20, %c128_21] : memref<128x512xf32, #tpu.memory_space<vmem>>, vector<128x128xf32>
    %32 = vector.broadcast %22 : vector<1x128xf32> to vector<128x128xf32>
    %33 = arith.subf %31, %32 : vector<128x128xf32>
    %34 = arith.mulf %33, %33 : vector<128x128xf32>
    %cst_22 = arith.constant dense<0.000000e+00> : vector<128xf32>
    %35 = vector.multi_reduction <add>, %34, %cst_22 [0] : vector<128x128xf32> to vector<128xf32>
    %36 = vector.shape_cast %35 : vector<128xf32> to vector<1x128xf32>
    %37 = arith.addf %30, %36 : vector<1x128xf32>
    %c0_23 = arith.constant 0 : index
    %c256_24 = arith.constant 256 : index
    %38 = vector.load %arg7[%c0_23, %c256_24] : memref<128x512xf32, #tpu.memory_space<vmem>>, vector<128x128xf32>
    %39 = vector.broadcast %22 : vector<1x128xf32> to vector<128x128xf32>
    %40 = arith.subf %38, %39 : vector<128x128xf32>
    %41 = arith.mulf %40, %40 : vector<128x128xf32>
    %cst_25 = arith.constant dense<0.000000e+00> : vector<128xf32>
    %42 = vector.multi_reduction <add>, %41, %cst_25 [0] : vector<128x128xf32> to vector<128xf32>
    %43 = vector.shape_cast %42 : vector<128xf32> to vector<1x128xf32>
    %44 = arith.addf %37, %43 : vector<1x128xf32>
    %c0_26 = arith.constant 0 : index
    %c384_27 = arith.constant 384 : index
    %45 = vector.load %arg7[%c0_26, %c384_27] : memref<128x512xf32, #tpu.memory_space<vmem>>, vector<128x128xf32>
    %46 = vector.broadcast %22 : vector<1x128xf32> to vector<128x128xf32>
    %47 = arith.subf %45, %46 : vector<128x128xf32>
    %48 = arith.mulf %47, %47 : vector<128x128xf32>
    %cst_28 = arith.constant dense<0.000000e+00> : vector<128xf32>
    %49 = vector.multi_reduction <add>, %48, %cst_28 [0] : vector<128x128xf32> to vector<128xf32>
    %50 = vector.shape_cast %49 : vector<128xf32> to vector<1x128xf32>
    %51 = arith.addf %44, %50 : vector<1x128xf32>
    %cst_29 = arith.constant 0.001953125 : f32
    %52 = vector.broadcast %cst_29 : f32 to vector<1x128xf32>
    %53 = arith.mulf %51, %52 : vector<1x128xf32>
    %cst_30 = arith.constant 9.99999974E-6 : f32
    %54 = vector.broadcast %cst_30 : f32 to vector<1x128xf32>
    %55 = arith.addf %53, %54 : vector<1x128xf32>
    %56 = math.rsqrt %55 : vector<1x128xf32>
    %c0_31 = arith.constant 0 : index
    %c0_32 = arith.constant 0 : index
    %57 = vector.load %arg3[%c0_31, %c0_32] : memref<1x128xf32, #tpu.memory_space<vmem>>, vector<1x128xf32>
    %58 = arith.mulf %57, %56 : vector<1x128xf32>
    %c0_33 = arith.constant 0 : index
    %c0_34 = arith.constant 0 : index
    %59 = vector.load %arg4[%c0_33, %c0_34] : memref<1x128xf32, #tpu.memory_space<vmem>>, vector<1x128xf32>
    %60 = arith.mulf %22, %58 : vector<1x128xf32>
    %61 = arith.subf %59, %60 : vector<1x128xf32>
    %c0_35 = arith.constant 0 : index
    %c0_36 = arith.constant 0 : index
    %62 = vector.load %arg5[%c0_35, %c0_36] : memref<2x128xf32, #tpu.memory_space<vmem>>, vector<2x128xf32>
    %63 = vector.extract_strided_slice %62 {offsets = [0, 0], sizes = [1, 128], strides = [1, 1]} : vector<2x128xf32> to vector<1x128xf32>
    %c0_37 = arith.constant 0 : index
    %c0_38 = arith.constant 0 : index
    %64 = vector.load %arg7[%c0_37, %c0_38] : memref<128x512xf32, #tpu.memory_space<vmem>>, vector<64x128xf32>
    %65 = arith.mulf %58, %63 : vector<1x128xf32>
    %66 = vector.broadcast %65 : vector<1x128xf32> to vector<64x128xf32>
    %67 = arith.mulf %64, %66 : vector<64x128xf32>
    %68 = arith.mulf %61, %63 : vector<1x128xf32>
    %69 = vector.broadcast %68 : vector<1x128xf32> to vector<64x128xf32>
    %70 = arith.addf %67, %69 : vector<64x128xf32>
    %cst_39 = arith.constant 0.000000e+00 : f32
    %71 = vector.broadcast %cst_39 : f32 to vector<64x128xf32>
    %72 = arith.maximumf %70, %71 : vector<64x128xf32>
    %73 = arith.truncf %72 : vector<64x128xf32> to vector<64x128xbf16>
    %c0_40 = arith.constant 0 : index
    %c0_41 = arith.constant 0 : index
    %c0_42 = arith.constant 0 : index
    %c0_43 = arith.constant 0 : index
    %74 = vector.load %arg6[%c0_40, %c0_41, %c0_42, %c0_43] : memref<4x2x64x128xbf16, #tpu.memory_space<vmem>>, vector<1x1x64x128xbf16>
    %75 = vector.shape_cast %74 : vector<1x1x64x128xbf16> to vector<64x128xbf16>
    %76 = vector.shape_cast %73 : vector<64x128xbf16> to vector<1x1x64x128xbf16>
    tpu.vector_store %arg6[%c0_40, %c0_41, %c0_42, %c0_43], %76 {strides = array<i32>} : memref<4x2x64x128xbf16, #tpu.memory_space<vmem>>, vector<1x1x64x128xbf16>,
    %77 = vector.extract_strided_slice %62 {offsets = [1, 0], sizes = [1, 128], strides = [1, 1]} : vector<2x128xf32> to vector<1x128xf32>
    %c64 = arith.constant 64 : index
    %c0_44 = arith.constant 0 : index
    %78 = vector.load %arg7[%c64, %c0_44] : memref<128x512xf32, #tpu.memory_space<vmem>>, vector<64x128xf32>
    %79 = arith.mulf %58, %77 : vector<1x128xf32>
    %80 = vector.broadcast %79 : vector<1x128xf32> to vector<64x128xf32>
    %81 = arith.mulf %78, %80 : vector<64x128xf32>
    %82 = arith.mulf %61, %77 : vector<1x128xf32>
    %83 = vector.broadcast %82 : vector<1x128xf32> to vector<64x128xf32>
    %84 = arith.addf %81, %83 : vector<64x128xf32>
    %cst_45 = arith.constant 0.000000e+00 : f32
    %85 = vector.broadcast %cst_45 : f32 to vector<64x128xf32>
    %86 = arith.maximumf %84, %85 : vector<64x128xf32>
    %87 = arith.truncf %86 : vector<64x128xf32> to vector<64x128xbf16>
    %c0_46 = arith.constant 0 : index
    %c1 = arith.constant 1 : index
    %c0_47 = arith.constant 0 : index
    %c0_48 = arith.constant 0 : index
    %88 = vector.load %arg6[%c0_46, %c1, %c0_47, %c0_48] : memref<4x2x64x128xbf16, #tpu.memory_space<vmem>>, vector<1x1x64x128xbf16>
    %89 = vector.shape_cast %88 : vector<1x1x64x128xbf16> to vector<64x128xbf16>
    %90 = vector.shape_cast %87 : vector<64x128xbf16> to vector<1x1x64x128xbf16>
    tpu.vector_store %arg6[%c0_46, %c1, %c0_47, %c0_48], %90 {strides = array<i32>} : memref<4x2x64x128xbf16, #tpu.memory_space<vmem>>, vector<1x1x64x128xbf16>,
    %91 = vector.extract_strided_slice %62 {offsets = [0, 0], sizes = [1, 128], strides = [1, 1]} : vector<2x128xf32> to vector<1x128xf32>
    %c0_49 = arith.constant 0 : index
    %c128_50 = arith.constant 128 : index
    %92 = vector.load %arg7[%c0_49, %c128_50] : memref<128x512xf32, #tpu.memory_space<vmem>>, vector<64x128xf32>
    %93 = arith.mulf %58, %91 : vector<1x128xf32>
    %94 = vector.broadcast %93 : vector<1x128xf32> to vector<64x128xf32>
    %95 = arith.mulf %92, %94 : vector<64x128xf32>
    %96 = arith.mulf %61, %91 : vector<1x128xf32>
    %97 = vector.broadcast %96 : vector<1x128xf32> to vector<64x128xf32>
    %98 = arith.addf %95, %97 : vector<64x128xf32>
    %cst_51 = arith.constant 0.000000e+00 : f32
    %99 = vector.broadcast %cst_51 : f32 to vector<64x128xf32>
    %100 = arith.maximumf %98, %99 : vector<64x128xf32>
    %101 = arith.truncf %100 : vector<64x128xf32> to vector<64x128xbf16>
    %c1_52 = arith.constant 1 : index
    %c0_53 = arith.constant 0 : index
    %c0_54 = arith.constant 0 : index
    %c0_55 = arith.constant 0 : index
    %102 = vector.load %arg6[%c1_52, %c0_53, %c0_54, %c0_55] : memref<4x2x64x128xbf16, #tpu.memory_space<vmem>>, vector<1x1x64x128xbf16>
    %103 = vector.shape_cast %102 : vector<1x1x64x128xbf16> to vector<64x128xbf16>
    %104 = vector.shape_cast %101 : vector<64x128xbf16> to vector<1x1x64x128xbf16>
    tpu.vector_store %arg6[%c1_52, %c0_53, %c0_54, %c0_55], %104 {strides = array<i32>} : memref<4x2x64x128xbf16, #tpu.memory_space<vmem>>, vector<1x1x64x128xbf16>,
    %105 = vector.extract_strided_slice %62 {offsets = [1, 0], sizes = [1, 128], strides = [1, 1]} : vector<2x128xf32> to vector<1x128xf32>
    %c64_56 = arith.constant 64 : index
    %c128_57 = arith.constant 128 : index
    %106 = vector.load %arg7[%c64_56, %c128_57] : memref<128x512xf32, #tpu.memory_space<vmem>>, vector<64x128xf32>
    %107 = arith.mulf %58, %105 : vector<1x128xf32>
    %108 = vector.broadcast %107 : vector<1x128xf32> to vector<64x128xf32>
    %109 = arith.mulf %106, %108 : vector<64x128xf32>
    %110 = arith.mulf %61, %105 : vector<1x128xf32>
    %111 = vector.broadcast %110 : vector<1x128xf32> to vector<64x128xf32>
    %112 = arith.addf %109, %111 : vector<64x128xf32>
    %cst_58 = arith.constant 0.000000e+00 : f32
    %113 = vector.broadcast %cst_58 : f32 to vector<64x128xf32>
    %114 = arith.maximumf %112, %113 : vector<64x128xf32>
    %115 = arith.truncf %114 : vector<64x128xf32> to vector<64x128xbf16>
    %c1_59 = arith.constant 1 : index
    %c1_60 = arith.constant 1 : index
    %c0_61 = arith.constant 0 : index
    %c0_62 = arith.constant 0 : index
    %116 = vector.load %arg6[%c1_59, %c1_60, %c0_61, %c0_62] : memref<4x2x64x128xbf16, #tpu.memory_space<vmem>>, vector<1x1x64x128xbf16>
    %117 = vector.shape_cast %116 : vector<1x1x64x128xbf16> to vector<64x128xbf16>
    %118 = vector.shape_cast %115 : vector<64x128xbf16> to vector<1x1x64x128xbf16>
    tpu.vector_store %arg6[%c1_59, %c1_60, %c0_61, %c0_62], %118 {strides = array<i32>} : memref<4x2x64x128xbf16, #tpu.memory_space<vmem>>, vector<1x1x64x128xbf16>,
    %119 = vector.extract_strided_slice %62 {offsets = [0, 0], sizes = [1, 128], strides = [1, 1]} : vector<2x128xf32> to vector<1x128xf32>
    %c0_63 = arith.constant 0 : index
    %c256_64 = arith.constant 256 : index
    %120 = vector.load %arg7[%c0_63, %c256_64] : memref<128x512xf32, #tpu.memory_space<vmem>>, vector<64x128xf32>
    %121 = arith.mulf %58, %119 : vector<1x128xf32>
    %122 = vector.broadcast %121 : vector<1x128xf32> to vector<64x128xf32>
    %123 = arith.mulf %120, %122 : vector<64x128xf32>
    %124 = arith.mulf %61, %119 : vector<1x128xf32>
    %125 = vector.broadcast %124 : vector<1x128xf32> to vector<64x128xf32>
    %126 = arith.addf %123, %125 : vector<64x128xf32>
    %cst_65 = arith.constant 0.000000e+00 : f32
    %127 = vector.broadcast %cst_65 : f32 to vector<64x128xf32>
    %128 = arith.maximumf %126, %127 : vector<64x128xf32>
    %129 = arith.truncf %128 : vector<64x128xf32> to vector<64x128xbf16>
    %c2 = arith.constant 2 : index
    %c0_66 = arith.constant 0 : index
    %c0_67 = arith.constant 0 : index
    %c0_68 = arith.constant 0 : index
    %130 = vector.load %arg6[%c2, %c0_66, %c0_67, %c0_68] : memref<4x2x64x128xbf16, #tpu.memory_space<vmem>>, vector<1x1x64x128xbf16>
    %131 = vector.shape_cast %130 : vector<1x1x64x128xbf16> to vector<64x128xbf16>
    %132 = vector.shape_cast %129 : vector<64x128xbf16> to vector<1x1x64x128xbf16>
    tpu.vector_store %arg6[%c2, %c0_66, %c0_67, %c0_68], %132 {strides = array<i32>} : memref<4x2x64x128xbf16, #tpu.memory_space<vmem>>, vector<1x1x64x128xbf16>,
    %133 = vector.extract_strided_slice %62 {offsets = [1, 0], sizes = [1, 128], strides = [1, 1]} : vector<2x128xf32> to vector<1x128xf32>
    %c64_69 = arith.constant 64 : index
    %c256_70 = arith.constant 256 : index
    %134 = vector.load %arg7[%c64_69, %c256_70] : memref<128x512xf32, #tpu.memory_space<vmem>>, vector<64x128xf32>
    %135 = arith.mulf %58, %133 : vector<1x128xf32>
    %136 = vector.broadcast %135 : vector<1x128xf32> to vector<64x128xf32>
    %137 = arith.mulf %134, %136 : vector<64x128xf32>
    %138 = arith.mulf %61, %133 : vector<1x128xf32>
    %139 = vector.broadcast %138 : vector<1x128xf32> to vector<64x128xf32>
    %140 = arith.addf %137, %139 : vector<64x128xf32>
    %cst_71 = arith.constant 0.000000e+00 : f32
    %141 = vector.broadcast %cst_71 : f32 to vector<64x128xf32>
    %142 = arith.maximumf %140, %141 : vector<64x128xf32>
    %143 = arith.truncf %142 : vector<64x128xf32> to vector<64x128xbf16>
    %c2_72 = arith.constant 2 : index
    %c1_73 = arith.constant 1 : index
    %c0_74 = arith.constant 0 : index
    %c0_75 = arith.constant 0 : index
    %144 = vector.load %arg6[%c2_72, %c1_73, %c0_74, %c0_75] : memref<4x2x64x128xbf16, #tpu.memory_space<vmem>>, vector<1x1x64x128xbf16>
    %145 = vector.shape_cast %144 : vector<1x1x64x128xbf16> to vector<64x128xbf16>
    %146 = vector.shape_cast %143 : vector<64x128xbf16> to vector<1x1x64x128xbf16>
    tpu.vector_store %arg6[%c2_72, %c1_73, %c0_74, %c0_75], %146 {strides = array<i32>} : memref<4x2x64x128xbf16, #tpu.memory_space<vmem>>, vector<1x1x64x128xbf16>,
    %147 = vector.extract_strided_slice %62 {offsets = [0, 0], sizes = [1, 128], strides = [1, 1]} : vector<2x128xf32> to vector<1x128xf32>
    %c0_76 = arith.constant 0 : index
    %c384_77 = arith.constant 384 : index
    %148 = vector.load %arg7[%c0_76, %c384_77] : memref<128x512xf32, #tpu.memory_space<vmem>>, vector<64x128xf32>
    %149 = arith.mulf %58, %147 : vector<1x128xf32>
    %150 = vector.broadcast %149 : vector<1x128xf32> to vector<64x128xf32>
    %151 = arith.mulf %148, %150 : vector<64x128xf32>
    %152 = arith.mulf %61, %147 : vector<1x128xf32>
    %153 = vector.broadcast %152 : vector<1x128xf32> to vector<64x128xf32>
    %154 = arith.addf %151, %153 : vector<64x128xf32>
    %cst_78 = arith.constant 0.000000e+00 : f32
    %155 = vector.broadcast %cst_78 : f32 to vector<64x128xf32>
    %156 = arith.maximumf %154, %155 : vector<64x128xf32>
    %157 = arith.truncf %156 : vector<64x128xf32> to vector<64x128xbf16>
    %c3 = arith.constant 3 : index
    %c0_79 = arith.constant 0 : index
    %c0_80 = arith.constant 0 : index
    %c0_81 = arith.constant 0 : index
    %158 = vector.load %arg6[%c3, %c0_79, %c0_80, %c0_81] : memref<4x2x64x128xbf16, #tpu.memory_space<vmem>>, vector<1x1x64x128xbf16>
    %159 = vector.shape_cast %158 : vector<1x1x64x128xbf16> to vector<64x128xbf16>
    %160 = vector.shape_cast %157 : vector<64x128xbf16> to vector<1x1x64x128xbf16>
    tpu.vector_store %arg6[%c3, %c0_79, %c0_80, %c0_81], %160 {strides = array<i32>} : memref<4x2x64x128xbf16, #tpu.memory_space<vmem>>, vector<1x1x64x128xbf16>,
    %161 = vector.extract_strided_slice %62 {offsets = [1, 0], sizes = [1, 128], strides = [1, 1]} : vector<2x128xf32> to vector<1x128xf32>
    %c64_82 = arith.constant 64 : index
    %c384_83 = arith.constant 384 : index
    %162 = vector.load %arg7[%c64_82, %c384_83] : memref<128x512xf32, #tpu.memory_space<vmem>>, vector<64x128xf32>
    %163 = arith.mulf %58, %161 : vector<1x128xf32>
    %164 = vector.broadcast %163 : vector<1x128xf32> to vector<64x128xf32>
    %165 = arith.mulf %162, %164 : vector<64x128xf32>
    %166 = arith.mulf %61, %161 : vector<1x128xf32>
    %167 = vector.broadcast %166 : vector<1x128xf32> to vector<64x128xf32>
    %168 = arith.addf %165, %167 : vector<64x128xf32>
    %cst_84 = arith.constant 0.000000e+00 : f32
    %169 = vector.broadcast %cst_84 : f32 to vector<64x128xf32>
    %170 = arith.maximumf %168, %169 : vector<64x128xf32>
    %171 = arith.truncf %170 : vector<64x128xf32> to vector<64x128xbf16>
    %c3_85 = arith.constant 3 : index
    %c1_86 = arith.constant 1 : index
    %c0_87 = arith.constant 0 : index
    %c0_88 = arith.constant 0 : index
    %172 = vector.load %arg6[%c3_85, %c1_86, %c0_87, %c0_88] : memref<4x2x64x128xbf16, #tpu.memory_space<vmem>>, vector<1x1x64x128xbf16>
    %173 = vector.shape_cast %172 : vector<1x1x64x128xbf16> to vector<64x128xbf16>
    %174 = vector.shape_cast %171 : vector<64x128xbf16> to vector<1x1x64x128xbf16>
    tpu.vector_store %arg6[%c3_85, %c1_86, %c0_87, %c0_88], %174 {strides = array<i32>} : memref<4x2x64x128xbf16, #tpu.memory_space<vmem>>, vector<1x1x64x128xbf16>,
    return
  }
  func.func @transform_0(%arg0: i32) -> (i32, i32) {
    %c0_i32 = arith.constant 0 : i32
    %c0_i32_0 = arith.constant 0 : i32
    %c0_i32_1 = arith.constant 0 : i32
    return %c0_i32, %c0_i32_0 : i32, i32
  }
  func.func @transform_1(%arg0: i32) -> (i32, i32) {
    %c0_i32 = arith.constant 0 : i32
    %c0_i32_0 = arith.constant 0 : i32
    return %c0_i32, %arg0 : i32, i32
  }
  func.func @transform_2(%arg0: i32) -> (i32, i32) {
    %c0_i32 = arith.constant 0 : i32
    %c0_i32_0 = arith.constant 0 : i32
    return %c0_i32, %arg0 : i32, i32
  }
  func.func @transform_3(%arg0: i32) -> (i32, i32) {
    %c0_i32 = arith.constant 0 : i32
    %c0_i32_0 = arith.constant 0 : i32
    return %c0_i32, %arg0 : i32, i32
  }
  func.func @transform_4(%arg0: i32) -> (i32, i32) {
    %c0_i32 = arith.constant 0 : i32
    %c0_i32_0 = arith.constant 0 : i32
    return %c0_i32, %arg0 : i32, i32
  }
  func.func @transform_5(%arg0: i32) -> (i32, i32, i32, i32) {
    %c0_i32 = arith.constant 0 : i32
    %c0_i32_0 = arith.constant 0 : i32
    %c0_i32_1 = arith.constant 0 : i32
    %c0_i32_2 = arith.constant 0 : i32
    return %c0_i32, %c0_i32_0, %c0_i32_1, %arg0 : i32, i32, i32, i32
  }
}

module attributes {stable_mosaic.version = 11 : i64} {
  func.func @_matmul_bias_kernel(%arg0: i32, %arg1: memref<256x256xbf16, #tpu.memory_space<vmem>>, %arg2: memref<256x128xbf16, #tpu.memory_space<vmem>>, %arg3: memref<1x128xf32, #tpu.memory_space<vmem>>, %arg4: memref<256x128xf32, #tpu.memory_space<vmem>>) attributes {dimension_semantics = [#tpu.dimension_semantics<parallel>], iteration_bounds = array<i64: 2>, scalar_prefetch = 0 : i64, scratch_operands = 0 : i64, tpu.core_type = #tpu.core_type<tc>, window_params = [{transform_indices = @transform_0, window_bounds = array<i64: 256, 256>}, {pipeline_mode = #tpu.pipeline_mode<synchronous>, transform_indices = @transform_1, window_bounds = array<i64: 256, 128>}, {pipeline_mode = #tpu.pipeline_mode<synchronous>, transform_indices = @transform_2, window_bounds = array<i64: 1, 128>}, {transform_indices = @transform_3, window_bounds = array<i64: 256, 128>}]} {
    %c0 = arith.constant 0 : index
    %c0_0 = arith.constant 0 : index
    %0 = vector.load %arg1[%c0, %c0_0] : memref<256x256xbf16, #tpu.memory_space<vmem>>, vector<256x256xbf16>
    %c0_1 = arith.constant 0 : index
    %c0_2 = arith.constant 0 : index
    %1 = vector.load %arg2[%c0_1, %c0_2] : memref<256x128xbf16, #tpu.memory_space<vmem>>, vector<256x128xbf16>
    %cst = arith.constant dense<0.000000e+00> : vector<256x128xf32>
    %2 = tpu.matmul %0, %1, %cst {dimension_numbers = #tpu.dot_dimension_numbers<[1], [0], [0], [1], [0, 0, 1, 1], [], []>} : vector<256x256xbf16>, vector<256x128xbf16>, vector<256x128xf32> -> vector<256x128xf32>
    %c0_3 = arith.constant 0 : index
    %c0_4 = arith.constant 0 : index
    %3 = vector.load %arg3[%c0_3, %c0_4] : memref<1x128xf32, #tpu.memory_space<vmem>>, vector<1x128xf32>
    %4 = vector.broadcast %3 : vector<1x128xf32> to vector<256x128xf32>
    %5 = arith.addf %2, %4 : vector<256x128xf32>
    %c0_5 = arith.constant 0 : index
    %c0_6 = arith.constant 0 : index
    %6 = vector.load %arg4[%c0_5, %c0_6] : memref<256x128xf32, #tpu.memory_space<vmem>>, vector<256x128xf32>
    tpu.vector_store %arg4[%c0_5, %c0_6], %5 {strides = array<i32>} : memref<256x128xf32, #tpu.memory_space<vmem>>, vector<256x128xf32>,
    return
  }
  func.func @transform_0(%arg0: i32) -> (i32, i32) {
    %c0_i32 = arith.constant 0 : i32
    %c0_i32_0 = arith.constant 0 : i32
    return %arg0, %c0_i32 : i32, i32
  }
  func.func @transform_1(%arg0: i32) -> (i32, i32) {
    %c0_i32 = arith.constant 0 : i32
    %c0_i32_0 = arith.constant 0 : i32
    %c0_i32_1 = arith.constant 0 : i32
    return %c0_i32, %c0_i32_0 : i32, i32
  }
  func.func @transform_2(%arg0: i32) -> (i32, i32) {
    %c0_i32 = arith.constant 0 : i32
    %c0_i32_0 = arith.constant 0 : i32
    %c0_i32_1 = arith.constant 0 : i32
    return %c0_i32, %c0_i32_0 : i32, i32
  }
  func.func @transform_3(%arg0: i32) -> (i32, i32) {
    %c0_i32 = arith.constant 0 : i32
    %c0_i32_0 = arith.constant 0 : i32
    return %arg0, %c0_i32 : i32, i32
  }
}

</mosaic_0001>

<bundles_post_ra>
// kernel: dropout_head_forward.6
= control target key start
LH: loop header
LB: loop body
LE: loop exit
PB: predicated region body
PF: predicated region fallthrough
CT: control target
= control target key end

     0   :  { %s4507_s18 = smov 0   ;;  %s4509_s19 = smov 0   ;;  %s5876_s0 = inlined_call_operand.vmem [shape: f32[3,2,80,128], index: 0, kind: input, shape index: {}]   ;;  %s5877_s1 = inlined_call_operand.vmem [shape: bf16[9,128,256], index: 1, kind: input, shape index: {}]   ;;  %s5878_s2 = inlined_call_operand.vmem [shape: f32[1,256], index: 2, kind: input, shape index: {}]   ;;  %s5879_s3 = inlined_call_operand.vmem [shape: f32[1,256], index: 3, kind: input, shape index: {}]   ;;  %s5880_s4 = inlined_call_operand.vmem [shape: f32[2,256], index: 4, kind: input, shape index: {}]   ;;  %s5881_s5 = inlined_call_operand.vmem [shape: f32[2,64,256], index: 5, kind: output, shape index: {}]  }
   0x1   :  { %s4511_s20 = smov 0  }
   0x2 LB: > { %s4523_s21 = sadd.s32 4294967295, %s4474_s20   ;;  %s4526_s22 = sadd.s32 1, %s4474_s20   ;;  %s4474_s20 = sphi %s4511_s20, %s5932_s20   ;;  %s4470_s19 = sphi %s4509_s19, %s5931_s19   ;;  %s4466_s18 = sphi %s4507_s18, %s5930_s18  }
   0x3   : > { %s40_s23 = ssub.s32 %s4474_s20, %s4526_s22  ;;  %s43_s24 = sadd.s32 1, %s4470_s19 }
   0x4   : > { %p41_p0 = scmp.eq.s32.totalorder %s40_s23, 0  ;;  %p50_p1 = scmp.ne.s32.totalorder %s4470_s19, %s4466_s18 }
   0x5   : > { %p51_p2 = scmp.eq.s32.totalorder %s4474_s20, 0  ;;  %p158_p3 = scmp.eq.s32.totalorder %s4523_s21, 1 }
   0x6   : > { %s4536_s25 = scalar_select %p41_p0, %s4470_s19, %s43_s24  }
   0x7   : > { %p52_p4 = por %p51_p2, %p50_p1  ;;  %p4538_p5 = por %p158_p3, %p50_p1 }
   0x8   : > { %p3366_p6 = scmp.ge.s32.totalorder %s4474_s20, 2 }
   0xa   : > { %183 = sbr.rel (%p3366_p6) target bundleno = 115 (0x73), region = 20 }
   0xf   : > { %186 = sbr.rel (!%p52_p4) target bundleno = 115 (0x73), region = 24  ;;  %s188_s27 = sand.u32 (%p52_p4), 1, %s4470_s19  }
  0x10   : > { %s3367_s28 = sshll.u32 (%p52_p4), %s4474_s20, 2  ;;  %s4351_s29 = smul.u32 (%p52_p4), 576, %s188_s27 }
  0x11   : > { %s4548_s7 = scalar_lea.vmem (%p52_p4), %s5877_s1, %s3367_s28 }
  0x12   : > { %v209_v0 = vld [vmem:[%s4548_s7] sm:$0xf] (%p52_p4)  ;;  %v211_v1 = vld [vmem:[%s4548_s7 + $0x8] sm:$0xf] (%p52_p4)  ;;  %v213_v2 = vld [vmem:[%s4548_s7 + $0x10] sm:$0xf] (%p52_p4) }
  0x13   : > { %v215_v3 = vld [vmem:[%s4548_s7 + $0x18] sm:$0xf] (%p52_p4)  ;;  %v217_v4 = vld [vmem:[%s4548_s7 + $0x20] sm:$0xf] (%p52_p4)  ;;  %s4555_s8 = scalar_lea.vmem (%p52_p4), [#allocation2], %s4351_s29 }
  0x14   : > { %210 = vst [vmem:[%s4555_s8] sm:$0xf] %v209_v0  ;;  %212 = vst [vmem:[%s4555_s8 + $0x4] sm:$0xf] %v211_v1  ;;  %v219_v5 = vld [vmem:[%s4548_s7 + $0x28] sm:$0xf] }
  0x15   : > { %214 = vst [vmem:[%s4555_s8 + $0x8] sm:$0xf] %v213_v2  ;;  %216 = vst [vmem:[%s4555_s8 + $0xc] sm:$0xf] %v215_v3  ;;  %v221_v6 = vld [vmem:[%s4548_s7 + $0x30] sm:$0xf] }
  0x16   : > { %218 = vst [vmem:[%s4555_s8 + $0x10] sm:$0xf] %v217_v4  ;;  %v223_v7 = vld [vmem:[%s4548_s7 + $0x38] sm:$0xf]  ;;  %220 = vst [vmem:[%s4555_s8 + $0x14] sm:$0xf] %v219_v5 }
  0x17   : > { %222 = vst [vmem:[%s4555_s8 + $0x18] sm:$0xf] %v221_v6  ;;  %224 = vst [vmem:[%s4555_s8 + $0x1c] sm:$0xf] %v223_v7  ;;  %v225_v8 = vld [vmem:[%s4548_s7 + $0x40] sm:$0xf] }
  0x18   : > { %v227_v9 = vld [vmem:[%s4548_s7 + $0x48] sm:$0xf]  ;;  %v229_v10 = vld [vmem:[%s4548_s7 + $0x50] sm:$0xf]  ;;  %226 = vst [vmem:[%s4555_s8 + $0x20] sm:$0xf] %v225_v8 }
  0x19   : > { %228 = vst [vmem:[%s4555_s8 + $0x24] sm:$0xf] %v227_v9  ;;  %230 = vst [vmem:[%s4555_s8 + $0x28] sm:$0xf] %v229_v10  ;;  %v231_v11 = vld [vmem:[%s4548_s7 + $0x58] sm:$0xf] }
  0x1a   : > { %v233_v12 = vld [vmem:[%s4548_s7 + $0x60] sm:$0xf]  ;;  %v235_v13 = vld [vmem:[%s4548_s7 + $0x68] sm:$0xf]  ;;  %232 = vst [vmem:[%s4555_s8 + $0x2c] sm:$0xf] %v231_v11 }
  0x1b   : > { %234 = vst [vmem:[%s4555_s8 + $0x30] sm:$0xf] %v233_v12  ;;  %236 = vst [vmem:[%s4555_s8 + $0x34] sm:$0xf] %v235_v13  ;;  %v237_v14 = vld [vmem:[%s4548_s7 + $0x70] sm:$0xf] }
  0x1c   : > { %v239_v15 = vld [vmem:[%s4548_s7 + $0x78] sm:$0xf]  ;;  %v241_v16 = vld [vmem:[%s4548_s7 + $0x80] sm:$0xf]  ;;  %238 = vst [vmem:[%s4555_s8 + $0x38] sm:$0xf] %v237_v14 }
  0x1d   : > { %240 = vst [vmem:[%s4555_s8 + $0x3c] sm:$0xf] %v239_v15  ;;  %242 = vst [vmem:[%s4555_s8 + $0x40] sm:$0xf] %v241_v16  ;;  %v243_v17 = vld [vmem:[%s4548_s7 + $0x88] sm:$0xf] }
  0x1e   : > { %v245_v18 = vld [vmem:[%s4548_s7 + $0x90] sm:$0xf]  ;;  %v247_v19 = vld [vmem:[%s4548_s7 + $0x98] sm:$0xf]  ;;  %244 = vst [vmem:[%s4555_s8 + $0x44] sm:$0xf] %v243_v17 }
  0x1f   : > { %246 = vst [vmem:[%s4555_s8 + $0x48] sm:$0xf] %v245_v18  ;;  %248 = vst [vmem:[%s4555_s8 + $0x4c] sm:$0xf] %v247_v19  ;;  %v249_v20 = vld [vmem:[%s4548_s7 + $0xa0] sm:$0xf] }
  0x20   : > { %v251_v21 = vld [vmem:[%s4548_s7 + $0xa8] sm:$0xf]  ;;  %v253_v22 = vld [vmem:[%s4548_s7 + $0xb0] sm:$0xf]  ;;  %250 = vst [vmem:[%s4555_s8 + $0x50] sm:$0xf] %v249_v20 }
  0x21   : > { %252 = vst [vmem:[%s4555_s8 + $0x54] sm:$0xf] %v251_v21  ;;  %254 = vst [vmem:[%s4555_s8 + $0x58] sm:$0xf] %v253_v22  ;;  %v255_v23 = vld [vmem:[%s4548_s7 + $0xb8] sm:$0xf] }
  0x22   : > { %v257_v24 = vld [vmem:[%s4548_s7 + $0xc0] sm:$0xf]  ;;  %v259_v25 = vld [vmem:[%s4548_s7 + $0xc8] sm:$0xf]  ;;  %256 = vst [vmem:[%s4555_s8 + $0x5c] sm:$0xf] %v255_v23 }
  0x23   : > { %258 = vst [vmem:[%s4555_s8 + $0x60] sm:$0xf] %v257_v24  ;;  %260 = vst [vmem:[%s4555_s8 + $0x64] sm:$0xf] %v259_v25  ;;  %v261_v26 = vld [vmem:[%s4548_s7 + $0xd0] sm:$0xf] }
  0x24   : > { %v263_v27 = vld [vmem:[%s4548_s7 + $0xd8] sm:$0xf]  ;;  %v265_v28 = vld [vmem:[%s4548_s7 + $0xe0] sm:$0xf]  ;;  %262 = vst [vmem:[%s4555_s8 + $0x68] sm:$0xf] %v261_v26 }
  0x25   : > { %264 = vst [vmem:[%s4555_s8 + $0x6c] sm:$0xf] %v263_v27  ;;  %266 = vst [vmem:[%s4555_s8 + $0x70] sm:$0xf] %v265_v28  ;;  %v267_v29 = vld [vmem:[%s4548_s7 + $0xe8] sm:$0xf] }
  0x26   : > { %v269_v30 = vld [vmem:[%s4548_s7 + $0xf0] sm:$0xf]  ;;  %v271_v31 = vld [vmem:[%s4548_s7 + $0xf8] sm:$0xf]  ;;  %268 = vst [vmem:[%s4555_s8 + $0x74] sm:$0xf] %v267_v29 }
  0x27   : > { %270 = vst [vmem:[%s4555_s8 + $0x78] sm:$0xf] %v269_v30  ;;  %272 = vst [vmem:[%s4555_s8 + $0x7c] sm:$0xf] %v271_v31  ;;  %v273_v32 = vld [vmem:[%s4548_s7 + $0x100] sm:$0xf] }
  0x28   : > { %v275_v33 = vld [vmem:[%s4548_s7 + $0x108] sm:$0xf]  ;;  %v277_v34 = vld [vmem:[%s4548_s7 + $0x110] sm:$0xf]  ;;  %274 = vst [vmem:[%s4555_s8 + $0x80] sm:$0xf] %v273_v32 }
  0x29   : > { %276 = vst [vmem:[%s4555_s8 + $0x84] sm:$0xf] %v275_v33  ;;  %278 = vst [vmem:[%s4555_s8 + $0x88] sm:$0xf] %v277_v34  ;;  %v279_v35 = vld [vmem:[%s4548_s7 + $0x118] sm:$0xf] }
  0x2a   : > { %v281_v36 = vld [vmem:[%s4548_s7 + $0x120] sm:$0xf]  ;;  %v283_v37 = vld [vmem:[%s4548_s7 + $0x128] sm:$0xf]  ;;  %280 = vst [vmem:[%s4555_s8 + $0x8c] sm:$0xf] %v279_v35 }
  0x2b   : > { %282 = vst [vmem:[%s4555_s8 + $0x90] sm:$0xf] %v281_v36  ;;  %284 = vst [vmem:[%s4555_s8 + $0x94] sm:$0xf] %v283_v37  ;;  %v285_v38 = vld [vmem:[%s4548_s7 + $0x130] sm:$0xf] }
  0x2c   : > { %v287_v39 = vld [vmem:[%s4548_s7 + $0x138] sm:$0xf]  ;;  %v289_v40 = vld [vmem:[%s4548_s7 + $0x140] sm:$0xf]  ;;  %286 = vst [vmem:[%s4555_s8 + $0x98] sm:$0xf] %v285_v38 }
  0x2d   : > { %288 = vst [vmem:[%s4555_s8 + $0x9c] sm:$0xf] %v287_v39  ;;  %290 = vst [vmem:[%s4555_s8 + $0xa0] sm:$0xf] %v289_v40  ;;  %v291_v41 = vld [vmem:[%s4548_s7 + $0x148] sm:$0xf] }
  0x2e   : > { %v293_v42 = vld [vmem:[%s4548_s7 + $0x150] sm:$0xf]  ;;  %v295_v43 = vld [vmem:[%s4548_s7 + $0x158] sm:$0xf]  ;;  %292 = vst [vmem:[%s4555_s8 + $0xa4] sm:$0xf] %v291_v41 }
  0x2f   : > { %294 = vst [vmem:[%s4555_s8 + $0xa8] sm:$0xf] %v293_v42  ;;  %296 = vst [vmem:[%s4555_s8 + $0xac] sm:$0xf] %v295_v43  ;;  %v297_v44 = vld [vmem:[%s4548_s7 + $0x160] sm:$0xf] }
  0x30   : > { %v299_v45 = vld [vmem:[%s4548_s7 + $0x168] sm:$0xf]  ;;  %v301_v46 = vld [vmem:[%s4548_s7 + $0x170] sm:$0xf]  ;;  %298 = vst [vmem:[%s4555_s8 + $0xb0] sm:$0xf] %v297_v44 }
  0x31   : > { %300 = vst [vmem:[%s4555_s8 + $0xb4] sm:$0xf] %v299_v45  ;;  %302 = vst [vmem:[%s4555_s8 + $0xb8] sm:$0xf] %v301_v46  ;;  %v303_v47 = vld [vmem:[%s4548_s7 + $0x178] sm:$0xf] }
  0x32   : > { %v305_v48 = vld [vmem:[%s4548_s7 + $0x180] sm:$0xf]  ;;  %v307_v49 = vld [vmem:[%s4548_s7 + $0x188] sm:$0xf]  ;;  %304 = vst [vmem:[%s4555_s8 + $0xbc] sm:$0xf] %v303_v47 }
  0x33   : > { %306 = vst [vmem:[%s4555_s8 + $0xc0] sm:$0xf] %v305_v48  ;;  %308 = vst [vmem:[%s4555_s8 + $0xc4] sm:$0xf] %v307_v49  ;;  %v309_v50 = vld [vmem:[%s4548_s7 + $0x190] sm:$0xf] }
  0x34   : > { %v311_v51 = vld [vmem:[%s4548_s7 + $0x198] sm:$0xf]  ;;  %v313_v52 = vld [vmem:[%s4548_s7 + $0x1a0] sm:$0xf]  ;;  %310 = vst [vmem:[%s4555_s8 + $0xc8] sm:$0xf] %v309_v50 }
  0x35   : > { %312 = vst [vmem:[%s4555_s8 + $0xcc] sm:$0xf] %v311_v51  ;;  %314 = vst [vmem:[%s4555_s8 + $0xd0] sm:$0xf] %v313_v52  ;;  %v315_v53 = vld [vmem:[%s4548_s7 + $0x1a8] sm:$0xf] }
  0x36   : > { %v317_v54 = vld [vmem:[%s4548_s7 + $0x1b0] sm:$0xf]  ;;  %v319_v55 = vld [vmem:[%s4548_s7 + $0x1b8] sm:$0xf]  ;;  %316 = vst [vmem:[%s4555_s8 + $0xd4] sm:$0xf] %v315_v53 }
  0x37   : > { %318 = vst [vmem:[%s4555_s8 + $0xd8] sm:$0xf] %v317_v54  ;;  %320 = vst [vmem:[%s4555_s8 + $0xdc] sm:$0xf] %v319_v55  ;;  %v321_v56 = vld [vmem:[%s4548_s7 + $0x1c0] sm:$0xf] }
  0x38   : > { %v323_v57 = vld [vmem:[%s4548_s7 + $0x1c8] sm:$0xf]  ;;  %v325_v58 = vld [vmem:[%s4548_s7 + $0x1d0] sm:$0xf]  ;;  %322 = vst [vmem:[%s4555_s8 + $0xe0] sm:$0xf] %v321_v56 }
  0x39   : > { %324 = vst [vmem:[%s4555_s8 + $0xe4] sm:$0xf] %v323_v57  ;;  %326 = vst [vmem:[%s4555_s8 + $0xe8] sm:$0xf] %v325_v58  ;;  %v327_v59 = vld [vmem:[%s4548_s7 + $0x1d8] sm:$0xf] }
  0x3a   : > { %v329_v60 = vld [vmem:[%s4548_s7 + $0x1e0] sm:$0xf]  ;;  %v331_v61 = vld [vmem:[%s4548_s7 + $0x1e8] sm:$0xf]  ;;  %328 = vst [vmem:[%s4555_s8 + $0xec] sm:$0xf] %v327_v59 }
  0x3b   : > { %330 = vst [vmem:[%s4555_s8 + $0xf0] sm:$0xf] %v329_v60  ;;  %332 = vst [vmem:[%s4555_s8 + $0xf4] sm:$0xf] %v331_v61  ;;  %v333_v62 = vld [vmem:[%s4548_s7 + $0x1f0] sm:$0xf] }
  0x3c   : > { %v335_v63 = vld [vmem:[%s4548_s7 + $0x1f8] sm:$0xf]  ;;  %v337_v0 = vld [vmem:[%s4548_s7 + $0x200] sm:$0xf]  ;;  %334 = vst [vmem:[%s4555_s8 + $0xf8] sm:$0xf] %v333_v62 }
  0x3d   : > { %336 = vst [vmem:[%s4555_s8 + $0xfc] sm:$0xf] %v335_v63  ;;  %338 = vst [vmem:[%s4555_s8 + $0x100] sm:$0xf] %v337_v0  ;;  %v339_v1 = vld [vmem:[%s4548_s7 + $0x208] sm:$0xf] }
  0x3e   : > { %v341_v2 = vld [vmem:[%s4548_s7 + $0x210] sm:$0xf]  ;;  %v343_v3 = vld [vmem:[%s4548_s7 + $0x218] sm:$0xf]  ;;  %340 = vst [vmem:[%s4555_s8 + $0x104] sm:$0xf] %v339_v1 }
  0x3f   : > { %342 = vst [vmem:[%s4555_s8 + $0x108] sm:$0xf] %v341_v2  ;;  %344 = vst [vmem:[%s4555_s8 + $0x10c] sm:$0xf] %v343_v3  ;;  %v345_v4 = vld [vmem:[%s4548_s7 + $0x220] sm:$0xf] }
  0x40   : > { %v347_v5 = vld [vmem:[%s4548_s7 + $0x228] sm:$0xf]  ;;  %v349_v6 = vld [vmem:[%s4548_s7 + $0x230] sm:$0xf]  ;;  %346 = vst [vmem:[%s4555_s8 + $0x110] sm:$0xf] %v345_v4 }
  0x41   : > { %348 = vst [vmem:[%s4555_s8 + $0x114] sm:$0xf] %v347_v5  ;;  %350 = vst [vmem:[%s4555_s8 + $0x118] sm:$0xf] %v349_v6  ;;  %v351_v7 = vld [vmem:[%s4548_s7 + $0x238] sm:$0xf] }
  0x42   : > { %v353_v8 = vld [vmem:[%s4548_s7 + $0x240] sm:$0xf]  ;;  %v355_v9 = vld [vmem:[%s4548_s7 + $0x248] sm:$0xf]  ;;  %352 = vst [vmem:[%s4555_s8 + $0x11c] sm:$0xf] %v351_v7 }
  0x43   : > { %354 = vst [vmem:[%s4555_s8 + $0x120] sm:$0xf] %v353_v8  ;;  %356 = vst [vmem:[%s4555_s8 + $0x124] sm:$0xf] %v355_v9  ;;  %v357_v10 = vld [vmem:[%s4548_s7 + $0x250] sm:$0xf] }
  0x44   : > { %v359_v11 = vld [vmem:[%s4548_s7 + $0x258] sm:$0xf]  ;;  %v361_v12 = vld [vmem:[%s4548_s7 + $0x260] sm:$0xf]  ;;  %358 = vst [vmem:[%s4555_s8 + $0x128] sm:$0xf] %v357_v10 }
  0x45   : > { %360 = vst [vmem:[%s4555_s8 + $0x12c] sm:$0xf] %v359_v11  ;;  %362 = vst [vmem:[%s4555_s8 + $0x130] sm:$0xf] %v361_v12  ;;  %v363_v13 = vld [vmem:[%s4548_s7 + $0x268] sm:$0xf] }
  0x46   : > { %v365_v14 = vld [vmem:[%s4548_s7 + $0x270] sm:$0xf]  ;;  %v367_v15 = vld [vmem:[%s4548_s7 + $0x278] sm:$0xf]  ;;  %364 = vst [vmem:[%s4555_s8 + $0x134] sm:$0xf] %v363_v13 }
  0x47   : > { %366 = vst [vmem:[%s4555_s8 + $0x138] sm:$0xf] %v365_v14  ;;  %368 = vst [vmem:[%s4555_s8 + $0x13c] sm:$0xf] %v367_v15  ;;  %v369_v16 = vld [vmem:[%s4548_s7 + $0x280] sm:$0xf] }
  0x48   : > { %v371_v17 = vld [vmem:[%s4548_s7 + $0x288] sm:$0xf]  ;;  %v373_v18 = vld [vmem:[%s4548_s7 + $0x290] sm:$0xf]  ;;  %370 = vst [vmem:[%s4555_s8 + $0x140] sm:$0xf] %v369_v16 }
  0x49   : > { %372 = vst [vmem:[%s4555_s8 + $0x144] sm:$0xf] %v371_v17  ;;  %374 = vst [vmem:[%s4555_s8 + $0x148] sm:$0xf] %v373_v18  ;;  %v375_v19 = vld [vmem:[%s4548_s7 + $0x298] sm:$0xf] }
  0x4a   : > { %v377_v20 = vld [vmem:[%s4548_s7 + $0x2a0] sm:$0xf]  ;;  %v379_v21 = vld [vmem:[%s4548_s7 + $0x2a8] sm:$0xf]  ;;  %376 = vst [vmem:[%s4555_s8 + $0x14c] sm:$0xf] %v375_v19 }
  0x4b   : > { %378 = vst [vmem:[%s4555_s8 + $0x150] sm:$0xf] %v377_v20  ;;  %380 = vst [vmem:[%s4555_s8 + $0x154] sm:$0xf] %v379_v21  ;;  %v381_v22 = vld [vmem:[%s4548_s7 + $0x2b0] sm:$0xf] }
  0x4c   : > { %v383_v23 = vld [vmem:[%s4548_s7 + $0x2b8] sm:$0xf]  ;;  %v385_v24 = vld [vmem:[%s4548_s7 + $0x2c0] sm:$0xf]  ;;  %382 = vst [vmem:[%s4555_s8 + $0x158] sm:$0xf] %v381_v22 }
  0x4d   : > { %384 = vst [vmem:[%s4555_s8 + $0x15c] sm:$0xf] %v383_v23  ;;  %386 = vst [vmem:[%s4555_s8 + $0x160] sm:$0xf] %v385_v24  ;;  %v387_v25 = vld [vmem:[%s4548_s7 + $0x2c8] sm:$0xf] }
  0x4e   : > { %v389_v26 = vld [vmem:[%s4548_s7 + $0x2d0] sm:$0xf]  ;;  %v391_v27 = vld [vmem:[%s4548_s7 + $0x2d8] sm:$0xf]  ;;  %388 = vst [vmem:[%s4555_s8 + $0x164] sm:$0xf] %v387_v25 }
  0x4f   : > { %390 = vst [vmem:[%s4555_s8 + $0x168] sm:$0xf] %v389_v26  ;;  %392 = vst [vmem:[%s4555_s8 + $0x16c] sm:$0xf] %v391_v27  ;;  %v393_v28 = vld [vmem:[%s4548_s7 + $0x2e0] sm:$0xf] }
  0x50   : > { %v395_v29 = vld [vmem:[%s4548_s7 + $0x2e8] sm:$0xf]  ;;  %v397_v30 = vld [vmem:[%s4548_s7 + $0x2f0] sm:$0xf]  ;;  %394 = vst [vmem:[%s4555_s8 + $0x170] sm:$0xf] %v393_v28 }
  0x51   : > { %396 = vst [vmem:[%s4555_s8 + $0x174] sm:$0xf] %v395_v29  ;;  %398 = vst [vmem:[%s4555_s8 + $0x178] sm:$0xf] %v397_v30  ;;  %v399_v31 = vld [vmem:[%s4548_s7 + $0x2f8] sm:$0xf] }
  0x52   : > { %v401_v32 = vld [vmem:[%s4548_s7 + $0x300] sm:$0xf]  ;;  %v403_v33 = vld [vmem:[%s4548_s7 + $0x308] sm:$0xf]  ;;  %400 = vst [vmem:[%s4555_s8 + $0x17c] sm:$0xf] %v399_v31 }
  0x53   : > { %402 = vst [vmem:[%s4555_s8 + $0x180] sm:$0xf] %v401_v32  ;;  %404 = vst [vmem:[%s4555_s8 + $0x184] sm:$0xf] %v403_v33  ;;  %v405_v34 = vld [vmem:[%s4548_s7 + $0x310] sm:$0xf] }
  0x54   : > { %v407_v35 = vld [vmem:[%s4548_s7 + $0x318] sm:$0xf]  ;;  %v409_v36 = vld [vmem:[%s4548_s7 + $0x320] sm:$0xf]  ;;  %406 = vst [vmem:[%s4555_s8 + $0x188] sm:$0xf] %v405_v34 }
  0x55   : > { %408 = vst [vmem:[%s4555_s8 + $0x18c] sm:$0xf] %v407_v35  ;;  %410 = vst [vmem:[%s4555_s8 + $0x190] sm:$0xf] %v409_v36  ;;  %v411_v37 = vld [vmem:[%s4548_s7 + $0x328] sm:$0xf] }
  0x56   : > { %v413_v38 = vld [vmem:[%s4548_s7 + $0x330] sm:$0xf]  ;;  %v415_v39 = vld [vmem:[%s4548_s7 + $0x338] sm:$0xf]  ;;  %412 = vst [vmem:[%s4555_s8 + $0x194] sm:$0xf] %v411_v37 }
  0x57   : > { %414 = vst [vmem:[%s4555_s8 + $0x198] sm:$0xf] %v413_v38  ;;  %416 = vst [vmem:[%s4555_s8 + $0x19c] sm:$0xf] %v415_v39  ;;  %v417_v40 = vld [vmem:[%s4548_s7 + $0x340] sm:$0xf] }
  0x58   : > { %v419_v41 = vld [vmem:[%s4548_s7 + $0x348] sm:$0xf]  ;;  %v421_v42 = vld [vmem:[%s4548_s7 + $0x350] sm:$0xf]  ;;  %418 = vst [vmem:[%s4555_s8 + $0x1a0] sm:$0xf] %v417_v40 }
  0x59   : > { %420 = vst [vmem:[%s4555_s8 + $0x1a4] sm:$0xf] %v419_v41  ;;  %422 = vst [vmem:[%s4555_s8 + $0x1a8] sm:$0xf] %v421_v42  ;;  %v423_v43 = vld [vmem:[%s4548_s7 + $0x358] sm:$0xf] }
  0x5a   : > { %v425_v44 = vld [vmem:[%s4548_s7 + $0x360] sm:$0xf]  ;;  %v427_v45 = vld [vmem:[%s4548_s7 + $0x368] sm:$0xf]  ;;  %424 = vst [vmem:[%s4555_s8 + $0x1ac] sm:$0xf] %v423_v43 }
  0x5b   : > { %426 = vst [vmem:[%s4555_s8 + $0x1b0] sm:$0xf] %v425_v44  ;;  %428 = vst [vmem:[%s4555_s8 + $0x1b4] sm:$0xf] %v427_v45  ;;  %v429_v46 = vld [vmem:[%s4548_s7 + $0x370] sm:$0xf] }
  0x5c   : > { %v431_v47 = vld [vmem:[%s4548_s7 + $0x378] sm:$0xf]  ;;  %v433_v48 = vld [vmem:[%s4548_s7 + $0x380] sm:$0xf]  ;;  %430 = vst [vmem:[%s4555_s8 + $0x1b8] sm:$0xf] %v429_v46 }
  0x5d   : > { %432 = vst [vmem:[%s4555_s8 + $0x1bc] sm:$0xf] %v431_v47  ;;  %434 = vst [vmem:[%s4555_s8 + $0x1c0] sm:$0xf] %v433_v48  ;;  %v435_v49 = vld [vmem:[%s4548_s7 + $0x388] sm:$0xf] }
  0x5e   : > { %v437_v50 = vld [vmem:[%s4548_s7 + $0x390] sm:$0xf]  ;;  %v439_v51 = vld [vmem:[%s4548_s7 + $0x398] sm:$0xf]  ;;  %436 = vst [vmem:[%s4555_s8 + $0x1c4] sm:$0xf] %v435_v49 }
  0x5f   : > { %438 = vst [vmem:[%s4555_s8 + $0x1c8] sm:$0xf] %v437_v50  ;;  %440 = vst [vmem:[%s4555_s8 + $0x1cc] sm:$0xf] %v439_v51  ;;  %v441_v52 = vld [vmem:[%s4548_s7 + $0x3a0] sm:$0xf] }
  0x60   : > { %v443_v53 = vld [vmem:[%s4548_s7 + $0x3a8] sm:$0xf]  ;;  %v445_v54 = vld [vmem:[%s4548_s7 + $0x3b0] sm:$0xf]  ;;  %442 = vst [vmem:[%s4555_s8 + $0x1d0] sm:$0xf] %v441_v52 }
  0x61   : > { %444 = vst [vmem:[%s4555_s8 + $0x1d4] sm:$0xf] %v443_v53  ;;  %446 = vst [vmem:[%s4555_s8 + $0x1d8] sm:$0xf] %v445_v54  ;;  %v447_v55 = vld [vmem:[%s4548_s7 + $0x3b8] sm:$0xf] }
  0x62   : > { %v449_v56 = vld [vmem:[%s4548_s7 + $0x3c0] sm:$0xf]  ;;  %v451_v57 = vld [vmem:[%s4548_s7 + $0x3c8] sm:$0xf]  ;;  %448 = vst [vmem:[%s4555_s8 + $0x1dc] sm:$0xf] %v447_v55 }
  0x63   : > { %450 = vst [vmem:[%s4555_s8 + $0x1e0] sm:$0xf] %v449_v56  ;;  %452 = vst [vmem:[%s4555_s8 + $0x1e4] sm:$0xf] %v451_v57  ;;  %v453_v58 = vld [vmem:[%s4548_s7 + $0x3d0] sm:$0xf] }
  0x64   : > { %v455_v59 = vld [vmem:[%s4548_s7 + $0x3d8] sm:$0xf]  ;;  %v457_v60 = vld [vmem:[%s4548_s7 + $0x3e0] sm:$0xf]  ;;  %454 = vst [vmem:[%s4555_s8 + $0x1e8] sm:$0xf] %v453_v58 }
  0x65   : > { %456 = vst [vmem:[%s4555_s8 + $0x1ec] sm:$0xf] %v455_v59  ;;  %458 = vst [vmem:[%s4555_s8 + $0x1f0] sm:$0xf] %v457_v60  ;;  %v459_v61 = vld [vmem:[%s4548_s7 + $0x3e8] sm:$0xf] }
  0x66   : > { %v461_v62 = vld [vmem:[%s4548_s7 + $0x3f0] sm:$0xf]  ;;  %v463_v63 = vld [vmem:[%s4548_s7 + $0x3f8] sm:$0xf]  ;;  %460 = vst [vmem:[%s4555_s8 + $0x1f4] sm:$0xf] %v459_v61 }
  0x67   : > { %462 = vst [vmem:[%s4555_s8 + $0x1f8] sm:$0xf] %v461_v62  ;;  %464 = vst [vmem:[%s4555_s8 + $0x1fc] sm:$0xf] %v463_v63  ;;  %v465_v0 = vld [vmem:[%s4548_s7 + $0x400] sm:$0xf] }
  0x68   : > { %v467_v1 = vld [vmem:[%s4548_s7 + $0x408] sm:$0xf]  ;;  %v469_v2 = vld [vmem:[%s4548_s7 + $0x410] sm:$0xf]  ;;  %466 = vst [vmem:[%s4555_s8 + $0x200] sm:$0xf] %v465_v0 }
  0x69   : > { %468 = vst [vmem:[%s4555_s8 + $0x204] sm:$0xf] %v467_v1  ;;  %470 = vst [vmem:[%s4555_s8 + $0x208] sm:$0xf] %v469_v2  ;;  %v471_v3 = vld [vmem:[%s4548_s7 + $0x418] sm:$0xf] }
  0x6a   : > { %v473_v4 = vld [vmem:[%s4548_s7 + $0x420] sm:$0xf]  ;;  %v475_v5 = vld [vmem:[%s4548_s7 + $0x428] sm:$0xf]  ;;  %472 = vst [vmem:[%s4555_s8 + $0x20c] sm:$0xf] %v471_v3 }
  0x6b   : > { %474 = vst [vmem:[%s4555_s8 + $0x210] sm:$0xf] %v473_v4  ;;  %476 = vst [vmem:[%s4555_s8 + $0x214] sm:$0xf] %v475_v5  ;;  %v477_v6 = vld [vmem:[%s4548_s7 + $0x430] sm:$0xf] }
  0x6c   : > { %v479_v7 = vld [vmem:[%s4548_s7 + $0x438] sm:$0xf]  ;;  %v481_v8 = vld [vmem:[%s4548_s7 + $0x440] sm:$0xf]  ;;  %478 = vst [vmem:[%s4555_s8 + $0x218] sm:$0xf] %v477_v6 }
  0x6d   : > { %480 = vst [vmem:[%s4555_s8 + $0x21c] sm:$0xf] %v479_v7  ;;  %482 = vst [vmem:[%s4555_s8 + $0x220] sm:$0xf] %v481_v8  ;;  %v483_v9 = vld [vmem:[%s4548_s7 + $0x448] sm:$0xf] }
  0x6e   : > { %v485_v10 = vld [vmem:[%s4548_s7 + $0x450] sm:$0xf]  ;;  %v487_v11 = vld [vmem:[%s4548_s7 + $0x458] sm:$0xf]  ;;  %484 = vst [vmem:[%s4555_s8 + $0x224] sm:$0xf] %v483_v9 }
  0x6f   : > { %486 = vst [vmem:[%s4555_s8 + $0x228] sm:$0xf] %v485_v10  ;;  %488 = vst [vmem:[%s4555_s8 + $0x22c] sm:$0xf] %v487_v11  ;;  %v489_v12 = vld [vmem:[%s4548_s7 + $0x460] sm:$0xf] }
  0x70   : > { %v491_v13 = vld [vmem:[%s4548_s7 + $0x468] sm:$0xf]  ;;  %v493_v14 = vld [vmem:[%s4548_s7 + $0x470] sm:$0xf]  ;;  %490 = vst [vmem:[%s4555_s8 + $0x230] sm:$0xf] %v489_v12 }
  0x71   : > { %492 = vst [vmem:[%s4555_s8 + $0x234] sm:$0xf] %v491_v13  ;;  %494 = vst [vmem:[%s4555_s8 + $0x238] sm:$0xf] %v493_v14  ;;  %v495_v15 = vld [vmem:[%s4548_s7 + $0x478] sm:$0xf] }
  0x72   : > { %496 = vst [vmem:[%s4555_s8 + $0x23c] sm:$0xf] %v495_v15 }
  0x73 PF: > { %p3368_p7 = scmp.ge.s32.totalorder %s4474_s20, 1  ;;  %p826_p8 = scmp.lt.s32.totalorder %s4474_s20, 3 }
  0x75   : > { %p827_p9 = pnand %p3368_p7, %p826_p8 }
  0x77   : > { %830 = sbr.rel (%p827_p9) target bundleno = 732 (0x2dc), region = 77 }
  0x7c   : > { %s833_s9 = sand.u32 1, %s4466_s18   ;;  %v3395_v16 = vld [vmem:[%s5876_s0 + $0xa0] sm:$0xff]  ;;  %v4849_v17 = vld [vmem:[%s5876_s0 + $0xa8] sm:$0xff]  ;;  %v4866_v22 = vld [vmem:[%s5876_s0 + $0x10] sm:$0xff]  ;;  %p869_p10 = scmp.lt.s32.totalorder %s4523_s21, 1 }
  0x7d   : > { %v896_v18 = vld [vmem:[%s5876_s0] sm:$0xff]  ;;  %s4352_s16 = smul.u32 576, %s833_s9  ;;  %v947_v19 = vpack.c.bf16 %v4849_v17, %v3395_v16  ;;  %v4860_v20 = vld [vmem:[%s5876_s0 + $0x8] sm:$0xff]  ;;  %v4871_v23 = vld [vmem:[%s5876_s0 + $0x18] sm:$0xff]  ;;  %s3369_s20 = sshll.u32 %s833_s9, 7 }
  0x7e   : > { %v904_v21 = vpack.c.bf16 %v4860_v20, %v896_v18  ;;  %v4876_v24 = vld [vmem:[%s5876_s0 + $0x20] sm:$0xff]  ;;  %v1582_v26 = vpack.c.bf16 %v4866_v22, %v4860_v20  ;;  %v4937_v38 = vld [vmem:[%s5876_s0 + $0x28] sm:$0xff]  ;;  %v4942_v39 = vld [vmem:[%s5876_s0 + $0x30] sm:$0xff]  ;;  %v4999_v51 = vpack.c.bf16 %v4871_v23, %v4866_v22  ;;  %s870_s7 = scalar_select %p869_p10, %s4523_s21, 1 }
  0x7f   : > { %3935 = vmatprep.mubr.bf16.mxu0 %v947_v19  ;;  %s4878_s6 = scalar_lea.vmem [#allocation2], %s4352_s16  ;;  %v1583_v27 = vpack.c.bf16 %v4876_v24, %v4871_v23  ;;  %v1584_v41 = vpack.c.bf16 %v4942_v39, %v4937_v38  ;;  %v4974_v46 = vld [vmem:[%s5876_s0 + $0xb0] sm:$0xff]  ;;  %v4979_v47 = vld [vmem:[%s5876_s0 + $0xb8] sm:$0xff]  ;;  %v4989_v49 = vld [vmem:[%s5876_s0 + $0xc0] sm:$0xff]  ;;  %v5036_v61 = vpack.c.bf16 %v4937_v38, %v4876_v24  ;;  %s5819_s18 = scalar_lea.vmem [#allocation3], %s3369_s20 }
  0x80   : > { %v4881_v25 = vld [vmem:[%s4878_s6 + $0x78] sm:$0xff]   ;;  %3959 = vmatprep.mubr.bf16.mxu1 %v904_v21  ;;  %v4892_v29 = vld [vmem:[%s4878_s6 + $0x70] sm:$0xff]   ;;  %v4902_v31 = vld [vmem:[%s4878_s6 + $0x68] sm:$0xff]   ;;  %v948_v48 = vpack.c.bf16 %v4979_v47, %v4974_v46  ;;  %v1817_v56 = vpack.c.bf16 %v4974_v46, %v4849_v17  ;;  %v1818_v59 = vpack.c.bf16 %v4989_v49, %v4979_v47  ;;  %s3370_s8 = sshll.u32 %s870_s7, 1  ;;  %s871_s14 = scalar_lea.vmem %s5878_s2, %s870_s7 }
  0x81   : > { %v4888_v28 = vld [vmem:[%s4878_s6 + $0x38] sm:$0xff]   ;;  %3919 = vmatprep.subr.bf16.mxu0 %v4881_v25  ;;  %v4897_v30 = vld [vmem:[%s4878_s6 + $0x30] sm:$0xff]   ;;  %v4906_v32 = vld [vmem:[%s4878_s6 + $0x28] sm:$0xff]   ;;  %s878_s12 = scalar_lea.vmem %s5880_s4, %s3370_s8  ;;  %s874_s17 = scalar_lea.vmem %s5879_s3, %s870_s7 }
  0x82   : > { %3943 = vmatprep.subr.bf16.mxu1 %v4888_v28  ;;  %3920 = vmatpush3.bf16.msra.mxu0 %v4881_v25  ;;  %v4912_v33 = vld [vmem:[%s4878_s6 + $0x60] sm:$0xff]   ;;  %v4922_v35 = vld [vmem:[%s4878_s6 + $0x58] sm:$0xff]   ;;  %v4932_v37 = vld [vmem:[%s4878_s6 + $0x50] sm:$0xff]   ;;  %s3700_s9 = sshll.u32 (%p4538_p5), %s4523_s21, 3 }
  0x83   : > { %3944 = vmatpush3.bf16.msra.mxu1 %v4888_v28  ;;  %3921 = vmatprep.subr.bf16.mxu0 %v4892_v29  ;;  %v4916_v34 = vld [vmem:[%s4878_s6 + $0x20] sm:$0xff]   ;;  %v4926_v36 = vld [vmem:[%s4878_s6 + $0x18] sm:$0xff]   ;;  %v4946_v40 = vld [vmem:[%s4878_s6 + $0x10] sm:$0xff]   ;;  %s3183_s27 = scalar_lea.vmem (%p4538_p5), %s5881_s5, %s3700_s9 }
  0x84   : > { %3945 = vmatprep.subr.bf16.mxu1 %v4897_v30  ;;  %v4954_v42 = vld [vmem:[%s4878_s6 + $0x48] sm:$0xff]   ;;  %v4964_v44 = vld [vmem:[%s4878_s6 + $0x40] sm:$0xff]   ;;  %v5004_v52 = vld [vmem:[%s5876_s0 + $0xf8] sm:$0xff] }
  0x85   : > { %v4958_v43 = vld [vmem:[%s4878_s6 + $0x8] sm:$0xff]   ;;  %v4968_v45 = vld [vmem:[%s4878_s6] sm:$0xff]   ;;  %v5021_v55 = vld [vmem:[%s5876_s0 + $0x110] sm:$0xff] }
  0x86   : > { %3922 = vmatpush3.bf16.msra.mxu0 %v4892_v29  ;;  %v4994_v50 = vld [vmem:[%s5876_s0 + $0xc8] sm:$0xff]  ;;  %v5011_v53 = vld [vmem:[%s5876_s0 + $0x100] sm:$0xff]  ;;  %v5043_v62 = vld [vmem:[%s5876_s0 + $0xd0] sm:$0xff] }
  0x87   : > { %3946 = vmatpush3.bf16.msra.mxu1 %v4897_v30  ;;  %3923 = vmatprep.subr.bf16.mxu0 %v4902_v31  ;;  %v5016_v54 = vld [vmem:[%s5876_s0 + $0x108] sm:$0xff]  ;;  %v949_v57 = vpack.c.bf16 %v4994_v50, %v4989_v49  ;;  %v1950_v58 = vpack.c.bf16 %v5011_v53, %v5004_v52  ;;  %v5048_v63 = vld [vmem:[%s5876_s0 + $0xd8] sm:$0xff]  ;;  %v3419_v1 = vld [vmem:[%s5876_s0 + $0xf0] sm:$0xff]  ;;  %v1819_v8 = vpack.c.bf16 %v5043_v62, %v4994_v50 }
  0x88   : > { %3947 = vmatprep.subr.bf16.mxu1 %v4906_v32  ;;  %v1951_v60 = vpack.c.bf16 %v5021_v55, %v5016_v54  ;;  %v5055_v0 = vld [vmem:[%s5876_s0 + $0x38] sm:$0xff]  ;;  %v3371_v2 = vld [vmem:[%s5876_s0 + $0x50] sm:$0xff]  ;;  %v950_v4 = vpack.c.bf16 %v5048_v63, %v5043_v62  ;;  %v5085_v7 = vld [vmem:[%s5876_s0 + $0x120] sm:$0xff]  ;;  %v1186_v10 = vpack.c.bf16 %v5004_v52, %v3419_v1 }
  0x89   : > { %v5067_v3 = vld [vmem:[%s5876_s0 + $0x58] sm:$0xff]  ;;  %v5080_v6 = vpack.c.bf16 %v5055_v0, %v4942_v39  ;;  %v5116_v12 = vld [vmem:[%s5876_s0 + $0x60] sm:$0xff]  ;;  %v5122_v13 = vld [vmem:[%s5876_s0 + $0x68] sm:$0xff] }
  0x8a   : > { %3924 = vmatpush3.bf16.msra.mxu0 %v4902_v31  ;;  %v5075_v5 = vld [vmem:[%s5876_s0 + $0x118] sm:$0xff]  ;;  %v917_v11 = vpack.c.bf16 %v5067_v3, %v3371_v2  ;;  %v5131_v15 = vld [vmem:[%s5876_s0 + $0x70] sm:$0xff]  ;;  %v5141_v18 = vld [vmem:[%s5876_s0 + $0x148] sm:$0xff] }
  0x8b   : > { %3948 = vmatpush3.bf16.msra.mxu1 %v4906_v32  ;;  %3925 = vmatprep.subr.bf16.mxu0 %v4912_v33  ;;  %v4394_v14 = vld [vmem:[%s4878_s6 + $0xb8] sm:$0xff]   ;;  %v5151_v21 = vld [vmem:[%s5876_s0 + $0x150] sm:$0xff]  ;;  %v3443_v1 = vld [vmem:[%s5876_s0 + $0x140] sm:$0xff]  ;;  %v1716_v22 = vpack.c.bf16 %v5131_v15, %v5122_v13  ;;  %v5883_v49 = vpack.c.bf16 %v5085_v7, %v5075_v5 }
  0x8c   : > { %3949 = vmatprep.subr.bf16.mxu1 %v4916_v34  ;;  %v5136_v16 = vld [vmem:[%s5876_s0 + $0x78] sm:$0xff]  ;;  %v3459_v2 = vld [vmem:[%s5876_s0 + $0x190] sm:$0xff]  ;;  %v4412_v23 = vld [vmem:[%s4878_s6 + $0x128] sm:$0xff]  }
  0x8d   : > { %v5146_v19 = vld [vmem:[%s5876_s0 + $0x198] sm:$0xff]  ;;  %v4415_v39 = vld [vmem:[%s4878_s6 + $0x110] sm:$0xff]   ;;  %v4417_v17 = vld [vmem:[%s4878_s6 + $0x100] sm:$0xff]  }
  0x8e   : > { %3926 = vmatpush3.bf16.msra.mxu0 %v4912_v33  ;;  %v1480_v9 = vpack.c.bf16 %v5146_v19, %v3459_v2  ;;  %v4403_v2 = vld [vmem:[%s4878_s6 + $0xf0] sm:$0xff]   ;;  %v4410_v20 = vld [vmem:[%s4878_s6 + $0x138] sm:$0xff]   ;;  %v4420_v47 = vld [vmem:[%s4878_s6 + $0x168] sm:$0xff]  }
  0x8f   : > { %3950 = vmatpush3.bf16.msra.mxu1 %v4916_v34  ;;  %3927 = vmatprep.subr.bf16.mxu0 %v4922_v35  ;;  %v4414_v38 = vld [vmem:[%s4878_s6 + $0x118] sm:$0xff]   ;;  %v4419_v52 = vld [vmem:[%s4878_s6 + $0x170] sm:$0xff]  }
  0x90   : > { %3951 = vmatprep.subr.bf16.mxu1 %v4926_v36  ;;  %v4418_v46 = vld [vmem:[%s4878_s6 + $0x178] sm:$0xff]   ;;  %v4423_v62 = vld [vmem:[%s4878_s6 + $0x150] sm:$0xff]  }
  0x91   : > { %v4422_v50 = vld [vmem:[%s4878_s6 + $0x158] sm:$0xff]  }
  0x92   : > { %3928 = vmatpush3.bf16.msra.mxu0 %v4922_v35 }
  0x93   : > { %3952 = vmatpush3.bf16.msra.mxu1 %v4926_v36  ;;  %3929 = vmatprep.subr.bf16.mxu0 %v4932_v37 }
  0x94   : > { %3953 = vmatprep.subr.bf16.mxu1 %v4946_v40 }
  0x96   : > { %3930 = vmatpush3.bf16.msra.mxu0 %v4932_v37 }
  0x97   : > { %3954 = vmatpush3.bf16.msra.mxu1 %v4946_v40  ;;  %3931 = vmatprep.subr.bf16.mxu0 %v4954_v42 }
  0x98   : > { %3955 = vmatprep.subr.bf16.mxu1 %v4958_v43 }
  0x9a   : > { %3932 = vmatpush3.bf16.msra.mxu0 %v4954_v42 }
  0x9b   : > { %3956 = vmatpush3.bf16.msra.mxu1 %v4958_v43  ;;  %3933 = vmatprep.subr.bf16.mxu0 %v4964_v44 }
  0x9c   : > { %3957 = vmatprep.subr.bf16.mxu1 %v4968_v45 }
  0x9e   : > { %3934 = vmatpush3.bf16.msra.mxu0 %v4964_v44 }
  0x9f   : > { %3958 = vmatpush3.bf16.msra.mxu1 %v4968_v45  ;;  %3967 = vmatprep.subr.bf16.mxu0 %v4881_v25 }
  0xa0   : > { %3991 = vmatprep.subr.bf16.mxu1 %v4888_v28 }
  0xa1   : > { %3936 = vmatmul.mubr.bf16.vlgmr.msra.gmra.mxu0 %v948_v48  ;;  %v5210_v48 = vld [vmem:[%s5876_s0 + $0x80] sm:$0xff] }
  0xa2   : > { %3960 = vmatmul.mubr.bf16.vlgmr.msra.gmra.mxu1 %v4999_v51  ;;  %3968 = vmatpush3.bf16.msra.mxu0 %v4881_v25  ;;  %v5156_v25 = vld [vmem:[%s5876_s0 + $0x158] sm:$0xff] }
  0xa3   : > { %3992 = vmatpush3.bf16.msra.mxu1 %v4888_v28  ;;  %3969 = vmatprep.subr.bf16.mxu0 %v4892_v29  ;;  %v5161_v28 = vld [vmem:[%s5876_s0 + $0x1a0] sm:$0xff] }
  0xa4   : > { %3993 = vmatprep.subr.bf16.mxu1 %v4897_v30  ;;  %3939 = vmatprep.mubr.bf16.mxu0 %v949_v57  ;;  %v5215_v57 = vld [vmem:[%s5876_s0 + $0x88] sm:$0xff] }
  0xa5   : > { %3963 = vmatprep.mubr.bf16.mxu1 %v5036_v61 }
  0xa6   : > { %3970 = vmatpush3.bf16.msra.mxu0 %v4892_v29  ;;  %v5166_v29 = vld [vmem:[%s5876_s0 + $0x160] sm:$0xff] }
  0xa7   : > { %3994 = vmatpush3.bf16.msra.mxu1 %v4897_v30  ;;  %3971 = vmatprep.subr.bf16.mxu0 %v4902_v31  ;;  %v1187_v30 = vpack.c.bf16 %v5016_v54, %v5011_v53  ;;  %v5347_v53 = vld [vmem:[%s5876_s0 + $0xe0] sm:$0xff] }
  0xa8   : > { %3995 = vmatprep.subr.bf16.mxu1 %v4906_v32  ;;  %v1820_v54 = vpack.c.bf16 %v5347_v53, %v5048_v63  ;;  %v4424_v63 = vld [vmem:[%s4878_s6 + $0x148] sm:$0xff]  }
  0xa9   : > { %3940 = vmatmul.mubr.bf16.gmra.mxu0 %v950_v4  ;;  %v5227_v4 = vld [vmem:[%s5876_s0 + $0x168] sm:$0xff] }
  0xaa   : > { %3972 = vmatpush3.bf16.msra.mxu0 %v4902_v31  ;;  %3964 = vmatmul.mubr.bf16.gmra.mxu1 %v5080_v6  ;;  %v4395_v31 = vld [vmem:[%s4878_s6 + $0xb0] sm:$0xff]  }
  0xab   : > { %3996 = vmatpush3.bf16.msra.mxu1 %v4906_v32  ;;  %3973 = vmatprep.subr.bf16.mxu0 %v4912_v33  ;;  %v5174_v32 = vld [vmem:[%s5876_s0 + $0x1a8] sm:$0xff] }
  0xac   : > { %3997 = vmatprep.subr.bf16.mxu1 %v4916_v34  ;;  %3983 = vmatprep.mubr.bf16.mxu0 %v1186_v10  ;;  %v5232_v10 = vld [vmem:[%s5876_s0 + $0x1b8] sm:$0xff] }
  0xad   : > { %4007 = vmatprep.mubr.bf16.mxu1 %v917_v11  ;;  %v5237_v11 = vld [vmem:[%s5876_s0 + $0x170] sm:$0xff] }
  0xae   : > { %3974 = vmatpush3.bf16.msra.mxu0 %v4912_v33  ;;  %v5179_v33 = vld [vmem:[%s5876_s0 + $0x1b0] sm:$0xff] }
  0xaf   : > { %3998 = vmatpush3.bf16.msra.mxu1 %v4916_v34  ;;  %3975 = vmatprep.subr.bf16.mxu0 %v4922_v35  ;;  %v5184_v34 = vpack.c.bf16 %v5122_v13, %v5116_v12  ;;  %v5315_v13 = vld [vmem:[%s5876_s0 + $0x90] sm:$0xff] }
  0xb0   : > { %3999 = vmatprep.subr.bf16.mxu1 %v4926_v36 }
  0xb2   : > { %3976 = vmatpush3.bf16.msra.mxu0 %v4922_v35  ;;  %v1346_v35 = vpack.c.bf16 %v5141_v18, %v3443_v1  ;;  %v4400_v1 = vld [vmem:[%s4878_s6 + $0x88] sm:$0xff]  }
  0xb3   : > { %4000 = vmatpush3.bf16.msra.mxu1 %v4926_v36  ;;  %3977 = vmatprep.subr.bf16.mxu0 %v4932_v37  ;;  %v4399_v36 = vld [vmem:[%s4878_s6 + $0x90] sm:$0xff]  }
  0xb4   : > { %4001 = vmatprep.subr.bf16.mxu1 %v4946_v40 }
  0xb6   : > { %3978 = vmatpush3.bf16.msra.mxu0 %v4932_v37  ;;  %v1715_v37 = vpack.c.bf16 %v5116_v12, %v5067_v3  ;;  %v4408_v3 = vld [vmem:[%s4878_s6 + $0xc8] sm:$0xff]   ;;  %v4409_v12 = vld [vmem:[%s4878_s6 + $0xc0] sm:$0xff]  }
  0xb7   : > { %4002 = vmatpush3.bf16.msra.mxu1 %v4946_v40  ;;  %3979 = vmatprep.subr.bf16.mxu0 %v4954_v42  ;;  %v1188_v40 = vpack.c.bf16 %v5075_v5, %v5021_v55  ;;  %v4426_v5 = vld [vmem:[%s4878_s6 + $0x1b8] sm:$0xff]  }
  0xb8   : > { %4003 = vmatprep.subr.bf16.mxu1 %v4958_v43 }
  0xba   : > { %3980 = vmatpush3.bf16.msra.mxu0 %v4954_v42  ;;  %v5198_v42 = vld [vmem:[%s5876_s0 + $0x128] sm:$0xff] }
  0xbb   : > { %4004 = vmatpush3.bf16.msra.mxu1 %v4958_v43  ;;  %3981 = vmatprep.subr.bf16.mxu0 %v4964_v44  ;;  %v4397_v43 = vld [vmem:[%s4878_s6 + $0xa0] sm:$0xff]  }
  0xbc   : > { %4005 = vmatprep.subr.bf16.mxu1 %v4968_v45 }
  0xbe   : > { %3982 = vmatpush3.bf16.msra.mxu0 %v4964_v44  ;;  %v4396_v44 = vld [vmem:[%s4878_s6 + $0xa8] sm:$0xff]  }
  0xbf   : > { %4006 = vmatpush3.bf16.msra.mxu1 %v4968_v45  ;;  %4015 = vmatprep.subr.bf16.mxu0 %v4394_v14  ;;  %v5205_v45 = vpack.c.bf16 %v5136_v16, %v5131_v15  ;;  %v4413_v15 = vld [vmem:[%s4878_s6 + $0x120] sm:$0xff]  }
  0xc0   : > { %4039 = vmatprep.subr.bf16.mxu1 %v4394_v14 }
  0xc1   : > { %3984 = vmatmul.mubr.bf16.vlgmr.msra.gmra.mxu0 %v1187_v30  ;;  %v1189_v30 = vpack.c.bf16 %v5198_v42, %v5085_v7  ;;  %v4427_v7 = vld [vmem:[%s4878_s6 + $0x1b0] sm:$0xff]  }
  0xc2   : > { %4008 = vmatmul.mubr.bf16.vlgmr.msra.gmra.mxu1 %v5184_v34  ;;  %4016 = vmatpush3.bf16.msra.mxu0 %v4394_v14 }
  0xc3   : > { %4040 = vmatpush3.bf16.msra.mxu1 %v4394_v14  ;;  %4017 = vmatprep.subr.bf16.mxu0 %v4395_v31  ;;  %v5242_v14 = vld [vmem:[%s5876_s0 + $0x1c0] sm:$0xff] }
  0xc4   : > { %4041 = vmatprep.subr.bf16.mxu1 %v4395_v31  ;;  %3987 = vmatprep.mubr.bf16.mxu0 %v1188_v40  ;;  %v5249_v40 = vpack.c.bf16 %v5215_v57, %v5210_v48 }
  0xc5   : > { %4011 = vmatprep.mubr.bf16.mxu1 %v5205_v45 }
  0xc6   : > { %4018 = vmatpush3.bf16.msra.mxu0 %v4395_v31 }
  0xc7   : > { %4042 = vmatpush3.bf16.msra.mxu1 %v4395_v31  ;;  %4019 = vmatprep.subr.bf16.mxu0 %v4396_v44  ;;  %v4398_v31 = vld [vmem:[%s4878_s6 + $0x98] sm:$0xff]  }
  0xc8   : > { %4043 = vmatprep.subr.bf16.mxu1 %v4396_v44 }
  0xc9   : > { %3988 = vmatmul.mubr.bf16.gmra.mxu0 %v1189_v30  ;;  %v1482_v30 = vpack.c.bf16 %v5232_v10, %v5179_v33 }
  0xca   : > { %4020 = vmatpush3.bf16.msra.mxu0 %v4396_v44  ;;  %4012 = vmatmul.mubr.bf16.gmra.mxu1 %v5249_v40 }
  0xcb   : > { %4044 = vmatpush3.bf16.msra.mxu1 %v4396_v44  ;;  %4021 = vmatprep.subr.bf16.mxu0 %v4397_v43  ;;  %v4401_v44 = vld [vmem:[%s4878_s6 + $0x80] sm:$0xff]  }
  0xcc   : > { %4045 = vmatprep.subr.bf16.mxu1 %v4397_v43  ;;  %4031 = vmatprep.mubr.bf16.mxu0 %v1346_v35  ;;  %v1347_v35 = vpack.c.bf16 %v5156_v25, %v5151_v21 }
  0xcd   : > { %4055 = vmatprep.mubr.bf16.mxu1 %v1480_v9  ;;  %v4402_v9 = vld [vmem:[%s4878_s6 + $0xf8] sm:$0xff]  }
  0xce   : > { %4022 = vmatpush3.bf16.msra.mxu0 %v4397_v43 }
  0xcf   : > { %4046 = vmatpush3.bf16.msra.mxu1 %v4397_v43  ;;  %4023 = vmatprep.subr.bf16.mxu0 %v4398_v31  ;;  %v1481_v43 = vpack.c.bf16 %v5174_v32, %v5161_v28 }
  0xd0   : > { %4047 = vmatprep.subr.bf16.mxu1 %v4398_v31 }
  0xd2   : > { %4024 = vmatpush3.bf16.msra.mxu0 %v4398_v31 }
  0xd3   : > { %4048 = vmatpush3.bf16.msra.mxu1 %v4398_v31  ;;  %4025 = vmatprep.subr.bf16.mxu0 %v4399_v36  ;;  %v5276_v31 = vld [vmem:[%s5876_s0 + $0x178] sm:$0xff] }
  0xd4   : > { %4049 = vmatprep.subr.bf16.mxu1 %v4399_v36 }
  0xd6   : > { %4026 = vmatpush3.bf16.msra.mxu0 %v4399_v36 }
  0xd7   : > { %4050 = vmatpush3.bf16.msra.mxu1 %v4399_v36  ;;  %4027 = vmatprep.subr.bf16.mxu0 %v4400_v1  ;;  %v1348_v36 = vpack.c.bf16 %v5227_v4, %v5166_v29 }
  0xd8   : > { %4051 = vmatprep.subr.bf16.mxu1 %v4400_v1 }
  0xda   : > { %4028 = vmatpush3.bf16.msra.mxu0 %v4400_v1 }
  0xdb   : > { %4052 = vmatpush3.bf16.msra.mxu1 %v4400_v1  ;;  %4029 = vmatprep.subr.bf16.mxu0 %v4401_v44  ;;  %v5281_v1 = vld [vmem:[%s5876_s0 + $0x1c8] sm:$0xff] }
  0xdc   : > { %4053 = vmatprep.subr.bf16.mxu1 %v4401_v44 }
  0xde   : > { %4030 = vmatpush3.bf16.msra.mxu0 %v4401_v44 }
  0xdf   : > { %4054 = vmatpush3.bf16.msra.mxu1 %v4401_v44  ;;  %4063 = vmatprep.subr.bf16.mxu0 %v4402_v9  ;;  %v4404_v44 = vld [vmem:[%s4878_s6 + $0xe8] sm:$0xff]  }
  0xe0   : > { %4087 = vmatprep.subr.bf16.mxu1 %v4402_v9 }
  0xe1   : > { %4032 = vmatmul.mubr.bf16.vlgmr.msra.gmra.mxu0 %v1347_v35  ;;  %v1349_v35 = vpack.c.bf16 %v5276_v31, %v5237_v11 }
  0xe2   : > { %4056 = vmatmul.mubr.bf16.vlgmr.msra.gmra.mxu1 %v1481_v43  ;;  %4064 = vmatpush3.bf16.msra.mxu0 %v4402_v9  ;;  %v1483_v43 = vpack.c.bf16 %v5281_v1, %v5242_v14 }
  0xe3   : > { %4088 = vmatpush3.bf16.msra.mxu1 %v4402_v9  ;;  %4065 = vmatprep.subr.bf16.mxu0 %v4403_v2  ;;  %v4405_v9 = vld [vmem:[%s4878_s6 + $0xe0] sm:$0xff]  }
  0xe4   : > { %4089 = vmatprep.subr.bf16.mxu1 %v4403_v2  ;;  %4035 = vmatprep.mubr.bf16.mxu0 %v1348_v36  ;;  %v4406_v36 = vld [vmem:[%s4878_s6 + $0xd8] sm:$0xff]  }
  0xe5   : > { %4059 = vmatprep.mubr.bf16.mxu1 %v1482_v30  ;;  %v5310_v30 = vld [vmem:[%s5876_s0 + $0x40] sm:$0xff] }
  0xe6   : > { %4066 = vmatpush3.bf16.msra.mxu0 %v4403_v2  ;;  %v1585_v24 = vpack.c.bf16 %v5310_v30, %v5055_v0  ;;  %v4425_v0 = vld [vmem:[%s4878_s6 + $0x140] sm:$0xff]  }
  0xe7   : > { %4090 = vmatpush3.bf16.msra.mxu1 %v4403_v2  ;;  %4067 = vmatprep.subr.bf16.mxu0 %v4404_v44  ;;  %v4407_v2 = vld [vmem:[%s4878_s6 + $0xd0] sm:$0xff]  }
  0xe8   : > { %4091 = vmatprep.subr.bf16.mxu1 %v4404_v44 }
  0xe9   : > { %4036 = vmatmul.mubr.bf16.gmra.mxu0 %v1349_v35  ;;  %v4436_v35 = vld [vmem:[%s4878_s6 + $0x1e8] sm:$0xff]  }
  0xea   : > { %4060 = vmatmul.mubr.bf16.gmra.mxu1 %v1483_v43  ;;  %4068 = vmatpush3.bf16.msra.mxu0 %v4404_v44 }
  0xeb   : > { %4092 = vmatpush3.bf16.msra.mxu1 %v4404_v44  ;;  %4069 = vmatprep.subr.bf16.mxu0 %v4405_v9  ;;  %v3610_v44 = vld [vmem:[%s5876_s0 + $0x98] sm:$0xff] }
  0xec   : > { %4093 = vmatprep.subr.bf16.mxu1 %v4405_v9  ;;  %4079 = vmatprep.mubr.bf16.mxu0 %v1582_v26  ;;  %v4411_v26 = vld [vmem:[%s4878_s6 + $0x130] sm:$0xff]  }
  0xed   : > { %4103 = vmatprep.mubr.bf16.mxu1 %v1715_v37  ;;  %v1717_v37 = vpack.c.bf16 %v5210_v48, %v5136_v16  ;;  %v5887_v16 = vpack.c.bf16 %v5179_v33, %v5174_v32  ;;  %v4429_v33 = vld [vmem:[%s4878_s6 + $0x1a0] sm:$0xff]   ;;  %v4431_v48 = vld [vmem:[%s4878_s6 + $0x190] sm:$0xff]  }
  0xee   : > { %4070 = vmatpush3.bf16.msra.mxu0 %v4405_v9 }
  0xef   : > { %4094 = vmatpush3.bf16.msra.mxu1 %v4405_v9  ;;  %4071 = vmatprep.subr.bf16.mxu0 %v4406_v36 }
  0xf0   : > { %4095 = vmatprep.subr.bf16.mxu1 %v4406_v36 }
  0xf2   : > { %4072 = vmatpush3.bf16.msra.mxu0 %v4406_v36 }
  0xf3   : > { %4096 = vmatpush3.bf16.msra.mxu1 %v4406_v36  ;;  %4073 = vmatprep.subr.bf16.mxu0 %v4407_v2  ;;  %v3627_v36 = vld [vmem:[%s5876_s0 + $0xb0] sm:$0xff] }
  0xf4   : > { %4097 = vmatprep.subr.bf16.mxu1 %v4407_v2 }
  0xf6   : > { %4074 = vmatpush3.bf16.msra.mxu0 %v4407_v2 }
  0xf7   : > { %4098 = vmatpush3.bf16.msra.mxu1 %v4407_v2  ;;  %4075 = vmatprep.subr.bf16.mxu0 %v4408_v3  ;;  %v3628_v2 = vld [vmem:[%s5876_s0 + $0xb8] sm:$0xff] }
  0xf8   : > { %4099 = vmatprep.subr.bf16.mxu1 %v4408_v3 }
  0xfa   : > { %4076 = vmatpush3.bf16.msra.mxu0 %v4408_v3 }
  0xfb   : > { %4100 = vmatpush3.bf16.msra.mxu1 %v4408_v3  ;;  %4077 = vmatprep.subr.bf16.mxu0 %v4409_v12 }
  0xfc   : > { %4101 = vmatprep.subr.bf16.mxu1 %v4409_v12 }
  0xfe   : > { %4078 = vmatpush3.bf16.msra.mxu0 %v4409_v12 }
  0xff   : > { %4102 = vmatpush3.bf16.msra.mxu1 %v4409_v12  ;;  %4111 = vmatprep.subr.bf16.mxu0 %v4410_v20  ;;  %v3643_v12 = vld [vmem:[%s5876_s0 + $0x100] sm:$0xff] }
 0x100   : > { %4135 = vmatprep.subr.bf16.mxu1 %v4410_v20 }
 0x101   : > { %4080 = vmatmul.mubr.bf16.vlgmr.msra.gmra.mxu0 %v1583_v27  ;;  %v1718_v27 = vpack.c.bf16 %v5315_v13, %v5215_v57  ;;  %v4432_v57 = vld [vmem:[%s4878_s6 + $0x188] sm:$0xff]  }
 0x102   : > { %4104 = vmatmul.mubr.bf16.vlgmr.msra.gmra.mxu1 %v1716_v22  ;;  %4112 = vmatpush3.bf16.msra.mxu0 %v4410_v20 }
 0x103   : > { %4136 = vmatpush3.bf16.msra.mxu1 %v4410_v20  ;;  %4113 = vmatprep.subr.bf16.mxu0 %v4411_v26 }
 0x104   : > { %4137 = vmatprep.subr.bf16.mxu1 %v4411_v26  ;;  %4083 = vmatprep.mubr.bf16.mxu0 %v1584_v41  ;;  %v4416_v41 = vld [vmem:[%s4878_s6 + $0x108] sm:$0xff]  }
 0x105   : > { %4107 = vmatprep.mubr.bf16.mxu1 %v1717_v37 }
 0x106   : > { %4114 = vmatpush3.bf16.msra.mxu0 %v4411_v26 }
 0x107   : > { %4138 = vmatpush3.bf16.msra.mxu1 %v4411_v26  ;;  %4115 = vmatprep.subr.bf16.mxu0 %v4412_v23  ;;  %v4437_v26 = vld [vmem:[%s4878_s6 + $0x1e0] sm:$0xff]  }
 0x108   : > { %4139 = vmatprep.subr.bf16.mxu1 %v4412_v23 }
 0x109   : > { %4084 = vmatmul.mubr.bf16.gmra.mxu0 %v1585_v24 }
 0x10a   : > { %4108 = vmatmul.mubr.bf16.gmra.mxu1 %v1718_v27  ;;  %4116 = vmatpush3.bf16.msra.mxu0 %v4412_v23 }
 0x10b   : > { %4140 = vmatpush3.bf16.msra.mxu1 %v4412_v23  ;;  %4117 = vmatprep.subr.bf16.mxu0 %v4413_v15 }
 0x10c   : > { %4141 = vmatprep.subr.bf16.mxu1 %v4413_v15  ;;  %4127 = vmatprep.mubr.bf16.mxu0 %v1817_v56  ;;  %v5352_v56 = vld [vmem:[%s5876_s0 + $0x130] sm:$0xff] }
 0x10d   : > { %4151 = vmatprep.mubr.bf16.mxu1 %v1950_v58  ;;  %v1953_v55 = vpack.c.bf16 %v5352_v56, %v5198_v42  ;;  %v4421_v58 = vld [vmem:[%s4878_s6 + $0x160] sm:$0xff]   ;;  %v4430_v42 = vld [vmem:[%s4878_s6 + $0x198] sm:$0xff]  }
 0x10e   : > { %4118 = vmatpush3.bf16.msra.mxu0 %v4413_v15 }
 0x10f   : > { %4142 = vmatpush3.bf16.msra.mxu1 %v4413_v15  ;;  %4119 = vmatprep.subr.bf16.mxu0 %v4414_v38  ;;  %v4438_v15 = vld [vmem:[%s4878_s6 + $0x1d8] sm:$0xff]  }
 0x110   : > { %4143 = vmatprep.subr.bf16.mxu1 %v4414_v38 }
 0x112   : > { %4120 = vmatpush3.bf16.msra.mxu0 %v4414_v38 }
 0x113   : > { %4144 = vmatpush3.bf16.msra.mxu1 %v4414_v38  ;;  %4121 = vmatprep.subr.bf16.mxu0 %v4415_v39 }
 0x114   : > { %4145 = vmatprep.subr.bf16.mxu1 %v4415_v39 }
 0x116   : > { %4122 = vmatpush3.bf16.msra.mxu0 %v4415_v39 }
 0x117   : > { %4146 = vmatpush3.bf16.msra.mxu1 %v4415_v39  ;;  %4123 = vmatprep.subr.bf16.mxu0 %v4416_v41 }
 0x118   : > { %4147 = vmatprep.subr.bf16.mxu1 %v4416_v41 }
 0x11a   : > { %4124 = vmatpush3.bf16.msra.mxu0 %v4416_v41 }
 0x11b   : > { %4148 = vmatpush3.bf16.msra.mxu1 %v4416_v41  ;;  %4125 = vmatprep.subr.bf16.mxu0 %v4417_v17 }
 0x11c   : > { %4149 = vmatprep.subr.bf16.mxu1 %v4417_v17 }
 0x11e   : > { %4126 = vmatpush3.bf16.msra.mxu0 %v4417_v17 }
 0x11f   : > { %4150 = vmatpush3.bf16.msra.mxu1 %v4417_v17  ;;  %4159 = vmatprep.subr.bf16.mxu0 %v4418_v46 }
 0x120   : > { %4183 = vmatprep.subr.bf16.mxu1 %v4418_v46 }
 0x121   : > { %4128 = vmatmul.mubr.bf16.vlgmr.msra.gmra.mxu0 %v1818_v59  ;;  %v5884_v59 = vpack.c.bf16 %v5151_v21, %v5141_v18  ;;  %v5387_v18 = vld [vmem:[%s5876_s0 + $0x180] sm:$0xff]  ;;  %v4428_v21 = vld [vmem:[%s4878_s6 + $0x1a8] sm:$0xff]  }
 0x122   : > { %4152 = vmatmul.mubr.bf16.vlgmr.msra.gmra.mxu1 %v1951_v60  ;;  %4160 = vmatpush3.bf16.msra.mxu0 %v4418_v46  ;;  %v5885_v60 = vpack.c.bf16 %v5161_v28, %v5146_v19  ;;  %v5392_v19 = vld [vmem:[%s5876_s0 + $0x1d0] sm:$0xff]  ;;  %v5889_v28 = vpack.c.bf16 %v5242_v14, %v5232_v10  ;;  %v2286_v14 = vld [vmem:[%s5876_s0 + $0x48] sm:$0xff] }
 0x123   : > { %4184 = vmatpush3.bf16.msra.mxu1 %v4418_v46  ;;  %4161 = vmatprep.subr.bf16.mxu0 %v4419_v52  ;;  %v2188_v32 = vpack.c.bf16 %v5392_v19, %v5281_v1  ;;  %v2290_v9 = vpack.c.bf16 %v2286_v14, %v5310_v30  ;;  %v2522_v30 = vpack.c.bf16 %v3628_v2, %v3627_v36  ;;  %v3683_v36 = vld [vmem:[%s5876_s0 + $0x1a0] sm:$0xff] }
 0x124   : > { %4185 = vmatprep.subr.bf16.mxu1 %v4419_v52  ;;  %4131 = vmatprep.mubr.bf16.mxu0 %v1819_v8  ;;  %v5886_v8 = vpack.c.bf16 %v5166_v29, %v5156_v25  ;;  %v5888_v25 = vpack.c.bf16 %v5237_v11, %v5227_v4  ;;  %v2055_v29 = vpack.c.bf16 %v5387_v18, %v5276_v31  ;;  %v4433_v4 = vld [vmem:[%s4878_s6 + $0x180] sm:$0xff]  }
 0x125   : > { %4155 = vmatprep.mubr.bf16.mxu1 %v5883_v49 }
 0x126   : > { %4162 = vmatpush3.bf16.msra.mxu0 %v4419_v52 }
 0x127   : > { %4186 = vmatpush3.bf16.msra.mxu1 %v4419_v52  ;;  %4163 = vmatprep.subr.bf16.mxu0 %v4420_v47 }
 0x128   : > { %4187 = vmatprep.subr.bf16.mxu1 %v4420_v47 }
 0x129   : > { %4132 = vmatmul.mubr.bf16.gmra.mxu0 %v1820_v54 }
 0x12a   : > { %4156 = vmatmul.mubr.bf16.gmra.mxu1 %v1953_v55  ;;  %4164 = vmatpush3.bf16.msra.mxu0 %v4420_v47 }
 0x12b   : > { %4188 = vmatpush3.bf16.msra.mxu1 %v4420_v47  ;;  %4165 = vmatprep.subr.bf16.mxu0 %v4421_v58  ;;  %v4439_v47 = vld [vmem:[%s4878_s6 + $0x1d0] sm:$0xff]  }
 0x12c   : > { %4189 = vmatprep.subr.bf16.mxu1 %v4421_v58  ;;  %4175 = vmatprep.mubr.bf16.mxu0 %v5884_v59  ;;  %v4441_v59 = vld [vmem:[%s4878_s6 + $0x1c0] sm:$0xff]  }
 0x12d   : > { %4199 = vmatprep.mubr.bf16.mxu1 %v5885_v60  ;;  %v3629_v60 = vld [vmem:[%s5876_s0 + $0xc0] sm:$0xff] }
 0x12e   : > { %4166 = vmatpush3.bf16.msra.mxu0 %v4421_v58 }
 0x12f   : > { %4190 = vmatpush3.bf16.msra.mxu1 %v4421_v58  ;;  %4167 = vmatprep.subr.bf16.mxu0 %v4422_v50 }
 0x130   : > { %4191 = vmatprep.subr.bf16.mxu1 %v4422_v50 }
 0x132   : > { %4168 = vmatpush3.bf16.msra.mxu0 %v4422_v50 }
 0x133   : > { %4192 = vmatpush3.bf16.msra.mxu1 %v4422_v50  ;;  %4169 = vmatprep.subr.bf16.mxu0 %v4423_v62  ;;  %v4440_v50 = vld [vmem:[%s4878_s6 + $0x1c8] sm:$0xff]  }
 0x134   : > { %4193 = vmatprep.subr.bf16.mxu1 %v4423_v62 }
 0x136   : > { %4170 = vmatpush3.bf16.msra.mxu0 %v4423_v62 }
 0x137   : > { %4194 = vmatpush3.bf16.msra.mxu1 %v4423_v62  ;;  %4171 = vmatprep.subr.bf16.mxu0 %v4424_v63  ;;  %v3630_v62 = vld [vmem:[%s5876_s0 + $0xc8] sm:$0xff] }
 0x138   : > { %4195 = vmatprep.subr.bf16.mxu1 %v4424_v63 }
 0x13a   : > { %4172 = vmatpush3.bf16.msra.mxu0 %v4424_v63 }
 0x13b   : > { %4196 = vmatpush3.bf16.msra.mxu1 %v4424_v63  ;;  %4173 = vmatprep.subr.bf16.mxu0 %v4425_v0  ;;  %v3645_v63 = vld [vmem:[%s5876_s0 + $0x110] sm:$0xff] }
 0x13c   : > { %4197 = vmatprep.subr.bf16.mxu1 %v4425_v0 }
 0x13e   : > { %4174 = vmatpush3.bf16.msra.mxu0 %v4425_v0 }
 0x13f   : > { %4198 = vmatpush3.bf16.msra.mxu1 %v4425_v0  ;;  %4207 = vmatprep.subr.bf16.mxu0 %v4426_v5  ;;  %v3646_v0 = vld [vmem:[%s5876_s0 + $0x118] sm:$0xff] }
 0x140   : > { %4231 = vmatprep.subr.bf16.mxu1 %v4426_v5 }
 0x141   : > { %4176 = vmatmul.mubr.bf16.vlgmr.msra.gmra.mxu0 %v5886_v8  ;;  %v3631_v8 = vld [vmem:[%s5876_s0 + $0xd0] sm:$0xff] }
 0x142   : > { %4200 = vmatmul.mubr.bf16.vlgmr.msra.gmra.mxu1 %v5887_v16  ;;  %4208 = vmatpush3.bf16.msra.mxu0 %v4426_v5  ;;  %v3632_v16 = vld [vmem:[%s5876_s0 + $0xd8] sm:$0xff] }
 0x143   : > { %4232 = vmatpush3.bf16.msra.mxu1 %v4426_v5  ;;  %4209 = vmatprep.subr.bf16.mxu0 %v4427_v7  ;;  %v4442_v5 = vld [vmem:[%s4878_s6 + $0x238] sm:$0xff]  }
 0x144   : > { %4233 = vmatprep.subr.bf16.mxu1 %v4427_v7  ;;  %4179 = vmatprep.mubr.bf16.mxu0 %v5888_v25  ;;  %v3647_v25 = vld [vmem:[%s5876_s0 + $0x120] sm:$0xff] }
 0x145   : > { %4203 = vmatprep.mubr.bf16.mxu1 %v5889_v28  ;;  %v3648_v28 = vld [vmem:[%s5876_s0 + $0x128] sm:$0xff] }
 0x146   : > { %4210 = vmatpush3.bf16.msra.mxu0 %v4427_v7 }
 0x147   : > { %4234 = vmatpush3.bf16.msra.mxu1 %v4427_v7  ;;  %4211 = vmatprep.subr.bf16.mxu0 %v4428_v21  ;;  %v2523_v7 = vpack.c.bf16 %v3630_v62, %v3629_v60  ;;  %v3669_v60 = vld [vmem:[%s5876_s0 + $0x160] sm:$0xff]  ;;  %v3670_v62 = vld [vmem:[%s5876_s0 + $0x168] sm:$0xff] }
 0x148   : > { %4235 = vmatprep.subr.bf16.mxu1 %v4428_v21 }
 0x149   : > { %4180 = vmatmul.mubr.bf16.gmra.mxu0 %v2055_v29  ;;  %v4443_v29 = vld [vmem:[%s4878_s6 + $0x230] sm:$0xff]  }
 0x14a   : > { %4204 = vmatmul.mubr.bf16.gmra.mxu1 %v2188_v32  ;;  %4212 = vmatpush3.bf16.msra.mxu0 %v4428_v21  ;;  %v2524_v32 = vpack.c.bf16 %v3632_v16, %v3631_v8  ;;  %v3687_v8 = vld [vmem:[%s5876_s0 + $0x1c0] sm:$0xff]  ;;  %v3688_v16 = vld [vmem:[%s5876_s0 + $0x1c8] sm:$0xff] }
 0x14b   : > { %4236 = vmatpush3.bf16.msra.mxu1 %v4428_v21  ;;  %4213 = vmatprep.subr.bf16.mxu0 %v4429_v33  ;;  %v2656_v21 = vpack.c.bf16 %v3646_v0, %v3645_v63  ;;  %v3685_v63 = vld [vmem:[%s5876_s0 + $0x1b0] sm:$0xff]  ;;  %v3686_v0 = vld [vmem:[%s5876_s0 + $0x1b8] sm:$0xff] }
 0x14c   : > { %4237 = vmatprep.subr.bf16.mxu1 %v4429_v33  ;;  %4223 = vmatprep.mubr.bf16.mxu0 %v4999_v51  ;;  %v4434_v51 = vld [vmem:[%s4878_s6 + $0x1f8] sm:$0xff]  }
 0x14d   : > { %4247 = vmatprep.mubr.bf16.mxu1 %v5184_v34  ;;  %v4435_v34 = vld [vmem:[%s4878_s6 + $0x1f0] sm:$0xff]  }
 0x14e   : > { %4214 = vmatpush3.bf16.msra.mxu0 %v4429_v33 }
 0x14f   : > { %4238 = vmatpush3.bf16.msra.mxu1 %v4429_v33  ;;  %4215 = vmatprep.subr.bf16.mxu0 %v4430_v42 }
 0x150   : > { %4239 = vmatprep.subr.bf16.mxu1 %v4430_v42 }
 0x152   : > { %4216 = vmatpush3.bf16.msra.mxu0 %v4430_v42 }
 0x153   : > { %4240 = vmatpush3.bf16.msra.mxu1 %v4430_v42  ;;  %4217 = vmatprep.subr.bf16.mxu0 %v4431_v48  ;;  %v2657_v42 = vpack.c.bf16 %v3648_v28, %v3647_v25  ;;  %v2891_v25 = vpack.c.bf16 %v3686_v0, %v3685_v63 }
 0x154   : > { %4241 = vmatprep.subr.bf16.mxu1 %v4431_v48 }
 0x156   : > { %4218 = vmatpush3.bf16.msra.mxu0 %v4431_v48 }
 0x157   : > { %4242 = vmatpush3.bf16.msra.mxu1 %v4431_v48  ;;  %4219 = vmatprep.subr.bf16.mxu0 %v4432_v57 }
 0x158   : > { %4243 = vmatprep.subr.bf16.mxu1 %v4432_v57 }
 0x15a   : > { %4220 = vmatpush3.bf16.msra.mxu0 %v4432_v57 }
 0x15b   : > { %4244 = vmatpush3.bf16.msra.mxu1 %v4432_v57  ;;  %4221 = vmatprep.subr.bf16.mxu0 %v4433_v4  ;;  %v3634_v57 = vld [vmem:[%s5876_s0 + $0xe8] sm:$0xff] }
 0x15c   : > { %4245 = vmatprep.subr.bf16.mxu1 %v4433_v4 }
 0x15e   : > { %4222 = vmatpush3.bf16.msra.mxu0 %v4433_v4 }
 0x15f   : > { %4246 = vmatpush3.bf16.msra.mxu1 %v4433_v4  ;;  %4255 = vmatprep.subr.bf16.mxu0 %v4434_v51 }
 0x160   : > { %4279 = vmatprep.subr.bf16.mxu1 %v4434_v51 }
 0x161   : > { %v3937_v10 = vpop.f32.mrf.mxu0  ;;  %4224 = vmatmul.mubr.bf16.vlgmr.msra.gmra.mxu0 %v5036_v61 }
 0x162   : > { %v3961_v11 = vpop.f32.mrf.mxu1  ;;  %4248 = vmatmul.mubr.bf16.vlgmr.msra.gmra.mxu1 %v5205_v45  ;;  %4256 = vmatpush3.bf16.msra.mxu0 %v4434_v51 }
 0x163   : > { %v5419_v31 = vadd.f32 %v3961_v11, %v3937_v10  ;;  %4280 = vmatpush3.bf16.msra.mxu1 %v4434_v51  ;;  %v1033_v1 = vpop.f32.mrf.mxu0  ;;  %4257 = vmatprep.subr.bf16.mxu0 %v4435_v34  ;;  %v4444_v10 = vld [vmem:[%s4878_s6 + $0x228] sm:$0xff]  }
 0x164   : > { %v1146_v43 = vpop.f32.mrf.mxu1  ;;  %4281 = vmatprep.subr.bf16.mxu1 %v4435_v34  ;;  %4227 = vmatprep.mubr.bf16.mxu0 %v5080_v6  ;;  %v2423_v6 = vpack.c.bf16 %v3610_v44, %v5315_v13  ;;  %v2525_v44 = vpack.c.bf16 %v3634_v57, %v5347_v53  ;;  %v3684_v53 = vld [vmem:[%s5876_s0 + $0x1a8] sm:$0xff] }
 0x165   : > { %v5426_v61 = vadd.f32 %v1146_v43, %v1033_v1  ;;  %v3938_v45 = vpop.f32.mrf.mxu0  ;;  %4251 = vmatprep.mubr.bf16.mxu1 %v5249_v40  ;;  %v3644_v40 = vld [vmem:[%s5876_s0 + $0x108] sm:$0xff]  ;;  %v3668_v43 = vld [vmem:[%s5876_s0 + $0x158] sm:$0xff] }
 0x166   : > { %v3962_v3 = vpop.f32.mrf.mxu1  ;;  %4258 = vmatpush3.bf16.msra.mxu0 %v4435_v34  ;;  %v2655_v24 = vpack.c.bf16 %v3644_v40, %v3643_v12 }
 0x167   : > { %v5443_v20 = vadd.f32 %v3962_v3, %v3938_v45  ;;  %4282 = vmatpush3.bf16.msra.mxu1 %v4435_v34  ;;  %v1036_v22 = vpop.f32.mrf.mxu0  ;;  %4259 = vmatprep.subr.bf16.mxu0 %v4436_v35  ;;  %v3650_v34 = vld [vmem:[%s5876_s0 + $0x138] sm:$0xff] }
 0x168   : > { %v1149_v37 = vpop.f32.mrf.mxu1  ;;  %4283 = vmatprep.subr.bf16.mxu1 %v4436_v35 }
 0x169   : > { %v5446_v23 = vadd.f32 %v1149_v37, %v1036_v22  ;;  %4228 = vmatmul.mubr.bf16.gmra.mxu0 %v2290_v9  ;;  %v3941_v13 = vpop.f32.mrf.mxu0  ;;  %v2658_v9 = vpack.c.bf16 %v3650_v34, %v5352_v56  ;;  %v3690_v34 = vld [vmem:[%s5876_s0 + $0x1d8] sm:$0xff] }
 0x16a   : > { %4252 = vmatmul.mubr.bf16.gmra.mxu1 %v2423_v6  ;;  %4260 = vmatpush3.bf16.msra.mxu0 %v4436_v35  ;;  %v3965_v27 = vpop.f32.mrf.mxu1  ;;  %v4445_v6 = vld [vmem:[%s4878_s6 + $0x220] sm:$0xff]  }
 0x16b   : > { %4284 = vmatpush3.bf16.msra.mxu1 %v4436_v35  ;;  %4261 = vmatprep.subr.bf16.mxu0 %v4437_v26  ;;  %v5449_v38 = vadd.f32 %v3965_v27, %v3941_v13  ;;  %v1049_v39 = vpop.f32.mrf.mxu0  ;;  %v3667_v35 = vld [vmem:[%s5876_s0 + $0x150] sm:$0xff] }
 0x16c   : > { %4285 = vmatprep.subr.bf16.mxu1 %v4437_v26  ;;  %v1162_v41 = vpop.f32.mrf.mxu1  ;;  %4271 = vmatprep.mubr.bf16.mxu0 %v2522_v30  ;;  %v2757_v40 = vpack.c.bf16 %v3668_v43, %v3667_v35  ;;  %v4446_v30 = vld [vmem:[%s4878_s6 + $0x218] sm:$0xff]  }
 0x16d   : > { %v5451_v17 = vadd.f32 %v1162_v41, %v1049_v39  ;;  %v3942_v46 = vpop.f32.mrf.mxu0  ;;  %4295 = vmatprep.mubr.bf16.mxu1 %v2655_v24 }
 0x16e   : > { %4262 = vmatpush3.bf16.msra.mxu0 %v4437_v26  ;;  %v3966_v52 = vpop.f32.mrf.mxu1 }
 0x16f   : > { %4286 = vmatpush3.bf16.msra.mxu1 %v4437_v26  ;;  %4263 = vmatprep.subr.bf16.mxu0 %v4438_v15  ;;  %v5454_v49 = vadd.f32 %v3966_v52, %v3942_v46  ;;  %v1052_v54 = vpop.f32.mrf.mxu0  ;;  %v2890_v26 = vpack.c.bf16 %v3684_v53, %v3683_v36  ;;  %v4447_v46 = vld [vmem:[%s4878_s6 + $0x210] sm:$0xff]  }
 0x170   : > { %4287 = vmatprep.subr.bf16.mxu1 %v4438_v15  ;;  %v1165_v55 = vpop.f32.mrf.mxu1 }
 0x171   : > { %v5456_v58 = vadd.f32 %v1165_v55, %v1052_v54 }
 0x172   : > { %4264 = vmatpush3.bf16.msra.mxu0 %v4438_v15 }
 0x173   : > { %4288 = vmatpush3.bf16.msra.mxu1 %v4438_v15  ;;  %4265 = vmatprep.subr.bf16.mxu0 %v4439_v47 }
 0x174   : > { %4289 = vmatprep.subr.bf16.mxu1 %v4439_v47 }
 0x176   : > { %4266 = vmatpush3.bf16.msra.mxu0 %v4439_v47 }
 0x177   : > { %4290 = vmatpush3.bf16.msra.mxu1 %v4439_v47  ;;  %4267 = vmatprep.subr.bf16.mxu0 %v4440_v50 }
 0x178   : > { %4291 = vmatprep.subr.bf16.mxu1 %v4440_v50 }
 0x17a   : > { %4268 = vmatpush3.bf16.msra.mxu0 %v4440_v50 }
 0x17b   : > { %4292 = vmatpush3.bf16.msra.mxu1 %v4440_v50  ;;  %4269 = vmatprep.subr.bf16.mxu0 %v4441_v59  ;;  %v4448_v50 = vld [vmem:[%s4878_s6 + $0x208] sm:$0xff]  }
 0x17c   : > { %4293 = vmatprep.subr.bf16.mxu1 %v4441_v59 }
 0x17e   : > { %4270 = vmatpush3.bf16.msra.mxu0 %v4441_v59 }
 0x17f   : > { %4294 = vmatpush3.bf16.msra.mxu1 %v4441_v59  ;;  %4303 = vmatprep.subr.bf16.mxu0 %v4442_v5  ;;  %v4449_v59 = vld [vmem:[%s4878_s6 + $0x200] sm:$0xff]  }
 0x180   : > { %4327 = vmatprep.subr.bf16.mxu1 %v4442_v5 }
 0x181   : > { %v3985_v33 = vpop.f32.mrf.mxu0  ;;  %4272 = vmatmul.mubr.bf16.vlgmr.msra.gmra.mxu0 %v2523_v7  ;;  %v3672_v7 = vld [vmem:[%s5876_s0 + $0x178] sm:$0xff] }
 0x182   : > { %v4009_v48 = vpop.f32.mrf.mxu1  ;;  %4296 = vmatmul.mubr.bf16.vlgmr.msra.gmra.mxu1 %v2656_v21  ;;  %4304 = vmatpush3.bf16.msra.mxu0 %v4442_v5  ;;  %v2758_v21 = vpack.c.bf16 %v3670_v62, %v3669_v60 }
 0x183   : > { %v5489_v4 = vadd.f32 %v4009_v48, %v3985_v33  ;;  %4328 = vmatpush3.bf16.msra.mxu1 %v4442_v5  ;;  %v1224_v51 = vpop.f32.mrf.mxu0  ;;  %4305 = vmatprep.subr.bf16.mxu0 %v4443_v29  ;;  %v3671_v5 = vld [vmem:[%s5876_s0 + $0x170] sm:$0xff]  ;;  %v3674_v48 = vld [vmem:[%s5876_s0 + $0x188] sm:$0xff] }
 0x184   : > { %v1289_v11 = vpop.f32.mrf.mxu1  ;;  %4329 = vmatprep.subr.bf16.mxu1 %v4443_v29  ;;  %4275 = vmatprep.mubr.bf16.mxu0 %v2524_v32  ;;  %v2759_v28 = vpack.c.bf16 %v3672_v7, %v3671_v5 }
 0x185   : > { %v5495_v14 = vadd.f32 %v1289_v11, %v1224_v51  ;;  %v3986_v1 = vpop.f32.mrf.mxu0  ;;  %4299 = vmatprep.mubr.bf16.mxu1 %v2657_v42 }
 0x186   : > { %v4010_v45 = vpop.f32.mrf.mxu1  ;;  %4306 = vmatpush3.bf16.msra.mxu0 %v4443_v29 }
 0x187   : > { %v5511_v2 = vadd.f32 %v4010_v45, %v3986_v1  ;;  %4330 = vmatpush3.bf16.msra.mxu1 %v4443_v29  ;;  %v1227_v3 = vpop.f32.mrf.mxu0  ;;  %4307 = vmatprep.subr.bf16.mxu0 %v4444_v10  ;;  %v2892_v29 = vpack.c.bf16 %v3688_v16, %v3687_v8  ;;  %v2893_v45 = vpack.c.bf16 %v3690_v34, %v5392_v19 }
 0x188   : > { %v1292_v12 = vpop.f32.mrf.mxu1  ;;  %4331 = vmatprep.subr.bf16.mxu1 %v4444_v10 }
 0x189   : > { %v5514_v22 = vadd.f32 %v1292_v12, %v1227_v3  ;;  %4276 = vmatmul.mubr.bf16.gmra.mxu0 %v2525_v44  ;;  %v3989_v56 = vpop.f32.mrf.mxu0  ;;  %v2760_v44 = vpack.c.bf16 %v3674_v48, %v5387_v18 }
 0x18a   : > { %4300 = vmatmul.mubr.bf16.gmra.mxu1 %v2658_v9  ;;  %4308 = vmatpush3.bf16.msra.mxu0 %v4444_v10  ;;  %v4013_v37 = vpop.f32.mrf.mxu1 }
 0x18b   : > { %4332 = vmatpush3.bf16.msra.mxu1 %v4444_v10  ;;  %4309 = vmatprep.subr.bf16.mxu0 %v4445_v6  ;;  %v5517_v13 = vadd.f32 %v4013_v37, %v3989_v56  ;;  %v1240_v24 = vpop.f32.mrf.mxu0 }
 0x18c   : > { %4333 = vmatprep.subr.bf16.mxu1 %v4445_v6  ;;  %v1305_v27 = vpop.f32.mrf.mxu1  ;;  %4319 = vmatprep.mubr.bf16.mxu0 %v2757_v40 }
 0x18d   : > { %v5519_v15 = vadd.f32 %v1305_v27, %v1240_v24  ;;  %v3990_v39 = vpop.f32.mrf.mxu0  ;;  %4343 = vmatprep.mubr.bf16.mxu1 %v2890_v26 }
 0x18e   : > { %4310 = vmatpush3.bf16.msra.mxu0 %v4445_v6  ;;  %v4014_v41 = vpop.f32.mrf.mxu1 }
 0x18f   : > { %4334 = vmatpush3.bf16.msra.mxu1 %v4445_v6  ;;  %4311 = vmatprep.subr.bf16.mxu0 %v4446_v30  ;;  %v5522_v52 = vadd.f32 %v4014_v41, %v3990_v39  ;;  %v1243_v47 = vpop.f32.mrf.mxu0 }
 0x190   : > { %4335 = vmatprep.subr.bf16.mxu1 %v4446_v30  ;;  %v1308_v54 = vpop.f32.mrf.mxu1 }
 0x191   : > { %v5524_v55 = vadd.f32 %v1308_v54, %v1243_v47 }
 0x192   : > { %4312 = vmatpush3.bf16.msra.mxu0 %v4446_v30 }
 0x193   : > { %4336 = vmatpush3.bf16.msra.mxu1 %v4446_v30  ;;  %4313 = vmatprep.subr.bf16.mxu0 %v4447_v46 }
 0x194   : > { %4337 = vmatprep.subr.bf16.mxu1 %v4447_v46 }
 0x196   : > { %4314 = vmatpush3.bf16.msra.mxu0 %v4447_v46 }
 0x197   : > { %4338 = vmatpush3.bf16.msra.mxu1 %v4447_v46  ;;  %4315 = vmatprep.subr.bf16.mxu0 %v4448_v50 }
 0x198   : > { %4339 = vmatprep.subr.bf16.mxu1 %v4448_v50 }
 0x19a   : > { %4316 = vmatpush3.bf16.msra.mxu0 %v4448_v50 }
 0x19b   : > { %4340 = vmatpush3.bf16.msra.mxu1 %v4448_v50  ;;  %4317 = vmatprep.subr.bf16.mxu0 %v4449_v59 }
 0x19c   : > { %4341 = vmatprep.subr.bf16.mxu1 %v4449_v59 }
 0x19e   : > { %4318 = vmatpush3.bf16.msra.mxu0 %v4449_v59 }
 0x19f   : > { %4342 = vmatpush3.bf16.msra.mxu1 %v4449_v59 }
 0x1a1   : > { %v4033_v32 = vpop.f32.mrf.mxu0  ;;  %4320 = vmatmul.mubr.bf16.vlgmr.msra.gmra.mxu0 %v2758_v21 }
 0x1a2   : > { %v1465_v33 = vadd.f32 %v4033_v32, %v5419_v31  ;;  %v4057_v42 = vpop.f32.mrf.mxu1  ;;  %4344 = vmatmul.mubr.bf16.vlgmr.msra.gmra.mxu1 %v2891_v25  ;;  %4323 = vmatprep.mubr.bf16.mxu0 %v2759_v28 }
 0x1a3   : > { %v1551_v57 = vadd.f32 %v4057_v42, %v5489_v4  ;;  %v1432_v51 = vpop.f32.mrf.mxu0  ;;  %4347 = vmatprep.mubr.bf16.mxu1 %v2892_v29 }
 0x1a4   : > { %v1463_v10 = vadd.f32 %v1432_v51, %v5426_v61  ;;  %v1518_v11 = vpop.f32.mrf.mxu1 }
 0x1a5   : > { %v1549_v31 = vadd.f32 %v1518_v11, %v5495_v14  ;;  %v4034_v1 = vpop.f32.mrf.mxu0 }
 0x1a6   : > { %v1466_v35 = vadd.f32 %v4034_v1, %v5443_v20  ;;  %v4058_v43 = vpop.f32.mrf.mxu1 }
 0x1a7   : > { %v1552_v4 = vadd.f32 %v4058_v43, %v5511_v2  ;;  %v1435_v9 = vpop.f32.mrf.mxu0 }
 0x1a8   : > { %v1464_v36 = vadd.f32 %v1435_v9, %v5446_v23  ;;  %v1521_v53 = vpop.f32.mrf.mxu1 }
 0x1a9   : > { %v1550_v3 = vadd.f32 %v1521_v53, %v5514_v22  ;;  %v4037_v61 = vpop.f32.mrf.mxu0  ;;  %4324 = vmatmul.mubr.bf16.gmra.mxu0 %v2760_v44 }
 0x1aa   : > { %v1469_v14 = vadd.f32 %v4037_v61, %v5449_v38  ;;  %v4061_v6 = vpop.f32.mrf.mxu1  ;;  %4348 = vmatmul.mubr.bf16.gmra.mxu1 %v2893_v45 }
 0x1ab   : > { %v1555_v18 = vadd.f32 %v4061_v6, %v5517_v13  ;;  %v1448_v20 = vpop.f32.mrf.mxu0 }
 0x1ac   : > { %v1467_v12 = vadd.f32 %v1448_v20, %v5451_v17  ;;  %v1534_v19 = vpop.f32.mrf.mxu1 }
 0x1ad   : > { %v1553_v2 = vadd.f32 %v1534_v19, %v5519_v15  ;;  %v4038_v40 = vpop.f32.mrf.mxu0 }
 0x1ae   : > { %v1470_v23 = vadd.f32 %v4038_v40, %v5454_v49  ;;  %v4062_v56 = vpop.f32.mrf.mxu1 }
 0x1af   : > { %v1556_v22 = vadd.f32 %v4062_v56, %v5522_v52  ;;  %v1451_v26 = vpop.f32.mrf.mxu0 }
 0x1b0   : > { %v1468_v37 = vadd.f32 %v1451_v26, %v5456_v58  ;;  %v1537_v38 = vpop.f32.mrf.mxu1 }
 0x1b1   : > { %v1554_v30 = vadd.f32 %v1537_v38, %v5524_v55 }
 0x1c1   : > { %v4081_v24 = vpop.f32.mrf.mxu0 }
 0x1c2   : > { %v1701_v13 = vadd.f32 %v4081_v24, %v1465_v33  ;;  %v4105_v27 = vpop.f32.mrf.mxu1 }
 0x1c3   : > { %v1786_v39 = vadd.f32 %v4105_v27, %v1551_v57  ;;  %v1668_v17 = vpop.f32.mrf.mxu0 }
 0x1c4   : > { %v5576_v41 = vadd.f32 %v1668_v17, %v1463_v10  ;;  %v1753_v15 = vpop.f32.mrf.mxu1 }
 0x1c5   : > { %v5578_v46 = vadd.f32 %v1753_v15, %v1549_v31  ;;  %v4082_v49 = vpop.f32.mrf.mxu0 }
 0x1c6   : > { %v5580_v47 = vadd.f32 %v4082_v49, %v1466_v35  ;;  %v4106_v52 = vpop.f32.mrf.mxu1 }
 0x1c7   : > { %v5582_v54 = vadd.f32 %v4106_v52, %v1552_v4  ;;  %v1671_v58 = vpop.f32.mrf.mxu0 }
 0x1c8   : > { %v5584_v50 = vadd.f32 %v1671_v58, %v1464_v36  ;;  %v1756_v55 = vpop.f32.mrf.mxu1 }
 0x1c9   : > { %v5586_v59 = vadd.f32 %v1756_v55, %v1550_v3  ;;  %v4085_v60 = vpop.f32.mrf.mxu0 }
 0x1ca   : > { %v1705_v62 = vadd.f32 %v4085_v60, %v1469_v14  ;;  %v4109_v63 = vpop.f32.mrf.mxu1 }
 0x1cb   : > { %v1790_v0 = vadd.f32 %v4109_v63, %v1555_v18  ;;  %v1684_v5 = vpop.f32.mrf.mxu0 }
 0x1cc   : > { %v5588_v7 = vadd.f32 %v1684_v5, %v1467_v12  ;;  %v1769_v8 = vpop.f32.mrf.mxu1 }
 0x1cd   : > { %v5590_v16 = vadd.f32 %v1769_v8, %v1553_v2  ;;  %v4086_v21 = vpop.f32.mrf.mxu0 }
 0x1ce   : > { %v5592_v25 = vadd.f32 %v4086_v21, %v1470_v23  ;;  %v4110_v28 = vpop.f32.mrf.mxu1 }
 0x1cf   : > { %v5594_v29 = vadd.f32 %v4110_v28, %v1556_v22  ;;  %v1687_v32 = vpop.f32.mrf.mxu0 }
 0x1d0   : > { %v5596_v33 = vadd.f32 %v1687_v32, %v1468_v37  ;;  %v1772_v42 = vpop.f32.mrf.mxu1 }
 0x1d1   : > { %v5598_v48 = vadd.f32 %v1772_v42, %v1554_v30 }
 0x1e1   : > { %v4129_v57 = vpop.f32.mrf.mxu0 }
 0x1e2   : > { %v5600_v51 = vadd.f32 %v4129_v57, %v1701_v13  ;;  %v4153_v34 = vpop.f32.mrf.mxu1 }
 0x1e3   : > { %v5602_v10 = vadd.f32 %v4153_v34, %v1786_v39  ;;  %v1903_v11 = vpop.f32.mrf.mxu0 }
 0x1e4   : > { %v1988_v31 = vpop.f32.mrf.mxu1 }
 0x1e5   : > { %v4130_v1 = vpop.f32.mrf.mxu0 }
 0x1e6   : > { %v4154_v44 = vpop.f32.mrf.mxu1 }
 0x1e7   : > { %v1906_v35 = vpop.f32.mrf.mxu0 }
 0x1e8   : > { %v1991_v43 = vpop.f32.mrf.mxu1 }
 0x1e9   : > { %v4133_v45 = vpop.f32.mrf.mxu0 }
 0x1ea   : > { %v5604_v4 = vadd.f32 %v4133_v45, %v1705_v62  ;;  %v4157_v9 = vpop.f32.mrf.mxu1 }
 0x1eb   : > { %v5606_v36 = vadd.f32 %v4157_v9, %v1790_v0  ;;  %v1919_v53 = vpop.f32.mrf.mxu0 }
 0x1ec   : > { %v2004_v3 = vpop.f32.mrf.mxu1 }
 0x1ed   : > { %v4134_v61 = vpop.f32.mrf.mxu0 }
 0x1ee   : > { %v4158_v14 = vpop.f32.mrf.mxu1 }
 0x1ef   : > { %v1922_v6 = vpop.f32.mrf.mxu0 }
 0x1f0   : > { %v2007_v18 = vpop.f32.mrf.mxu1 }
 0x201   : > { %v4177_v20 = vpop.f32.mrf.mxu0 }
 0x202   : > { %v4201_v12 = vpop.f32.mrf.mxu1 }
 0x203   : > { %v2138_v19 = vpop.f32.mrf.mxu0 }
 0x204   : > { %v2223_v2 = vpop.f32.mrf.mxu1 }
 0x205   : > { %v4178_v40 = vpop.f32.mrf.mxu0 }
 0x206   : > { %v5608_v23 = vpop.f32.mrf.mxu1 }
 0x207   : > { %v2141_v56 = vpop.f32.mrf.mxu0 }
 0x208   : > { %v2226_v22 = vpop.f32.mrf.mxu1 }
 0x209   : > { %v4181_v26 = vpop.f32.mrf.mxu0 }
 0x20a   : > { %v4205_v37 = vpop.f32.mrf.mxu1 }
 0x20b   : > { %v5610_v38 = vpop.f32.mrf.mxu0 }
 0x20c   : > { %v5612_v30 = vpop.f32.mrf.mxu1 }
 0x20d   : > { %v5614_v24 = vpop.f32.mrf.mxu0 }
 0x20e   : > { %v5616_v13 = vpop.f32.mrf.mxu1 }
 0x20f   : > { %v5618_v27 = vpop.f32.mrf.mxu0 }
 0x210   : > { %v5620_v39 = vpop.f32.mrf.mxu1 }
 0x211   : > { %5890 = vst [vmem:[#allocation4_spill] sm:$0xff] %v5620_v39 }
 0x221   : > { %v5622_v17 = vpop.f32.mrf.mxu0 }
 0x222   : > { %v5624_v15 = vpop.f32.mrf.mxu1 }
 0x223   : > { %5891 = vst [vmem:[#allocation5_spill] sm:$0xff] %v5624_v15  ;;  %v2373_v49 = vpop.f32.mrf.mxu0  ;;  %v2022_v15 = vadd.f32 %v4154_v44, %v5582_v54  ;;  %v2171_v54 = vadd.f32 %v4177_v20, %v5600_v51 }
 0x224   : > { %v2458_v52 = vpop.f32.mrf.mxu1 }
 0x225   : > { %v5626_v58 = vpop.f32.mrf.mxu0 }
 0x226   : > { %5892 = vst [vmem:[#allocation6_spill] sm:$0xff] %v5626_v58  ;;  %v5628_v55 = vpop.f32.mrf.mxu1 }
 0x227   : > { %5893 = vst [vmem:[#allocation7_spill] sm:$0xff] %v5628_v55  ;;  %v2376_v60 = vpop.f32.mrf.mxu0 }
 0x228   : > { %v2461_v62 = vpop.f32.mrf.mxu1 }
 0x229   : > { %v5630_v63 = vpop.f32.mrf.mxu0 }
 0x22a   : > { %5894 = vst [vmem:[#allocation8_spill] sm:$0xff] %v5630_v63  ;;  %v5632_v0 = vpop.f32.mrf.mxu1 }
 0x22b   : > { %5895 = vst [vmem:[#allocation9_spill] sm:$0xff] %v5632_v0  ;;  %v5634_v5 = vpop.f32.mrf.mxu0 }
 0x22c   : > { %5896 = vst [vmem:[#allocation10_spill] sm:$0xff] %v5634_v5  ;;  %v5636_v8 = vpop.f32.mrf.mxu1 }
 0x22d   : > { %5897 = vst [vmem:[#allocation11_spill] sm:$0xff] %v5636_v8  ;;  %v5638_v21 = vpop.f32.mrf.mxu0 }
 0x22e   : > { %5898 = vst [vmem:[#allocation12_spill] sm:$0xff] %v5638_v21  ;;  %v5640_v28 = vpop.f32.mrf.mxu1 }
 0x22f   : > { %5899 = vst [vmem:[#allocation13_spill] sm:$0xff] %v5640_v28  ;;  %v5642_v32 = vpop.f32.mrf.mxu0 }
 0x230   : > { %5900 = vst [vmem:[#allocation14_spill] sm:$0xff] %v5642_v32  ;;  %v5644_v42 = vpop.f32.mrf.mxu1 }
 0x231   : > { %5901 = vst [vmem:[#allocation15_spill] sm:$0xff] %v5644_v42 }
 0x241   : > { %v4273_v57 = vpop.f32.mrf.mxu0 }
 0x242   : > { %v5646_v34 = vpop.f32.mrf.mxu1 }
 0x243   : > { %5902 = vst [vmem:[#allocation16_spill] sm:$0xff] %v5646_v34  ;;  %v2608_v45 = vpop.f32.mrf.mxu0  ;;  %v1934_v34 = vadd.f32 %v1903_v11, %v5576_v41  ;;  %v2026_v41 = vadd.f32 %v4158_v14, %v5594_v29  ;;  %v2175_v29 = vadd.f32 %v4181_v26, %v5604_v4  ;;  %v2406_v4 = vadd.f32 %v5622_v17, %v2171_v54 }
 0x244   : > { %v2693_v9 = vpop.f32.mrf.mxu1 }
 0x245   : > { %v5648_v63 = vpop.f32.mrf.mxu0  ;;  %v2261_v14 = vadd.f32 %v5616_v13, %v2026_v41  ;;  %v2641_v13 = vadd.f32 %v4273_v57, %v2406_v4 }
 0x246   : > { %5903 = vst [vmem:[#allocation17_spill] sm:$0xff] %v5648_v63  ;;  %v5650_v0 = vpop.f32.mrf.mxu1  ;;  %v2019_v63 = vadd.f32 %v1988_v31, %v5578_v46  ;;  %v1939_v46 = vadd.f32 %v1922_v6, %v5596_v33  ;;  %v2169_v31 = vadd.f32 %v2138_v19, %v1934_v34  ;;  %v5917_v34 = vld [vmem:[#allocation11_spill] sm:$0xff] }
 0x247   : > { %5904 = vst [vmem:[#allocation18_spill] sm:$0xff] %v5650_v0  ;;  %v2611_v5 = vpop.f32.mrf.mxu0  ;;  %v1937_v0 = vadd.f32 %v4130_v1, %v5580_v47  ;;  %v2024_v47 = vadd.f32 %v2007_v18, %v5598_v48 }
 0x248   : > { %v2696_v55 = vpop.f32.mrf.mxu1  ;;  %v2254_v1 = vadd.f32 %v2223_v2, %v2019_v63 }
 0x249   : > { %v5652_v8 = vpop.f32.mrf.mxu0 }
 0x24a   : > { %5905 = vst [vmem:[#allocation19_spill] sm:$0xff] %v5652_v8  ;;  %v5654_v21 = vpop.f32.mrf.mxu1  ;;  %v1935_v8 = vadd.f32 %v1906_v35, %v5584_v50  ;;  %v2256_v50 = vadd.f32 %v4201_v12, %v5602_v10  ;;  %v2489_v6 = vadd.f32 %v2458_v52, %v2254_v1  ;;  %v2174_v12 = vadd.f32 %v5618_v27, %v1939_v46  ;;  %v5913_v52 = vld [vmem:[#allocation7_spill] sm:$0xff] }
 0x24b   : > { %5906 = vst [vmem:[#allocation20_spill] sm:$0xff] %v5654_v21  ;;  %v5656_v28 = vpop.f32.mrf.mxu0  ;;  %v2020_v21 = vadd.f32 %v1991_v43, %v5586_v59  ;;  %v2260_v43 = vadd.f32 %v4205_v37, %v5606_v36 }
 0x24c   : > { %v5658_v32 = vpop.f32.mrf.mxu1  ;;  %v2170_v44 = vadd.f32 %v2141_v56, %v1935_v8  ;;  %v5911_v56 = vld [vmem:[#allocation5_spill] sm:$0xff]  ;;  %v2724_v26 = vadd.f32 %v2693_v9, %v2489_v6 }
 0x24d   : > { %5907 = vst [vmem:[#allocation21_spill] sm:$0xff] %v5658_v32  ;;  %v5660_v42 = vpop.f32.mrf.mxu0  ;;  %v1938_v32 = vadd.f32 %v1919_v53, %v5588_v7  ;;  %v2172_v7 = vadd.f32 %v4178_v40, %v1937_v0  ;;  %v2255_v35 = vadd.f32 %v2226_v22, %v2020_v21  ;;  %v2404_v53 = vadd.f32 %v2373_v49, %v2169_v31  ;;  %v5910_v40 = vld [vmem:[#allocation4_spill] sm:$0xff]  ;;  %v5916_v8 = vld [vmem:[#allocation17_spill] sm:$0xff] }
 0x24e   : > { %5908 = vst [vmem:[#allocation22_spill] sm:$0xff] %v5660_v42  ;;  %v5662_v58 = vpop.f32.mrf.mxu1  ;;  %v2023_v42 = vadd.f32 %v2004_v3, %v5590_v16  ;;  %v2405_v10 = vadd.f32 %v2376_v60, %v2170_v44  ;;  %v2491_v22 = vadd.f32 %v5911_v56, %v2256_v50  ;;  %v5918_v9 = vld [vmem:[#allocation18_spill] sm:$0xff] }
 0x24f   : > { %5909 = vst [vmem:[#allocation23_spill] sm:$0xff] %v5662_v58  ;;  %v5670_v39 = vpop.f32.mrf.mxu0  ;;  %v1941_v58 = vadd.f32 %v4134_v61, %v5592_v25  ;;  %v2257_v25 = vadd.f32 %v5608_v23, %v2022_v15  ;;  %v2173_v48 = vadd.f32 %v5610_v38, %v1938_v32  ;;  %v2490_v18 = vadd.f32 %v2461_v62, %v2255_v35  ;;  %v5919_v50 = vld [vmem:[#allocation14_spill] sm:$0xff] }
 0x250   : > { %v5676_v11 = vpop.f32.mrf.mxu1  ;;  %v2258_v51 = vadd.f32 %v5612_v30, %v2023_v42  ;;  %v2639_v36 = vadd.f32 %v2608_v45, %v2404_v53  ;;  %v2640_v19 = vadd.f32 %v2611_v5, %v2405_v10  ;;  %v2259_v23 = vadd.f32 %v5910_v40, %v2024_v47  ;;  %v5912_v30 = vld [vmem:[#allocation6_spill] sm:$0xff]  ;;  %v5922_v10 = vld [vmem:[#allocation8_spill] sm:$0xff] }
 0x251   : > { %v2176_v61 = vadd.f32 %v5614_v24, %v1941_v58  ;;  %v2725_v37 = vadd.f32 %v2696_v55, %v2490_v18  ;;  %v2407_v24 = vadd.f32 %v5912_v30, %v2172_v7  ;;  %v2492_v17 = vadd.f32 %v5913_v52, %v2257_v25  ;;  %v5914_v58 = vld [vmem:[#allocation16_spill] sm:$0xff]  ;;  %v5915_v5 = vld [vmem:[#allocation10_spill] sm:$0xff]  ;;  %v5920_v25 = vld [vmem:[#allocation15_spill] sm:$0xff] }
 0x252   : > { %v2726_v60 = vadd.f32 %v5914_v58, %v2491_v22  ;;  %v2408_v55 = vadd.f32 %v5915_v5, %v2173_v48  ;;  %v2493_v45 = vadd.f32 %v5917_v34, %v2258_v51  ;;  %v2409_v31 = vadd.f32 %v5919_v50, %v2174_v12  ;;  %v5923_v12 = vld [vmem:[#allocation9_spill] sm:$0xff]  ;;  %v5925_v22 = vld [vmem:[#allocation19_spill] sm:$0xff] }
 0x253   : > { %v2642_v21 = vadd.f32 %v5916_v8, %v2407_v24  ;;  %v2727_v41 = vadd.f32 %v5918_v9, %v2492_v17  ;;  %v2494_v35 = vadd.f32 %v5920_v25, %v2259_v23  ;;  %v2495_v4 = vadd.f32 %v5923_v12, %v2260_v43  ;;  %v5924_v23 = vld [vmem:[#allocation12_spill] sm:$0xff] }
 0x254   : > { %v2643_v1 = vadd.f32 %v5656_v28, %v2408_v55  ;;  %v2644_v6 = vadd.f32 %v5670_v39, %v2409_v31  ;;  %v2411_v56 = vadd.f32 %v5924_v23, %v2176_v61  ;;  %v5927_v24 = vld [vmem:[#allocation20_spill] sm:$0xff] }
 0x255   : > { %v2730_v43 = vadd.f32 %v5927_v24, %v2495_v4 }
 0x256   : > { %v5929_v58 = vld [vmem:[#allocation23_spill] sm:$0xff] }
 0x261   : > { %v4321_v59 = vpop.f32.mrf.mxu0 }
 0x262   : > { %v4345_v16 = vpop.f32.mrf.mxu1  ;;  %v5706_v32 = vadd.f32 %v4321_v59, %v2641_v13 }
 0x263   : > { %v2843_v33 = vpop.f32.mrf.mxu0  ;;  %v5712_v46 = vadd.f32 %v4345_v16, %v2726_v60 }
 0x264   : > { %v2928_v3 = vpop.f32.mrf.mxu1  ;;  %v5694_v15 = vadd.f32 %v2843_v33, %v2639_v36  ;;  %v5921_v33 = vld [vmem:[#allocation21_spill] sm:$0xff]  ;;  %v2729_v36 = vadd.f32 %v5676_v11, %v2494_v35 }
 0x265   : > { %v4322_v20 = vpop.f32.mrf.mxu0  ;;  %v5700_v62 = vadd.f32 %v2928_v3, %v2724_v26  ;;  %v2728_v48 = vadd.f32 %v5921_v33, %v2493_v45  ;;  %v2410_v3 = vadd.f32 %v5922_v10, %v2175_v29 }
 0x266   : > { %v4346_v2 = vpop.f32.mrf.mxu1  ;;  %v5718_v59 = vadd.f32 %v4322_v20, %v2642_v21 }
 0x267   : > { %v2846_v38 = vpop.f32.mrf.mxu0  ;;  %v5723_v51 = vadd.f32 %v4346_v2, %v2727_v41  ;;  %v2645_v29 = vadd.f32 %v5925_v22, %v2410_v3 }
 0x268   : > { %v5696_v49 = vadd.f32 %v2846_v38, %v2640_v19  ;;  %v2931_v27 = vpop.f32.mrf.mxu1  ;;  %v5926_v38 = vld [vmem:[#allocation13_spill] sm:$0xff] }
 0x269   : > { %v5702_v63 = vadd.f32 %v2931_v27, %v2725_v37  ;;  %v4325_v0 = vpop.f32.mrf.mxu0  ;;  %v2496_v30 = vadd.f32 %v5926_v38, %v2261_v14  ;;  %v5928_v27 = vld [vmem:[#allocation22_spill] sm:$0xff] }
 0x26a   : > { %v2967_v42 = vadd.f32 %v5696_v49, %v5694_v15  ;;  %v4349_v57 = vpop.f32.mrf.mxu1  ;;  %v2646_v52 = vadd.f32 %v5928_v27, %v2411_v56  ;;  %v5747_v17 = vadd.f32 %v4325_v0, %v2645_v29 }
 0x26b   : > { %v2981_v47 = vadd.f32 %v5702_v63, %v5700_v62  ;;  %v2859_v54 = vpop.f32.mrf.mxu0  ;;  %v2731_v60 = vadd.f32 %v5929_v58, %v2496_v30  ;;  %v5751_v5 = vadd.f32 %v4349_v57, %v2730_v43 }
 0x26c   : > { %v2968_v7 = vadd.f32 %v2967_v42, %v5706_v32  ;;  %v2944_v44 = vpop.f32.mrf.mxu1  ;;  %v5728_v18 = vadd.f32 %v2859_v54, %v2643_v1 }
 0x26d   : > { %v2982_v16 = vadd.f32 %v2981_v47, %v5712_v46  ;;  %v4326_v53 = vpop.f32.mrf.mxu0  ;;  %v5733_v19 = vadd.f32 %v2944_v44, %v2728_v48 }
 0x26e   : > { %v2969_v28 = vadd.f32 %v2968_v7, %v5718_v59  ;;  %v4350_v20 = vpop.f32.mrf.mxu1  ;;  %v5754_v8 = vadd.f32 %v4326_v53, %v2646_v52 }
 0x26f   : > { %v2983_v2 = vadd.f32 %v2982_v16, %v5723_v51  ;;  %v2862_v40 = vpop.f32.mrf.mxu0  ;;  %v5757_v21 = vadd.f32 %v4350_v20, %v2731_v60 }
 0x270   : > { %v2970_v39 = vadd.f32 %v2969_v28, %v5728_v18  ;;  %v5739_v26 = vadd.f32 %v2862_v40, %v2644_v6  ;;  %v2947_v37 = vpop.f32.mrf.mxu1 }
 0x271   : > { %v2984_v11 = vadd.f32 %v2983_v2, %v5733_v19  ;;  %v5744_v13 = vadd.f32 %v2947_v37, %v2729_v36 }
 0x272   : > { %v2971_v61 = vadd.f32 %v2970_v39, %v5739_v26 }
 0x273   : > { %v2985_v55 = vadd.f32 %v2984_v11, %v5744_v13 }
 0x274   : > { %v2972_v14 = vadd.f32 %v2971_v61, %v5747_v17 }
 0x275   : > { %v2986_v42 = vadd.f32 %v2985_v55, %v5751_v5 }
 0x276   : > { %v2973_v34 = vadd.f32 %v2972_v14, %v5754_v8 }
 0x277   : > { %v2987_v0 = vadd.f32 %v2986_v42, %v5757_v21 }
 0x278   : > { %v2974_v45 = vrot.slane %v2973_v34, 4 }
 0x279   : > { %v2988_v9 = vrot.slane %v2987_v0, 4 }
 0x27a   : > { %v2975_v41 = vadd.f32 %v2974_v45, %v2973_v34 }
 0x27b   : > { %v2989_v47 = vadd.f32 %v2988_v9, %v2987_v0 }
 0x27c   : > { %v2976_v57 = vrot.slane %v2975_v41, 2 }
 0x27d   : > { %v2990_v54 = vrot.slane %v2989_v47, 2 }
 0x27e   : > { %v2977_v50 = vadd.f32 %v2976_v57, %v2975_v41 }
 0x27f   : > { %v2991_v31 = vadd.f32 %v2990_v54, %v2989_v47 }
 0x280   : > { %v2978_v1 = vrot.slane %v2977_v50, 1 }
 0x281   : > { %v2992_v7 = vrot.slane %v2991_v31, 1 }
 0x282   : > { %v2979_v44 = vadd.f32 %v2978_v1, %v2977_v50 }
 0x283   : > { %v2993_v25 = vadd.f32 %v2992_v7, %v2991_v31 }
 0x285   : > { %v2994_v35 = vadd.f32 %v2993_v25, %v2979_v44 }
 0x287   : > { %v5762_v33 = vmul.f32 0.0078125, %v2994_v35 }
 0x289   : > { %v2996_v48 = vsub.f32 %v5694_v15, %v5762_v33  ;;  %v2997_v16 = vsub.f32 %v5696_v49, %v5762_v33  ;;  %v2998_v53 = vsub.f32 %v5706_v32, %v5762_v33  ;;  %v2999_v10 = vsub.f32 %v5718_v59, %v5762_v33 }
 0x28a   : > { %v3000_v28 = vsub.f32 %v5728_v18, %v5762_v33  ;;  %v3026_v4 = vsub.f32 %v5700_v62, %v5762_v33  ;;  %v3027_v36 = vsub.f32 %v5702_v63, %v5762_v33  ;;  %v3028_v2 = vsub.f32 %v5712_v46, %v5762_v33 }
 0x28b   : > { %v3004_v3 = vmul.f32 %v2996_v48, %v2996_v48  ;;  %v3005_v6 = vmul.f32 %v2997_v16, %v2997_v16  ;;  %v3006_v20 = vmul.f32 %v2998_v53, %v2998_v53  ;;  %v3001_v40 = vsub.f32 %v5739_v26, %v5762_v33 }
 0x28c   : > { %v3007_v23 = vmul.f32 %v2999_v10, %v2999_v10  ;;  %v3029_v22 = vsub.f32 %v5723_v51, %v5762_v33  ;;  %v3034_v29 = vmul.f32 %v3026_v4, %v3026_v4  ;;  %v3035_v39 = vmul.f32 %v3027_v36, %v3027_v36 }
 0x28d   : > { %v3012_v12 = vadd.f32 %v3005_v6, %v3004_v3  ;;  %v3002_v37 = vsub.f32 %v5747_v17, %v5762_v33  ;;  %v3008_v38 = vmul.f32 %v3000_v28, %v3000_v28  ;;  %v3030_v24 = vsub.f32 %v5733_v19, %v5762_v33 }
 0x28e   : > { %v3036_v43 = vmul.f32 %v3028_v2, %v3028_v2  ;;  %v3042_v11 = vadd.f32 %v3035_v39, %v3034_v29  ;;  %v3003_v27 = vsub.f32 %v5754_v8, %v5762_v33  ;;  %v3009_v52 = vmul.f32 %v3001_v40, %v3001_v40 }
 0x28f   : > { %v3013_v56 = vadd.f32 %v3012_v12, %v3006_v20  ;;  %v3031_v58 = vsub.f32 %v5744_v13, %v5762_v33  ;;  %v3037_v60 = vmul.f32 %v3029_v22, %v3029_v22  ;;  %v3010_v14 = vmul.f32 %v3002_v37, %v3002_v37 }
 0x290   : > { %v3043_v55 = vadd.f32 %v3042_v11, %v3036_v43  ;;  %v3032_v34 = vsub.f32 %v5751_v5, %v5762_v33  ;;  %v3038_v0 = vmul.f32 %v3030_v24, %v3030_v24  ;;  %v3011_v9 = vmul.f32 %v3003_v27, %v3003_v27  ;;  %v3059_v11 = vld [vmem:[%s871_s14] sm:$0x1] }
 0x291   : > { %v3014_v30 = vadd.f32 %v3013_v56, %v3007_v23  ;;  %v3033_v47 = vsub.f32 %v5757_v21, %v5762_v33  ;;  %v3039_v57 = vmul.f32 %v3031_v58, %v3031_v58  ;;  %v3067_v2 = vlaneseq  ;;  %v3061_v58 = vld [vmem:[%s874_s17] sm:$0x1] }
 0x292   : > { %v3044_v45 = vadd.f32 %v3043_v55, %v3037_v60  ;;  %v3040_v31 = vmul.f32 %v3032_v34, %v3032_v34  ;;  %v4476_v40 = vmov 1966171168  }
 0x293   : > { %v3015_v61 = vadd.f32 %v3014_v30, %v3008_v38  ;;  %v3041_v44 = vmul.f32 %v3033_v47, %v3033_v47  ;;  %v3113_v23 = vunpack.c.l.s4 %v4476_v40  ;;  %v3068_v29 = vshrl.u32 %v3067_v2, 7  ;;  %v3064_v30 = vld [vmem:[%s878_s12] sm:$0x3] }
 0x294   : > { %v3045_v54 = vadd.f32 %v3044_v45, %v3038_v0 }
 0x295   : > { %v3016_v42 = vadd.f32 %v3015_v61, %v3009_v52  ;;  %v3114_v39 = vunpack.c.0.s8 %v3113_v23  ;;  %v3069_v60 = vsub.s32 0, %v3068_v29 }
 0x296   : > { %v3046_v1 = vadd.f32 %v3045_v54, %v3039_v57 }
 0x297   : > { %v3017_v41 = vadd.f32 %v3016_v42, %v3010_v14  ;;  %v3117_v38 = vsub.s32 %v3114_v39, %v3068_v29 }
 0x298   : > { %v3047_v25 = vadd.f32 %v3046_v1, %v3040_v31 }
 0x299   : > { %v3018_v50 = vadd.f32 %v3017_v41, %v3011_v9  ;;  %v3118_v24 = vrot.slane %v3064_v30, %v3117_v38 }
 0x29a   : > { %v3048_v48 = vadd.f32 %v3047_v25, %v3041_v44 }
 0x29b   : > { %v3019_v7 = vrot.slane %v3018_v50, 4  ;;  %v3119_v43 = vcombine.high %v3118_v24, %v3118_v24 }
 0x29c   : > { %v3049_v53 = vrot.slane %v3048_v48, 4 }
 0x29d   : > { %v3020_v35 = vadd.f32 %v3019_v7, %v3018_v50  ;;  %v3126_v52 = vrot.slane %v3119_v43, %v3117_v38 }
 0x29e   : > { %v3050_v3 = vadd.f32 %v3049_v53, %v3048_v48 }
 0x29f   : > { %v3021_v16 = vrot.slane %v3020_v35, 2 }
 0x2a0   : > { %v3051_v28 = vrot.slane %v3050_v3, 2 }
 0x2a1   : > { %v3022_v10 = vadd.f32 %v3021_v16, %v3020_v35 }
 0x2a2   : > { %v3052_v20 = vadd.f32 %v3051_v28, %v3050_v3 }
 0x2a3   : > { %v3023_v6 = vrot.slane %v3022_v10, 1 }
 0x2a4   : > { %v3053_v4 = vrot.slane %v3052_v20, 1 }
 0x2a5   : > { %v3024_v12 = vadd.f32 %v3023_v6, %v3022_v10 }
 0x2a6   : > { %v3054_v36 = vadd.f32 %v3053_v4, %v3052_v20 }
 0x2a8   : > { %v3055_v56 = vadd.f32 %v3054_v36, %v3024_v12 }
 0x2aa   : > { %v3056_v22 = vmul.f32 0.0078125, %v3055_v56 }
 0x2ac   : > { %v3057_v37 = vadd.f32 1e-05, %v3056_v22 }
 0x2ae   : > { %4450 = vrsqrt.f32 %v3057_v37 }
 0x2bb   : > { %v4451_v27 = vpop.eup %4450 }
 0x2bc   : > { %v3060_v61 = vmul.f32 %v4451_v27, %v3059_v11 }
 0x2be   : > { %v3062_v55 = vmul.f32 %v3060_v61, %v5762_v33  ;;  %v3065_v14 = vmul.f32 %v3064_v30, %v3060_v61  ;;  %v3128_v42 = vmul.f32 %v3126_v52, %v3060_v61 }
 0x2c0   : > { %v3063_v34 = vsub.f32 %v3061_v58, %v3062_v55  ;;  %v3070_v0 = vrot.slane %v3065_v14, %v3069_v60  ;;  %v3133_v45 = vrot.slane %v3128_v42, %v3069_v60 }
 0x2c2   : > { %v3080_v9 = vmul.f32 %v3064_v30, %v3063_v34  ;;  %v3072_v41 = vmul.f32 %v3070_v0, %v5694_v15  ;;  %v3073_v47 = vmul.f32 %v3070_v0, %v5696_v49  ;;  %v3074_v57 = vmul.f32 %v3070_v0, %v5706_v32 }
 0x2c3   : > { %v3075_v54 = vmul.f32 %v3070_v0, %v5718_v59  ;;  %v3076_v50 = vmul.f32 %v3070_v0, %v5728_v18  ;;  %v3077_v33 = vmul.f32 %v3070_v0, %v5739_v26  ;;  %v3078_v1 = vmul.f32 %v3070_v0, %v5747_v17 }
 0x2c4   : > { %v3085_v31 = vrot.slane %v3080_v9, %v3069_v60  ;;  %v3079_v7 = vmul.f32 %v3070_v0, %v5754_v8  ;;  %v3135_v44 = vmul.f32 %v3133_v45, %v5700_v62  ;;  %v3143_v15 = vmul.f32 %v3126_v52, %v3063_v34 }
 0x2c5   : > { %v3136_v62 = vmul.f32 %v3133_v45, %v5702_v63  ;;  %v3137_v8 = vmul.f32 %v3133_v45, %v5712_v46  ;;  %v3138_v12 = vmul.f32 %v3133_v45, %v5723_v51  ;;  %v3139_v36 = vmul.f32 %v3133_v45, %v5733_v19 }
 0x2c6   : > { %v3087_v25 = vadd.f32 %v3085_v31, %v3072_v41  ;;  %v3088_v49 = vadd.f32 %v3085_v31, %v3073_v47  ;;  %v3089_v35 = vadd.f32 %v3085_v31, %v3074_v57  ;;  %v3090_v32 = vadd.f32 %v3085_v31, %v3075_v54 }
 0x2c7   : > { %v3091_v48 = vadd.f32 %v3085_v31, %v3076_v50  ;;  %v3092_v16 = vadd.f32 %v3085_v31, %v3077_v33  ;;  %v3093_v53 = vadd.f32 %v3085_v31, %v3078_v1  ;;  %v3094_v59 = vadd.f32 %v3085_v31, %v3079_v7 }
 0x2c8   : > { %v3095_v10 = vmax.f32 %v3087_v25, 0.0  ;;  %v3096_v18 = vmax.f32 %v3088_v49, 0.0  ;;  %v3097_v3 = vmax.f32 %v3089_v35, 0.0  ;;  %v3098_v26 = vmax.f32 %v3090_v32, 0.0 }
 0x2c9   : > { %v3099_v6 = vmax.f32 %v3091_v48, 0.0  ;;  %v3100_v28 = vmax.f32 %v3092_v16, 0.0  ;;  %v3101_v17 = vmax.f32 %v3093_v53, 0.0  ;;  %v3102_v20 = vmax.f32 %v3094_v59, 0.0 }
 0x2ca   : > { %3103 = vst [vmem:[%s5819_s18] sm:$0xff] %v3095_v10  ;;  %3104 = vst [vmem:[%s5819_s18 + $0x8] sm:$0xff] %v3096_v18  ;;  %v3148_v4 = vrot.slane %v3143_v15, %v3069_v60  ;;  %v3140_v2 = vmul.f32 %v3133_v45, %v5744_v13  ;;  %v3141_v40 = vmul.f32 %v3133_v45, %v5751_v5 }
 0x2cb   : > { %3105 = vst [vmem:[%s5819_s18 + $0x10] sm:$0xff] %v3097_v3  ;;  %3106 = vst [vmem:[%s5819_s18 + $0x18] sm:$0xff] %v3098_v26  ;;  %v3142_v23 = vmul.f32 %v3133_v45, %v5757_v21 }
 0x2cc   : > { %3107 = vst [vmem:[%s5819_s18 + $0x20] sm:$0xff] %v3099_v6  ;;  %3108 = vst [vmem:[%s5819_s18 + $0x28] sm:$0xff] %v3100_v28  ;;  %v3150_v56 = vadd.f32 %v3148_v4, %v3135_v44  ;;  %v3151_v63 = vadd.f32 %v3148_v4, %v3136_v62  ;;  %v3152_v46 = vadd.f32 %v3148_v4, %v3137_v8 }
 0x2cd   : > { %3109 = vst [vmem:[%s5819_s18 + $0x30] sm:$0xff] %v3101_v17  ;;  %3110 = vst [vmem:[%s5819_s18 + $0x38] sm:$0xff] %v3102_v20  ;;  %v3153_v51 = vadd.f32 %v3148_v4, %v3138_v12  ;;  %v3154_v22 = vadd.f32 %v3148_v4, %v3139_v36  ;;  %v3155_v29 = vadd.f32 %v3148_v4, %v3140_v2 }
 0x2ce   : > { %v3156_v39 = vadd.f32 %v3148_v4, %v3141_v40  ;;  %v3157_v19 = vadd.f32 %v3148_v4, %v3142_v23  ;;  %v3158_v13 = vmax.f32 %v3150_v56, 0.0  ;;  %v3159_v5 = vmax.f32 %v3151_v63, 0.0 }
 0x2cf   : > { %v3160_v37 = vmax.f32 %v3152_v46, 0.0  ;;  %v3161_v21 = vmax.f32 %v3153_v51, 0.0  ;;  %v3162_v38 = vmax.f32 %v3154_v22, 0.0  ;;  %v3163_v30 = vmax.f32 %v3155_v29, 0.0  ;;  %3181 = sbr.rel (!%p4538_p5) target bundleno = 732 (0x2dc), region = 85 }
 0x2d0   : > { %v3164_v24 = vmax.f32 %v3156_v39, 0.0  ;;  %v3165_v43 = vmax.f32 %v3157_v19, 0.0  ;;  %3691 = vst [vmem:[%s5819_s18 + $0x40] sm:$0xff] %v3158_v13  ;;  %3692 = vst [vmem:[%s5819_s18 + $0x48] sm:$0xff] %v3159_v5 }
 0x2d1   : > { %3693 = vst [vmem:[%s5819_s18 + $0x50] sm:$0xff] %v3160_v37  ;;  %3694 = vst [vmem:[%s5819_s18 + $0x58] sm:$0xff] %v3161_v21  ;;  %v3242_v11 = vld [vmem:[%s5819_s18] sm:$0xff] (%p4538_p5)  ;;  %v3244_v27 = vld [vmem:[%s5819_s18 + $0x8] sm:$0xff] (%p4538_p5) }
 0x2d2   : > { %3695 = vst [vmem:[%s5819_s18 + $0x60] sm:$0xff] %v3162_v38  ;;  %3696 = vst [vmem:[%s5819_s18 + $0x68] sm:$0xff] %v3163_v30  ;;  %v3246_v52 = vld [vmem:[%s5819_s18 + $0x10] sm:$0xff] (%p4538_p5)  ;;  %v3248_v61 = vld [vmem:[%s5819_s18 + $0x18] sm:$0xff] (%p4538_p5) }
 0x2d3   : > { %3697 = vst [vmem:[%s5819_s18 + $0x70] sm:$0xff] %v3164_v24  ;;  %3698 = vst [vmem:[%s5819_s18 + $0x78] sm:$0xff] %v3165_v43  ;;  %v3250_v58 = vld [vmem:[%s5819_s18 + $0x20] sm:$0xff] (%p4538_p5)  ;;  %v3252_v60 = vld [vmem:[%s5819_s18 + $0x28] sm:$0xff] (%p4538_p5) }
 0x2d4   : > { %3243 = vst [vmem:[%s3183_s27] sm:$0xff] %v3242_v11  ;;  %3245 = vst [vmem:[%s3183_s27 + $0x10] sm:$0xff] %v3244_v27  ;;  %v3254_v55 = vld [vmem:[%s5819_s18 + $0x30] sm:$0xff]  ;;  %v3256_v14 = vld [vmem:[%s5819_s18 + $0x38] sm:$0xff] }
 0x2d5   : > { %3247 = vst [vmem:[%s3183_s27 + $0x20] sm:$0xff] %v3246_v52  ;;  %3249 = vst [vmem:[%s3183_s27 + $0x30] sm:$0xff] %v3248_v61 }
 0x2d6   : > { %3251 = vst [vmem:[%s3183_s27 + $0x40] sm:$0xff] %v3250_v58  ;;  %3253 = vst [vmem:[%s3183_s27 + $0x50] sm:$0xff] %v3252_v60 }
 0x2d7   : > { %v3258_v42 = vld [vmem:[%s5819_s18 + $0x40] sm:$0xff]  ;;  %3255 = vst [vmem:[%s3183_s27 + $0x60] sm:$0xff] %v3254_v55  ;;  %3257 = vst [vmem:[%s3183_s27 + $0x70] sm:$0xff] %v3256_v14  ;;  %v3260_v34 = vld [vmem:[%s5819_s18 + $0x48] sm:$0xff] }
 0x2d8   : > { %3259 = vst [vmem:[%s3183_s27 + $0x80] sm:$0xff] %v3258_v42  ;;  %v3262_v0 = vld [vmem:[%s5819_s18 + $0x50] sm:$0xff]  ;;  %v3264_v45 = vld [vmem:[%s5819_s18 + $0x58] sm:$0xff]  ;;  %3261 = vst [vmem:[%s3183_s27 + $0x90] sm:$0xff] %v3260_v34 }
 0x2d9   : > { %3263 = vst [vmem:[%s3183_s27 + $0xa0] sm:$0xff] %v3262_v0  ;;  %3265 = vst [vmem:[%s3183_s27 + $0xb0] sm:$0xff] %v3264_v45  ;;  %v3266_v9 = vld [vmem:[%s5819_s18 + $0x60] sm:$0xff]  ;;  %v3268_v41 = vld [vmem:[%s5819_s18 + $0x68] sm:$0xff] }
 0x2da   : > { %v3270_v47 = vld [vmem:[%s5819_s18 + $0x70] sm:$0xff]  ;;  %3267 = vst [vmem:[%s3183_s27 + $0xc0] sm:$0xff] %v3266_v9  ;;  %3269 = vst [vmem:[%s3183_s27 + $0xd0] sm:$0xff] %v3268_v41  ;;  %v3272_v57 = vld [vmem:[%s5819_s18 + $0x78] sm:$0xff] }
 0x2db   : > { %3271 = vst [vmem:[%s3183_s27 + $0xe0] sm:$0xff] %v3270_v47  ;;  %3273 = vst [vmem:[%s3183_s27 + $0xf0] sm:$0xff] %v3272_v57 }
 0x2dc PF: > { %p12_p11 = scmp.ge.s32.totalorder %s4526_s22, 4   ;;  %s5930_s18 = smov %s4470_s19 }
 0x2dd   : > { %s5931_s19 = smov %s4536_s25  ;;  %s5932_s20 = smov %s4526_s22 }
 0x2de   :  { %14 = sbr.rel (!%p12_p11) target bundleno = 2 (0x2), region = 177 }

// kernel: dropout_head_forward.7
= control target key start
LH: loop header
LB: loop body
LE: loop exit
PB: predicated region body
PF: predicated region fallthrough
CT: control target
= control target key end

     0   :  { %s6341_s18 = smov 0   ;;  %s6343_s19 = smov 0   ;;  %s8733_s0 = inlined_call_operand.vmem [shape: f32[3,2,80,256], index: 0, kind: input, shape index: {}]   ;;  %s8734_s1 = inlined_call_operand.vmem [shape: bf16[9,256,256], index: 1, kind: input, shape index: {}]   ;;  %s8735_s2 = inlined_call_operand.vmem [shape: f32[1,256], index: 2, kind: input, shape index: {}]   ;;  %s8736_s3 = inlined_call_operand.vmem [shape: f32[1,256], index: 3, kind: input, shape index: {}]   ;;  %s8737_s4 = inlined_call_operand.vmem [shape: f32[2,256], index: 4, kind: input, shape index: {}]   ;;  %s8738_s5 = inlined_call_operand.vmem [shape: f32[2,64,256], index: 5, kind: output, shape index: {}]  }
   0x1   :  { %s6345_s20 = smov 0  }
   0x2 LB: > { %s6357_s21 = sadd.s32 4294967295, %s6308_s20   ;;  %s6360_s22 = sadd.s32 1, %s6308_s20   ;;  %s6308_s20 = sphi %s6345_s20, %s8846_s20   ;;  %s6304_s19 = sphi %s6343_s19, %s8845_s19   ;;  %s6300_s18 = sphi %s6341_s18, %s8844_s18  }
   0x3   : > { %s40_s23 = ssub.s32 %s6308_s20, %s6360_s22  ;;  %s43_s24 = sadd.s32 1, %s6304_s19 }
   0x4   : > { %p41_p0 = scmp.eq.s32.totalorder %s40_s23, 0  ;;  %p50_p1 = scmp.ne.s32.totalorder %s6304_s19, %s6300_s18 }
   0x5   : > { %p51_p2 = scmp.eq.s32.totalorder %s6308_s20, 0  ;;  %p158_p3 = scmp.eq.s32.totalorder %s6357_s21, 1 }
   0x6   : > { %s6370_s25 = scalar_select %p41_p0, %s6304_s19, %s43_s24  }
   0x7   : > { %p52_p4 = por %p51_p2, %p50_p1  ;;  %p6372_p5 = por %p158_p3, %p50_p1 }
   0x8   : > { %p4734_p6 = scmp.ge.s32.totalorder %s6308_s20, 2 }
   0xa   : > { %183 = sbr.rel (%p4734_p6) target bundleno = 211 (0xd3), region = 20 }
   0xf   : > { %186 = sbr.rel (!%p52_p4) target bundleno = 211 (0xd3), region = 24  ;;  %s188_s27 = sand.u32 (%p52_p4), 1, %s6304_s19  }
  0x10   : > { %s4735_s28 = sshll.u32 (%p52_p4), %s6308_s20, 2  ;;  %s6111_s29 = smul.u32 (%p52_p4), 1152, %s188_s27 }
  0x11   : > { %s6382_s7 = scalar_lea.vmem (%p52_p4), %s8734_s1, %s4735_s28 }
  0x12   : > { %v209_v0 = vld [vmem:[%s6382_s7] sm:$0xf] (%p52_p4)  ;;  %v211_v1 = vld [vmem:[%s6382_s7 + $0x8] sm:$0xf] (%p52_p4)  ;;  %v213_v2 = vld [vmem:[%s6382_s7 + $0x10] sm:$0xf] (%p52_p4) }
  0x13   : > { %v215_v3 = vld [vmem:[%s6382_s7 + $0x18] sm:$0xf] (%p52_p4)  ;;  %v217_v4 = vld [vmem:[%s6382_s7 + $0x20] sm:$0xf] (%p52_p4)  ;;  %s6389_s8 = scalar_lea.vmem (%p52_p4), [#allocation2], %s6111_s29 }
  0x14   : > { %210 = vst [vmem:[%s6389_s8] sm:$0xf] %v209_v0  ;;  %212 = vst [vmem:[%s6389_s8 + $0x4] sm:$0xf] %v211_v1  ;;  %v219_v5 = vld [vmem:[%s6382_s7 + $0x28] sm:$0xf] }
  0x15   : > { %214 = vst [vmem:[%s6389_s8 + $0x8] sm:$0xf] %v213_v2  ;;  %216 = vst [vmem:[%s6389_s8 + $0xc] sm:$0xf] %v215_v3  ;;  %v221_v6 = vld [vmem:[%s6382_s7 + $0x30] sm:$0xf] }
  0x16   : > { %218 = vst [vmem:[%s6389_s8 + $0x10] sm:$0xf] %v217_v4  ;;  %v223_v7 = vld [vmem:[%s6382_s7 + $0x38] sm:$0xf]  ;;  %220 = vst [vmem:[%s6389_s8 + $0x14] sm:$0xf] %v219_v5 }
  0x17   : > { %222 = vst [vmem:[%s6389_s8 + $0x18] sm:$0xf] %v221_v6  ;;  %224 = vst [vmem:[%s6389_s8 + $0x1c] sm:$0xf] %v223_v7  ;;  %v225_v8 = vld [vmem:[%s6382_s7 + $0x40] sm:$0xf] }
  0x18   : > { %v227_v9 = vld [vmem:[%s6382_s7 + $0x48] sm:$0xf]  ;;  %v229_v10 = vld [vmem:[%s6382_s7 + $0x50] sm:$0xf]  ;;  %226 = vst [vmem:[%s6389_s8 + $0x20] sm:$0xf] %v225_v8 }
  0x19   : > { %228 = vst [vmem:[%s6389_s8 + $0x24] sm:$0xf] %v227_v9  ;;  %230 = vst [vmem:[%s6389_s8 + $0x28] sm:$0xf] %v229_v10  ;;  %v231_v11 = vld [vmem:[%s6382_s7 + $0x58] sm:$0xf] }
  0x1a   : > { %v233_v12 = vld [vmem:[%s6382_s7 + $0x60] sm:$0xf]  ;;  %v235_v13 = vld [vmem:[%s6382_s7 + $0x68] sm:$0xf]  ;;  %232 = vst [vmem:[%s6389_s8 + $0x2c] sm:$0xf] %v231_v11 }
  0x1b   : > { %234 = vst [vmem:[%s6389_s8 + $0x30] sm:$0xf] %v233_v12  ;;  %236 = vst [vmem:[%s6389_s8 + $0x34] sm:$0xf] %v235_v13  ;;  %v237_v14 = vld [vmem:[%s6382_s7 + $0x70] sm:$0xf] }
  0x1c   : > { %v239_v15 = vld [vmem:[%s6382_s7 + $0x78] sm:$0xf]  ;;  %v241_v16 = vld [vmem:[%s6382_s7 + $0x80] sm:$0xf]  ;;  %238 = vst [vmem:[%s6389_s8 + $0x38] sm:$0xf] %v237_v14 }
  0x1d   : > { %240 = vst [vmem:[%s6389_s8 + $0x3c] sm:$0xf] %v239_v15  ;;  %242 = vst [vmem:[%s6389_s8 + $0x40] sm:$0xf] %v241_v16  ;;  %v243_v17 = vld [vmem:[%s6382_s7 + $0x88] sm:$0xf] }
  0x1e   : > { %v245_v18 = vld [vmem:[%s6382_s7 + $0x90] sm:$0xf]  ;;  %v247_v19 = vld [vmem:[%s6382_s7 + $0x98] sm:$0xf]  ;;  %244 = vst [vmem:[%s6389_s8 + $0x44] sm:$0xf] %v243_v17 }
  0x1f   : > { %246 = vst [vmem:[%s6389_s8 + $0x48] sm:$0xf] %v245_v18  ;;  %248 = vst [vmem:[%s6389_s8 + $0x4c] sm:$0xf] %v247_v19  ;;  %v249_v20 = vld [vmem:[%s6382_s7 + $0xa0] sm:$0xf] }
  0x20   : > { %v251_v21 = vld [vmem:[%s6382_s7 + $0xa8] sm:$0xf]  ;;  %v253_v22 = vld [vmem:[%s6382_s7 + $0xb0] sm:$0xf]  ;;  %250 = vst [vmem:[%s6389_s8 + $0x50] sm:$0xf] %v249_v20 }
  0x21   : > { %252 = vst [vmem:[%s6389_s8 + $0x54] sm:$0xf] %v251_v21  ;;  %254 = vst [vmem:[%s6389_s8 + $0x58] sm:$0xf] %v253_v22  ;;  %v255_v23 = vld [vmem:[%s6382_s7 + $0xb8] sm:$0xf] }
  0x22   : > { %v257_v24 = vld [vmem:[%s6382_s7 + $0xc0] sm:$0xf]  ;;  %v259_v25 = vld [vmem:[%s6382_s7 + $0xc8] sm:$0xf]  ;;  %256 = vst [vmem:[%s6389_s8 + $0x5c] sm:$0xf] %v255_v23 }
  0x23   : > { %258 = vst [vmem:[%s6389_s8 + $0x60] sm:$0xf] %v257_v24  ;;  %260 = vst [vmem:[%s6389_s8 + $0x64] sm:$0xf] %v259_v25  ;;  %v261_v26 = vld [vmem:[%s6382_s7 + $0xd0] sm:$0xf] }
  0x24   : > { %v263_v27 = vld [vmem:[%s6382_s7 + $0xd8] sm:$0xf]  ;;  %v265_v28 = vld [vmem:[%s6382_s7 + $0xe0] sm:$0xf]  ;;  %262 = vst [vmem:[%s6389_s8 + $0x68] sm:$0xf] %v261_v26 }
  0x25   : > { %264 = vst [vmem:[%s6389_s8 + $0x6c] sm:$0xf] %v263_v27  ;;  %266 = vst [vmem:[%s6389_s8 + $0x70] sm:$0xf] %v265_v28  ;;  %v267_v29 = vld [vmem:[%s6382_s7 + $0xe8] sm:$0xf] }
  0x26   : > { %v269_v30 = vld [vmem:[%s6382_s7 + $0xf0] sm:$0xf]  ;;  %v271_v31 = vld [vmem:[%s6382_s7 + $0xf8] sm:$0xf]  ;;  %268 = vst [vmem:[%s6389_s8 + $0x74] sm:$0xf] %v267_v29 }
  0x27   : > { %270 = vst [vmem:[%s6389_s8 + $0x78] sm:$0xf] %v269_v30  ;;  %272 = vst [vmem:[%s6389_s8 + $0x7c] sm:$0xf] %v271_v31  ;;  %v273_v32 = vld [vmem:[%s6382_s7 + $0x100] sm:$0xf] }
  0x28   : > { %v275_v33 = vld [vmem:[%s6382_s7 + $0x108] sm:$0xf]  ;;  %v277_v34 = vld [vmem:[%s6382_s7 + $0x110] sm:$0xf]  ;;  %274 = vst [vmem:[%s6389_s8 + $0x80] sm:$0xf] %v273_v32 }
  0x29   : > { %276 = vst [vmem:[%s6389_s8 + $0x84] sm:$0xf] %v275_v33  ;;  %278 = vst [vmem:[%s6389_s8 + $0x88] sm:$0xf] %v277_v34  ;;  %v279_v35 = vld [vmem:[%s6382_s7 + $0x118] sm:$0xf] }
  0x2a   : > { %v281_v36 = vld [vmem:[%s6382_s7 + $0x120] sm:$0xf]  ;;  %v283_v37 = vld [vmem:[%s6382_s7 + $0x128] sm:$0xf]  ;;  %280 = vst [vmem:[%s6389_s8 + $0x8c] sm:$0xf] %v279_v35 }
  0x2b   : > { %282 = vst [vmem:[%s6389_s8 + $0x90] sm:$0xf] %v281_v36  ;;  %284 = vst [vmem:[%s6389_s8 + $0x94] sm:$0xf] %v283_v37  ;;  %v285_v38 = vld [vmem:[%s6382_s7 + $0x130] sm:$0xf] }
  0x2c   : > { %v287_v39 = vld [vmem:[%s6382_s7 + $0x138] sm:$0xf]  ;;  %v289_v40 = vld [vmem:[%s6382_s7 + $0x140] sm:$0xf]  ;;  %286 = vst [vmem:[%s6389_s8 + $0x98] sm:$0xf] %v285_v38 }
  0x2d   : > { %288 = vst [vmem:[%s6389_s8 + $0x9c] sm:$0xf] %v287_v39  ;;  %290 = vst [vmem:[%s6389_s8 + $0xa0] sm:$0xf] %v289_v40  ;;  %v291_v41 = vld [vmem:[%s6382_s7 + $0x148] sm:$0xf] }
  0x2e   : > { %v293_v42 = vld [vmem:[%s6382_s7 + $0x150] sm:$0xf]  ;;  %v295_v43 = vld [vmem:[%s6382_s7 + $0x158] sm:$0xf]  ;;  %292 = vst [vmem:[%s6389_s8 + $0xa4] sm:$0xf] %v291_v41 }
  0x2f   : > { %294 = vst [vmem:[%s6389_s8 + $0xa8] sm:$0xf] %v293_v42  ;;  %296 = vst [vmem:[%s6389_s8 + $0xac] sm:$0xf] %v295_v43  ;;  %v297_v44 = vld [vmem:[%s6382_s7 + $0x160] sm:$0xf] }
  0x30   : > { %v299_v45 = vld [vmem:[%s6382_s7 + $0x168] sm:$0xf]  ;;  %v301_v46 = vld [vmem:[%s6382_s7 + $0x170] sm:$0xf]  ;;  %298 = vst [vmem:[%s6389_s8 + $0xb0] sm:$0xf] %v297_v44 }
  0x31   : > { %300 = vst [vmem:[%s6389_s8 + $0xb4] sm:$0xf] %v299_v45  ;;  %302 = vst [vmem:[%s6389_s8 + $0xb8] sm:$0xf] %v301_v46  ;;  %v303_v47 = vld [vmem:[%s6382_s7 + $0x178] sm:$0xf] }
  0x32   : > { %v305_v48 = vld [vmem:[%s6382_s7 + $0x180] sm:$0xf]  ;;  %v307_v49 = vld [vmem:[%s6382_s7 + $0x188] sm:$0xf]  ;;  %304 = vst [vmem:[%s6389_s8 + $0xbc] sm:$0xf] %v303_v47 }
  0x33   : > { %306 = vst [vmem:[%s6389_s8 + $0xc0] sm:$0xf] %v305_v48  ;;  %308 = vst [vmem:[%s6389_s8 + $0xc4] sm:$0xf] %v307_v49  ;;  %v309_v50 = vld [vmem:[%s6382_s7 + $0x190] sm:$0xf] }
  0x34   : > { %v311_v51 = vld [vmem:[%s6382_s7 + $0x198] sm:$0xf]  ;;  %v313_v52 = vld [vmem:[%s6382_s7 + $0x1a0] sm:$0xf]  ;;  %310 = vst [vmem:[%s6389_s8 + $0xc8] sm:$0xf] %v309_v50 }
  0x35   : > { %312 = vst [vmem:[%s6389_s8 + $0xcc] sm:$0xf] %v311_v51  ;;  %314 = vst [vmem:[%s6389_s8 + $0xd0] sm:$0xf] %v313_v52  ;;  %v315_v53 = vld [vmem:[%s6382_s7 + $0x1a8] sm:$0xf] }
  0x36   : > { %v317_v54 = vld [vmem:[%s6382_s7 + $0x1b0] sm:$0xf]  ;;  %v319_v55 = vld [vmem:[%s6382_s7 + $0x1b8] sm:$0xf]  ;;  %316 = vst [vmem:[%s6389_s8 + $0xd4] sm:$0xf] %v315_v53 }
  0x37   : > { %318 = vst [vmem:[%s6389_s8 + $0xd8] sm:$0xf] %v317_v54  ;;  %320 = vst [vmem:[%s6389_s8 + $0xdc] sm:$0xf] %v319_v55  ;;  %v321_v56 = vld [vmem:[%s6382_s7 + $0x1c0] sm:$0xf] }
  0x38   : > { %v323_v57 = vld [vmem:[%s6382_s7 + $0x1c8] sm:$0xf]  ;;  %v325_v58 = vld [vmem:[%s6382_s7 + $0x1d0] sm:$0xf]  ;;  %322 = vst [vmem:[%s6389_s8 + $0xe0] sm:$0xf] %v321_v56 }
  0x39   : > { %324 = vst [vmem:[%s6389_s8 + $0xe4] sm:$0xf] %v323_v57  ;;  %326 = vst [vmem:[%s6389_s8 + $0xe8] sm:$0xf] %v325_v58  ;;  %v327_v59 = vld [vmem:[%s6382_s7 + $0x1d8] sm:$0xf] }
  0x3a   : > { %v329_v60 = vld [vmem:[%s6382_s7 + $0x1e0] sm:$0xf]  ;;  %v331_v61 = vld [vmem:[%s6382_s7 + $0x1e8] sm:$0xf]  ;;  %328 = vst [vmem:[%s6389_s8 + $0xec] sm:$0xf] %v327_v59 }
  0x3b   : > { %330 = vst [vmem:[%s6389_s8 + $0xf0] sm:$0xf] %v329_v60  ;;  %332 = vst [vmem:[%s6389_s8 + $0xf4] sm:$0xf] %v331_v61  ;;  %v333_v62 = vld [vmem:[%s6382_s7 + $0x1f0] sm:$0xf] }
  0x3c   : > { %v335_v63 = vld [vmem:[%s6382_s7 + $0x1f8] sm:$0xf]  ;;  %v337_v0 = vld [vmem:[%s6382_s7 + $0x200] sm:$0xf]  ;;  %334 = vst [vmem:[%s6389_s8 + $0xf8] sm:$0xf] %v333_v62 }
  0x3d   : > { %336 = vst [vmem:[%s6389_s8 + $0xfc] sm:$0xf] %v335_v63  ;;  %338 = vst [vmem:[%s6389_s8 + $0x100] sm:$0xf] %v337_v0  ;;  %v339_v1 = vld [vmem:[%s6382_s7 + $0x208] sm:$0xf] }
  0x3e   : > { %v341_v2 = vld [vmem:[%s6382_s7 + $0x210] sm:$0xf]  ;;  %v343_v3 = vld [vmem:[%s6382_s7 + $0x218] sm:$0xf]  ;;  %340 = vst [vmem:[%s6389_s8 + $0x104] sm:$0xf] %v339_v1 }
  0x3f   : > { %342 = vst [vmem:[%s6389_s8 + $0x108] sm:$0xf] %v341_v2  ;;  %344 = vst [vmem:[%s6389_s8 + $0x10c] sm:$0xf] %v343_v3  ;;  %v345_v4 = vld [vmem:[%s6382_s7 + $0x220] sm:$0xf] }
  0x40   : > { %v347_v5 = vld [vmem:[%s6382_s7 + $0x228] sm:$0xf]  ;;  %v349_v6 = vld [vmem:[%s6382_s7 + $0x230] sm:$0xf]  ;;  %346 = vst [vmem:[%s6389_s8 + $0x110] sm:$0xf] %v345_v4 }
  0x41   : > { %348 = vst [vmem:[%s6389_s8 + $0x114] sm:$0xf] %v347_v5  ;;  %350 = vst [vmem:[%s6389_s8 + $0x118] sm:$0xf] %v349_v6  ;;  %v351_v7 = vld [vmem:[%s6382_s7 + $0x238] sm:$0xf] }
  0x42   : > { %v353_v8 = vld [vmem:[%s6382_s7 + $0x240] sm:$0xf]  ;;  %v355_v9 = vld [vmem:[%s6382_s7 + $0x248] sm:$0xf]  ;;  %352 = vst [vmem:[%s6389_s8 + $0x11c] sm:$0xf] %v351_v7 }
  0x43   : > { %354 = vst [vmem:[%s6389_s8 + $0x120] sm:$0xf] %v353_v8  ;;  %356 = vst [vmem:[%s6389_s8 + $0x124] sm:$0xf] %v355_v9  ;;  %v357_v10 = vld [vmem:[%s6382_s7 + $0x250] sm:$0xf] }
  0x44   : > { %v359_v11 = vld [vmem:[%s6382_s7 + $0x258] sm:$0xf]  ;;  %v361_v12 = vld [vmem:[%s6382_s7 + $0x260] sm:$0xf]  ;;  %358 = vst [vmem:[%s6389_s8 + $0x128] sm:$0xf] %v357_v10 }
  0x45   : > { %360 = vst [vmem:[%s6389_s8 + $0x12c] sm:$0xf] %v359_v11  ;;  %362 = vst [vmem:[%s6389_s8 + $0x130] sm:$0xf] %v361_v12  ;;  %v363_v13 = vld [vmem:[%s6382_s7 + $0x268] sm:$0xf] }
  0x46   : > { %v365_v14 = vld [vmem:[%s6382_s7 + $0x270] sm:$0xf]  ;;  %v367_v15 = vld [vmem:[%s6382_s7 + $0x278] sm:$0xf]  ;;  %364 = vst [vmem:[%s6389_s8 + $0x134] sm:$0xf] %v363_v13 }
  0x47   : > { %366 = vst [vmem:[%s6389_s8 + $0x138] sm:$0xf] %v365_v14  ;;  %368 = vst [vmem:[%s6389_s8 + $0x13c] sm:$0xf] %v367_v15  ;;  %v369_v16 = vld [vmem:[%s6382_s7 + $0x280] sm:$0xf] }
  0x48   : > { %v371_v17 = vld [vmem:[%s6382_s7 + $0x288] sm:$0xf]  ;;  %v373_v18 = vld [vmem:[%s6382_s7 + $0x290] sm:$0xf]  ;;  %370 = vst [vmem:[%s6389_s8 + $0x140] sm:$0xf] %v369_v16 }
  0x49   : > { %372 = vst [vmem:[%s6389_s8 + $0x144] sm:$0xf] %v371_v17  ;;  %374 = vst [vmem:[%s6389_s8 + $0x148] sm:$0xf] %v373_v18  ;;  %v375_v19 = vld [vmem:[%s6382_s7 + $0x298] sm:$0xf] }
  0x4a   : > { %v377_v20 = vld [vmem:[%s6382_s7 + $0x2a0] sm:$0xf]  ;;  %v379_v21 = vld [vmem:[%s6382_s7 + $0x2a8] sm:$0xf]  ;;  %376 = vst [vmem:[%s6389_s8 + $0x14c] sm:$0xf] %v375_v19 }
  0x4b   : > { %378 = vst [vmem:[%s6389_s8 + $0x150] sm:$0xf] %v377_v20  ;;  %380 = vst [vmem:[%s6389_s8 + $0x154] sm:$0xf] %v379_v21  ;;  %v381_v22 = vld [vmem:[%s6382_s7 + $0x2b0] sm:$0xf] }
  0x4c   : > { %v383_v23 = vld [vmem:[%s6382_s7 + $0x2b8] sm:$0xf]  ;;  %v385_v24 = vld [vmem:[%s6382_s7 + $0x2c0] sm:$0xf]  ;;  %382 = vst [vmem:[%s6389_s8 + $0x158] sm:$0xf] %v381_v22 }
  0x4d   : > { %384 = vst [vmem:[%s6389_s8 + $0x15c] sm:$0xf] %v383_v23  ;;  %386 = vst [vmem:[%s6389_s8 + $0x160] sm:$0xf] %v385_v24  ;;  %v387_v25 = vld [vmem:[%s6382_s7 + $0x2c8] sm:$0xf] }
  0x4e   : > { %v389_v26 = vld [vmem:[%s6382_s7 + $0x2d0] sm:$0xf]  ;;  %v391_v27 = vld [vmem:[%s6382_s7 + $0x2d8] sm:$0xf]  ;;  %388 = vst [vmem:[%s6389_s8 + $0x164] sm:$0xf] %v387_v25 }
  0x4f   : > { %390 = vst [vmem:[%s6389_s8 + $0x168] sm:$0xf] %v389_v26  ;;  %392 = vst [vmem:[%s6389_s8 + $0x16c] sm:$0xf] %v391_v27  ;;  %v393_v28 = vld [vmem:[%s6382_s7 + $0x2e0] sm:$0xf] }
  0x50   : > { %v395_v29 = vld [vmem:[%s6382_s7 + $0x2e8] sm:$0xf]  ;;  %v397_v30 = vld [vmem:[%s6382_s7 + $0x2f0] sm:$0xf]  ;;  %394 = vst [vmem:[%s6389_s8 + $0x170] sm:$0xf] %v393_v28 }
  0x51   : > { %396 = vst [vmem:[%s6389_s8 + $0x174] sm:$0xf] %v395_v29  ;;  %398 = vst [vmem:[%s6389_s8 + $0x178] sm:$0xf] %v397_v30  ;;  %v399_v31 = vld [vmem:[%s6382_s7 + $0x2f8] sm:$0xf] }
  0x52   : > { %v401_v32 = vld [vmem:[%s6382_s7 + $0x300] sm:$0xf]  ;;  %v403_v33 = vld [vmem:[%s6382_s7 + $0x308] sm:$0xf]  ;;  %400 = vst [vmem:[%s6389_s8 + $0x17c] sm:$0xf] %v399_v31 }
  0x53   : > { %402 = vst [vmem:[%s6389_s8 + $0x180] sm:$0xf] %v401_v32  ;;  %404 = vst [vmem:[%s6389_s8 + $0x184] sm:$0xf] %v403_v33  ;;  %v405_v34 = vld [vmem:[%s6382_s7 + $0x310] sm:$0xf] }
  0x54   : > { %v407_v35 = vld [vmem:[%s6382_s7 + $0x318] sm:$0xf]  ;;  %v409_v36 = vld [vmem:[%s6382_s7 + $0x320] sm:$0xf]  ;;  %406 = vst [vmem:[%s6389_s8 + $0x188] sm:$0xf] %v405_v34 }
  0x55   : > { %408 = vst [vmem:[%s6389_s8 + $0x18c] sm:$0xf] %v407_v35  ;;  %410 = vst [vmem:[%s6389_s8 + $0x190] sm:$0xf] %v409_v36  ;;  %v411_v37 = vld [vmem:[%s6382_s7 + $0x328] sm:$0xf] }
  0x56   : > { %v413_v38 = vld [vmem:[%s6382_s7 + $0x330] sm:$0xf]  ;;  %v415_v39 = vld [vmem:[%s6382_s7 + $0x338] sm:$0xf]  ;;  %412 = vst [vmem:[%s6389_s8 + $0x194] sm:$0xf] %v411_v37 }
  0x57   : > { %414 = vst [vmem:[%s6389_s8 + $0x198] sm:$0xf] %v413_v38  ;;  %416 = vst [vmem:[%s6389_s8 + $0x19c] sm:$0xf] %v415_v39  ;;  %v417_v40 = vld [vmem:[%s6382_s7 + $0x340] sm:$0xf] }
  0x58   : > { %v419_v41 = vld [vmem:[%s6382_s7 + $0x348] sm:$0xf]  ;;  %v421_v42 = vld [vmem:[%s6382_s7 + $0x350] sm:$0xf]  ;;  %418 = vst [vmem:[%s6389_s8 + $0x1a0] sm:$0xf] %v417_v40 }
  0x59   : > { %420 = vst [vmem:[%s6389_s8 + $0x1a4] sm:$0xf] %v419_v41  ;;  %422 = vst [vmem:[%s6389_s8 + $0x1a8] sm:$0xf] %v421_v42  ;;  %v423_v43 = vld [vmem:[%s6382_s7 + $0x358] sm:$0xf] }
  0x5a   : > { %v425_v44 = vld [vmem:[%s6382_s7 + $0x360] sm:$0xf]  ;;  %v427_v45 = vld [vmem:[%s6382_s7 + $0x368] sm:$0xf]  ;;  %424 = vst [vmem:[%s6389_s8 + $0x1ac] sm:$0xf] %v423_v43 }
  0x5b   : > { %426 = vst [vmem:[%s6389_s8 + $0x1b0] sm:$0xf] %v425_v44  ;;  %428 = vst [vmem:[%s6389_s8 + $0x1b4] sm:$0xf] %v427_v45  ;;  %v429_v46 = vld [vmem:[%s6382_s7 + $0x370] sm:$0xf] }
  0x5c   : > { %v431_v47 = vld [vmem:[%s6382_s7 + $0x378] sm:$0xf]  ;;  %v433_v48 = vld [vmem:[%s6382_s7 + $0x380] sm:$0xf]  ;;  %430 = vst [vmem:[%s6389_s8 + $0x1b8] sm:$0xf] %v429_v46 }
  0x5d   : > { %432 = vst [vmem:[%s6389_s8 + $0x1bc] sm:$0xf] %v431_v47  ;;  %434 = vst [vmem:[%s6389_s8 + $0x1c0] sm:$0xf] %v433_v48  ;;  %v435_v49 = vld [vmem:[%s6382_s7 + $0x388] sm:$0xf] }
  0x5e   : > { %v437_v50 = vld [vmem:[%s6382_s7 + $0x390] sm:$0xf]  ;;  %v439_v51 = vld [vmem:[%s6382_s7 + $0x398] sm:$0xf]  ;;  %436 = vst [vmem:[%s6389_s8 + $0x1c4] sm:$0xf] %v435_v49 }
  0x5f   : > { %438 = vst [vmem:[%s6389_s8 + $0x1c8] sm:$0xf] %v437_v50  ;;  %440 = vst [vmem:[%s6389_s8 + $0x1cc] sm:$0xf] %v439_v51  ;;  %v441_v52 = vld [vmem:[%s6382_s7 + $0x3a0] sm:$0xf] }
  0x60   : > { %v443_v53 = vld [vmem:[%s6382_s7 + $0x3a8] sm:$0xf]  ;;  %v445_v54 = vld [vmem:[%s6382_s7 + $0x3b0] sm:$0xf]  ;;  %442 = vst [vmem:[%s6389_s8 + $0x1d0] sm:$0xf] %v441_v52 }
  0x61   : > { %444 = vst [vmem:[%s6389_s8 + $0x1d4] sm:$0xf] %v443_v53  ;;  %446 = vst [vmem:[%s6389_s8 + $0x1d8] sm:$0xf] %v445_v54  ;;  %v447_v55 = vld [vmem:[%s6382_s7 + $0x3b8] sm:$0xf] }
  0x62   : > { %v449_v56 = vld [vmem:[%s6382_s7 + $0x3c0] sm:$0xf]  ;;  %v451_v57 = vld [vmem:[%s6382_s7 + $0x3c8] sm:$0xf]  ;;  %448 = vst [vmem:[%s6389_s8 + $0x1dc] sm:$0xf] %v447_v55 }
  0x63   : > { %450 = vst [vmem:[%s6389_s8 + $0x1e0] sm:$0xf] %v449_v56  ;;  %452 = vst [vmem:[%s6389_s8 + $0x1e4] sm:$0xf] %v451_v57  ;;  %v453_v58 = vld [vmem:[%s6382_s7 + $0x3d0] sm:$0xf] }
  0x64   : > { %v455_v59 = vld [vmem:[%s6382_s7 + $0x3d8] sm:$0xf]  ;;  %v457_v60 = vld [vmem:[%s6382_s7 + $0x3e0] sm:$0xf]  ;;  %454 = vst [vmem:[%s6389_s8 + $0x1e8] sm:$0xf] %v453_v58 }
  0x65   : > { %456 = vst [vmem:[%s6389_s8 + $0x1ec] sm:$0xf] %v455_v59  ;;  %458 = vst [vmem:[%s6389_s8 + $0x1f0] sm:$0xf] %v457_v60  ;;  %v459_v61 = vld [vmem:[%s6382_s7 + $0x3e8] sm:$0xf] }
  0x66   : > { %v461_v62 = vld [vmem:[%s6382_s7 + $0x3f0] sm:$0xf]  ;;  %v463_v63 = vld [vmem:[%s6382_s7 + $0x3f8] sm:$0xf]  ;;  %460 = vst [vmem:[%s6389_s8 + $0x1f4] sm:$0xf] %v459_v61 }
  0x67   : > { %462 = vst [vmem:[%s6389_s8 + $0x1f8] sm:$0xf] %v461_v62  ;;  %464 = vst [vmem:[%s6389_s8 + $0x1fc] sm:$0xf] %v463_v63  ;;  %v465_v0 = vld [vmem:[%s6382_s7 + $0x400] sm:$0xf] }
  0x68   : > { %v467_v1 = vld [vmem:[%s6382_s7 + $0x408] sm:$0xf]  ;;  %v469_v2 = vld [vmem:[%s6382_s7 + $0x410] sm:$0xf]  ;;  %466 = vst [vmem:[%s6389_s8 + $0x200] sm:$0xf] %v465_v0 }
  0x69   : > { %468 = vst [vmem:[%s6389_s8 + $0x204] sm:$0xf] %v467_v1  ;;  %470 = vst [vmem:[%s6389_s8 + $0x208] sm:$0xf] %v469_v2  ;;  %v471_v3 = vld [vmem:[%s6382_s7 + $0x418] sm:$0xf] }
  0x6a   : > { %v473_v4 = vld [vmem:[%s6382_s7 + $0x420] sm:$0xf]  ;;  %v475_v5 = vld [vmem:[%s6382_s7 + $0x428] sm:$0xf]  ;;  %472 = vst [vmem:[%s6389_s8 + $0x20c] sm:$0xf] %v471_v3 }
  0x6b   : > { %474 = vst [vmem:[%s6389_s8 + $0x210] sm:$0xf] %v473_v4  ;;  %476 = vst [vmem:[%s6389_s8 + $0x214] sm:$0xf] %v475_v5  ;;  %v477_v6 = vld [vmem:[%s6382_s7 + $0x430] sm:$0xf] }
  0x6c   : > { %v479_v7 = vld [vmem:[%s6382_s7 + $0x438] sm:$0xf]  ;;  %v481_v8 = vld [vmem:[%s6382_s7 + $0x440] sm:$0xf]  ;;  %478 = vst [vmem:[%s6389_s8 + $0x218] sm:$0xf] %v477_v6 }
  0x6d   : > { %480 = vst [vmem:[%s6389_s8 + $0x21c] sm:$0xf] %v479_v7  ;;  %482 = vst [vmem:[%s6389_s8 + $0x220] sm:$0xf] %v481_v8  ;;  %v483_v9 = vld [vmem:[%s6382_s7 + $0x448] sm:$0xf] }
  0x6e   : > { %v485_v10 = vld [vmem:[%s6382_s7 + $0x450] sm:$0xf]  ;;  %v487_v11 = vld [vmem:[%s6382_s7 + $0x458] sm:$0xf]  ;;  %484 = vst [vmem:[%s6389_s8 + $0x224] sm:$0xf] %v483_v9 }
  0x6f   : > { %486 = vst [vmem:[%s6389_s8 + $0x228] sm:$0xf] %v485_v10  ;;  %488 = vst [vmem:[%s6389_s8 + $0x22c] sm:$0xf] %v487_v11  ;;  %v489_v12 = vld [vmem:[%s6382_s7 + $0x460] sm:$0xf] }
  0x70   : > { %v491_v13 = vld [vmem:[%s6382_s7 + $0x468] sm:$0xf]  ;;  %v493_v14 = vld [vmem:[%s6382_s7 + $0x470] sm:$0xf]  ;;  %490 = vst [vmem:[%s6389_s8 + $0x230] sm:$0xf] %v489_v12 }
  0x71   : > { %492 = vst [vmem:[%s6389_s8 + $0x234] sm:$0xf] %v491_v13  ;;  %494 = vst [vmem:[%s6389_s8 + $0x238] sm:$0xf] %v493_v14  ;;  %v495_v15 = vld [vmem:[%s6382_s7 + $0x478] sm:$0xf] }
  0x72   : > { %v497_v16 = vld [vmem:[%s6382_s7 + $0x480] sm:$0xf]  ;;  %v499_v17 = vld [vmem:[%s6382_s7 + $0x488] sm:$0xf]  ;;  %496 = vst [vmem:[%s6389_s8 + $0x23c] sm:$0xf] %v495_v15 }
  0x73   : > { %498 = vst [vmem:[%s6389_s8 + $0x240] sm:$0xf] %v497_v16  ;;  %500 = vst [vmem:[%s6389_s8 + $0x244] sm:$0xf] %v499_v17  ;;  %v501_v18 = vld [vmem:[%s6382_s7 + $0x490] sm:$0xf] }
  0x74   : > { %v503_v19 = vld [vmem:[%s6382_s7 + $0x498] sm:$0xf]  ;;  %v505_v20 = vld [vmem:[%s6382_s7 + $0x4a0] sm:$0xf]  ;;  %502 = vst [vmem:[%s6389_s8 + $0x248] sm:$0xf] %v501_v18 }
  0x75   : > { %504 = vst [vmem:[%s6389_s8 + $0x24c] sm:$0xf] %v503_v19  ;;  %506 = vst [vmem:[%s6389_s8 + $0x250] sm:$0xf] %v505_v20  ;;  %v507_v21 = vld [vmem:[%s6382_s7 + $0x4a8] sm:$0xf] }
  0x76   : > { %v509_v22 = vld [vmem:[%s6382_s7 + $0x4b0] sm:$0xf]  ;;  %v511_v23 = vld [vmem:[%s6382_s7 + $0x4b8] sm:$0xf]  ;;  %508 = vst [vmem:[%s6389_s8 + $0x254] sm:$0xf] %v507_v21 }
  0x77   : > { %510 = vst [vmem:[%s6389_s8 + $0x258] sm:$0xf] %v509_v22  ;;  %512 = vst [vmem:[%s6389_s8 + $0x25c] sm:$0xf] %v511_v23  ;;  %v513_v24 = vld [vmem:[%s6382_s7 + $0x4c0] sm:$0xf] }
  0x78   : > { %v515_v25 = vld [vmem:[%s6382_s7 + $0x4c8] sm:$0xf]  ;;  %v517_v26 = vld [vmem:[%s6382_s7 + $0x4d0] sm:$0xf]  ;;  %514 = vst [vmem:[%s6389_s8 + $0x260] sm:$0xf] %v513_v24 }
  0x79   : > { %516 = vst [vmem:[%s6389_s8 + $0x264] sm:$0xf] %v515_v25  ;;  %518 = vst [vmem:[%s6389_s8 + $0x268] sm:$0xf] %v517_v26  ;;  %v519_v27 = vld [vmem:[%s6382_s7 + $0x4d8] sm:$0xf] }
  0x7a   : > { %v521_v28 = vld [vmem:[%s6382_s7 + $0x4e0] sm:$0xf]  ;;  %v523_v29 = vld [vmem:[%s6382_s7 + $0x4e8] sm:$0xf]  ;;  %520 = vst [vmem:[%s6389_s8 + $0x26c] sm:$0xf] %v519_v27 }
  0x7b   : > { %522 = vst [vmem:[%s6389_s8 + $0x270] sm:$0xf] %v521_v28  ;;  %524 = vst [vmem:[%s6389_s8 + $0x274] sm:$0xf] %v523_v29  ;;  %v525_v30 = vld [vmem:[%s6382_s7 + $0x4f0] sm:$0xf] }
  0x7c   : > { %v527_v31 = vld [vmem:[%s6382_s7 + $0x4f8] sm:$0xf]  ;;  %v529_v32 = vld [vmem:[%s6382_s7 + $0x500] sm:$0xf]  ;;  %526 = vst [vmem:[%s6389_s8 + $0x278] sm:$0xf] %v525_v30 }
  0x7d   : > { %528 = vst [vmem:[%s6389_s8 + $0x27c] sm:$0xf] %v527_v31  ;;  %530 = vst [vmem:[%s6389_s8 + $0x280] sm:$0xf] %v529_v32  ;;  %v531_v33 = vld [vmem:[%s6382_s7 + $0x508] sm:$0xf] }
  0x7e   : > { %v533_v34 = vld [vmem:[%s6382_s7 + $0x510] sm:$0xf]  ;;  %v535_v35 = vld [vmem:[%s6382_s7 + $0x518] sm:$0xf]  ;;  %532 = vst [vmem:[%s6389_s8 + $0x284] sm:$0xf] %v531_v33 }
  0x7f   : > { %534 = vst [vmem:[%s6389_s8 + $0x288] sm:$0xf] %v533_v34  ;;  %536 = vst [vmem:[%s6389_s8 + $0x28c] sm:$0xf] %v535_v35  ;;  %v537_v36 = vld [vmem:[%s6382_s7 + $0x520] sm:$0xf] }
  0x80   : > { %v539_v37 = vld [vmem:[%s6382_s7 + $0x528] sm:$0xf]  ;;  %v541_v38 = vld [vmem:[%s6382_s7 + $0x530] sm:$0xf]  ;;  %538 = vst [vmem:[%s6389_s8 + $0x290] sm:$0xf] %v537_v36 }
  0x81   : > { %540 = vst [vmem:[%s6389_s8 + $0x294] sm:$0xf] %v539_v37  ;;  %542 = vst [vmem:[%s6389_s8 + $0x298] sm:$0xf] %v541_v38  ;;  %v543_v39 = vld [vmem:[%s6382_s7 + $0x538] sm:$0xf] }
  0x82   : > { %v545_v40 = vld [vmem:[%s6382_s7 + $0x540] sm:$0xf]  ;;  %v547_v41 = vld [vmem:[%s6382_s7 + $0x548] sm:$0xf]  ;;  %544 = vst [vmem:[%s6389_s8 + $0x29c] sm:$0xf] %v543_v39 }
  0x83   : > { %546 = vst [vmem:[%s6389_s8 + $0x2a0] sm:$0xf] %v545_v40  ;;  %548 = vst [vmem:[%s6389_s8 + $0x2a4] sm:$0xf] %v547_v41  ;;  %v549_v42 = vld [vmem:[%s6382_s7 + $0x550] sm:$0xf] }
  0x84   : > { %v551_v43 = vld [vmem:[%s6382_s7 + $0x558] sm:$0xf]  ;;  %v553_v44 = vld [vmem:[%s6382_s7 + $0x560] sm:$0xf]  ;;  %550 = vst [vmem:[%s6389_s8 + $0x2a8] sm:$0xf] %v549_v42 }
  0x85   : > { %552 = vst [vmem:[%s6389_s8 + $0x2ac] sm:$0xf] %v551_v43  ;;  %554 = vst [vmem:[%s6389_s8 + $0x2b0] sm:$0xf] %v553_v44  ;;  %v555_v45 = vld [vmem:[%s6382_s7 + $0x568] sm:$0xf] }
  0x86   : > { %v557_v46 = vld [vmem:[%s6382_s7 + $0x570] sm:$0xf]  ;;  %v559_v47 = vld [vmem:[%s6382_s7 + $0x578] sm:$0xf]  ;;  %556 = vst [vmem:[%s6389_s8 + $0x2b4] sm:$0xf] %v555_v45 }
  0x87   : > { %558 = vst [vmem:[%s6389_s8 + $0x2b8] sm:$0xf] %v557_v46  ;;  %560 = vst [vmem:[%s6389_s8 + $0x2bc] sm:$0xf] %v559_v47  ;;  %v561_v48 = vld [vmem:[%s6382_s7 + $0x580] sm:$0xf] }
  0x88   : > { %v563_v49 = vld [vmem:[%s6382_s7 + $0x588] sm:$0xf]  ;;  %v565_v50 = vld [vmem:[%s6382_s7 + $0x590] sm:$0xf]  ;;  %562 = vst [vmem:[%s6389_s8 + $0x2c0] sm:$0xf] %v561_v48 }
  0x89   : > { %564 = vst [vmem:[%s6389_s8 + $0x2c4] sm:$0xf] %v563_v49  ;;  %566 = vst [vmem:[%s6389_s8 + $0x2c8] sm:$0xf] %v565_v50  ;;  %v567_v51 = vld [vmem:[%s6382_s7 + $0x598] sm:$0xf] }
  0x8a   : > { %v569_v52 = vld [vmem:[%s6382_s7 + $0x5a0] sm:$0xf]  ;;  %v571_v53 = vld [vmem:[%s6382_s7 + $0x5a8] sm:$0xf]  ;;  %568 = vst [vmem:[%s6389_s8 + $0x2cc] sm:$0xf] %v567_v51 }
  0x8b   : > { %570 = vst [vmem:[%s6389_s8 + $0x2d0] sm:$0xf] %v569_v52  ;;  %572 = vst [vmem:[%s6389_s8 + $0x2d4] sm:$0xf] %v571_v53  ;;  %v573_v54 = vld [vmem:[%s6382_s7 + $0x5b0] sm:$0xf] }
  0x8c   : > { %v575_v55 = vld [vmem:[%s6382_s7 + $0x5b8] sm:$0xf]  ;;  %v577_v56 = vld [vmem:[%s6382_s7 + $0x5c0] sm:$0xf]  ;;  %574 = vst [vmem:[%s6389_s8 + $0x2d8] sm:$0xf] %v573_v54 }
  0x8d   : > { %576 = vst [vmem:[%s6389_s8 + $0x2dc] sm:$0xf] %v575_v55  ;;  %578 = vst [vmem:[%s6389_s8 + $0x2e0] sm:$0xf] %v577_v56  ;;  %v579_v57 = vld [vmem:[%s6382_s7 + $0x5c8] sm:$0xf] }
  0x8e   : > { %v581_v58 = vld [vmem:[%s6382_s7 + $0x5d0] sm:$0xf]  ;;  %v583_v59 = vld [vmem:[%s6382_s7 + $0x5d8] sm:$0xf]  ;;  %580 = vst [vmem:[%s6389_s8 + $0x2e4] sm:$0xf] %v579_v57 }
  0x8f   : > { %582 = vst [vmem:[%s6389_s8 + $0x2e8] sm:$0xf] %v581_v58  ;;  %584 = vst [vmem:[%s6389_s8 + $0x2ec] sm:$0xf] %v583_v59  ;;  %v585_v60 = vld [vmem:[%s6382_s7 + $0x5e0] sm:$0xf] }
  0x90   : > { %v587_v61 = vld [vmem:[%s6382_s7 + $0x5e8] sm:$0xf]  ;;  %v589_v62 = vld [vmem:[%s6382_s7 + $0x5f0] sm:$0xf]  ;;  %586 = vst [vmem:[%s6389_s8 + $0x2f0] sm:$0xf] %v585_v60 }
  0x91   : > { %588 = vst [vmem:[%s6389_s8 + $0x2f4] sm:$0xf] %v587_v61  ;;  %590 = vst [vmem:[%s6389_s8 + $0x2f8] sm:$0xf] %v589_v62  ;;  %v591_v63 = vld [vmem:[%s6382_s7 + $0x5f8] sm:$0xf] }
  0x92   : > { %v593_v0 = vld [vmem:[%s6382_s7 + $0x600] sm:$0xf]  ;;  %v595_v1 = vld [vmem:[%s6382_s7 + $0x608] sm:$0xf]  ;;  %592 = vst [vmem:[%s6389_s8 + $0x2fc] sm:$0xf] %v591_v63 }
  0x93   : > { %594 = vst [vmem:[%s6389_s8 + $0x300] sm:$0xf] %v593_v0  ;;  %596 = vst [vmem:[%s6389_s8 + $0x304] sm:$0xf] %v595_v1  ;;  %v597_v2 = vld [vmem:[%s6382_s7 + $0x610] sm:$0xf] }
  0x94   : > { %v599_v3 = vld [vmem:[%s6382_s7 + $0x618] sm:$0xf]  ;;  %v601_v4 = vld [vmem:[%s6382_s7 + $0x620] sm:$0xf]  ;;  %598 = vst [vmem:[%s6389_s8 + $0x308] sm:$0xf] %v597_v2 }
  0x95   : > { %600 = vst [vmem:[%s6389_s8 + $0x30c] sm:$0xf] %v599_v3  ;;  %602 = vst [vmem:[%s6389_s8 + $0x310] sm:$0xf] %v601_v4  ;;  %v603_v5 = vld [vmem:[%s6382_s7 + $0x628] sm:$0xf] }
  0x96   : > { %v605_v6 = vld [vmem:[%s6382_s7 + $0x630] sm:$0xf]  ;;  %v607_v7 = vld [vmem:[%s6382_s7 + $0x638] sm:$0xf]  ;;  %604 = vst [vmem:[%s6389_s8 + $0x314] sm:$0xf] %v603_v5 }
  0x97   : > { %606 = vst [vmem:[%s6389_s8 + $0x318] sm:$0xf] %v605_v6  ;;  %608 = vst [vmem:[%s6389_s8 + $0x31c] sm:$0xf] %v607_v7  ;;  %v609_v8 = vld [vmem:[%s6382_s7 + $0x640] sm:$0xf] }
  0x98   : > { %v611_v9 = vld [vmem:[%s6382_s7 + $0x648] sm:$0xf]  ;;  %v613_v10 = vld [vmem:[%s6382_s7 + $0x650] sm:$0xf]  ;;  %610 = vst [vmem:[%s6389_s8 + $0x320] sm:$0xf] %v609_v8 }
  0x99   : > { %612 = vst [vmem:[%s6389_s8 + $0x324] sm:$0xf] %v611_v9  ;;  %614 = vst [vmem:[%s6389_s8 + $0x328] sm:$0xf] %v613_v10  ;;  %v615_v11 = vld [vmem:[%s6382_s7 + $0x658] sm:$0xf] }
  0x9a   : > { %v617_v12 = vld [vmem:[%s6382_s7 + $0x660] sm:$0xf]  ;;  %v619_v13 = vld [vmem:[%s6382_s7 + $0x668] sm:$0xf]  ;;  %616 = vst [vmem:[%s6389_s8 + $0x32c] sm:$0xf] %v615_v11 }
  0x9b   : > { %618 = vst [vmem:[%s6389_s8 + $0x330] sm:$0xf] %v617_v12  ;;  %620 = vst [vmem:[%s6389_s8 + $0x334] sm:$0xf] %v619_v13  ;;  %v621_v14 = vld [vmem:[%s6382_s7 + $0x670] sm:$0xf] }
  0x9c   : > { %v623_v15 = vld [vmem:[%s6382_s7 + $0x678] sm:$0xf]  ;;  %v625_v16 = vld [vmem:[%s6382_s7 + $0x680] sm:$0xf]  ;;  %622 = vst [vmem:[%s6389_s8 + $0x338] sm:$0xf] %v621_v14 }
  0x9d   : > { %624 = vst [vmem:[%s6389_s8 + $0x33c] sm:$0xf] %v623_v15  ;;  %626 = vst [vmem:[%s6389_s8 + $0x340] sm:$0xf] %v625_v16  ;;  %v627_v17 = vld [vmem:[%s6382_s7 + $0x688] sm:$0xf] }
  0x9e   : > { %v629_v18 = vld [vmem:[%s6382_s7 + $0x690] sm:$0xf]  ;;  %v631_v19 = vld [vmem:[%s6382_s7 + $0x698] sm:$0xf]  ;;  %628 = vst [vmem:[%s6389_s8 + $0x344] sm:$0xf] %v627_v17 }
  0x9f   : > { %630 = vst [vmem:[%s6389_s8 + $0x348] sm:$0xf] %v629_v18  ;;  %632 = vst [vmem:[%s6389_s8 + $0x34c] sm:$0xf] %v631_v19  ;;  %v633_v20 = vld [vmem:[%s6382_s7 + $0x6a0] sm:$0xf] }
  0xa0   : > { %v635_v21 = vld [vmem:[%s6382_s7 + $0x6a8] sm:$0xf]  ;;  %v637_v22 = vld [vmem:[%s6382_s7 + $0x6b0] sm:$0xf]  ;;  %634 = vst [vmem:[%s6389_s8 + $0x350] sm:$0xf] %v633_v20 }
  0xa1   : > { %636 = vst [vmem:[%s6389_s8 + $0x354] sm:$0xf] %v635_v21  ;;  %638 = vst [vmem:[%s6389_s8 + $0x358] sm:$0xf] %v637_v22  ;;  %v639_v23 = vld [vmem:[%s6382_s7 + $0x6b8] sm:$0xf] }
  0xa2   : > { %v641_v24 = vld [vmem:[%s6382_s7 + $0x6c0] sm:$0xf]  ;;  %v643_v25 = vld [vmem:[%s6382_s7 + $0x6c8] sm:$0xf]  ;;  %640 = vst [vmem:[%s6389_s8 + $0x35c] sm:$0xf] %v639_v23 }
  0xa3   : > { %642 = vst [vmem:[%s6389_s8 + $0x360] sm:$0xf] %v641_v24  ;;  %644 = vst [vmem:[%s6389_s8 + $0x364] sm:$0xf] %v643_v25  ;;  %v645_v26 = vld [vmem:[%s6382_s7 + $0x6d0] sm:$0xf] }
  0xa4   : > { %v647_v27 = vld [vmem:[%s6382_s7 + $0x6d8] sm:$0xf]  ;;  %v649_v28 = vld [vmem:[%s6382_s7 + $0x6e0] sm:$0xf]  ;;  %646 = vst [vmem:[%s6389_s8 + $0x368] sm:$0xf] %v645_v26 }
  0xa5   : > { %648 = vst [vmem:[%s6389_s8 + $0x36c] sm:$0xf] %v647_v27  ;;  %650 = vst [vmem:[%s6389_s8 + $0x370] sm:$0xf] %v649_v28  ;;  %v651_v29 = vld [vmem:[%s6382_s7 + $0x6e8] sm:$0xf] }
  0xa6   : > { %v653_v30 = vld [vmem:[%s6382_s7 + $0x6f0] sm:$0xf]  ;;  %v655_v31 = vld [vmem:[%s6382_s7 + $0x6f8] sm:$0xf]  ;;  %652 = vst [vmem:[%s6389_s8 + $0x374] sm:$0xf] %v651_v29 }
  0xa7   : > { %654 = vst [vmem:[%s6389_s8 + $0x378] sm:$0xf] %v653_v30  ;;  %656 = vst [vmem:[%s6389_s8 + $0x37c] sm:$0xf] %v655_v31  ;;  %v657_v32 = vld [vmem:[%s6382_s7 + $0x700] sm:$0xf] }
  0xa8   : > { %v659_v33 = vld [vmem:[%s6382_s7 + $0x708] sm:$0xf]  ;;  %v661_v34 = vld [vmem:[%s6382_s7 + $0x710] sm:$0xf]  ;;  %658 = vst [vmem:[%s6389_s8 + $0x380] sm:$0xf] %v657_v32 }
  0xa9   : > { %660 = vst [vmem:[%s6389_s8 + $0x384] sm:$0xf] %v659_v33  ;;  %662 = vst [vmem:[%s6389_s8 + $0x388] sm:$0xf] %v661_v34  ;;  %v663_v35 = vld [vmem:[%s6382_s7 + $0x718] sm:$0xf] }
  0xaa   : > { %v665_v36 = vld [vmem:[%s6382_s7 + $0x720] sm:$0xf]  ;;  %v667_v37 = vld [vmem:[%s6382_s7 + $0x728] sm:$0xf]  ;;  %664 = vst [vmem:[%s6389_s8 + $0x38c] sm:$0xf] %v663_v35 }
  0xab   : > { %666 = vst [vmem:[%s6389_s8 + $0x390] sm:$0xf] %v665_v36  ;;  %668 = vst [vmem:[%s6389_s8 + $0x394] sm:$0xf] %v667_v37  ;;  %v669_v38 = vld [vmem:[%s6382_s7 + $0x730] sm:$0xf] }
  0xac   : > { %v671_v39 = vld [vmem:[%s6382_s7 + $0x738] sm:$0xf]  ;;  %v673_v40 = vld [vmem:[%s6382_s7 + $0x740] sm:$0xf]  ;;  %670 = vst [vmem:[%s6389_s8 + $0x398] sm:$0xf] %v669_v38 }
  0xad   : > { %672 = vst [vmem:[%s6389_s8 + $0x39c] sm:$0xf] %v671_v39  ;;  %674 = vst [vmem:[%s6389_s8 + $0x3a0] sm:$0xf] %v673_v40  ;;  %v675_v41 = vld [vmem:[%s6382_s7 + $0x748] sm:$0xf] }
  0xae   : > { %v677_v42 = vld [vmem:[%s6382_s7 + $0x750] sm:$0xf]  ;;  %v679_v43 = vld [vmem:[%s6382_s7 + $0x758] sm:$0xf]  ;;  %676 = vst [vmem:[%s6389_s8 + $0x3a4] sm:$0xf] %v675_v41 }
  0xaf   : > { %678 = vst [vmem:[%s6389_s8 + $0x3a8] sm:$0xf] %v677_v42  ;;  %680 = vst [vmem:[%s6389_s8 + $0x3ac] sm:$0xf] %v679_v43  ;;  %v681_v44 = vld [vmem:[%s6382_s7 + $0x760] sm:$0xf] }
  0xb0   : > { %v683_v45 = vld [vmem:[%s6382_s7 + $0x768] sm:$0xf]  ;;  %v685_v46 = vld [vmem:[%s6382_s7 + $0x770] sm:$0xf]  ;;  %682 = vst [vmem:[%s6389_s8 + $0x3b0] sm:$0xf] %v681_v44 }
  0xb1   : > { %684 = vst [vmem:[%s6389_s8 + $0x3b4] sm:$0xf] %v683_v45  ;;  %686 = vst [vmem:[%s6389_s8 + $0x3b8] sm:$0xf] %v685_v46  ;;  %v687_v47 = vld [vmem:[%s6382_s7 + $0x778] sm:$0xf] }
  0xb2   : > { %v689_v48 = vld [vmem:[%s6382_s7 + $0x780] sm:$0xf]  ;;  %v691_v49 = vld [vmem:[%s6382_s7 + $0x788] sm:$0xf]  ;;  %688 = vst [vmem:[%s6389_s8 + $0x3bc] sm:$0xf] %v687_v47 }
  0xb3   : > { %690 = vst [vmem:[%s6389_s8 + $0x3c0] sm:$0xf] %v689_v48  ;;  %692 = vst [vmem:[%s6389_s8 + $0x3c4] sm:$0xf] %v691_v49  ;;  %v693_v50 = vld [vmem:[%s6382_s7 + $0x790] sm:$0xf] }
  0xb4   : > { %v695_v51 = vld [vmem:[%s6382_s7 + $0x798] sm:$0xf]  ;;  %v697_v52 = vld [vmem:[%s6382_s7 + $0x7a0] sm:$0xf]  ;;  %694 = vst [vmem:[%s6389_s8 + $0x3c8] sm:$0xf] %v693_v50 }
  0xb5   : > { %696 = vst [vmem:[%s6389_s8 + $0x3cc] sm:$0xf] %v695_v51  ;;  %698 = vst [vmem:[%s6389_s8 + $0x3d0] sm:$0xf] %v697_v52  ;;  %v699_v53 = vld [vmem:[%s6382_s7 + $0x7a8] sm:$0xf] }
  0xb6   : > { %v701_v54 = vld [vmem:[%s6382_s7 + $0x7b0] sm:$0xf]  ;;  %v703_v55 = vld [vmem:[%s6382_s7 + $0x7b8] sm:$0xf]  ;;  %700 = vst [vmem:[%s6389_s8 + $0x3d4] sm:$0xf] %v699_v53 }
  0xb7   : > { %702 = vst [vmem:[%s6389_s8 + $0x3d8] sm:$0xf] %v701_v54  ;;  %704 = vst [vmem:[%s6389_s8 + $0x3dc] sm:$0xf] %v703_v55  ;;  %v705_v56 = vld [vmem:[%s6382_s7 + $0x7c0] sm:$0xf] }
  0xb8   : > { %v707_v57 = vld [vmem:[%s6382_s7 + $0x7c8] sm:$0xf]  ;;  %v709_v58 = vld [vmem:[%s6382_s7 + $0x7d0] sm:$0xf]  ;;  %706 = vst [vmem:[%s6389_s8 + $0x3e0] sm:$0xf] %v705_v56 }
  0xb9   : > { %708 = vst [vmem:[%s6389_s8 + $0x3e4] sm:$0xf] %v707_v57  ;;  %710 = vst [vmem:[%s6389_s8 + $0x3e8] sm:$0xf] %v709_v58  ;;  %v711_v59 = vld [vmem:[%s6382_s7 + $0x7d8] sm:$0xf] }
  0xba   : > { %v713_v60 = vld [vmem:[%s6382_s7 + $0x7e0] sm:$0xf]  ;;  %v715_v61 = vld [vmem:[%s6382_s7 + $0x7e8] sm:$0xf]  ;;  %712 = vst [vmem:[%s6389_s8 + $0x3ec] sm:$0xf] %v711_v59 }
  0xbb   : > { %714 = vst [vmem:[%s6389_s8 + $0x3f0] sm:$0xf] %v713_v60  ;;  %716 = vst [vmem:[%s6389_s8 + $0x3f4] sm:$0xf] %v715_v61  ;;  %v717_v62 = vld [vmem:[%s6382_s7 + $0x7f0] sm:$0xf] }
  0xbc   : > { %v719_v63 = vld [vmem:[%s6382_s7 + $0x7f8] sm:$0xf]  ;;  %v721_v0 = vld [vmem:[%s6382_s7 + $0x800] sm:$0xf]  ;;  %718 = vst [vmem:[%s6389_s8 + $0x3f8] sm:$0xf] %v717_v62 }
  0xbd   : > { %720 = vst [vmem:[%s6389_s8 + $0x3fc] sm:$0xf] %v719_v63  ;;  %722 = vst [vmem:[%s6389_s8 + $0x400] sm:$0xf] %v721_v0  ;;  %v723_v1 = vld [vmem:[%s6382_s7 + $0x808] sm:$0xf] }
  0xbe   : > { %v725_v2 = vld [vmem:[%s6382_s7 + $0x810] sm:$0xf]  ;;  %v727_v3 = vld [vmem:[%s6382_s7 + $0x818] sm:$0xf]  ;;  %724 = vst [vmem:[%s6389_s8 + $0x404] sm:$0xf] %v723_v1 }
  0xbf   : > { %726 = vst [vmem:[%s6389_s8 + $0x408] sm:$0xf] %v725_v2  ;;  %728 = vst [vmem:[%s6389_s8 + $0x40c] sm:$0xf] %v727_v3  ;;  %v729_v4 = vld [vmem:[%s6382_s7 + $0x820] sm:$0xf] }
  0xc0   : > { %v731_v5 = vld [vmem:[%s6382_s7 + $0x828] sm:$0xf]  ;;  %v733_v6 = vld [vmem:[%s6382_s7 + $0x830] sm:$0xf]  ;;  %730 = vst [vmem:[%s6389_s8 + $0x410] sm:$0xf] %v729_v4 }
  0xc1   : > { %732 = vst [vmem:[%s6389_s8 + $0x414] sm:$0xf] %v731_v5  ;;  %734 = vst [vmem:[%s6389_s8 + $0x418] sm:$0xf] %v733_v6  ;;  %v735_v7 = vld [vmem:[%s6382_s7 + $0x838] sm:$0xf] }
  0xc2   : > { %v737_v8 = vld [vmem:[%s6382_s7 + $0x840] sm:$0xf]  ;;  %v739_v9 = vld [vmem:[%s6382_s7 + $0x848] sm:$0xf]  ;;  %736 = vst [vmem:[%s6389_s8 + $0x41c] sm:$0xf] %v735_v7 }
  0xc3   : > { %738 = vst [vmem:[%s6389_s8 + $0x420] sm:$0xf] %v737_v8  ;;  %740 = vst [vmem:[%s6389_s8 + $0x424] sm:$0xf] %v739_v9  ;;  %v741_v10 = vld [vmem:[%s6382_s7 + $0x850] sm:$0xf] }
  0xc4   : > { %v743_v11 = vld [vmem:[%s6382_s7 + $0x858] sm:$0xf]  ;;  %v745_v12 = vld [vmem:[%s6382_s7 + $0x860] sm:$0xf]  ;;  %742 = vst [vmem:[%s6389_s8 + $0x428] sm:$0xf] %v741_v10 }
  0xc5   : > { %744 = vst [vmem:[%s6389_s8 + $0x42c] sm:$0xf] %v743_v11  ;;  %746 = vst [vmem:[%s6389_s8 + $0x430] sm:$0xf] %v745_v12  ;;  %v747_v13 = vld [vmem:[%s6382_s7 + $0x868] sm:$0xf] }
  0xc6   : > { %v749_v14 = vld [vmem:[%s6382_s7 + $0x870] sm:$0xf]  ;;  %v751_v15 = vld [vmem:[%s6382_s7 + $0x878] sm:$0xf]  ;;  %748 = vst [vmem:[%s6389_s8 + $0x434] sm:$0xf] %v747_v13 }
  0xc7   : > { %750 = vst [vmem:[%s6389_s8 + $0x438] sm:$0xf] %v749_v14  ;;  %752 = vst [vmem:[%s6389_s8 + $0x43c] sm:$0xf] %v751_v15  ;;  %v753_v16 = vld [vmem:[%s6382_s7 + $0x880] sm:$0xf] }
  0xc8   : > { %v755_v17 = vld [vmem:[%s6382_s7 + $0x888] sm:$0xf]  ;;  %v757_v18 = vld [vmem:[%s6382_s7 + $0x890] sm:$0xf]  ;;  %754 = vst [vmem:[%s6389_s8 + $0x440] sm:$0xf] %v753_v16 }
  0xc9   : > { %756 = vst [vmem:[%s6389_s8 + $0x444] sm:$0xf] %v755_v17  ;;  %758 = vst [vmem:[%s6389_s8 + $0x448] sm:$0xf] %v757_v18  ;;  %v759_v19 = vld [vmem:[%s6382_s7 + $0x898] sm:$0xf] }
  0xca   : > { %v761_v20 = vld [vmem:[%s6382_s7 + $0x8a0] sm:$0xf]  ;;  %v763_v21 = vld [vmem:[%s6382_s7 + $0x8a8] sm:$0xf]  ;;  %760 = vst [vmem:[%s6389_s8 + $0x44c] sm:$0xf] %v759_v19 }
  0xcb   : > { %762 = vst [vmem:[%s6389_s8 + $0x450] sm:$0xf] %v761_v20  ;;  %764 = vst [vmem:[%s6389_s8 + $0x454] sm:$0xf] %v763_v21  ;;  %v765_v22 = vld [vmem:[%s6382_s7 + $0x8b0] sm:$0xf] }
  0xcc   : > { %v767_v23 = vld [vmem:[%s6382_s7 + $0x8b8] sm:$0xf]  ;;  %v769_v24 = vld [vmem:[%s6382_s7 + $0x8c0] sm:$0xf]  ;;  %766 = vst [vmem:[%s6389_s8 + $0x458] sm:$0xf] %v765_v22 }
  0xcd   : > { %768 = vst [vmem:[%s6389_s8 + $0x45c] sm:$0xf] %v767_v23  ;;  %770 = vst [vmem:[%s6389_s8 + $0x460] sm:$0xf] %v769_v24  ;;  %v771_v25 = vld [vmem:[%s6382_s7 + $0x8c8] sm:$0xf] }
  0xce   : > { %v773_v26 = vld [vmem:[%s6382_s7 + $0x8d0] sm:$0xf]  ;;  %v775_v27 = vld [vmem:[%s6382_s7 + $0x8d8] sm:$0xf]  ;;  %772 = vst [vmem:[%s6389_s8 + $0x464] sm:$0xf] %v771_v25 }
  0xcf   : > { %774 = vst [vmem:[%s6389_s8 + $0x468] sm:$0xf] %v773_v26  ;;  %776 = vst [vmem:[%s6389_s8 + $0x46c] sm:$0xf] %v775_v27  ;;  %v777_v28 = vld [vmem:[%s6382_s7 + $0x8e0] sm:$0xf] }
  0xd0   : > { %v779_v29 = vld [vmem:[%s6382_s7 + $0x8e8] sm:$0xf]  ;;  %v781_v30 = vld [vmem:[%s6382_s7 + $0x8f0] sm:$0xf]  ;;  %778 = vst [vmem:[%s6389_s8 + $0x470] sm:$0xf] %v777_v28 }
  0xd1   : > { %780 = vst [vmem:[%s6389_s8 + $0x474] sm:$0xf] %v779_v29  ;;  %782 = vst [vmem:[%s6389_s8 + $0x478] sm:$0xf] %v781_v30  ;;  %v783_v31 = vld [vmem:[%s6382_s7 + $0x8f8] sm:$0xf] }
  0xd2   : > { %784 = vst [vmem:[%s6389_s8 + $0x47c] sm:$0xf] %v783_v31 }
  0xd3 PF: > { %p4736_p7 = scmp.ge.s32.totalorder %s6308_s20, 1  ;;  %p1402_p8 = scmp.lt.s32.totalorder %s6308_s20, 3 }
  0xd5   : > { %p1403_p9 = pnand %p4736_p7, %p1402_p8 }
  0xd7   : > { %1406 = sbr.rel (%p1403_p9) target bundleno = 843 (0x34b), region = 77 }
  0xdc   : > { %s1409_s9 = sand.u32 1, %s6300_s18   ;;  %v4788_v32 = vld [vmem:[%s8733_s0 + $0x148] sm:$0xff]  ;;  %v4790_v33 = vld [vmem:[%s8733_s0 + $0x158] sm:$0xff]  ;;  %v4787_v3 = vld [vmem:[%s8733_s0 + $0x140] sm:$0xff]  ;;  %p1445_p10 = scmp.lt.s32.totalorder %s6357_s21, 1 }
  0xdd   : > { %v1489_v34 = vld [vmem:[%s8733_s0 + $0x8] sm:$0xff]  ;;  %s6112_s16 = smul.u32 1152, %s1409_s9  ;;  %v1588_v35 = vpack.c.bf16 %v4790_v33, %v4788_v32  ;;  %v6979_v36 = vld [vmem:[%s8733_s0 + $0x18] sm:$0xff]  ;;  %v4789_v4 = vld [vmem:[%s8733_s0 + $0x150] sm:$0xff]  ;;  %s4737_s29 = sshll.u32 %s1409_s9, 7 }
  0xde   : > { %v1505_v37 = vpack.c.bf16 %v6979_v36, %v1489_v34  ;;  %v6985_v38 = vld [vmem:[%s8733_s0 + $0x28] sm:$0xff]  ;;  %v1488_v6 = vld [vmem:[%s8733_s0] sm:$0xff]  ;;  %v7113_v7 = vld [vmem:[%s8733_s0 + $0x10] sm:$0xff]  ;;  %v1587_v14 = vpack.c.bf16 %v4789_v4, %v4787_v3  ;;  %s1446_s12 = scalar_select %p1445_p10, %s6357_s21, 1 }
  0xdf   : > { %1723 = vmatprep.mubr.bf16.mxu0 %v1588_v35  ;;  %s6987_s27 = scalar_lea.vmem [#allocation2], %s6112_s16  ;;  %v4792_v10 = vld [vmem:[%s8733_s0 + $0x168] sm:$0xff]  ;;  %v4794_v11 = vld [vmem:[%s8733_s0 + $0x178] sm:$0xff]  ;;  %v1504_v15 = vpack.c.bf16 %v7113_v7, %v1488_v6  ;;  %v7147_v17 = vld [vmem:[%s8733_s0 + $0x20] sm:$0xff]  ;;  %s8676_s18 = scalar_lea.vmem [#allocation3], %s4737_s29 }
  0xe0   : > { %v6990_v39 = vld [vmem:[%s6987_s27 + $0xf8] sm:$0xff]   ;;  %1884 = vmatprep.mubr.bf16.mxu1 %v1505_v37  ;;  %v7007_v44 = vld [vmem:[%s6987_s27 + $0xf0] sm:$0xff]   ;;  %v7023_v48 = vld [vmem:[%s6987_s27 + $0xe8] sm:$0xff]   ;;  %v1590_v19 = vpack.c.bf16 %v4794_v11, %v4792_v10  ;;  %s4738_s13 = sshll.u32 %s1446_s12, 1  ;;  %s1447_s20 = scalar_lea.vmem %s8735_s2, %s1446_s12 }
  0xe1   : > { %v6993_v40 = vld [vmem:[%s6987_s27 + $0x78] sm:$0xff]   ;;  %5391 = vmatprep.subr.bf16.mxu0 %v6990_v39  ;;  %v7011_v45 = vld [vmem:[%s6987_s27 + $0x70] sm:$0xff]   ;;  %v7027_v49 = vld [vmem:[%s6987_s27 + $0x68] sm:$0xff]   ;;  %s1450_s28 = scalar_lea.vmem %s8736_s3, %s1446_s12  ;;  %s5388_s9 = sshll.u32 (%p6372_p5), %s6357_s21, 3 }
  0xe2   : > { %v6999_v42 = vld [vmem:[%s6987_s27 + $0xb8] sm:$0xff]   ;;  %5431 = vmatprep.subr.bf16.mxu1 %v6993_v40  ;;  %v7015_v46 = vld [vmem:[%s6987_s27 + $0xb0] sm:$0xff]   ;;  %v7031_v50 = vld [vmem:[%s6987_s27 + $0xa8] sm:$0xff]   ;;  %s4551_s7 = scalar_lea.vmem (%p6372_p5), %s8738_s5, %s5388_s9 }
  0xe3   : > { %v7003_v43 = vld [vmem:[%s6987_s27 + $0x38] sm:$0xff]   ;;  %5392 = vmatpush3.bf16.msra.mxu0 %v6999_v42  ;;  %v7019_v47 = vld [vmem:[%s6987_s27 + $0x30] sm:$0xff]   ;;  %v7035_v51 = vld [vmem:[%s6987_s27 + $0x28] sm:$0xff]  }
  0xe4   : > { %5432 = vmatpush3.bf16.msra.mxu1 %v7003_v43  ;;  %5393 = vmatprep.subr.bf16.mxu0 %v7007_v44  ;;  %v7039_v52 = vld [vmem:[%s6987_s27 + $0xe0] sm:$0xff]   ;;  %v7055_v56 = vld [vmem:[%s6987_s27 + $0xd8] sm:$0xff]   ;;  %v7071_v60 = vld [vmem:[%s6987_s27 + $0xd0] sm:$0xff]  }
  0xe5   : > { %5433 = vmatprep.subr.bf16.mxu1 %v7011_v45  ;;  %v7043_v53 = vld [vmem:[%s6987_s27 + $0x60] sm:$0xff]   ;;  %v7059_v57 = vld [vmem:[%s6987_s27 + $0x58] sm:$0xff]   ;;  %v7075_v61 = vld [vmem:[%s6987_s27 + $0x50] sm:$0xff]  }
  0xe6   : > { %v7047_v54 = vld [vmem:[%s6987_s27 + $0xa0] sm:$0xff]   ;;  %v7063_v58 = vld [vmem:[%s6987_s27 + $0x98] sm:$0xff]   ;;  %v7079_v62 = vld [vmem:[%s6987_s27 + $0x90] sm:$0xff]  }
  0xe7   : > { %5394 = vmatpush3.bf16.msra.mxu0 %v7015_v46  ;;  %v7051_v55 = vld [vmem:[%s6987_s27 + $0x20] sm:$0xff]   ;;  %v7067_v59 = vld [vmem:[%s6987_s27 + $0x18] sm:$0xff]   ;;  %v7083_v63 = vld [vmem:[%s6987_s27 + $0x10] sm:$0xff]  }
  0xe8   : > { %5434 = vmatpush3.bf16.msra.mxu1 %v7019_v47  ;;  %5395 = vmatprep.subr.bf16.mxu0 %v7023_v48  ;;  %v7087_v0 = vld [vmem:[%s6987_s27 + $0xc8] sm:$0xff]   ;;  %v7117_v8 = vld [vmem:[%s6987_s27 + $0xc0] sm:$0xff]   ;;  %v7142_v16 = vld [vmem:[%s8733_s0 + $0x38] sm:$0xff] }
  0xe9   : > { %5435 = vmatprep.subr.bf16.mxu1 %v7027_v49  ;;  %v7091_v1 = vld [vmem:[%s6987_s27 + $0x48] sm:$0xff]   ;;  %v7121_v9 = vld [vmem:[%s6987_s27 + $0x40] sm:$0xff]   ;;  %v1507_v21 = vpack.c.bf16 %v7142_v16, %v6985_v38  ;;  %v7167_v23 = vld [vmem:[%s8733_s0 + $0x30] sm:$0xff] }
  0xea   : > { %v7095_v2 = vld [vmem:[%s6987_s27 + $0x88] sm:$0xff]   ;;  %v7131_v12 = vld [vmem:[%s6987_s27 + $0x80] sm:$0xff]   ;;  %v4793_v26 = vld [vmem:[%s8733_s0 + $0x170] sm:$0xff] }
  0xeb   : > { %5396 = vmatpush3.bf16.msra.mxu0 %v7031_v50  ;;  %v7105_v5 = vld [vmem:[%s6987_s27 + $0x8] sm:$0xff]   ;;  %v7135_v13 = vld [vmem:[%s6987_s27] sm:$0xff]   ;;  %v7183_v27 = vld [vmem:[%s8733_s0 + $0x58] sm:$0xff] }
  0xec   : > { %5436 = vmatpush3.bf16.msra.mxu1 %v7035_v51  ;;  %5397 = vmatprep.subr.bf16.mxu0 %v7039_v52  ;;  %v7157_v20 = vld [vmem:[%s8733_s0 + $0x48] sm:$0xff]  ;;  %v4791_v22 = vld [vmem:[%s8733_s0 + $0x160] sm:$0xff]  ;;  %v7200_v31 = vld [vmem:[%s8733_s0 + $0x50] sm:$0xff] }
  0xed   : > { %5437 = vmatprep.subr.bf16.mxu1 %v7043_v53  ;;  %v7172_v24 = vld [vmem:[%s8733_s0 + $0x40] sm:$0xff]  ;;  %v7188_v28 = vld [vmem:[%s8733_s0 + $0x68] sm:$0xff]  ;;  %v1589_v33 = vpack.c.bf16 %v4793_v26, %v4791_v22  ;;  %v4798_v35 = vld [vmem:[%s8733_s0 + $0x198] sm:$0xff] }
  0xee   : > { %v7205_v32 = vld [vmem:[%s8733_s0 + $0x60] sm:$0xff]  ;;  %v4796_v34 = vld [vmem:[%s8733_s0 + $0x188] sm:$0xff]  ;;  %v1508_v3 = vpack.c.bf16 %v7200_v31, %v7172_v24  ;;  %v7269_v4 = vld [vmem:[%s8733_s0 + $0x78] sm:$0xff] }
  0xef   : > { %5398 = vmatpush3.bf16.msra.mxu0 %v7047_v54  ;;  %v1511_v10 = vpack.c.bf16 %v7269_v4, %v7188_v28  ;;  %v7303_v11 = vld [vmem:[%s8733_s0 + $0x210] sm:$0xff]  ;;  %v7541_v30 = vld [vmem:[%s8733_s0 + $0x2c0] sm:$0xff]  ;;  %v6182_v41 = vld [vmem:[%s6987_s27 + $0x148] sm:$0xff]  }
  0xf0   : > { %5438 = vmatpush3.bf16.msra.mxu1 %v7051_v55  ;;  %5399 = vmatprep.subr.bf16.mxu0 %v7055_v56  ;;  %8762 = vst [vmem:[#allocation10_spill] sm:$0xff] %v7303_v11  ;;  %v7536_v37 = vld [vmem:[%s8733_s0 + $0x350] sm:$0xff]  ;;  %v7546_v29 = vld [vmem:[%s8733_s0 + $0x360] sm:$0xff] }
  0xf1   : > { %5439 = vmatprep.subr.bf16.mxu1 %v7059_v57  ;;  %v6180_v25 = vld [vmem:[%s6987_s27 + $0x150] sm:$0xff]   ;;  %v7568_v18 = vld [vmem:[%s8733_s0 + $0x100] sm:$0xff] }
  0xf3   : > { %5400 = vmatpush3.bf16.msra.mxu0 %v7063_v58 }
  0xf4   : > { %5440 = vmatpush3.bf16.msra.mxu1 %v7067_v59  ;;  %5401 = vmatprep.subr.bf16.mxu0 %v7071_v60 }
  0xf5   : > { %5441 = vmatprep.subr.bf16.mxu1 %v7075_v61 }
  0xf7   : > { %5402 = vmatpush3.bf16.msra.mxu0 %v7079_v62 }
  0xf8   : > { %5442 = vmatpush3.bf16.msra.mxu1 %v7083_v63  ;;  %5403 = vmatprep.subr.bf16.mxu0 %v7087_v0 }
  0xf9   : > { %5443 = vmatprep.subr.bf16.mxu1 %v7091_v1 }
  0xfb   : > { %5404 = vmatpush3.bf16.msra.mxu0 %v7095_v2 }
  0xfc   : > { %5444 = vmatpush3.bf16.msra.mxu1 %v7105_v5  ;;  %5405 = vmatprep.subr.bf16.mxu0 %v7117_v8 }
  0xfd   : > { %5445 = vmatprep.subr.bf16.mxu1 %v7121_v9 }
  0xff   : > { %5406 = vmatpush3.bf16.msra.mxu0 %v7131_v12 }
 0x100   : > { %5446 = vmatpush3.bf16.msra.mxu1 %v7135_v13  ;;  %5471 = vmatprep.subr.bf16.mxu0 %v6990_v39  ;;  %v1506_v39 = vpack.c.bf16 %v7167_v23, %v7147_v17 }
 0x101   : > { %5511 = vmatprep.subr.bf16.mxu1 %v6993_v40  ;;  %v1592_v40 = vpack.c.bf16 %v4798_v35, %v4796_v34  ;;  %v7356_v35 = vld [vmem:[%s8733_s0 + $0xb0] sm:$0xff]  ;;  %v6179_v34 = vld [vmem:[%s6987_s27 + $0x118] sm:$0xff]  }
 0x102   : > { %1724 = vmatmul.mubr.bf16.vlgmr.msra.gmra.mxu0 %v1587_v14  ;;  %v7308_v14 = vld [vmem:[%s8733_s0 + $0x220] sm:$0xff] }
 0x103   : > { %1885 = vmatmul.mubr.bf16.vlgmr.msra.gmra.mxu1 %v1504_v15  ;;  %5472 = vmatpush3.bf16.msra.mxu0 %v6999_v42  ;;  %v1509_v42 = vpack.c.bf16 %v7183_v27, %v7157_v20  ;;  %8763 = vst [vmem:[#allocation11_spill] sm:$0xff] %v7308_v14  ;;  %v7495_v15 = vld [vmem:[%s8733_s0 + $0x108] sm:$0xff] }
 0x104   : > { %5512 = vmatpush3.bf16.msra.mxu1 %v7003_v43  ;;  %5473 = vmatprep.subr.bf16.mxu0 %v7007_v44  ;;  %v4795_v43 = vld [vmem:[%s8733_s0 + $0x180] sm:$0xff]  ;;  %v4797_v44 = vld [vmem:[%s8733_s0 + $0x190] sm:$0xff] }
 0x105   : > { %5513 = vmatprep.subr.bf16.mxu1 %v7011_v45  ;;  %1731 = vmatprep.mubr.bf16.mxu0 %v1590_v19  ;;  %v7235_v45 = vld [vmem:[%s8733_s0 + $0x1f8] sm:$0xff] }
 0x106   : > { %1892 = vmatprep.mubr.bf16.mxu1 %v1507_v21  ;;  %8756 = vst [vmem:[#allocation4_spill] sm:$0xff] %v7235_v45  ;;  %v4740_v21 = vld [vmem:[%s8733_s0 + $0xa8] sm:$0xff] }
 0x107   : > { %5474 = vmatpush3.bf16.msra.mxu0 %v7015_v46  ;;  %v7240_v46 = vld [vmem:[%s8733_s0 + $0x208] sm:$0xff] }
 0x108   : > { %5514 = vmatpush3.bf16.msra.mxu1 %v7019_v47  ;;  %5475 = vmatprep.subr.bf16.mxu0 %v7023_v48  ;;  %8757 = vst [vmem:[#allocation5_spill] sm:$0xff] %v7240_v46  ;;  %v7246_v47 = vld [vmem:[%s8733_s0 + $0x1f0] sm:$0xff]  ;;  %v7251_v48 = vld [vmem:[%s8733_s0 + $0x200] sm:$0xff] }
 0x109   : > { %5515 = vmatprep.subr.bf16.mxu1 %v7027_v49  ;;  %8758 = vst [vmem:[#allocation6_spill] sm:$0xff] %v7246_v47  ;;  %8759 = vst [vmem:[#allocation7_spill] sm:$0xff] %v7251_v48 }
 0x10a   : > { %1732 = vmatmul.mubr.bf16.gmra.mxu0 %v1589_v33  ;;  %v7341_v33 = vld [vmem:[%s8733_s0 + $0x248] sm:$0xff] }
 0x10b   : > { %1893 = vmatmul.mubr.bf16.gmra.mxu1 %v1506_v39  ;;  %5476 = vmatpush3.bf16.msra.mxu0 %v7031_v50  ;;  %v1591_v50 = vpack.c.bf16 %v4797_v44, %v4795_v43  ;;  %8765 = vst [vmem:[#allocation13_spill] sm:$0xff] %v7341_v33  ;;  %v7361_v39 = vld [vmem:[%s8733_s0 + $0x230] sm:$0xff]  ;;  %v6171_v43 = vld [vmem:[%s6987_s27 + $0x138] sm:$0xff]  }
 0x10c   : > { %5516 = vmatpush3.bf16.msra.mxu1 %v7035_v51  ;;  %5477 = vmatprep.subr.bf16.mxu0 %v7039_v52  ;;  %v4800_v51 = vld [vmem:[%s8733_s0 + $0x1a8] sm:$0xff]  ;;  %v4802_v52 = vld [vmem:[%s8733_s0 + $0x1b8] sm:$0xff]  ;;  %8766 = vst [vmem:[#allocation14_spill] sm:$0xff] %v7361_v39 }
 0x10d   : > { %5517 = vmatprep.subr.bf16.mxu1 %v7043_v53  ;;  %1739 = vmatprep.mubr.bf16.mxu0 %v1592_v40  ;;  %v1594_v6 = vpack.c.bf16 %v4802_v52, %v4800_v51  ;;  %v7366_v40 = vld [vmem:[%s8733_s0 + $0x240] sm:$0xff]  ;;  %v6173_v52 = vld [vmem:[%s6987_s27 + $0x130] sm:$0xff]   ;;  %v7527_v53 = vld [vmem:[%s8733_s0 + $0x368] sm:$0xff] }
 0x10e   : > { %1900 = vmatprep.mubr.bf16.mxu1 %v1509_v42  ;;  %8767 = vst [vmem:[#allocation15_spill] sm:$0xff] %v7366_v40  ;;  %v7517_v42 = vld [vmem:[%s8733_s0 + $0x358] sm:$0xff] }
 0x10f   : > { %5478 = vmatpush3.bf16.msra.mxu0 %v7047_v54  ;;  %v4799_v54 = vld [vmem:[%s8733_s0 + $0x1a0] sm:$0xff] }
 0x110   : > { %5518 = vmatpush3.bf16.msra.mxu1 %v7051_v55  ;;  %5479 = vmatprep.subr.bf16.mxu0 %v7055_v56  ;;  %v4801_v55 = vld [vmem:[%s8733_s0 + $0x1b0] sm:$0xff]  ;;  %v7286_v56 = vld [vmem:[%s8733_s0 + $0x218] sm:$0xff] }
 0x111   : > { %5519 = vmatprep.subr.bf16.mxu1 %v7059_v57  ;;  %8760 = vst [vmem:[#allocation8_spill] sm:$0xff] %v7286_v56  ;;  %v7291_v57 = vld [vmem:[%s8733_s0 + $0x228] sm:$0xff]  ;;  %v1593_v19 = vpack.c.bf16 %v4801_v55, %v4799_v54  ;;  %v1937_v51 = vpack.c.bf16 %v7286_v56, %v7240_v46  ;;  %v7415_v55 = vld [vmem:[%s8733_s0 + $0xf8] sm:$0xff] }
 0x112   : > { %1740 = vmatmul.mubr.bf16.gmra.mxu0 %v1591_v50  ;;  %8761 = vst [vmem:[#allocation9_spill] sm:$0xff] %v7291_v57  ;;  %v7379_v50 = vld [vmem:[%s8733_s0 + $0xc8] sm:$0xff] }
 0x113   : > { %1901 = vmatmul.mubr.bf16.gmra.mxu1 %v1508_v3  ;;  %5480 = vmatpush3.bf16.msra.mxu0 %v7063_v58  ;;  %v7298_v58 = vld [vmem:[%s8733_s0 + $0x70] sm:$0xff]  ;;  %v7398_v3 = vld [vmem:[%s8733_s0 + $0xc0] sm:$0xff]  ;;  %v7410_v54 = vld [vmem:[%s8733_s0 + $0xe8] sm:$0xff] }
 0x114   : > { %5520 = vmatpush3.bf16.msra.mxu1 %v7067_v59  ;;  %5481 = vmatprep.subr.bf16.mxu0 %v7071_v60  ;;  %v4836_v60 = vld [vmem:[%s8733_s0 + $0x1e8] sm:$0xff]  ;;  %v1510_v22 = vpack.c.bf16 %v7298_v58, %v7205_v32  ;;  %v7522_v59 = vld [vmem:[%s8733_s0 + $0x2b0] sm:$0xff] }
 0x115   : > { %5521 = vmatprep.subr.bf16.mxu1 %v7075_v61  ;;  %1747 = vmatprep.mubr.bf16.mxu0 %v1594_v6  ;;  %v7327_v61 = vld [vmem:[%s8733_s0 + $0xb8] sm:$0xff]  ;;  %v1935_v26 = vpack.c.bf16 %v7235_v45, %v4836_v60  ;;  %v6174_v6 = vld [vmem:[%s6987_s27 + $0x168] sm:$0xff]   ;;  %v1936_v60 = vpack.c.bf16 %v7303_v11, %v7251_v48  ;;  %v6184_v45 = vld [vmem:[%s6987_s27 + $0x140] sm:$0xff]  }
 0x116   : > { %1908 = vmatprep.mubr.bf16.mxu1 %v1511_v10  ;;  %v6175_v10 = vld [vmem:[%s6987_s27 + $0x128] sm:$0xff]  }
 0x117   : > { %5482 = vmatpush3.bf16.msra.mxu0 %v7079_v62  ;;  %v7336_v62 = vld [vmem:[%s8733_s0 + $0x238] sm:$0xff]  ;;  %v7600_v11 = vld [vmem:[%s8733_s0 + $0x388] sm:$0xff] }
 0x118   : > { %5522 = vmatpush3.bf16.msra.mxu1 %v7083_v63  ;;  %5483 = vmatprep.subr.bf16.mxu0 %v7087_v0  ;;  %8764 = vst [vmem:[#allocation12_spill] sm:$0xff] %v7336_v62  ;;  %v1530_v63 = vpack.c.bf16 %v7327_v61, %v4740_v21  ;;  %v4835_v0 = vld [vmem:[%s8733_s0 + $0x1e0] sm:$0xff]  ;;  %v4884_v56 = vld [vmem:[%s8733_s0 + $0x288] sm:$0xff] }
 0x119   : > { %5523 = vmatprep.subr.bf16.mxu1 %v7091_v1  ;;  %v4739_v1 = vld [vmem:[%s8733_s0 + $0xa0] sm:$0xff]  ;;  %v1934_v44 = vpack.c.bf16 %v7246_v47, %v4835_v0  ;;  %v6199_v48 = vld [vmem:[%s6987_s27 + $0x188] sm:$0xff]  }
 0x11a   : > { %1748 = vmatmul.mubr.bf16.gmra.mxu0 %v1593_v19  ;;  %v7422_v19 = vld [vmem:[%s8733_s0 + $0x298] sm:$0xff]  ;;  %v6176_v0 = vld [vmem:[%s6987_s27 + $0x160] sm:$0xff]  }
 0x11b   : > { %1909 = vmatmul.mubr.bf16.gmra.mxu1 %v1510_v22  ;;  %5484 = vmatpush3.bf16.msra.mxu0 %v7095_v2  ;;  %v6170_v2 = vld [vmem:[%s6987_s27 + $0x178] sm:$0xff]   ;;  %v7622_v47 = vld [vmem:[%s8733_s0 + $0x380] sm:$0xff]  ;;  %v2123_v46 = vpack.c.bf16 %v7422_v19, %v4884_v56 }
 0x11c   : > { %5524 = vmatpush3.bf16.msra.mxu1 %v7105_v5  ;;  %5485 = vmatprep.subr.bf16.mxu0 %v7117_v8  ;;  %v1529_v5 = vpack.c.bf16 %v7356_v35, %v4739_v1  ;;  %v7386_v8 = vld [vmem:[%s8733_s0 + $0xd8] sm:$0xff]  ;;  %v7445_v1 = vld [vmem:[%s8733_s0 + $0x290] sm:$0xff] }
 0x11d   : > { %5525 = vmatprep.subr.bf16.mxu1 %v7121_v9  ;;  %1974 = vmatprep.mubr.bf16.mxu0 %v1935_v26  ;;  %v6172_v9 = vld [vmem:[%s6987_s27 + $0x170] sm:$0xff]   ;;  %v7429_v22 = vld [vmem:[%s8733_s0 + $0x338] sm:$0xff]  ;;  %v7434_v26 = vld [vmem:[%s8733_s0 + $0x2a8] sm:$0xff] }
 0x11e   : > { %2039 = vmatprep.mubr.bf16.mxu1 %v1530_v63  ;;  %v7439_v63 = vld [vmem:[%s8733_s0 + $0x348] sm:$0xff] }
 0x11f   : > { %5486 = vmatpush3.bf16.msra.mxu0 %v7131_v12  ;;  %v1532_v12 = vpack.c.bf16 %v7386_v8, %v7379_v50 }
 0x120   : > { %5526 = vmatpush3.bf16.msra.mxu1 %v7135_v13  ;;  %5551 = vmatprep.subr.bf16.mxu0 %v6170_v2  ;;  %v7403_v13 = vld [vmem:[%s8733_s0 + $0xd0] sm:$0xff] }
 0x121   : > { %5591 = vmatprep.subr.bf16.mxu1 %v6170_v2  ;;  %v1531_v21 = vpack.c.bf16 %v7403_v13, %v7398_v3  ;;  %v7450_v2 = vld [vmem:[%s8733_s0 + $0x2a0] sm:$0xff] }
 0x122   : > { %1975 = vmatmul.mubr.bf16.vlgmr.msra.gmra.mxu0 %v1934_v44  ;;  %v7476_v44 = vld [vmem:[%s8733_s0 + $0xe0] sm:$0xff] }
 0x123   : > { %2040 = vmatmul.mubr.bf16.vlgmr.msra.gmra.mxu1 %v1529_v5  ;;  %5552 = vmatpush3.bf16.msra.mxu0 %v6171_v43  ;;  %v6177_v5 = vld [vmem:[%s6987_s27 + $0x120] sm:$0xff]  }
 0x124   : > { %5592 = vmatpush3.bf16.msra.mxu1 %v6171_v43  ;;  %5553 = vmatprep.subr.bf16.mxu0 %v6172_v9  ;;  %v7481_v43 = vld [vmem:[%s8733_s0 + $0xf0] sm:$0xff] }
 0x125   : > { %5593 = vmatprep.subr.bf16.mxu1 %v6172_v9  ;;  %1982 = vmatprep.mubr.bf16.mxu0 %v1937_v51  ;;  %v1939_v9 = vpack.c.bf16 %v7336_v62, %v7291_v57  ;;  %v7462_v51 = vld [vmem:[%s8733_s0 + $0x330] sm:$0xff]  ;;  %v1533_v49 = vpack.c.bf16 %v7481_v43, %v7476_v44 }
 0x126   : > { %2047 = vmatprep.mubr.bf16.mxu1 %v1532_v12  ;;  %v6178_v12 = vld [vmem:[%s6987_s27 + $0x158] sm:$0xff]   ;;  %v7617_v57 = vld [vmem:[%s8733_s0 + $0x370] sm:$0xff] }
 0x127   : > { %5554 = vmatpush3.bf16.msra.mxu0 %v6173_v52  ;;  %8771 = vst [vmem:[#allocation19_spill] sm:$0xff] %v7617_v57 }
 0x128   : > { %5594 = vmatpush3.bf16.msra.mxu1 %v6173_v52  ;;  %5555 = vmatprep.subr.bf16.mxu0 %v6174_v6  ;;  %v7467_v52 = vld [vmem:[%s8733_s0 + $0x340] sm:$0xff] }
 0x129   : > { %5595 = vmatprep.subr.bf16.mxu1 %v6174_v6  ;;  %v1534_v6 = vpack.c.bf16 %v7415_v55, %v7410_v54 }
 0x12a   : > { %1983 = vmatmul.mubr.bf16.gmra.mxu0 %v1936_v60  ;;  %v7489_v60 = vld [vmem:[%s8733_s0 + $0x258] sm:$0xff] }
 0x12b   : > { %2048 = vmatmul.mubr.bf16.gmra.mxu1 %v1531_v21  ;;  %5556 = vmatpush3.bf16.msra.mxu0 %v6175_v10  ;;  %8768 = vst [vmem:[#allocation16_spill] sm:$0xff] %v7489_v60  ;;  %v7500_v21 = vld [vmem:[%s8733_s0 + $0x118] sm:$0xff]  ;;  %v1941_v62 = vpack.c.bf16 %v7489_v60, %v7341_v33  ;;  %v7589_v33 = vld [vmem:[%s8733_s0 + $0x2e8] sm:$0xff] }
 0x12c   : > { %5596 = vmatpush3.bf16.msra.mxu1 %v6175_v10  ;;  %5557 = vmatprep.subr.bf16.mxu0 %v6176_v0  ;;  %v7505_v10 = vld [vmem:[%s8733_s0 + $0x2b8] sm:$0xff] }
 0x12d   : > { %5597 = vmatprep.subr.bf16.mxu1 %v6176_v0  ;;  %1990 = vmatprep.mubr.bf16.mxu0 %v1939_v9  ;;  %v7510_v0 = vld [vmem:[%s8733_s0 + $0x2c8] sm:$0xff]  ;;  %v1938_v9 = vpack.c.bf16 %v7361_v39, %v7308_v14  ;;  %v6181_v39 = vld [vmem:[%s6987_s27 + $0x110] sm:$0xff]   ;;  %v7584_v60 = vld [vmem:[%s8733_s0 + $0x378] sm:$0xff] }
 0x12e   : > { %2055 = vmatprep.mubr.bf16.mxu1 %v1534_v6  ;;  %v7561_v6 = vld [vmem:[%s8733_s0 + $0x250] sm:$0xff]  ;;  %v7605_v14 = vld [vmem:[%s8733_s0 + $0x2e0] sm:$0xff] }
 0x12f   : > { %5558 = vmatpush3.bf16.msra.mxu0 %v6177_v5  ;;  %8769 = vst [vmem:[#allocation17_spill] sm:$0xff] %v7561_v6 }
 0x130   : > { %5598 = vmatpush3.bf16.msra.mxu1 %v6177_v5  ;;  %5559 = vmatprep.subr.bf16.mxu0 %v6178_v12  ;;  %v1536_v5 = vpack.c.bf16 %v7500_v21, %v7495_v15 }
 0x131   : > { %5599 = vmatprep.subr.bf16.mxu1 %v6178_v12  ;;  %v7573_v12 = vld [vmem:[%s8733_s0 + $0x110] sm:$0xff] }
 0x132   : > { %1991 = vmatmul.mubr.bf16.gmra.mxu0 %v1938_v9  ;;  %8770 = vst [vmem:[#allocation18_spill] sm:$0xff] %v7573_v12  ;;  %v7579_v9 = vld [vmem:[%s8733_s0 + $0x2d8] sm:$0xff] }
 0x133   : > { %2056 = vmatmul.mubr.bf16.gmra.mxu1 %v1533_v49  ;;  %5560 = vmatpush3.bf16.msra.mxu0 %v6179_v34  ;;  %v6183_v49 = vld [vmem:[%s6987_s27 + $0x108] sm:$0xff]  }
 0x134   : > { %5600 = vmatpush3.bf16.msra.mxu1 %v6179_v34  ;;  %5561 = vmatprep.subr.bf16.mxu0 %v6180_v25  ;;  %v7595_v34 = vld [vmem:[%s8733_s0 + $0x2d0] sm:$0xff] }
 0x135   : > { %5601 = vmatprep.subr.bf16.mxu1 %v6180_v25  ;;  %1998 = vmatprep.mubr.bf16.mxu0 %v1941_v62  ;;  %v1940_v62 = vpack.c.bf16 %v7561_v6, %v7366_v40  ;;  %v1535_v6 = vpack.c.bf16 %v7573_v12, %v7568_v18  ;;  %v4916_v40 = vld [vmem:[%s8733_s0 + $0x328] sm:$0xff]  ;;  %v4883_v12 = vld [vmem:[%s8733_s0 + $0x280] sm:$0xff] }
 0x136   : > { %2063 = vmatprep.mubr.bf16.mxu1 %v1536_v5  ;;  %v6185_v5 = vld [vmem:[%s6987_s27 + $0x100] sm:$0xff]   ;;  %v2317_v25 = vpack.c.bf16 %v7429_v22, %v4916_v40  ;;  %v2122_v56 = vpack.c.bf16 %v7445_v1, %v4883_v12  ;;  %v6190_v12 = vld [vmem:[%s6987_s27 + $0x1e8] sm:$0xff]  }
 0x137   : > { %5562 = vmatpush3.bf16.msra.mxu0 %v6181_v39 }
 0x138   : > { %5602 = vmatpush3.bf16.msra.mxu1 %v6181_v39  ;;  %5563 = vmatprep.subr.bf16.mxu0 %v6182_v41  ;;  %v4915_v39 = vld [vmem:[%s8733_s0 + $0x320] sm:$0xff] }
 0x139   : > { %5603 = vmatprep.subr.bf16.mxu1 %v6182_v41  ;;  %v6186_v41 = vld [vmem:[%s6987_s27 + $0x1f8] sm:$0xff]   ;;  %v2316_v40 = vpack.c.bf16 %v7462_v51, %v4915_v39  ;;  %v6191_v39 = vld [vmem:[%s6987_s27 + $0x1a8] sm:$0xff]  }
 0x13a   : > { %1999 = vmatmul.mubr.bf16.gmra.mxu0 %v1940_v62  ;;  %v6187_v62 = vld [vmem:[%s6987_s27 + $0x1b8] sm:$0xff]  }
 0x13b   : > { %2064 = vmatmul.mubr.bf16.gmra.mxu1 %v1535_v6  ;;  %5564 = vmatpush3.bf16.msra.mxu0 %v6183_v49  ;;  %v6188_v6 = vld [vmem:[%s6987_s27 + $0x1f0] sm:$0xff]  }
 0x13c   : > { %5604 = vmatpush3.bf16.msra.mxu1 %v6183_v49  ;;  %5565 = vmatprep.subr.bf16.mxu0 %v6184_v45  ;;  %v2125_v49 = vpack.c.bf16 %v7505_v10, %v7434_v26 }
 0x13d   : > { %5605 = vmatprep.subr.bf16.mxu1 %v6184_v45  ;;  %2258 = vmatprep.mubr.bf16.mxu0 %v2123_v46  ;;  %v2319_v45 = vpack.c.bf16 %v7517_v42, %v7439_v63  ;;  %v6189_v46 = vld [vmem:[%s6987_s27 + $0x1b0] sm:$0xff]  }
 0x13e   : > { %2356 = vmatprep.mubr.bf16.mxu1 %v2317_v25  ;;  %v2124_v25 = vpack.c.bf16 %v7522_v59, %v7450_v2 }
 0x13f   : > { %5566 = vmatpush3.bf16.msra.mxu0 %v6185_v5 }
 0x140   : > { %5606 = vmatpush3.bf16.msra.mxu1 %v6185_v5  ;;  %5631 = vmatprep.subr.bf16.mxu0 %v6186_v41  ;;  %v2318_v5 = vpack.c.bf16 %v7536_v37, %v7467_v52 }
 0x141   : > { %5671 = vmatprep.subr.bf16.mxu1 %v6186_v41  ;;  %v6192_v41 = vld [vmem:[%s6987_s27 + $0x1e0] sm:$0xff]  }
 0x142   : > { %2259 = vmatmul.mubr.bf16.vlgmr.msra.gmra.mxu0 %v2122_v56  ;;  %v2127_v56 = vpack.c.bf16 %v7579_v9, %v7510_v0 }
 0x143   : > { %2357 = vmatmul.mubr.bf16.vlgmr.msra.gmra.mxu1 %v2316_v40  ;;  %5632 = vmatpush3.bf16.msra.mxu0 %v6187_v62  ;;  %v2321_v40 = vpack.c.bf16 %v7584_v60, %v7527_v53 }
 0x144   : > { %5672 = vmatpush3.bf16.msra.mxu1 %v6187_v62  ;;  %5633 = vmatprep.subr.bf16.mxu0 %v6188_v6  ;;  %v6193_v62 = vld [vmem:[%s6987_s27 + $0x1a0] sm:$0xff]  }
 0x145   : > { %5673 = vmatprep.subr.bf16.mxu1 %v6188_v6  ;;  %2266 = vmatprep.mubr.bf16.mxu0 %v2125_v49  ;;  %v6194_v6 = vld [vmem:[%s6987_s27 + $0x1d8] sm:$0xff]  }
 0x146   : > { %2364 = vmatprep.mubr.bf16.mxu1 %v2319_v45  ;;  %v6195_v49 = vld [vmem:[%s6987_s27 + $0x198] sm:$0xff]   ;;  %v2126_v45 = vpack.c.bf16 %v7595_v34, %v7541_v30 }
 0x147   : > { %5634 = vmatpush3.bf16.msra.mxu0 %v6189_v46 }
 0x148   : > { %5674 = vmatpush3.bf16.msra.mxu1 %v6189_v46  ;;  %5635 = vmatprep.subr.bf16.mxu0 %v6190_v12  ;;  %v7674_v46 = vld [vmem:[%s8733_s0 + $0x2f8] sm:$0xff] }
 0x149   : > { %5675 = vmatprep.subr.bf16.mxu1 %v6190_v12  ;;  %v2320_v12 = vpack.c.bf16 %v7617_v57, %v7546_v29  ;;  %v6200_v57 = vld [vmem:[%s6987_s27 + $0x1c0] sm:$0xff]  }
 0x14a   : > { %2267 = vmatmul.mubr.bf16.gmra.mxu0 %v2124_v25  ;;  %v7681_v25 = vld [vmem:[%s8733_s0 + $0x398] sm:$0xff] }
 0x14b   : > { %2365 = vmatmul.mubr.bf16.gmra.mxu1 %v2318_v5  ;;  %5636 = vmatpush3.bf16.msra.mxu0 %v6191_v39  ;;  %v6196_v5 = vld [vmem:[%s6987_s27 + $0x1d0] sm:$0xff]  }
 0x14c   : > { %5676 = vmatpush3.bf16.msra.mxu1 %v6191_v39  ;;  %5637 = vmatprep.subr.bf16.mxu0 %v6192_v41  ;;  %v6197_v39 = vld [vmem:[%s6987_s27 + $0x190] sm:$0xff]  }
 0x14d   : > { %5677 = vmatprep.subr.bf16.mxu1 %v6192_v41  ;;  %2274 = vmatprep.mubr.bf16.mxu0 %v2127_v56  ;;  %v2129_v41 = vpack.c.bf16 %v7674_v46, %v7589_v33  ;;  %v2323_v56 = vpack.c.bf16 %v7681_v25, %v7600_v11 }
 0x14e   : > { %2372 = vmatprep.mubr.bf16.mxu1 %v2321_v40  ;;  %v7692_v40 = vld [vmem:[%s8733_s0 + $0x2f0] sm:$0xff] }
 0x14f   : > { %5638 = vmatpush3.bf16.msra.mxu0 %v6193_v62 }
 0x150   : > { %5678 = vmatpush3.bf16.msra.mxu1 %v6193_v62  ;;  %5639 = vmatprep.subr.bf16.mxu0 %v6194_v6  ;;  %v7697_v62 = vld [vmem:[%s8733_s0 + $0x390] sm:$0xff] }
 0x151   : > { %5679 = vmatprep.subr.bf16.mxu1 %v6194_v6  ;;  %v6198_v6 = vld [vmem:[%s6987_s27 + $0x1c8] sm:$0xff]  }
 0x152   : > { %2275 = vmatmul.mubr.bf16.gmra.mxu0 %v2126_v45  ;;  %v2128_v45 = vpack.c.bf16 %v7692_v40, %v7605_v14 }
 0x153   : > { %2373 = vmatmul.mubr.bf16.gmra.mxu1 %v2320_v12  ;;  %5640 = vmatpush3.bf16.msra.mxu0 %v6195_v49  ;;  %v2322_v12 = vpack.c.bf16 %v7697_v62, %v7622_v47 }
 0x154   : > { %5680 = vmatpush3.bf16.msra.mxu1 %v6195_v49  ;;  %5641 = vmatprep.subr.bf16.mxu0 %v6196_v5  ;;  %v2640_v49 = vpack.c.bf16 %v7379_v50, %v7327_v61  ;;  %v6203_v61 = vld [vmem:[%s6987_s27 + $0x238] sm:$0xff]   ;;  %v8774_v50 = vpack.c.bf16 %v7157_v20, %v7142_v16  ;;  %v2641_v16 = vpack.c.bf16 %v7476_v44, %v7403_v13 }
 0x155   : > { %5681 = vmatprep.subr.bf16.mxu1 %v6196_v5  ;;  %2282 = vmatprep.mubr.bf16.mxu0 %v2129_v41  ;;  %v6201_v5 = vld [vmem:[%s6987_s27 + $0x180] sm:$0xff]   ;;  %v6202_v41 = vld [vmem:[%s6987_s27 + $0x278] sm:$0xff]   ;;  %v8775_v44 = vpack.c.bf16 %v7172_v24, %v7167_v23  ;;  %v7769_v23 = vld [vmem:[%s8733_s0 + $0x88] sm:$0xff]  ;;  %v2643_v24 = vpack.c.bf16 %v7568_v18, %v7481_v43 }
 0x156   : > { %2380 = vmatprep.mubr.bf16.mxu1 %v2323_v56  ;;  %v2639_v56 = vpack.c.bf16 %v7398_v3, %v7356_v35  ;;  %v6206_v35 = vld [vmem:[%s6987_s27 + $0x268] sm:$0xff]   ;;  %v7744_v20 = vld [vmem:[%s8733_s0 + $0x198] sm:$0xff]  ;;  %v6213_v43 = vld [vmem:[%s6987_s27 + $0x210] sm:$0xff]  }
 0x157   : > { %5642 = vmatpush3.bf16.msra.mxu0 %v6197_v39  ;;  %v6207_v3 = vld [vmem:[%s6987_s27 + $0x228] sm:$0xff]  }
 0x158   : > { %5682 = vmatpush3.bf16.msra.mxu1 %v6197_v39  ;;  %5643 = vmatprep.subr.bf16.mxu0 %v6198_v6  ;;  %v8772_v39 = vpack.c.bf16 %v6985_v38, %v6979_v36  ;;  %v2642_v36 = vpack.c.bf16 %v7410_v54, %v7386_v8  ;;  %v6205_v38 = vld [vmem:[%s6987_s27 + $0x230] sm:$0xff]   ;;  %v7737_v8 = vld [vmem:[%s8733_s0 + $0x180] sm:$0xff] }
 0x159   : > { %5683 = vmatprep.subr.bf16.mxu1 %v6198_v6  ;;  %v7749_v54 = vld [vmem:[%s8733_s0 + $0x190] sm:$0xff] }
 0x15a   : > { %2283 = vmatmul.mubr.bf16.gmra.mxu0 %v2128_v45  ;;  %v3740_v13 = vpack.c.bf16 %v7749_v54, %v7737_v8  ;;  %v2644_v45 = vpack.c.bf16 %v7495_v15, %v7415_v55  ;;  %v7776_v15 = vld [vmem:[%s8733_s0 + $0x128] sm:$0xff]  ;;  %v8777_v55 = vpack.c.bf16 %v7205_v32, %v7200_v31  ;;  %v7795_v31 = vld [vmem:[%s8733_s0 + $0x120] sm:$0xff] }
 0x15b   : > { %2381 = vmatmul.mubr.bf16.gmra.mxu1 %v2322_v12  ;;  %5644 = vmatpush3.bf16.msra.mxu0 %v6199_v48  ;;  %v6209_v12 = vld [vmem:[%s6987_s27 + $0x220] sm:$0xff]   ;;  %v2646_v18 = vpack.c.bf16 %v7776_v15, %v7500_v21  ;;  %v6214_v32 = vld [vmem:[%s6987_s27 + $0x248] sm:$0xff]   ;;  %v5028_v21 = vld [vmem:[%s8733_s0 + $0x158] sm:$0xff] }
 0x15c   : > { %5684 = vmatpush3.bf16.msra.mxu1 %v6199_v48  ;;  %5645 = vmatprep.subr.bf16.mxu0 %v6200_v57  ;;  %v6204_v48 = vld [vmem:[%s6987_s27 + $0x270] sm:$0xff]  }
 0x15d   : > { %5685 = vmatprep.subr.bf16.mxu1 %v6200_v57  ;;  %2582 = vmatprep.mubr.bf16.mxu0 %v8772_v39  ;;  %v8773_v57 = vpack.c.bf16 %v7147_v17, %v7113_v7  ;;  %v7731_v7 = vld [vmem:[%s8733_s0 + $0x188] sm:$0xff]  ;;  %v6208_v17 = vld [vmem:[%s6987_s27 + $0x260] sm:$0xff]  }
 0x15e   : > { %2679 = vmatprep.mubr.bf16.mxu1 %v2640_v49  ;;  %v3741_v6 = vpack.c.bf16 %v7744_v20, %v7731_v7  ;;  %v6210_v49 = vld [vmem:[%s6987_s27 + $0x258] sm:$0xff]   ;;  %v7790_v39 = vld [vmem:[%s8733_s0 + $0x80] sm:$0xff] }
 0x15f   : > { %5646 = vmatpush3.bf16.msra.mxu0 %v6201_v5 }
 0x160   : > { %5686 = vmatpush3.bf16.msra.mxu1 %v6201_v5  ;;  %5711 = vmatprep.subr.bf16.mxu0 %v6202_v41  ;;  %v8776_v5 = vpack.c.bf16 %v7188_v28, %v7183_v27  ;;  %v6212_v27 = vld [vmem:[%s6987_s27 + $0x250] sm:$0xff]   ;;  %v2453_v28 = vpack.c.bf16 %v7769_v23, %v7269_v4  ;;  %v2452_v4 = vpack.c.bf16 %v7790_v39, %v7298_v58  ;;  %v6217_v58 = vld [vmem:[%s6987_s27 + $0x200] sm:$0xff]  }
 0x161   : > { %5751 = vmatprep.subr.bf16.mxu1 %v6202_v41  ;;  %v6211_v41 = vld [vmem:[%s6987_s27 + $0x218] sm:$0xff]  }
 0x162   : > { %2583 = vmatmul.mubr.bf16.vlgmr.msra.gmra.mxu0 %v8773_v57  ;;  %v6216_v57 = vld [vmem:[%s6987_s27 + $0x240] sm:$0xff]  }
 0x163   : > { %2680 = vmatmul.mubr.bf16.vlgmr.msra.gmra.mxu1 %v2639_v56  ;;  %5712 = vmatpush3.bf16.msra.mxu0 %v6203_v61  ;;  %v8778_v56 = vld [vmem:[#allocation18_spill] sm:$0xff] }
 0x164   : > { %5752 = vmatpush3.bf16.msra.mxu1 %v6203_v61  ;;  %5713 = vmatprep.subr.bf16.mxu0 %v6204_v48  ;;  %v2645_v61 = vpack.c.bf16 %v7795_v31, %v8778_v56 }
 0x165   : > { %5753 = vmatprep.subr.bf16.mxu1 %v6204_v48  ;;  %2590 = vmatprep.mubr.bf16.mxu0 %v8774_v50  ;;  %v6215_v48 = vld [vmem:[%s6987_s27 + $0x208] sm:$0xff]   ;;  %v6218_v50 = vld [vmem:[%s6987_s27 + $0x2f8] sm:$0xff]  }
 0x166   : > { %2687 = vmatprep.mubr.bf16.mxu1 %v2642_v36  ;;  %v6284_v36 = vld [vmem:[%s8733_s0 + $0x168] sm:$0xff] }
 0x167   : > { %5714 = vmatpush3.bf16.msra.mxu0 %v6205_v38 }
 0x168   : > { %5754 = vmatpush3.bf16.msra.mxu1 %v6205_v38  ;;  %5715 = vmatprep.subr.bf16.mxu0 %v6206_v35  ;;  %v2770_v38 = vpack.c.bf16 %v6284_v36, %v5028_v21 }
 0x169   : > { %5755 = vmatprep.subr.bf16.mxu1 %v6206_v35  ;;  %v5027_v35 = vld [vmem:[%s8733_s0 + $0x150] sm:$0xff] }
 0x16a   : > { %2591 = vmatmul.mubr.bf16.gmra.mxu0 %v8775_v44  ;;  %v6285_v44 = vld [vmem:[%s8733_s0 + $0x160] sm:$0xff] }
 0x16b   : > { %2688 = vmatmul.mubr.bf16.gmra.mxu1 %v2641_v16  ;;  %5716 = vmatpush3.bf16.msra.mxu0 %v6207_v3 }
 0x16c   : > { %5756 = vmatpush3.bf16.msra.mxu1 %v6207_v3  ;;  %5717 = vmatprep.subr.bf16.mxu0 %v6208_v17  ;;  %v8779_v3 = vld [vmem:[#allocation5_spill] sm:$0xff] }
 0x16d   : > { %5757 = vmatprep.subr.bf16.mxu1 %v6208_v17  ;;  %2598 = vmatprep.mubr.bf16.mxu0 %v8776_v5  ;;  %v8780_v17 = vld [vmem:[#allocation4_spill] sm:$0xff]  ;;  %v6220_v5 = vld [vmem:[%s6987_s27 + $0x2f0] sm:$0xff]  }
 0x16e   : > { %2695 = vmatprep.mubr.bf16.mxu1 %v2644_v45  ;;  %v8781_v16 = vpack.c.bf16 %v8779_v3, %v8780_v17  ;;  %v2769_v45 = vpack.c.bf16 %v6285_v44, %v5027_v35  ;;  %v8789_v35 = vld [vmem:[#allocation10_spill] sm:$0xff]  ;;  %v5037_v3 = vld [vmem:[%s8733_s0 + $0x1a0] sm:$0xff]  ;;  %v6226_v17 = vld [vmem:[%s6987_s27 + $0x2d8] sm:$0xff]  }
 0x16f   : > { %5718 = vmatpush3.bf16.msra.mxu0 %v6209_v12  ;;  %v7863_v44 = vld [vmem:[%s8733_s0 + $0x1b8] sm:$0xff] }
 0x170   : > { %5758 = vmatpush3.bf16.msra.mxu1 %v6209_v12  ;;  %5719 = vmatprep.subr.bf16.mxu0 %v6210_v49  ;;  %v7824_v12 = vld [vmem:[%s8733_s0 + $0x178] sm:$0xff] }
 0x171   : > { %5759 = vmatprep.subr.bf16.mxu1 %v6210_v49  ;;  %v6219_v49 = vld [vmem:[%s6987_s27 + $0x2b8] sm:$0xff]  }
 0x172   : > { %2599 = vmatmul.mubr.bf16.gmra.mxu0 %v8777_v55 }
 0x173   : > { %2696 = vmatmul.mubr.bf16.gmra.mxu1 %v2643_v24  ;;  %5720 = vmatpush3.bf16.msra.mxu0 %v6211_v41  ;;  %v6221_v24 = vld [vmem:[%s6987_s27 + $0x2b0] sm:$0xff]  }
 0x174   : > { %5760 = vmatpush3.bf16.msra.mxu1 %v6211_v41  ;;  %5721 = vmatprep.subr.bf16.mxu0 %v6212_v27  ;;  %v2772_v41 = vpack.c.bf16 %v7731_v7, %v7824_v12  ;;  %v5294_v7 = vld [vmem:[%s8733_s0 + $0x258] sm:$0xff] }
 0x175   : > { %5761 = vmatprep.subr.bf16.mxu1 %v6212_v27  ;;  %2606 = vmatprep.mubr.bf16.mxu0 %v2453_v28  ;;  %v8782_v27 = vld [vmem:[#allocation7_spill] sm:$0xff]  ;;  %v8783_v28 = vld [vmem:[#allocation6_spill] sm:$0xff] }
 0x176   : > { %2703 = vmatprep.mubr.bf16.mxu1 %v2646_v18  ;;  %v8784_v55 = vpack.c.bf16 %v8782_v27, %v8783_v28  ;;  %v7837_v18 = vld [vmem:[%s8733_s0 + $0x170] sm:$0xff]  ;;  %v5074_v27 = vld [vmem:[%s8733_s0 + $0x268] sm:$0xff] }
 0x177   : > { %5722 = vmatpush3.bf16.msra.mxu0 %v6213_v43  ;;  %v2771_v56 = vpack.c.bf16 %v7737_v8, %v7837_v18  ;;  %v6228_v28 = vld [vmem:[%s6987_s27 + $0x2d0] sm:$0xff]  }
 0x178   : > { %5762 = vmatpush3.bf16.msra.mxu1 %v6213_v43  ;;  %5723 = vmatprep.subr.bf16.mxu0 %v6214_v32  ;;  %v6222_v43 = vld [vmem:[%s6987_s27 + $0x2e8] sm:$0xff]   ;;  %v5293_v8 = vld [vmem:[%s8733_s0 + $0x250] sm:$0xff] }
 0x179   : > { %5763 = vmatprep.subr.bf16.mxu1 %v6214_v32  ;;  %v8785_v32 = vld [vmem:[#allocation9_spill] sm:$0xff] }
 0x17a   : > { %2607 = vmatmul.mubr.bf16.gmra.mxu0 %v2452_v4  ;;  %v8786_v4 = vld [vmem:[#allocation8_spill] sm:$0xff] }
 0x17b   : > { %2704 = vmatmul.mubr.bf16.gmra.mxu1 %v2645_v61  ;;  %5724 = vmatpush3.bf16.msra.mxu0 %v6215_v48  ;;  %v8787_v21 = vpack.c.bf16 %v8785_v32, %v8786_v4  ;;  %v5038_v61 = vld [vmem:[%s8733_s0 + $0x1a8] sm:$0xff]  ;;  %v8794_v32 = vld [vmem:[#allocation16_spill] sm:$0xff] }
 0x17c   : > { %5764 = vmatpush3.bf16.msra.mxu1 %v6215_v48  ;;  %5725 = vmatprep.subr.bf16.mxu0 %v6216_v57  ;;  %v6223_v48 = vld [vmem:[%s6987_s27 + $0x2a8] sm:$0xff]   ;;  %v2774_v36 = vpack.c.bf16 %v5038_v61, %v7744_v20  ;;  %v2969_v4 = vpack.c.bf16 %v5074_v27, %v8794_v32  ;;  %v8796_v61 = vld [vmem:[#allocation14_spill] sm:$0xff]  ;;  %v8801_v27 = vpack.c.bf16 %v7450_v2, %v7445_v1  ;;  %v5121_v32 = vld [vmem:[%s8733_s0 + $0x300] sm:$0xff] }
 0x17d   : > { %5765 = vmatprep.subr.bf16.mxu1 %v6216_v57  ;;  %2905 = vmatprep.mubr.bf16.mxu0 %v2770_v38  ;;  %v6224_v57 = vld [vmem:[%s6987_s27 + $0x2e0] sm:$0xff]   ;;  %v8804_v1 = vpack.c.bf16 %v7527_v53, %v7517_v42  ;;  %v6239_v2 = vld [vmem:[%s6987_s27 + $0x328] sm:$0xff]   ;;  %v6242_v53 = vld [vmem:[%s6987_s27 + $0x358] sm:$0xff]   ;;  %v8807_v42 = vpack.c.bf16 %v7589_v33, %v7579_v9 }
 0x17e   : > { %3002 = vmatprep.mubr.bf16.mxu1 %v8781_v16  ;;  %v6225_v38 = vld [vmem:[%s6987_s27 + $0x2a0] sm:$0xff]   ;;  %v6227_v16 = vld [vmem:[%s6987_s27 + $0x298] sm:$0xff]   ;;  %v6244_v33 = vld [vmem:[%s6987_s27 + $0x350] sm:$0xff]  }
 0x17f   : > { %5726 = vmatpush3.bf16.msra.mxu0 %v6217_v58  ;;  %v8810_v9 = vld [vmem:[#allocation19_spill] sm:$0xff] }
 0x180   : > { %5766 = vmatpush3.bf16.msra.mxu1 %v6217_v58  ;;  %5791 = vmatprep.subr.bf16.mxu0 %v6218_v50  ;;  %v8788_v58 = vld [vmem:[#allocation11_spill] sm:$0xff] }
 0x181   : > { %5831 = vmatprep.subr.bf16.mxu1 %v6218_v50  ;;  %v8790_v50 = vpack.c.bf16 %v8788_v58, %v8789_v35  ;;  %v8798_v35 = vld [vmem:[#allocation17_spill] sm:$0xff] }
 0x182   : > { %2906 = vmatmul.mubr.bf16.vlgmr.msra.gmra.mxu0 %v2769_v45  ;;  %v8791_v45 = vld [vmem:[#allocation13_spill] sm:$0xff] }
 0x183   : > { %3003 = vmatmul.mubr.bf16.vlgmr.msra.gmra.mxu1 %v8784_v55  ;;  %5792 = vmatpush3.bf16.msra.mxu0 %v6219_v49 }
 0x184   : > { %5832 = vmatpush3.bf16.msra.mxu1 %v6219_v49  ;;  %5793 = vmatprep.subr.bf16.mxu0 %v6220_v5  ;;  %v8792_v49 = vld [vmem:[#allocation12_spill] sm:$0xff] }
 0x185   : > { %5833 = vmatprep.subr.bf16.mxu1 %v6220_v5  ;;  %2913 = vmatprep.mubr.bf16.mxu0 %v2772_v41  ;;  %v8793_v5 = vpack.c.bf16 %v8791_v45, %v8792_v49  ;;  %v2773_v41 = vpack.c.bf16 %v5037_v3, %v7749_v54  ;;  %v6231_v3 = vld [vmem:[%s6987_s27 + $0x288] sm:$0xff]   ;;  %v6234_v45 = vld [vmem:[%s6987_s27 + $0x378] sm:$0xff]   ;;  %v8799_v49 = vpack.c.bf16 %v7434_v26, %v7422_v19  ;;  %v6237_v26 = vld [vmem:[%s6987_s27 + $0x330] sm:$0xff]  }
 0x186   : > { %3010 = vmatprep.mubr.bf16.mxu1 %v8787_v21  ;;  %v7882_v21 = vld [vmem:[%s8733_s0 + $0x1b0] sm:$0xff]  ;;  %v8802_v19 = vpack.c.bf16 %v7467_v52, %v7462_v51  ;;  %v6240_v51 = vld [vmem:[%s6987_s27 + $0x360] sm:$0xff]   ;;  %v8805_v52 = vpack.c.bf16 %v7541_v30, %v7522_v59  ;;  %v8808_v30 = vpack.c.bf16 %v7600_v11, %v7584_v60  ;;  %v5154_v59 = vld [vmem:[%s8733_s0 + $0x3a8] sm:$0xff]  ;;  %v8809_v11 = vpack.c.bf16 %v7605_v14, %v7595_v34 }
 0x187   : > { %5794 = vmatpush3.bf16.msra.mxu0 %v6221_v24  ;;  %v3292_v60 = vpack.c.bf16 %v5154_v59, %v7681_v25  ;;  %v5153_v14 = vld [vmem:[%s8733_s0 + $0x3a0] sm:$0xff]  ;;  %v6246_v34 = vld [vmem:[%s6987_s27 + $0x348] sm:$0xff]   ;;  %v3402_v25 = vld [vmem:[%s8733_s0 + $0x38] sm:$0xff] }
 0x188   : > { %5834 = vmatpush3.bf16.msra.mxu1 %v6221_v24  ;;  %5795 = vmatprep.subr.bf16.mxu0 %v6222_v43  ;;  %v5042_v24 = vld [vmem:[%s8733_s0 + $0x1c8] sm:$0xff]  ;;  %v6274_v54 = vld [vmem:[%s6987_s27 + $0x458] sm:$0xff]  }
 0x189   : > { %5835 = vmatprep.subr.bf16.mxu1 %v6222_v43  ;;  %v2776_v55 = vpack.c.bf16 %v5042_v24, %v7863_v44  ;;  %v6229_v43 = vld [vmem:[%s6987_s27 + $0x290] sm:$0xff]  }
 0x18a   : > { %2914 = vmatmul.mubr.bf16.gmra.mxu0 %v2771_v56  ;;  %v8795_v56 = vld [vmem:[#allocation15_spill] sm:$0xff]  ;;  %v6236_v24 = vld [vmem:[%s6987_s27 + $0x370] sm:$0xff]  }
 0x18b   : > { %3011 = vmatmul.mubr.bf16.gmra.mxu1 %v8790_v50  ;;  %5796 = vmatpush3.bf16.msra.mxu0 %v6223_v48 }
 0x18c   : > { %5836 = vmatpush3.bf16.msra.mxu1 %v6223_v48  ;;  %5797 = vmatprep.subr.bf16.mxu0 %v6224_v57  ;;  %v8797_v48 = vpack.c.bf16 %v8795_v56, %v8796_v61  ;;  %v6247_v56 = vld [vmem:[%s6987_s27 + $0x308] sm:$0xff]  }
 0x18d   : > { %5837 = vmatprep.subr.bf16.mxu1 %v6224_v57  ;;  %2921 = vmatprep.mubr.bf16.mxu0 %v2774_v36  ;;  %v5041_v57 = vld [vmem:[%s8733_s0 + $0x1c0] sm:$0xff]  ;;  %v5204_v61 = vld [vmem:[%s8733_s0 + $0xc8] sm:$0xff] }
 0x18e   : > { %3018 = vmatprep.mubr.bf16.mxu1 %v8793_v5  ;;  %v5073_v36 = vld [vmem:[%s8733_s0 + $0x260] sm:$0xff]  ;;  %v2775_v58 = vpack.c.bf16 %v5041_v57, %v7882_v21  ;;  %v8800_v5 = vpack.c.bf16 %v7439_v63, %v7429_v22  ;;  %v6238_v22 = vld [vmem:[%s6987_s27 + $0x368] sm:$0xff]   ;;  %v8803_v63 = vpack.c.bf16 %v7510_v0, %v7505_v10 }
 0x18f   : > { %5798 = vmatpush3.bf16.msra.mxu0 %v6225_v38  ;;  %v2968_v50 = vpack.c.bf16 %v5073_v36, %v8798_v35  ;;  %v6241_v10 = vld [vmem:[%s6987_s27 + $0x320] sm:$0xff]  }
 0x190   : > { %5838 = vmatpush3.bf16.msra.mxu1 %v6225_v38  ;;  %5799 = vmatprep.subr.bf16.mxu0 %v6226_v17  ;;  %v6230_v38 = vld [vmem:[%s6987_s27 + $0x2c8] sm:$0xff]   ;;  %v5203_v35 = vld [vmem:[%s8733_s0 + $0xc0] sm:$0xff] }
 0x191   : > { %5839 = vmatprep.subr.bf16.mxu1 %v6226_v17  ;;  %v6232_v17 = vld [vmem:[%s6987_s27 + $0x2c0] sm:$0xff]  }
 0x192   : > { %2922 = vmatmul.mubr.bf16.gmra.mxu0 %v2773_v41  ;;  %v6235_v41 = vld [vmem:[%s6987_s27 + $0x338] sm:$0xff]  }
 0x193   : > { %3019 = vmatmul.mubr.bf16.gmra.mxu1 %v8797_v48  ;;  %5800 = vmatpush3.bf16.msra.mxu0 %v6227_v16  ;;  %v6248_v48 = vld [vmem:[%s6987_s27 + $0x340] sm:$0xff]  }
 0x194   : > { %5840 = vmatpush3.bf16.msra.mxu1 %v6227_v16  ;;  %5801 = vmatprep.subr.bf16.mxu0 %v6228_v28  ;;  %v6233_v16 = vld [vmem:[%s6987_s27 + $0x280] sm:$0xff]  }
 0x195   : > { %5841 = vmatprep.subr.bf16.mxu1 %v6228_v28  ;;  %2929 = vmatprep.mubr.bf16.mxu0 %v2776_v55  ;;  %v8806_v28 = vpack.c.bf16 %v7546_v29, %v7536_v37  ;;  %v5122_v29 = vld [vmem:[%s8733_s0 + $0x308] sm:$0xff]  ;;  %v6243_v37 = vld [vmem:[%s6987_s27 + $0x318] sm:$0xff]   ;;  %v8811_v55 = vpack.c.bf16 %v7622_v47, %v8810_v9  ;;  %v3098_v47 = vpack.c.bf16 %v5121_v32, %v7692_v40 }
 0x196   : > { %3026 = vmatprep.mubr.bf16.mxu1 %v2969_v4  ;;  %v3099_v0 = vpack.c.bf16 %v5122_v29, %v7674_v46  ;;  %v3400_v46 = vld [vmem:[%s8733_s0 + $0x28] sm:$0xff]  ;;  %v3291_v4 = vpack.c.bf16 %v5153_v14, %v7697_v62  ;;  %v5206_v40 = vld [vmem:[%s8733_s0 + $0xd8] sm:$0xff]  ;;  %v6249_v62 = vld [vmem:[%s6987_s27 + $0x300] sm:$0xff]  }
 0x197   : > { %5802 = vmatpush3.bf16.msra.mxu0 %v6229_v43  ;;  %v3416_v57 = vpack.c.bf16 %v3402_v25, %v3400_v46  ;;  %v3609_v36 = vpack.c.bf16 %v5206_v40, %v5204_v61  ;;  %v6255_v9 = vld [vmem:[%s6987_s27 + $0x3a8] sm:$0xff]  }
 0x198   : > { %5842 = vmatpush3.bf16.msra.mxu1 %v6229_v43  ;;  %5803 = vmatprep.subr.bf16.mxu0 %v6230_v38  ;;  %v6245_v43 = vld [vmem:[%s6987_s27 + $0x310] sm:$0xff]  }
 0x199   : > { %5843 = vmatprep.subr.bf16.mxu1 %v6230_v38  ;;  %v3399_v38 = vld [vmem:[%s8733_s0 + $0x20] sm:$0xff] }
 0x19a   : > { %2930 = vmatmul.mubr.bf16.gmra.mxu0 %v2775_v58  ;;  %v3401_v58 = vld [vmem:[%s8733_s0 + $0x30] sm:$0xff] }
 0x19b   : > { %3027 = vmatmul.mubr.bf16.gmra.mxu1 %v2968_v50  ;;  %5804 = vmatpush3.bf16.msra.mxu0 %v6231_v3  ;;  %v5205_v50 = vld [vmem:[%s8733_s0 + $0xd0] sm:$0xff] }
 0x19c   : > { %5844 = vmatpush3.bf16.msra.mxu1 %v6231_v3  ;;  %5805 = vmatprep.subr.bf16.mxu0 %v6232_v17  ;;  %v6250_v3 = vld [vmem:[%s6987_s27 + $0x3f8] sm:$0xff]  }
 0x19d   : > { %5845 = vmatprep.subr.bf16.mxu1 %v6232_v17  ;;  %3228 = vmatprep.mubr.bf16.mxu0 %v8799_v49  ;;  %v3415_v17 = vpack.c.bf16 %v3401_v58, %v3399_v38  ;;  %v3608_v49 = vpack.c.bf16 %v5205_v50, %v5203_v35  ;;  %v5211_v58 = vld [vmem:[%s8733_s0 + $0x100] sm:$0xff]  ;;  %v5213_v35 = vld [vmem:[%s8733_s0 + $0x110] sm:$0xff]  ;;  %v6258_v50 = vld [vmem:[%s6987_s27 + $0x3d8] sm:$0xff]  }
 0x19e   : > { %3325 = vmatprep.mubr.bf16.mxu1 %v8800_v5  ;;  %v6251_v5 = vld [vmem:[%s6987_s27 + $0x3b8] sm:$0xff]  }
 0x19f   : > { %5806 = vmatpush3.bf16.msra.mxu0 %v6233_v16 }
 0x1a0   : > { %5846 = vmatpush3.bf16.msra.mxu1 %v6233_v16  ;;  %5871 = vmatprep.subr.bf16.mxu0 %v6234_v45  ;;  %v3404_v16 = vld [vmem:[%s8733_s0 + $0x48] sm:$0xff] }
 0x1a1   : > { %5911 = vmatprep.subr.bf16.mxu1 %v6234_v45  ;;  %v3406_v45 = vld [vmem:[%s8733_s0 + $0x58] sm:$0xff] }
 0x1a2   : > { %3229 = vmatmul.mubr.bf16.vlgmr.msra.gmra.mxu0 %v8801_v27  ;;  %v6252_v27 = vld [vmem:[%s6987_s27 + $0x3f0] sm:$0xff]  }
 0x1a3   : > { %3326 = vmatmul.mubr.bf16.vlgmr.msra.gmra.mxu1 %v8802_v19  ;;  %5872 = vmatpush3.bf16.msra.mxu0 %v6235_v41  ;;  %v3418_v19 = vpack.c.bf16 %v3406_v45, %v3404_v16 }
 0x1a4   : > { %5912 = vmatpush3.bf16.msra.mxu1 %v6235_v41  ;;  %5873 = vmatprep.subr.bf16.mxu0 %v6236_v24  ;;  %v5208_v41 = vld [vmem:[%s8733_s0 + $0xe8] sm:$0xff] }
 0x1a5   : > { %5913 = vmatprep.subr.bf16.mxu1 %v6236_v24  ;;  %3236 = vmatprep.mubr.bf16.mxu0 %v8803_v63  ;;  %v5210_v24 = vld [vmem:[%s8733_s0 + $0xf8] sm:$0xff] }
 0x1a6   : > { %3333 = vmatprep.mubr.bf16.mxu1 %v8804_v1  ;;  %v6253_v1 = vld [vmem:[%s6987_s27 + $0x3b0] sm:$0xff]  }
 0x1a7   : > { %5874 = vmatpush3.bf16.msra.mxu0 %v6237_v26 }
 0x1a8   : > { %5914 = vmatpush3.bf16.msra.mxu1 %v6237_v26  ;;  %5875 = vmatprep.subr.bf16.mxu0 %v6238_v22 }
 0x1a9   : > { %5915 = vmatprep.subr.bf16.mxu1 %v6238_v22  ;;  %v3611_v22 = vpack.c.bf16 %v5210_v24, %v5208_v41  ;;  %v3612_v24 = vpack.c.bf16 %v5213_v35, %v5211_v58 }
 0x1aa   : > { %3237 = vmatmul.mubr.bf16.gmra.mxu0 %v8805_v52 }
 0x1ab   : > { %3334 = vmatmul.mubr.bf16.gmra.mxu1 %v8806_v28  ;;  %5876 = vmatpush3.bf16.msra.mxu0 %v6239_v2  ;;  %v5207_v28 = vld [vmem:[%s8733_s0 + $0xe0] sm:$0xff] }
 0x1ac   : > { %5916 = vmatpush3.bf16.msra.mxu1 %v6239_v2  ;;  %5877 = vmatprep.subr.bf16.mxu0 %v6240_v51  ;;  %v3403_v2 = vld [vmem:[%s8733_s0 + $0x40] sm:$0xff] }
 0x1ad   : > { %5917 = vmatprep.subr.bf16.mxu1 %v6240_v51  ;;  %3244 = vmatprep.mubr.bf16.mxu0 %v8807_v42  ;;  %v3405_v51 = vld [vmem:[%s8733_s0 + $0x50] sm:$0xff] }
 0x1ae   : > { %3341 = vmatprep.mubr.bf16.mxu1 %v8808_v30  ;;  %v3417_v59 = vpack.c.bf16 %v3405_v51, %v3403_v2 }
 0x1af   : > { %5878 = vmatpush3.bf16.msra.mxu0 %v6241_v10 }
 0x1b0   : > { %5918 = vmatpush3.bf16.msra.mxu1 %v6241_v10  ;;  %5879 = vmatprep.subr.bf16.mxu0 %v6242_v53  ;;  %v5209_v10 = vld [vmem:[%s8733_s0 + $0xf0] sm:$0xff] }
 0x1b1   : > { %5919 = vmatprep.subr.bf16.mxu1 %v6242_v53  ;;  %v6254_v53 = vld [vmem:[%s6987_s27 + $0x3e8] sm:$0xff]  }
 0x1b2   : > { %3245 = vmatmul.mubr.bf16.gmra.mxu0 %v8809_v11 }
 0x1b3   : > { %3342 = vmatmul.mubr.bf16.gmra.mxu1 %v8811_v55  ;;  %5880 = vmatpush3.bf16.msra.mxu0 %v6243_v37  ;;  %v5212_v55 = vld [vmem:[%s8733_s0 + $0x108] sm:$0xff] }
 0x1b4   : > { %5920 = vmatpush3.bf16.msra.mxu1 %v6243_v37  ;;  %5881 = vmatprep.subr.bf16.mxu0 %v6244_v33 }
 0x1b5   : > { %5921 = vmatprep.subr.bf16.mxu1 %v6244_v33  ;;  %3252 = vmatprep.mubr.bf16.mxu0 %v3099_v0  ;;  %v3408_v33 = vld [vmem:[%s8733_s0 + $0x68] sm:$0xff]  ;;  %v3410_v0 = vld [vmem:[%s8733_s0 + $0x78] sm:$0xff] }
 0x1b6   : > { %3349 = vmatprep.mubr.bf16.mxu1 %v3292_v60  ;;  %v3610_v60 = vpack.c.bf16 %v5209_v10, %v5207_v28  ;;  %v3420_v25 = vpack.c.bf16 %v3410_v0, %v3408_v33 }
 0x1b7   : > { %5882 = vmatpush3.bf16.msra.mxu0 %v6245_v43 }
 0x1b8   : > { %5922 = vmatpush3.bf16.msra.mxu1 %v6245_v43  ;;  %5883 = vmatprep.subr.bf16.mxu0 %v6246_v34  ;;  %v5214_v43 = vld [vmem:[%s8733_s0 + $0x118] sm:$0xff] }
 0x1b9   : > { %5923 = vmatprep.subr.bf16.mxu1 %v6246_v34  ;;  %v6256_v34 = vld [vmem:[%s6987_s27 + $0x3e0] sm:$0xff]   ;;  %v3613_v61 = vpack.c.bf16 %v5214_v43, %v5212_v55 }
 0x1ba   : > { %3253 = vmatmul.mubr.bf16.gmra.mxu0 %v3098_v47 }
 0x1bb   : > { %3350 = vmatmul.mubr.bf16.gmra.mxu1 %v3291_v4  ;;  %5884 = vmatpush3.bf16.msra.mxu0 %v6247_v56 }
 0x1bc   : > { %5924 = vmatpush3.bf16.msra.mxu1 %v6247_v56  ;;  %5885 = vmatprep.subr.bf16.mxu0 %v6248_v48 }
 0x1bd   : > { %5925 = vmatprep.subr.bf16.mxu1 %v6248_v48  ;;  %3551 = vmatprep.mubr.bf16.mxu0 %v3416_v57  ;;  %v6257_v48 = vld [vmem:[%s6987_s27 + $0x3a0] sm:$0xff]  }
 0x1be   : > { %3648 = vmatprep.mubr.bf16.mxu1 %v3609_v36  ;;  %v3407_v57 = vld [vmem:[%s8733_s0 + $0x60] sm:$0xff]  ;;  %v3409_v36 = vld [vmem:[%s8733_s0 + $0x70] sm:$0xff] }
 0x1bf   : > { %5886 = vmatpush3.bf16.msra.mxu0 %v6249_v62 }
 0x1c0   : > { %5926 = vmatpush3.bf16.msra.mxu1 %v6249_v62  ;;  %5951 = vmatprep.subr.bf16.mxu0 %v6250_v3 }
 0x1c1   : > { %5991 = vmatprep.subr.bf16.mxu1 %v6250_v3 }
 0x1c2   : > { %v5407_v26 = vpop.f32.mrf.mxu0  ;;  %3552 = vmatmul.mubr.bf16.vlgmr.msra.gmra.mxu0 %v3415_v17 }
 0x1c3   : > { %v5447_v63 = vpop.f32.mrf.mxu1  ;;  %3649 = vmatmul.mubr.bf16.vlgmr.msra.gmra.mxu1 %v3608_v49  ;;  %5952 = vmatpush3.bf16.msra.mxu0 %v6251_v5  ;;  %v3419_v49 = vpack.c.bf16 %v3409_v36, %v3407_v57  ;;  %v6265_v36 = vld [vmem:[%s6987_s27 + $0x380] sm:$0xff]  }
 0x1c4   : > { %5992 = vmatpush3.bf16.msra.mxu1 %v6251_v5  ;;  %v5408_v52 = vpop.f32.mrf.mxu0  ;;  %5953 = vmatprep.subr.bf16.mxu0 %v6252_v27  ;;  %v3414_v5 = vld [vmem:[%s8733_s0 + $0x98] sm:$0xff] }
 0x1c5   : > { %v5409_v42 = vadd.f32 %v5408_v52, %v5407_v26  ;;  %v5448_v30 = vpop.f32.mrf.mxu1  ;;  %5993 = vmatprep.subr.bf16.mxu1 %v6252_v27  ;;  %3559 = vmatprep.mubr.bf16.mxu0 %v3418_v19  ;;  %v6259_v27 = vld [vmem:[%s6987_s27 + $0x398] sm:$0xff]   ;;  %v3422_v51 = vpack.c.bf16 %v3414_v5, %v7769_v23  ;;  %v5217_v23 = vld [vmem:[%s8733_s0 + $0x130] sm:$0xff] }
 0x1c6   : > { %v5449_v29 = vadd.f32 %v5448_v30, %v5447_v63  ;;  %v5410_v37 = vpop.f32.mrf.mxu0  ;;  %3656 = vmatprep.mubr.bf16.mxu1 %v3611_v22  ;;  %v5218_v19 = vld [vmem:[%s8733_s0 + $0x138] sm:$0xff]  ;;  %v6260_v63 = vld [vmem:[%s6987_s27 + $0x3d0] sm:$0xff]   ;;  %v3614_v43 = vpack.c.bf16 %v5217_v23, %v7795_v31  ;;  %v5287_v23 = vld [vmem:[%s8733_s0 + $0x220] sm:$0xff] }
 0x1c7   : > { %v5450_v11 = vpop.f32.mrf.mxu1  ;;  %5954 = vmatpush3.bf16.msra.mxu0 %v6253_v1  ;;  %v3615_v10 = vpack.c.bf16 %v5218_v19, %v7776_v15  ;;  %v3413_v30 = vld [vmem:[%s8733_s0 + $0x90] sm:$0xff]  ;;  %v5288_v19 = vld [vmem:[%s8733_s0 + $0x228] sm:$0xff] }
 0x1c8   : > { %v8033_v32 = vadd.f32 %v5449_v29, %v5409_v42  ;;  %5994 = vmatpush3.bf16.msra.mxu1 %v6253_v1  ;;  %v5411_v14 = vpop.f32.mrf.mxu0  ;;  %5955 = vmatprep.subr.bf16.mxu0 %v6254_v53  ;;  %v6261_v42 = vld [vmem:[%s6987_s27 + $0x390] sm:$0xff]  }
 0x1c9   : > { %v5412_v47 = vadd.f32 %v5411_v14, %v5410_v37  ;;  %v5451_v46 = vpop.f32.mrf.mxu1  ;;  %5995 = vmatprep.subr.bf16.mxu1 %v6254_v53  ;;  %v6263_v14 = vld [vmem:[%s6987_s27 + $0x388] sm:$0xff]  }
 0x1ca   : > { %v5452_v4 = vadd.f32 %v5451_v46, %v5450_v11  ;;  %v5413_v56 = vpop.f32.mrf.mxu0  ;;  %3560 = vmatmul.mubr.bf16.gmra.mxu0 %v3417_v59  ;;  %v6262_v59 = vld [vmem:[%s6987_s27 + $0x3c8] sm:$0xff]  }
 0x1cb   : > { %v5453_v40 = vpop.f32.mrf.mxu1  ;;  %3657 = vmatmul.mubr.bf16.gmra.mxu1 %v3610_v60  ;;  %5956 = vmatpush3.bf16.msra.mxu0 %v6255_v9  ;;  %v3421_v60 = vpack.c.bf16 %v3413_v30, %v7790_v39 }
 0x1cc   : > { %v8043_v62 = vadd.f32 %v5452_v4, %v5412_v47  ;;  %5996 = vmatpush3.bf16.msra.mxu1 %v6255_v9  ;;  %v5414_v38 = vpop.f32.mrf.mxu0  ;;  %5957 = vmatprep.subr.bf16.mxu0 %v6256_v34  ;;  %v5252_v9 = vld [vmem:[%s8733_s0 + $0x168] sm:$0xff]  ;;  %v5286_v47 = vld [vmem:[%s8733_s0 + $0x218] sm:$0xff] }
 0x1cd   : > { %v5415_v3 = vadd.f32 %v5414_v38, %v5413_v56  ;;  %v5454_v17 = vpop.f32.mrf.mxu1  ;;  %5997 = vmatprep.subr.bf16.mxu1 %v6256_v34  ;;  %3567 = vmatprep.mubr.bf16.mxu0 %v3420_v25  ;;  %v5284_v34 = vld [vmem:[%s8733_s0 + $0x208] sm:$0xff]  ;;  %v6264_v25 = vld [vmem:[%s6987_s27 + $0x3c0] sm:$0xff]   ;;  %v3739_v31 = vpack.c.bf16 %v7824_v12, %v5252_v9 }
 0x1ce   : > { %v5455_v16 = vadd.f32 %v5454_v17, %v5453_v40  ;;  %v5416_v45 = vpop.f32.mrf.mxu0  ;;  %3664 = vmatprep.mubr.bf16.mxu1 %v3613_v61  ;;  %v5251_v38 = vld [vmem:[%s8733_s0 + $0x160] sm:$0xff]  ;;  %v5260_v9 = vld [vmem:[%s8733_s0 + $0x1a8] sm:$0xff] }
 0x1cf   : > { %v5456_v41 = vpop.f32.mrf.mxu1  ;;  %5958 = vmatpush3.bf16.msra.mxu0 %v6257_v48  ;;  %v5283_v12 = vld [vmem:[%s8733_s0 + $0x200] sm:$0xff]  ;;  %v3738_v5 = vpack.c.bf16 %v7837_v18, %v5251_v38 }
 0x1d0   : > { %v8059_v26 = vadd.f32 %v5455_v16, %v5415_v3  ;;  %5998 = vmatpush3.bf16.msra.mxu1 %v6257_v48  ;;  %v5417_v22 = vpop.f32.mrf.mxu0  ;;  %5959 = vmatprep.subr.bf16.mxu0 %v6258_v50  ;;  %v3932_v48 = vpack.c.bf16 %v5286_v47, %v5284_v34  ;;  %v6266_v3 = vld [vmem:[%s6987_s27 + $0x478] sm:$0xff]   ;;  %v5292_v34 = vld [vmem:[%s8733_s0 + $0x248] sm:$0xff]  ;;  %v6272_v47 = vld [vmem:[%s6987_s27 + $0x460] sm:$0xff]  }
 0x1d1   : > { %v5418_v1 = vadd.f32 %v5417_v22, %v5416_v45  ;;  %v5457_v2 = vpop.f32.mrf.mxu1  ;;  %5999 = vmatprep.subr.bf16.mxu1 %v6258_v50  ;;  %v5285_v50 = vld [vmem:[%s8733_s0 + $0x210] sm:$0xff]  ;;  %v5290_v22 = vld [vmem:[%s8733_s0 + $0x238] sm:$0xff]  ;;  %v5291_v38 = vld [vmem:[%s8733_s0 + $0x240] sm:$0xff] }
 0x1d2   : > { %v5458_v52 = vadd.f32 %v5457_v2, %v5456_v41  ;;  %v5419_v28 = vpop.f32.mrf.mxu0  ;;  %3568 = vmatmul.mubr.bf16.gmra.mxu0 %v3419_v49  ;;  %v6268_v2 = vld [vmem:[%s6987_s27 + $0x470] sm:$0xff]  }
 0x1d3   : > { %v5459_v53 = vpop.f32.mrf.mxu1  ;;  %3665 = vmatmul.mubr.bf16.gmra.mxu1 %v3612_v24  ;;  %5960 = vmatpush3.bf16.msra.mxu0 %v6259_v27  ;;  %v3931_v24 = vpack.c.bf16 %v5285_v50, %v5283_v12 }
 0x1d4   : > { %v8068_v29 = vadd.f32 %v5458_v52, %v5418_v1  ;;  %6000 = vmatpush3.bf16.msra.mxu1 %v6259_v27  ;;  %v5420_v37 = vpop.f32.mrf.mxu0  ;;  %5961 = vmatprep.subr.bf16.mxu0 %v6260_v63  ;;  %v6267_v27 = vld [vmem:[%s6987_s27 + $0x438] sm:$0xff]  }
 0x1d5   : > { %v5421_v15 = vadd.f32 %v5420_v37, %v5419_v28  ;;  %v5460_v33 = vpop.f32.mrf.mxu1  ;;  %6001 = vmatprep.subr.bf16.mxu1 %v6260_v63  ;;  %3575 = vmatprep.mubr.bf16.mxu0 %v3422_v51 }
 0x1d6   : > { %v5461_v0 = vadd.f32 %v5460_v33, %v5459_v53  ;;  %v5422_v11 = vpop.f32.mrf.mxu0  ;;  %3672 = vmatprep.mubr.bf16.mxu1 %v3615_v10  ;;  %v3934_v10 = vpack.c.bf16 %v5290_v22, %v5288_v19  ;;  %v6276_v19 = vld [vmem:[%s6987_s27 + $0x450] sm:$0xff]  }
 0x1d7   : > { %v5462_v55 = vpop.f32.mrf.mxu1  ;;  %5962 = vmatpush3.bf16.msra.mxu0 %v6261_v42 }
 0x1d8   : > { %v8086_v46 = vadd.f32 %v5461_v0, %v5421_v15  ;;  %6002 = vmatpush3.bf16.msra.mxu1 %v6261_v42  ;;  %v5423_v39 = vpop.f32.mrf.mxu0  ;;  %5963 = vmatprep.subr.bf16.mxu0 %v6262_v59  ;;  %v6269_v42 = vld [vmem:[%s6987_s27 + $0x430] sm:$0xff]   ;;  %v6270_v15 = vld [vmem:[%s6987_s27 + $0x468] sm:$0xff]  }
 0x1d9   : > { %v5424_v4 = vadd.f32 %v5423_v39, %v5422_v11  ;;  %v5463_v56 = vpop.f32.mrf.mxu1  ;;  %6003 = vmatprep.subr.bf16.mxu1 %v6262_v59  ;;  %v5289_v59 = vld [vmem:[%s8733_s0 + $0x230] sm:$0xff] }
 0x1da   : > { %v5464_v61 = vadd.f32 %v5463_v56, %v5462_v55  ;;  %v5425_v40 = vpop.f32.mrf.mxu0  ;;  %3576 = vmatmul.mubr.bf16.gmra.mxu0 %v3421_v60 }
 0x1db   : > { %v5465_v57 = vpop.f32.mrf.mxu1  ;;  %3673 = vmatmul.mubr.bf16.gmra.mxu1 %v3614_v43  ;;  %5964 = vmatpush3.bf16.msra.mxu0 %v6263_v14  ;;  %v3933_v43 = vpack.c.bf16 %v5289_v59, %v5287_v23  ;;  %v5295_v59 = vld [vmem:[%s8733_s0 + $0x260] sm:$0xff] }
 0x1dc   : > { %v8094_v58 = vadd.f32 %v5464_v61, %v5424_v4  ;;  %6004 = vmatpush3.bf16.msra.mxu1 %v6263_v14  ;;  %v5426_v35 = vpop.f32.mrf.mxu0  ;;  %5965 = vmatprep.subr.bf16.mxu0 %v6264_v25  ;;  %v6271_v14 = vld [vmem:[%s6987_s27 + $0x428] sm:$0xff]   ;;  %v3743_v4 = vpack.c.bf16 %v7863_v44, %v5260_v9  ;;  %v3936_v61 = vpack.c.bf16 %v5294_v7, %v5292_v34 }
 0x1dd   : > { %v5427_v17 = vadd.f32 %v5426_v35, %v5425_v40  ;;  %v5466_v16 = vpop.f32.mrf.mxu1  ;;  %6005 = vmatprep.subr.bf16.mxu1 %v6264_v25  ;;  %3874 = vmatprep.mubr.bf16.mxu0 %v3739_v31 }
 0x1de   : > { %v5467_v45 = vadd.f32 %v5466_v16, %v5465_v57  ;;  %v5428_v49 = vpop.f32.mrf.mxu0  ;;  %3971 = vmatprep.mubr.bf16.mxu1 %v3932_v48  ;;  %v6273_v48 = vld [vmem:[%s6987_s27 + $0x420] sm:$0xff]   ;;  %v5266_v16 = vld [vmem:[%s8733_s0 + $0x1d8] sm:$0xff] }
 0x1df   : > { %v5468_v41 = vpop.f32.mrf.mxu1  ;;  %5966 = vmatpush3.bf16.msra.mxu0 %v6265_v36  ;;  %v5259_v57 = vld [vmem:[%s8733_s0 + $0x1a0] sm:$0xff] }
 0x1e0   : > { %v8111_v63 = vadd.f32 %v5467_v45, %v5427_v17  ;;  %6006 = vmatpush3.bf16.msra.mxu1 %v6265_v36  ;;  %v5429_v1 = vpop.f32.mrf.mxu0  ;;  %6031 = vmatprep.subr.bf16.mxu0 %v6266_v3  ;;  %v5264_v17 = vld [vmem:[%s8733_s0 + $0x1c8] sm:$0xff] }
 0x1e1   : > { %v5430_v18 = vadd.f32 %v5429_v1, %v5428_v49  ;;  %v5469_v51 = vpop.f32.mrf.mxu1  ;;  %6071 = vmatprep.subr.bf16.mxu1 %v6266_v3  ;;  %v3742_v3 = vpack.c.bf16 %v7882_v21, %v5259_v57  ;;  %v3935_v49 = vpack.c.bf16 %v5293_v8, %v5291_v38  ;;  %v5298_v21 = vld [vmem:[%s8733_s0 + $0x278] sm:$0xff] }
 0x1e2   : > { %v5470_v52 = vadd.f32 %v5469_v51, %v5468_v41  ;;  %v5487_v28 = vpop.f32.mrf.mxu0  ;;  %3875 = vmatmul.mubr.bf16.vlgmr.msra.gmra.mxu0 %v3738_v5  ;;  %v6275_v5 = vld [vmem:[%s6987_s27 + $0x418] sm:$0xff]   ;;  %v5296_v41 = vld [vmem:[%s8733_s0 + $0x268] sm:$0xff] }
 0x1e3   : > { %v5527_v53 = vpop.f32.mrf.mxu1  ;;  %3972 = vmatmul.mubr.bf16.vlgmr.msra.gmra.mxu1 %v3931_v24  ;;  %6032 = vmatpush3.bf16.msra.mxu0 %v6267_v27 }
 0x1e4   : > { %v8115_v30 = vadd.f32 %v5470_v52, %v5430_v18  ;;  %6072 = vmatpush3.bf16.msra.mxu1 %v6267_v27  ;;  %v5488_v37 = vpop.f32.mrf.mxu0  ;;  %6033 = vmatprep.subr.bf16.mxu0 %v6268_v2  ;;  %v3938_v52 = vpack.c.bf16 %v5298_v21, %v5296_v41  ;;  %v5370_v41 = vld [vmem:[%s8733_s0 + $0x378] sm:$0xff] }
 0x1e5   : > { %v5489_v33 = vadd.f32 %v5488_v37, %v5487_v28  ;;  %v5528_v0 = vpop.f32.mrf.mxu1  ;;  %6073 = vmatprep.subr.bf16.mxu1 %v6268_v2  ;;  %3882 = vmatprep.mubr.bf16.mxu0 %v3741_v6  ;;  %v3745_v2 = vpack.c.bf16 %v5266_v16, %v5264_v17  ;;  %v5336_v17 = vld [vmem:[%s8733_s0 + $0x2c8] sm:$0xff]  ;;  %v5338_v16 = vld [vmem:[%s8733_s0 + $0x2d8] sm:$0xff] }
 0x1e6   : > { %v5529_v11 = vadd.f32 %v5528_v0, %v5527_v53  ;;  %v5490_v60 = vpop.f32.mrf.mxu0  ;;  %3979 = vmatprep.mubr.bf16.mxu1 %v3934_v10  ;;  %v6277_v10 = vld [vmem:[%s6987_s27 + $0x410] sm:$0xff]   ;;  %v5263_v53 = vld [vmem:[%s8733_s0 + $0x1c0] sm:$0xff] }
 0x1e7   : > { %v5530_v55 = vpop.f32.mrf.mxu1  ;;  %6034 = vmatpush3.bf16.msra.mxu0 %v6269_v42 }
 0x1e8   : > { %v8137_v20 = vadd.f32 %v5529_v11, %v5489_v33  ;;  %6074 = vmatpush3.bf16.msra.mxu1 %v6269_v42  ;;  %v5491_v6 = vpop.f32.mrf.mxu0  ;;  %6035 = vmatprep.subr.bf16.mxu0 %v6270_v15  ;;  %v5265_v42 = vld [vmem:[%s8733_s0 + $0x1d0] sm:$0xff]  ;;  %v6278_v33 = vld [vmem:[%s6987_s27 + $0x448] sm:$0xff]  }
 0x1e9   : > { %v5492_v39 = vadd.f32 %v5491_v6, %v5490_v60  ;;  %v5531_v25 = vpop.f32.mrf.mxu1  ;;  %6075 = vmatprep.subr.bf16.mxu1 %v6270_v15  ;;  %v5297_v15 = vld [vmem:[%s8733_s0 + $0x270] sm:$0xff]  ;;  %v6279_v6 = vld [vmem:[%s6987_s27 + $0x408] sm:$0xff]  }
 0x1ea   : > { %v5532_v56 = vadd.f32 %v5531_v25, %v5530_v55  ;;  %v5493_v31 = vpop.f32.mrf.mxu0  ;;  %3883 = vmatmul.mubr.bf16.gmra.mxu0 %v3740_v13  ;;  %v3744_v55 = vpack.c.bf16 %v5265_v42, %v5263_v53  ;;  %v3937_v7 = vpack.c.bf16 %v5297_v15, %v5295_v59  ;;  %v5335_v59 = vld [vmem:[%s8733_s0 + $0x2c0] sm:$0xff]  ;;  %v5337_v15 = vld [vmem:[%s8733_s0 + $0x2d0] sm:$0xff] }
 0x1eb   : > { %v5533_v40 = vpop.f32.mrf.mxu1  ;;  %3980 = vmatmul.mubr.bf16.gmra.mxu1 %v3933_v43  ;;  %6036 = vmatpush3.bf16.msra.mxu0 %v6271_v14  ;;  %v5332_v43 = vld [vmem:[%s8733_s0 + $0x2a8] sm:$0xff] }
 0x1ec   : > { %v8148_v36 = vadd.f32 %v5532_v56, %v5492_v39  ;;  %6076 = vmatpush3.bf16.msra.mxu1 %v6271_v14  ;;  %v5494_v44 = vpop.f32.mrf.mxu0  ;;  %6037 = vmatprep.subr.bf16.mxu0 %v6272_v47  ;;  %v5334_v14 = vld [vmem:[%s8733_s0 + $0x2b8] sm:$0xff]  ;;  %v6280_v56 = vld [vmem:[%s6987_s27 + $0x440] sm:$0xff]  }
 0x1ed   : > { %v5495_v13 = vadd.f32 %v5494_v44, %v5493_v31  ;;  %v5534_v35 = vpop.f32.mrf.mxu1  ;;  %6077 = vmatprep.subr.bf16.mxu1 %v6272_v47  ;;  %3890 = vmatprep.mubr.bf16.mxu0 %v3743_v4  ;;  %v5364_v47 = vld [vmem:[%s8733_s0 + $0x348] sm:$0xff]  ;;  %v5366_v39 = vld [vmem:[%s8733_s0 + $0x358] sm:$0xff]  ;;  %v6281_v44 = vld [vmem:[%s6987_s27 + $0x400] sm:$0xff]   ;;  %s1454_s27 = scalar_lea.vmem %s8737_s4, %s4738_s13 }
 0x1ee   : > { %v5535_v12 = vadd.f32 %v5534_v35, %v5533_v40  ;;  %v5496_v50 = vpop.f32.mrf.mxu0  ;;  %3987 = vmatprep.mubr.bf16.mxu1 %v3936_v61  ;;  %v4062_v40 = vpack.c.bf16 %v5334_v14, %v5332_v43  ;;  %v4255_v38 = vpack.c.bf16 %v5366_v39, %v5364_v47  ;;  %v5363_v35 = vld [vmem:[%s8733_s0 + $0x340] sm:$0xff]  ;;  %v4063_v39 = vpack.c.bf16 %v5337_v15, %v5335_v59 }
 0x1ef   : > { %v5536_v45 = vpop.f32.mrf.mxu1  ;;  %6038 = vmatpush3.bf16.msra.mxu0 %v6273_v48 }
 0x1f0   : > { %v8171_v24 = vadd.f32 %v5535_v12, %v5495_v13  ;;  %6078 = vmatpush3.bf16.msra.mxu1 %v6273_v48  ;;  %v5497_v27 = vpop.f32.mrf.mxu0  ;;  %6039 = vmatprep.subr.bf16.mxu0 %v6274_v54  ;;  %v5333_v13 = vld [vmem:[%s8733_s0 + $0x2b0] sm:$0xff] }
 0x1f1   : > { %v5498_v22 = vadd.f32 %v5497_v27, %v5496_v50  ;;  %v5537_v1 = vpop.f32.mrf.mxu1  ;;  %6079 = vmatprep.subr.bf16.mxu1 %v6274_v54  ;;  %v5331_v54 = vld [vmem:[%s8733_s0 + $0x2a0] sm:$0xff] }
 0x1f2   : > { %v5538_v18 = vadd.f32 %v5537_v1, %v5536_v45  ;;  %v5499_v51 = vpop.f32.mrf.mxu0  ;;  %3891 = vmatmul.mubr.bf16.gmra.mxu0 %v3742_v3  ;;  %v5365_v3 = vld [vmem:[%s8733_s0 + $0x350] sm:$0xff] }
 0x1f3   : > { %v5539_v28 = vpop.f32.mrf.mxu1  ;;  %3988 = vmatmul.mubr.bf16.gmra.mxu1 %v3935_v49  ;;  %6040 = vmatpush3.bf16.msra.mxu0 %v6275_v5  ;;  %v4254_v1 = vpack.c.bf16 %v5365_v3, %v5363_v35 }
 0x1f4   : > { %v8181_v37 = vadd.f32 %v5538_v18, %v5498_v22  ;;  %6080 = vmatpush3.bf16.msra.mxu1 %v6275_v5  ;;  %v5500_v23 = vpop.f32.mrf.mxu0  ;;  %6041 = vmatprep.subr.bf16.mxu0 %v6276_v19  ;;  %v5368_v5 = vld [vmem:[%s8733_s0 + $0x368] sm:$0xff] }
 0x1f5   : > { %v5501_v0 = vadd.f32 %v5500_v23, %v5499_v51  ;;  %v5540_v11 = vpop.f32.mrf.mxu1  ;;  %6081 = vmatprep.subr.bf16.mxu1 %v6276_v19  ;;  %3898 = vmatprep.mubr.bf16.mxu0 %v3745_v2  ;;  %v4061_v19 = vpack.c.bf16 %v5333_v13, %v5331_v54  ;;  %v4064_v2 = vpack.c.bf16 %v5338_v16, %v5336_v17  ;;  %v5373_v17 = vld [vmem:[%s8733_s0 + $0x390] sm:$0xff]  ;;  %v5344_v16 = vld [vmem:[%s8733_s0 + $0x308] sm:$0xff] }
 0x1f6   : > { %v5541_v60 = vadd.f32 %v5540_v11, %v5539_v28  ;;  %v5502_v9 = vpop.f32.mrf.mxu0  ;;  %3995 = vmatprep.mubr.bf16.mxu1 %v3938_v52  ;;  %v4257_v52 = vpack.c.bf16 %v5370_v41, %v5368_v5  ;;  %v5378_v41 = vld [vmem:[%s8733_s0 + $0x3b8] sm:$0xff] }
 0x1f7   : > { %v5542_v34 = vpop.f32.mrf.mxu1  ;;  %6042 = vmatpush3.bf16.msra.mxu0 %v6277_v10 }
 0x1f8   : > { %v8203_v25 = vadd.f32 %v5541_v60, %v5501_v0  ;;  %6082 = vmatpush3.bf16.msra.mxu1 %v6277_v10  ;;  %v5503_v4 = vpop.f32.mrf.mxu0  ;;  %6043 = vmatprep.subr.bf16.mxu0 %v6278_v33  ;;  %v5369_v60 = vld [vmem:[%s8733_s0 + $0x370] sm:$0xff] }
 0x1f9   : > { %v5504_v31 = vadd.f32 %v5503_v4, %v5502_v9  ;;  %v5543_v61 = vpop.f32.mrf.mxu1  ;;  %6083 = vmatprep.subr.bf16.mxu1 %v6278_v33  ;;  %v5367_v33 = vld [vmem:[%s8733_s0 + $0x360] sm:$0xff]  ;;  %v5340_v9 = vld [vmem:[%s8733_s0 + $0x2e8] sm:$0xff] }
 0x1fa   : > { %v5544_v48 = vadd.f32 %v5543_v61, %v5542_v34  ;;  %v5505_v57 = vpop.f32.mrf.mxu0  ;;  %3899 = vmatmul.mubr.bf16.gmra.mxu0 %v3744_v55  ;;  %v5342_v55 = vld [vmem:[%s8733_s0 + $0x2f8] sm:$0xff]  ;;  %v5372_v34 = vld [vmem:[%s8733_s0 + $0x388] sm:$0xff] }
 0x1fb   : > { %v5545_v8 = vpop.f32.mrf.mxu1  ;;  %3996 = vmatmul.mubr.bf16.gmra.mxu1 %v3937_v7  ;;  %6044 = vmatpush3.bf16.msra.mxu0 %v6279_v6  ;;  %v5374_v7 = vld [vmem:[%s8733_s0 + $0x398] sm:$0xff]  ;;  %v4066_v61 = vpack.c.bf16 %v5342_v55, %v5340_v9  ;;  %v5377_v9 = vld [vmem:[%s8733_s0 + $0x3b0] sm:$0xff] }
 0x1fc   : > { %v8216_v12 = vadd.f32 %v5544_v48, %v5504_v31  ;;  %6084 = vmatpush3.bf16.msra.mxu1 %v6279_v6  ;;  %v5506_v50 = vpop.f32.mrf.mxu0  ;;  %6045 = vmatprep.subr.bf16.mxu0 %v6280_v56  ;;  %v4256_v31 = vpack.c.bf16 %v5369_v60, %v5367_v33 }
 0x1fd   : > { %v5507_v45 = vadd.f32 %v5506_v50, %v5505_v57  ;;  %v5546_v49 = vpop.f32.mrf.mxu1  ;;  %6085 = vmatprep.subr.bf16.mxu1 %v6280_v56  ;;  %4197 = vmatprep.mubr.bf16.mxu0 %v4062_v40  ;;  %v4259_v57 = vpack.c.bf16 %v5374_v7, %v5372_v34  ;;  %v5371_v50 = vld [vmem:[%s8733_s0 + $0x380] sm:$0xff] }
 0x1fe   : > { %v5547_v21 = vadd.f32 %v5546_v49, %v5545_v8  ;;  %v5508_v27 = vpop.f32.mrf.mxu0  ;;  %4294 = vmatprep.mubr.bf16.mxu1 %v4255_v38 }
 0x1ff   : > { %v5548_v22 = vpop.f32.mrf.mxu1  ;;  %6046 = vmatpush3.bf16.msra.mxu0 %v6281_v44 }
 0x200   : > { %v8233_v18 = vadd.f32 %v5547_v21, %v5507_v45  ;;  %6086 = vmatpush3.bf16.msra.mxu1 %v6281_v44  ;;  %v5509_v51 = vpop.f32.mrf.mxu0  ;;  %v5346_v45 = vld [vmem:[%s8733_s0 + $0x318] sm:$0xff] }
 0x201   : > { %v5510_v28 = vadd.f32 %v5509_v51, %v5508_v27  ;;  %v5549_v10 = vpop.f32.mrf.mxu1  ;;  %v4068_v51 = vpack.c.bf16 %v5346_v45, %v5344_v16 }
 0x202   : > { %v5550_v53 = vadd.f32 %v5549_v10, %v5548_v22  ;;  %v5567_v42 = vpop.f32.mrf.mxu0  ;;  %4198 = vmatmul.mubr.bf16.vlgmr.msra.gmra.mxu0 %v4061_v19 }
 0x203   : > { %v5607_v23 = vpop.f32.mrf.mxu1  ;;  %4295 = vmatmul.mubr.bf16.vlgmr.msra.gmra.mxu1 %v4254_v1  ;;  %4205 = vmatprep.mubr.bf16.mxu0 %v4064_v2  ;;  %v4258_v2 = vpack.c.bf16 %v5373_v17, %v5371_v50 }
 0x204   : > { %v8244_v0 = vadd.f32 %v5550_v53, %v5510_v28  ;;  %v5568_v11 = vpop.f32.mrf.mxu0  ;;  %4302 = vmatprep.mubr.bf16.mxu1 %v4257_v52 }
 0x205   : > { %v5569_v43 = vadd.f32 %v5568_v11, %v5567_v42  ;;  %v5608_v14 = vpop.f32.mrf.mxu1 }
 0x206   : > { %v5609_v6 = vadd.f32 %v5608_v14, %v5607_v23  ;;  %v5570_v47 = vpop.f32.mrf.mxu0 }
 0x207   : > { %v8262_v4 = vadd.f32 %v5569_v43, %v8033_v32  ;;  %v5610_v56 = vpop.f32.mrf.mxu1  ;;  %v5339_v32 = vld [vmem:[%s8733_s0 + $0x2e0] sm:$0xff] }
 0x208   : > { %v8265_v40 = vadd.f32 %v5609_v6, %v8137_v20  ;;  %v5571_v48 = vpop.f32.mrf.mxu0  ;;  %v5341_v20 = vld [vmem:[%s8733_s0 + $0x2f0] sm:$0xff] }
 0x209   : > { %v5572_v44 = vadd.f32 %v5571_v48, %v5570_v47  ;;  %v5611_v38 = vpop.f32.mrf.mxu1  ;;  %v4065_v19 = vpack.c.bf16 %v5341_v20, %v5339_v32 }
 0x20a   : > { %v5612_v8 = vadd.f32 %v5611_v38, %v5610_v56  ;;  %v5573_v54 = vpop.f32.mrf.mxu0  ;;  %4206 = vmatmul.mubr.bf16.gmra.mxu0 %v4063_v39 }
 0x20b   : > { %v8268_v13 = vadd.f32 %v5572_v44, %v8043_v62  ;;  %v5613_v35 = vpop.f32.mrf.mxu1  ;;  %4303 = vmatmul.mubr.bf16.gmra.mxu1 %v4256_v31  ;;  %4213 = vmatprep.mubr.bf16.mxu0 %v4066_v61 }
 0x20c   : > { %v8280_v3 = vadd.f32 %v5612_v8, %v8148_v36  ;;  %v5574_v62 = vpop.f32.mrf.mxu0  ;;  %4310 = vmatprep.mubr.bf16.mxu1 %v4259_v57  ;;  %v5376_v36 = vld [vmem:[%s8733_s0 + $0x3a8] sm:$0xff] }
 0x20d   : > { %v5575_v49 = vadd.f32 %v5574_v62, %v5573_v54  ;;  %v5614_v5 = vpop.f32.mrf.mxu1  ;;  %v4261_v10 = vpack.c.bf16 %v5378_v41, %v5376_v36 }
 0x20e   : > { %v5615_v21 = vadd.f32 %v5614_v5, %v5613_v35  ;;  %v5576_v27 = vpop.f32.mrf.mxu0 }
 0x20f   : > { %v8298_v22 = vadd.f32 %v5575_v49, %v8059_v26  ;;  %v5616_v1 = vpop.f32.mrf.mxu1  ;;  %v5343_v26 = vld [vmem:[%s8733_s0 + $0x300] sm:$0xff] }
 0x210   : > { %v8301_v52 = vadd.f32 %v5615_v21, %v8171_v24  ;;  %v5577_v28 = vpop.f32.mrf.mxu0  ;;  %v5345_v24 = vld [vmem:[%s8733_s0 + $0x310] sm:$0xff] }
 0x211   : > { %v5578_v53 = vadd.f32 %v5577_v28, %v5576_v27  ;;  %v5617_v42 = vpop.f32.mrf.mxu1  ;;  %v4067_v7 = vpack.c.bf16 %v5345_v24, %v5343_v26 }
 0x212   : > { %v5618_v23 = vadd.f32 %v5617_v42, %v5616_v1  ;;  %v5579_v59 = vpop.f32.mrf.mxu0  ;;  %4214 = vmatmul.mubr.bf16.gmra.mxu0 %v4065_v19 }
 0x213   : > { %v8304_v15 = vadd.f32 %v5578_v53, %v8068_v29  ;;  %v5619_v33 = vpop.f32.mrf.mxu1  ;;  %4311 = vmatmul.mubr.bf16.gmra.mxu1 %v4258_v2  ;;  %4221 = vmatprep.mubr.bf16.mxu0 %v4068_v51  ;;  %v5375_v29 = vld [vmem:[%s8733_s0 + $0x3a0] sm:$0xff] }
 0x214   : > { %v8313_v11 = vadd.f32 %v5618_v23, %v8181_v37  ;;  %v5580_v60 = vpop.f32.mrf.mxu0  ;;  %4318 = vmatprep.mubr.bf16.mxu1 %v4261_v10  ;;  %v4260_v47 = vpack.c.bf16 %v5377_v9, %v5375_v29 }
 0x215   : > { %v5581_v55 = vadd.f32 %v5580_v60, %v5579_v59  ;;  %v5620_v43 = vpop.f32.mrf.mxu1 }
 0x216   : > { %v5621_v14 = vadd.f32 %v5620_v43, %v5619_v33  ;;  %v5582_v34 = vpop.f32.mrf.mxu0 }
 0x217   : > { %v8322_v6 = vadd.f32 %v5581_v55, %v8086_v46  ;;  %v5622_v37 = vpop.f32.mrf.mxu1 }
 0x218   : > { %v8325_v39 = vadd.f32 %v5621_v14, %v8203_v25  ;;  %v5583_v56 = vpop.f32.mrf.mxu0 }
 0x219   : > { %v5584_v31 = vadd.f32 %v5583_v56, %v5582_v34  ;;  %v5623_v61 = vpop.f32.mrf.mxu1 }
 0x21a   : > { %v5624_v48 = vadd.f32 %v5623_v61, %v5622_v37  ;;  %v5585_v57 = vpop.f32.mrf.mxu0  ;;  %4222 = vmatmul.mubr.bf16.gmra.mxu0 %v4067_v7 }
 0x21b   : > { %v8328_v44 = vadd.f32 %v5584_v31, %v8094_v58  ;;  %v5625_v38 = vpop.f32.mrf.mxu1  ;;  %4319 = vmatmul.mubr.bf16.gmra.mxu1 %v4260_v47 }
 0x21c   : > { %v8331_v8 = vadd.f32 %v5624_v48, %v8216_v12  ;;  %v5586_v46 = vpop.f32.mrf.mxu0 }
 0x21d   : > { %v5587_v54 = vadd.f32 %v5586_v46, %v5585_v57  ;;  %v5626_v35 = vpop.f32.mrf.mxu1 }
 0x21e   : > { %v5627_v32 = vadd.f32 %v5626_v35, %v5625_v38  ;;  %v5588_v25 = vpop.f32.mrf.mxu0 }
 0x21f   : > { %v8334_v20 = vadd.f32 %v5587_v54, %v8111_v63  ;;  %v5628_v50 = vpop.f32.mrf.mxu1 }
 0x220   : > { %v8337_v62 = vadd.f32 %v5627_v32, %v8233_v18  ;;  %v5589_v17 = vpop.f32.mrf.mxu0 }
 0x221   : > { %v5590_v58 = vadd.f32 %v5589_v17, %v5588_v25  ;;  %v5629_v16 = vpop.f32.mrf.mxu1 }
 0x222   : > { %v5630_v45 = vadd.f32 %v5629_v16, %v5628_v50  ;;  %v5647_v49 = vpop.f32.mrf.mxu0 }
 0x223   : > { %v8340_v12 = vadd.f32 %v5590_v58, %v8115_v30  ;;  %v5687_v5 = vpop.f32.mrf.mxu1 }
 0x224   : > { %v8343_v36 = vadd.f32 %v5630_v45, %v8244_v0  ;;  %v5648_v41 = vpop.f32.mrf.mxu0 }
 0x225   : > { %v5649_v21 = vadd.f32 %v5648_v41, %v5647_v49  ;;  %v5688_v63 = vpop.f32.mrf.mxu1 }
 0x226   : > { %v5689_v27 = vadd.f32 %v5688_v63, %v5687_v5  ;;  %v5650_v19 = vpop.f32.mrf.mxu0 }
 0x227   : > { %v8346_v18 = vadd.f32 %v5649_v21, %v8262_v4  ;;  %v5690_v1 = vpop.f32.mrf.mxu1 }
 0x228   : > { %v8349_v2 = vadd.f32 %v5689_v27, %v8265_v40  ;;  %v5651_v51 = vpop.f32.mrf.mxu0 }
 0x229   : > { %v5652_v28 = vadd.f32 %v5651_v51, %v5650_v19  ;;  %v5691_v30 = vpop.f32.mrf.mxu1 }
 0x22a   : > { %v5692_v10 = vadd.f32 %v5691_v30, %v5690_v1  ;;  %v5653_v53 = vpop.f32.mrf.mxu0 }
 0x22b   : > { %v8352_v0 = vadd.f32 %v5652_v28, %v8268_v13  ;;  %v5693_v42 = vpop.f32.mrf.mxu1 }
 0x22c   : > { %v8355_v23 = vadd.f32 %v5692_v10, %v8280_v3  ;;  %v5654_v59 = vpop.f32.mrf.mxu0 }
 0x22d   : > { %v5655_v33 = vadd.f32 %v5654_v59, %v5653_v53  ;;  %v5694_v4 = vpop.f32.mrf.mxu1 }
 0x22e   : > { %v5695_v26 = vadd.f32 %v5694_v4, %v5693_v42  ;;  %v5656_v24 = vpop.f32.mrf.mxu0 }
 0x22f   : > { %v8358_v40 = vadd.f32 %v5655_v33, %v8298_v22  ;;  %v5696_v60 = vpop.f32.mrf.mxu1 }
 0x230   : > { %v8361_v29 = vadd.f32 %v5695_v26, %v8301_v52  ;;  %v5657_v9 = vpop.f32.mrf.mxu0 }
 0x231   : > { %v5658_v55 = vadd.f32 %v5657_v9, %v5656_v24  ;;  %v5697_v13 = vpop.f32.mrf.mxu1 }
 0x232   : > { %v5698_v43 = vadd.f32 %v5697_v13, %v5696_v60  ;;  %v5659_v14 = vpop.f32.mrf.mxu0 }
 0x233   : > { %v8364_v3 = vadd.f32 %v5658_v55, %v8304_v15  ;;  %v5699_v34 = vpop.f32.mrf.mxu1 }
 0x234   : > { %v8367_v7 = vadd.f32 %v5698_v43, %v8313_v11  ;;  %v5660_v37 = vpop.f32.mrf.mxu0 }
 0x235   : > { %v5661_v47 = vadd.f32 %v5660_v37, %v5659_v14  ;;  %v5700_v22 = vpop.f32.mrf.mxu1 }
 0x236   : > { %v5701_v56 = vadd.f32 %v5700_v22, %v5699_v34  ;;  %v5662_v31 = vpop.f32.mrf.mxu0 }
 0x237   : > { %v8370_v52 = vadd.f32 %v5661_v47, %v8322_v6  ;;  %v5702_v61 = vpop.f32.mrf.mxu1 }
 0x238   : > { %v8373_v48 = vadd.f32 %v5701_v56, %v8325_v39  ;;  %v5663_v57 = vpop.f32.mrf.mxu0 }
 0x239   : > { %v5664_v38 = vadd.f32 %v5663_v57, %v5662_v31  ;;  %v5703_v15 = vpop.f32.mrf.mxu1 }
 0x23a   : > { %v5704_v46 = vadd.f32 %v5703_v15, %v5702_v61  ;;  %v5665_v54 = vpop.f32.mrf.mxu0 }
 0x23b   : > { %v8376_v11 = vadd.f32 %v5664_v38, %v8328_v44  ;;  %v5705_v35 = vpop.f32.mrf.mxu1 }
 0x23c   : > { %v8379_v32 = vadd.f32 %v5704_v46, %v8331_v8  ;;  %v5666_v25 = vpop.f32.mrf.mxu0 }
 0x23d   : > { %v5667_v50 = vadd.f32 %v5666_v25, %v5665_v54  ;;  %v5706_v6 = vpop.f32.mrf.mxu1 }
 0x23e   : > { %v5707_v17 = vadd.f32 %v5706_v6, %v5705_v35  ;;  %v5668_v58 = vpop.f32.mrf.mxu0 }
 0x23f   : > { %v8382_v39 = vadd.f32 %v5667_v50, %v8334_v20  ;;  %v5708_v16 = vpop.f32.mrf.mxu1 }
 0x240   : > { %v8385_v45 = vadd.f32 %v5707_v17, %v8337_v62  ;;  %v5669_v49 = vpop.f32.mrf.mxu0 }
 0x241   : > { %v5670_v5 = vadd.f32 %v5669_v49, %v5668_v58  ;;  %v5709_v44 = vpop.f32.mrf.mxu1 }
 0x242   : > { %v5710_v41 = vadd.f32 %v5709_v44, %v5708_v16  ;;  %v5727_v21 = vpop.f32.mrf.mxu0 }
 0x243   : > { %v8388_v8 = vadd.f32 %v5670_v5, %v8340_v12  ;;  %v5767_v63 = vpop.f32.mrf.mxu1 }
 0x244   : > { %v8391_v27 = vadd.f32 %v5710_v41, %v8343_v36  ;;  %v5728_v19 = vpop.f32.mrf.mxu0 }
 0x245   : > { %v5729_v1 = vadd.f32 %v5728_v19, %v5727_v21  ;;  %v5768_v20 = vpop.f32.mrf.mxu1 }
 0x246   : > { %v5769_v51 = vadd.f32 %v5768_v20, %v5767_v63  ;;  %v5730_v28 = vpop.f32.mrf.mxu0 }
 0x247   : > { %v8394_v62 = vadd.f32 %v5729_v1, %v8346_v18  ;;  %v5770_v30 = vpop.f32.mrf.mxu1 }
 0x248   : > { %v8397_v10 = vadd.f32 %v5769_v51, %v8349_v2  ;;  %v5731_v53 = vpop.f32.mrf.mxu0 }
 0x249   : > { %v5732_v42 = vadd.f32 %v5731_v53, %v5730_v28  ;;  %v5771_v12 = vpop.f32.mrf.mxu1 }
 0x24a   : > { %v5772_v59 = vadd.f32 %v5771_v12, %v5770_v30  ;;  %v5733_v33 = vpop.f32.mrf.mxu0 }
 0x24b   : > { %v8400_v36 = vadd.f32 %v5732_v42, %v8352_v0  ;;  %v5773_v4 = vpop.f32.mrf.mxu1 }
 0x24c   : > { %v8403_v26 = vadd.f32 %v5772_v59, %v8355_v23  ;;  %v5734_v24 = vpop.f32.mrf.mxu0 }
 0x24d   : > { %v5735_v60 = vadd.f32 %v5734_v24, %v5733_v33  ;;  %v5774_v18 = vpop.f32.mrf.mxu1 }
 0x24e   : > { %v5775_v9 = vadd.f32 %v5774_v18, %v5773_v4  ;;  %v5736_v55 = vpop.f32.mrf.mxu0 }
 0x24f   : > { %v8406_v2 = vadd.f32 %v5735_v60, %v8358_v40  ;;  %v5776_v13 = vpop.f32.mrf.mxu1 }
 0x250   : > { %v8409_v43 = vadd.f32 %v5775_v9, %v8361_v29  ;;  %v5737_v14 = vpop.f32.mrf.mxu0 }
 0x251   : > { %v5738_v34 = vadd.f32 %v5737_v14, %v5736_v55  ;;  %v5777_v0 = vpop.f32.mrf.mxu1 }
 0x252   : > { %v5778_v37 = vadd.f32 %v5777_v0, %v5776_v13  ;;  %v5739_v47 = vpop.f32.mrf.mxu0 }
 0x253   : > { %v8412_v23 = vadd.f32 %v5738_v34, %v8364_v3  ;;  %v5779_v22 = vpop.f32.mrf.mxu1 }
 0x254   : > { %v8415_v56 = vadd.f32 %v5778_v37, %v8367_v7  ;;  %v5740_v31 = vpop.f32.mrf.mxu0 }
 0x255   : > { %v5741_v61 = vadd.f32 %v5740_v31, %v5739_v47  ;;  %v5780_v40 = vpop.f32.mrf.mxu1 }
 0x256   : > { %v5781_v57 = vadd.f32 %v5780_v40, %v5779_v22  ;;  %v5742_v38 = vpop.f32.mrf.mxu0 }
 0x257   : > { %v8418_v29 = vadd.f32 %v5741_v61, %v8370_v52  ;;  %v5782_v15 = vpop.f32.mrf.mxu1 }
 0x258   : > { %v8421_v46 = vadd.f32 %v5781_v57, %v8373_v48  ;;  %v5743_v54 = vpop.f32.mrf.mxu0 }
 0x259   : > { %v5744_v35 = vadd.f32 %v5743_v54, %v5742_v38  ;;  %v5783_v3 = vpop.f32.mrf.mxu1 }
 0x25a   : > { %v5784_v25 = vadd.f32 %v5783_v3, %v5782_v15  ;;  %v5745_v50 = vpop.f32.mrf.mxu0 }
 0x25b   : > { %v8424_v7 = vadd.f32 %v5744_v35, %v8376_v11  ;;  %v5785_v6 = vpop.f32.mrf.mxu1 }
 0x25c   : > { %v8427_v17 = vadd.f32 %v5784_v25, %v8379_v32  ;;  %v5746_v58 = vpop.f32.mrf.mxu0 }
 0x25d   : > { %v5747_v16 = vadd.f32 %v5746_v58, %v5745_v50  ;;  %v5786_v52 = vpop.f32.mrf.mxu1 }
 0x25e   : > { %v5787_v49 = vadd.f32 %v5786_v52, %v5785_v6  ;;  %v5748_v5 = vpop.f32.mrf.mxu0 }
 0x25f   : > { %v8430_v48 = vadd.f32 %v5747_v16, %v8382_v39  ;;  %v5788_v44 = vpop.f32.mrf.mxu1 }
 0x260   : > { %v8433_v41 = vadd.f32 %v5787_v49, %v8385_v45  ;;  %v5749_v21 = vpop.f32.mrf.mxu0 }
 0x261   : > { %v5750_v63 = vadd.f32 %v5749_v21, %v5748_v5  ;;  %v5789_v11 = vpop.f32.mrf.mxu1 }
 0x262   : > { %v5790_v19 = vadd.f32 %v5789_v11, %v5788_v44  ;;  %v5807_v1 = vpop.f32.mrf.mxu0 }
 0x263   : > { %v8436_v32 = vadd.f32 %v5750_v63, %v8388_v8  ;;  %v5847_v20 = vpop.f32.mrf.mxu1 }
 0x264   : > { %v8439_v51 = vadd.f32 %v5790_v19, %v8391_v27  ;;  %v5808_v28 = vpop.f32.mrf.mxu0 }
 0x265   : > { %v5809_v30 = vadd.f32 %v5808_v28, %v5807_v1  ;;  %v5848_v39 = vpop.f32.mrf.mxu1 }
 0x266   : > { %v5849_v53 = vadd.f32 %v5848_v39, %v5847_v20  ;;  %v5810_v42 = vpop.f32.mrf.mxu0 }
 0x267   : > { %v8442_v45 = vadd.f32 %v5809_v30, %v8394_v62  ;;  %v5850_v12 = vpop.f32.mrf.mxu1 }
 0x268   : > { %v8445_v59 = vadd.f32 %v5849_v53, %v8397_v10  ;;  %v5811_v33 = vpop.f32.mrf.mxu0 }
 0x269   : > { %v5812_v4 = vadd.f32 %v5811_v33, %v5810_v42  ;;  %v5851_v8 = vpop.f32.mrf.mxu1 }
 0x26a   : > { %v5852_v24 = vadd.f32 %v5851_v8, %v5850_v12  ;;  %v5813_v60 = vpop.f32.mrf.mxu0 }
 0x26b   : > { %v8448_v27 = vadd.f32 %v5812_v4, %v8400_v36  ;;  %v5853_v18 = vpop.f32.mrf.mxu1 }
 0x26c   : > { %v8451_v9 = vadd.f32 %v5852_v24, %v8403_v26  ;;  %v5814_v55 = vpop.f32.mrf.mxu0 }
 0x26d   : > { %v5815_v13 = vadd.f32 %v5814_v55, %v5813_v60  ;;  %v5854_v62 = vpop.f32.mrf.mxu1 }
 0x26e   : > { %v5855_v14 = vadd.f32 %v5854_v62, %v5853_v18  ;;  %v5816_v34 = vpop.f32.mrf.mxu0 }
 0x26f   : > { %v8454_v10 = vadd.f32 %v5815_v13, %v8406_v2  ;;  %v5856_v0 = vpop.f32.mrf.mxu1 }
 0x270   : > { %v8457_v37 = vadd.f32 %v5855_v14, %v8409_v43  ;;  %v5817_v47 = vpop.f32.mrf.mxu0 }
 0x271   : > { %v5818_v22 = vadd.f32 %v5817_v47, %v5816_v34  ;;  %v5857_v36 = vpop.f32.mrf.mxu1 }
 0x272   : > { %v5858_v31 = vadd.f32 %v5857_v36, %v5856_v0  ;;  %v5819_v61 = vpop.f32.mrf.mxu0 }
 0x273   : > { %v8460_v26 = vadd.f32 %v5818_v22, %v8412_v23  ;;  %v5859_v40 = vpop.f32.mrf.mxu1 }
 0x274   : > { %v8463_v57 = vadd.f32 %v5858_v31, %v8415_v56  ;;  %v5820_v38 = vpop.f32.mrf.mxu0 }
 0x275   : > { %v5821_v15 = vadd.f32 %v5820_v38, %v5819_v61  ;;  %v5860_v2 = vpop.f32.mrf.mxu1 }
 0x276   : > { %v5861_v54 = vadd.f32 %v5860_v2, %v5859_v40  ;;  %v5822_v35 = vpop.f32.mrf.mxu0 }
 0x277   : > { %v8466_v43 = vadd.f32 %v5821_v15, %v8418_v29  ;;  %v5862_v3 = vpop.f32.mrf.mxu1 }
 0x278   : > { %v8469_v25 = vadd.f32 %v5861_v54, %v8421_v46  ;;  %v5823_v50 = vpop.f32.mrf.mxu0 }
 0x279   : > { %v5824_v6 = vadd.f32 %v5823_v50, %v5822_v35  ;;  %v5863_v23 = vpop.f32.mrf.mxu1 }
 0x27a   : > { %v5864_v58 = vadd.f32 %v5863_v23, %v5862_v3  ;;  %v5825_v16 = vpop.f32.mrf.mxu0 }
 0x27b   : > { %v8472_v56 = vadd.f32 %v5824_v6, %v8424_v7  ;;  %v5865_v52 = vpop.f32.mrf.mxu1 }
 0x27c   : > { %v8475_v49 = vadd.f32 %v5864_v58, %v8427_v17  ;;  %v5826_v5 = vpop.f32.mrf.mxu0 }
 0x27d   : > { %v5827_v44 = vadd.f32 %v5826_v5, %v5825_v16  ;;  %v5866_v29 = vpop.f32.mrf.mxu1 }
 0x27e   : > { %v5867_v21 = vadd.f32 %v5866_v29, %v5865_v52  ;;  %v5828_v63 = vpop.f32.mrf.mxu0 }
 0x27f   : > { %v8478_v46 = vadd.f32 %v5827_v44, %v8430_v48  ;;  %v5868_v11 = vpop.f32.mrf.mxu1 }
 0x280   : > { %v8481_v19 = vadd.f32 %v5867_v21, %v8433_v41  ;;  %v5829_v1 = vpop.f32.mrf.mxu0 }
 0x281   : > { %v5830_v20 = vadd.f32 %v5829_v1, %v5828_v63  ;;  %v5869_v7 = vpop.f32.mrf.mxu1 }
 0x282   : > { %v5870_v28 = vadd.f32 %v5869_v7, %v5868_v11  ;;  %v5887_v30 = vpop.f32.mrf.mxu0 }
 0x283   : > { %v8484_v17 = vadd.f32 %v5830_v20, %v8436_v32  ;;  %v5927_v39 = vpop.f32.mrf.mxu1 }
 0x284   : > { %v8487_v53 = vadd.f32 %v5870_v28, %v8439_v51  ;;  %v5888_v42 = vpop.f32.mrf.mxu0 }
 0x285   : > { %8812 = vst [vmem:[#allocation18_spill] sm:$0xff] %v8484_v17  ;;  %v5889_v12 = vadd.f32 %v5888_v42, %v5887_v30  ;;  %v5928_v48 = vpop.f32.mrf.mxu1 }
 0x286   : > { %8813 = vst [vmem:[#allocation5_spill] sm:$0xff] %v8487_v53  ;;  %v5929_v33 = vadd.f32 %v5928_v48, %v5927_v39  ;;  %v5890_v4 = vpop.f32.mrf.mxu0 }
 0x287   : > { %v8490_v41 = vadd.f32 %v5889_v12, %v8442_v45  ;;  %v5930_v8 = vpop.f32.mrf.mxu1 }
 0x288   : > { %v8493_v24 = vadd.f32 %v5929_v33, %v8445_v59  ;;  %v5891_v60 = vpop.f32.mrf.mxu0 }
 0x289   : > { %v5892_v18 = vadd.f32 %v5891_v60, %v5890_v4  ;;  %v5931_v32 = vpop.f32.mrf.mxu1 }
 0x28a   : > { %v5932_v55 = vadd.f32 %v5931_v32, %v5930_v8  ;;  %v5893_v13 = vpop.f32.mrf.mxu0 }
 0x28b   : > { %v8496_v51 = vadd.f32 %v5892_v18, %v8448_v27  ;;  %v5933_v62 = vpop.f32.mrf.mxu1 }
 0x28c   : > { %v8499_v14 = vadd.f32 %v5932_v55, %v8451_v9  ;;  %v5894_v34 = vpop.f32.mrf.mxu0 }
 0x28d   : > { %v5895_v0 = vadd.f32 %v5894_v34, %v5893_v13  ;;  %v5934_v45 = vpop.f32.mrf.mxu1 }
 0x28e   : > { %v5935_v47 = vadd.f32 %v5934_v45, %v5933_v62  ;;  %v5896_v22 = vpop.f32.mrf.mxu0 }
 0x28f   : > { %v8502_v59 = vadd.f32 %v5895_v0, %v8454_v10  ;;  %v5936_v36 = vpop.f32.mrf.mxu1 }
 0x290   : > { %v8505_v31 = vadd.f32 %v5935_v47, %v8457_v37  ;;  %v5897_v61 = vpop.f32.mrf.mxu0 }
 0x291   : > { %v5898_v40 = vadd.f32 %v5897_v61, %v5896_v22  ;;  %v5937_v27 = vpop.f32.mrf.mxu1 }
 0x292   : > { %v5938_v38 = vadd.f32 %v5937_v27, %v5936_v36  ;;  %v5899_v15 = vpop.f32.mrf.mxu0 }
 0x293   : > { %v8508_v9 = vadd.f32 %v5898_v40, %v8460_v26  ;;  %v5939_v2 = vpop.f32.mrf.mxu1 }
 0x294   : > { %v8511_v54 = vadd.f32 %v5938_v38, %v8463_v57  ;;  %v5900_v35 = vpop.f32.mrf.mxu0 }
 0x295   : > { %8814 = vst [vmem:[#allocation4_spill] sm:$0xff] %v8508_v9  ;;  %v5901_v3 = vadd.f32 %v5900_v35, %v5899_v15  ;;  %v5940_v10 = vpop.f32.mrf.mxu1 }
 0x296   : > { %8815 = vst [vmem:[#allocation7_spill] sm:$0xff] %v8511_v54  ;;  %v5941_v50 = vadd.f32 %v5940_v10, %v5939_v2  ;;  %v5902_v6 = vpop.f32.mrf.mxu0 }
 0x297   : > { %v8514_v37 = vadd.f32 %v5901_v3, %v8466_v43  ;;  %v5942_v23 = vpop.f32.mrf.mxu1 }
 0x298   : > { %v8517_v58 = vadd.f32 %v5941_v50, %v8469_v25  ;;  %v5903_v16 = vpop.f32.mrf.mxu0 }
 0x299   : > { %8816 = vst [vmem:[#allocation6_spill] sm:$0xff] %v8514_v37  ;;  %v5904_v52 = vadd.f32 %v5903_v16, %v5902_v6  ;;  %v5943_v26 = vpop.f32.mrf.mxu1 }
 0x29a   : > { %8817 = vst [vmem:[#allocation9_spill] sm:$0xff] %v8517_v58  ;;  %v5944_v5 = vadd.f32 %v5943_v26, %v5942_v23  ;;  %v5905_v44 = vpop.f32.mrf.mxu0 }
 0x29b   : > { %v8520_v57 = vadd.f32 %v5904_v52, %v8472_v56  ;;  %v5945_v29 = vpop.f32.mrf.mxu1 }
 0x29c   : > { %v8523_v21 = vadd.f32 %v5944_v5, %v8475_v49  ;;  %v5906_v63 = vpop.f32.mrf.mxu0 }
 0x29d   : > { %8818 = vst [vmem:[#allocation8_spill] sm:$0xff] %v8520_v57  ;;  %v5907_v11 = vadd.f32 %v5906_v63, %v5905_v44  ;;  %v5946_v43 = vpop.f32.mrf.mxu1 }
 0x29e   : > { %8819 = vst [vmem:[#allocation11_spill] sm:$0xff] %v8523_v21  ;;  %v5947_v1 = vadd.f32 %v5946_v43, %v5945_v29  ;;  %v5908_v20 = vpop.f32.mrf.mxu0 }
 0x29f   : > { %v8526_v25 = vadd.f32 %v5907_v11, %v8478_v46  ;;  %v5948_v7 = vpop.f32.mrf.mxu1 }
 0x2a0   : > { %v8529_v28 = vadd.f32 %v5947_v1, %v8481_v19  ;;  %v5909_v30 = vpop.f32.mrf.mxu0 }
 0x2a1   : > { %8820 = vst [vmem:[#allocation10_spill] sm:$0xff] %v8526_v25  ;;  %v5949_v39 = vpop.f32.mrf.mxu1  ;;  %v8543_v37 = vadd.f32 %v5909_v30, %v5908_v20 }
 0x2a2   : > { %8821 = vst [vmem:[#allocation13_spill] sm:$0xff] %v8529_v28  ;;  %v5967_v56 = vpop.f32.mrf.mxu0 }
 0x2a3   : > { %v6007_v42 = vpop.f32.mrf.mxu1 }
 0x2a4   : > { %v5968_v12 = vpop.f32.mrf.mxu0 }
 0x2a5   : > { %v6008_v48 = vpop.f32.mrf.mxu1  ;;  %v5969_v1 = vadd.f32 %v5968_v12, %v5967_v56 }
 0x2a6   : > { %v5970_v49 = vpop.f32.mrf.mxu0  ;;  %v6009_v17 = vadd.f32 %v6008_v48, %v6007_v42 }
 0x2a7   : > { %v6010_v33 = vpop.f32.mrf.mxu1 }
 0x2a8   : > { %v5971_v4 = vpop.f32.mrf.mxu0  ;;  %v4004_v56 = vadd.f32 %v6009_v17, %v8493_v24 }
 0x2a9   : > { %v6011_v8 = vpop.f32.mrf.mxu1 }
 0x2aa   : > { %v5973_v60 = vpop.f32.mrf.mxu0 }
 0x2ab   : > { %v6013_v18 = vpop.f32.mrf.mxu1 }
 0x2ac   : > { %v5974_v32 = vpop.f32.mrf.mxu0 }
 0x2ad   : > { %v6014_v55 = vpop.f32.mrf.mxu1 }
 0x2ae   : > { %v5976_v46 = vpop.f32.mrf.mxu0  ;;  %v6015_v25 = vadd.f32 %v6014_v55, %v6013_v18 }
 0x2af   : > { %v6016_v13 = vpop.f32.mrf.mxu1 }
 0x2b0   : > { %v5977_v62 = vpop.f32.mrf.mxu0 }
 0x2b1   : > { %v6017_v34 = vpop.f32.mrf.mxu1  ;;  %v5978_v21 = vadd.f32 %v5977_v62, %v5976_v46 }
 0x2b2   : > { %v5979_v19 = vpop.f32.mrf.mxu0  ;;  %v6018_v57 = vadd.f32 %v6017_v34, %v6016_v13 }
 0x2b3   : > { %v6019_v0 = vpop.f32.mrf.mxu1 }
 0x2b4   : > { %v5980_v45 = vpop.f32.mrf.mxu0 }
 0x2b5   : > { %v6020_v47 = vpop.f32.mrf.mxu1  ;;  %v5981_v24 = vadd.f32 %v5980_v45, %v5979_v19 }
 0x2b6   : > { %v5982_v22 = vpop.f32.mrf.mxu0 }
 0x2b7   : > { %v6022_v36 = vpop.f32.mrf.mxu1 }
 0x2b8   : > { %v5983_v61 = vpop.f32.mrf.mxu0 }
 0x2b9   : > { %v6023_v40 = vpop.f32.mrf.mxu1  ;;  %v5984_v13 = vadd.f32 %v5983_v61, %v5982_v22 }
 0x2ba   : > { %v5985_v27 = vpop.f32.mrf.mxu0 }
 0x2bb   : > { %v8531_v38 = vpop.f32.mrf.mxu1 }
 0x2bc   : > { %8822 = vst [vmem:[#allocation12_spill] sm:$0xff] %v8531_v38  ;;  %v5986_v15 = vpop.f32.mrf.mxu0  ;;  %v3907_v38 = vadd.f32 %v5969_v1, %v8490_v41  ;;  %v8829_v41 = vld [vmem:[#allocation7_spill] sm:$0xff] }
 0x2bd   : > { %v8533_v2 = vpop.f32.mrf.mxu1  ;;  %v5987_v34 = vadd.f32 %v5986_v15, %v5985_v27  ;;  %v8833_v27 = vld [vmem:[#allocation9_spill] sm:$0xff] }
 0x2be   : > { %8823 = vst [vmem:[#allocation16_spill] sm:$0xff] %v8533_v2  ;;  %v8535_v35 = vpop.f32.mrf.mxu0  ;;  %v8545_v2 = vadd.f32 %v5949_v39, %v5948_v7  ;;  %v8828_v39 = vld [vmem:[#allocation4_spill] sm:$0xff] }
 0x2bf   : > { %8824 = vst [vmem:[#allocation15_spill] sm:$0xff] %v8535_v35  ;;  %v8537_v3 = vpop.f32.mrf.mxu1  ;;  %v5972_v35 = vadd.f32 %v5971_v4, %v5970_v49  ;;  %v4006_v4 = vadd.f32 %v6015_v25, %v8505_v31 }
 0x2c0   : > { %8825 = vst [vmem:[#allocation14_spill] sm:$0xff] %v8537_v3  ;;  %v8539_v10 = vpop.f32.mrf.mxu0  ;;  %v6012_v3 = vadd.f32 %v6011_v8, %v6010_v33  ;;  %v3910_v8 = vadd.f32 %v5978_v21, %v8828_v39 }
 0x2c1   : > { %8826 = vst [vmem:[#allocation17_spill] sm:$0xff] %v8539_v10  ;;  %v8541_v50 = vpop.f32.mrf.mxu1  ;;  %v5975_v10 = vadd.f32 %v5974_v32, %v5973_v60  ;;  %v3908_v42 = vadd.f32 %v5972_v35, %v8496_v51  ;;  %v4007_v60 = vadd.f32 %v6018_v57, %v8829_v41  ;;  %v6021_v51 = vadd.f32 %v6020_v47, %v6019_v0  ;;  %v8832_v47 = vld [vmem:[#allocation6_spill] sm:$0xff] }
 0x2c2   : > { %8827 = vst [vmem:[#allocation19_spill] sm:$0xff] %v8541_v50  ;;  %v6047_v6 = vpop.f32.mrf.mxu0  ;;  %v4005_v12 = vadd.f32 %v6012_v3, %v8499_v14  ;;  %v3911_v22 = vadd.f32 %v5981_v24, %v8832_v47  ;;  %v8842_v24 = vld [vmem:[#allocation18_spill] sm:$0xff] }
 0x2c3   : > { %v6087_v23 = vpop.f32.mrf.mxu1  ;;  %v3909_v33 = vadd.f32 %v5975_v10, %v8502_v59  ;;  %v6024_v59 = vadd.f32 %v6023_v40, %v6022_v36  ;;  %v8830_v3 = vld [vmem:[#allocation12_spill] sm:$0xff] }
 0x2c4   : > { %v6048_v16 = vpop.f32.mrf.mxu0 }
 0x2c5   : > { %v6088_v52 = vpop.f32.mrf.mxu1  ;;  %v6049_v20 = vadd.f32 %v6048_v16, %v6047_v6  ;;  %v8831_v19 = vld [vmem:[#allocation16_spill] sm:$0xff] }
 0x2c6   : > { %v6050_v26 = vpop.f32.mrf.mxu0  ;;  %v6089_v18 = vadd.f32 %v6088_v52, %v6087_v23  ;;  %v6027_v0 = vadd.f32 %v8831_v19, %v8830_v3  ;;  %v8834_v23 = vld [vmem:[#allocation8_spill] sm:$0xff]  ;;  %v8835_v52 = vld [vmem:[#allocation11_spill] sm:$0xff] }
 0x2c7   : > { %v6090_v5 = vpop.f32.mrf.mxu1  ;;  %v8559_v35 = vadd.f32 %v6049_v20, %v3907_v38  ;;  %v4008_v38 = vadd.f32 %v6021_v51, %v8833_v27  ;;  %v3912_v16 = vadd.f32 %v5984_v13, %v8834_v23  ;;  %v8840_v39 = vld [vmem:[#allocation14_spill] sm:$0xff]  ;;  %v3591_v51 = vadd.f32 %v8543_v37, %v8842_v24 }
 0x2c8   : > { %v6051_v44 = vpop.f32.mrf.mxu0 }
 0x2c9   : > { %v6091_v29 = vpop.f32.mrf.mxu1  ;;  %v6052_v54 = vadd.f32 %v6051_v44, %v6050_v26  ;;  %v4009_v26 = vadd.f32 %v6024_v59, %v8835_v52  ;;  %v8843_v59 = vld [vmem:[#allocation5_spill] sm:$0xff] }
 0x2ca   : > { %v6053_v63 = vpop.f32.mrf.mxu0  ;;  %v6092_v48 = vadd.f32 %v6091_v29, %v6090_v5 }
 0x2cb   : > { %v6093_v11 = vpop.f32.mrf.mxu1  ;;  %v8555_v55 = vadd.f32 %v6052_v54, %v3908_v42  ;;  %v8565_v54 = vadd.f32 %v6089_v18, %v4004_v56 }
 0x2cc   : > { %v6054_v43 = vpop.f32.mrf.mxu0  ;;  %v8557_v62 = vadd.f32 %v6092_v48, %v4005_v12  ;;  %v8838_v48 = vld [vmem:[#allocation15_spill] sm:$0xff] }
 0x2cd   : > { %v6094_v53 = vpop.f32.mrf.mxu1  ;;  %v6055_v30 = vadd.f32 %v6054_v43, %v6053_v63  ;;  %v8836_v63 = vld [vmem:[#allocation10_spill] sm:$0xff]  ;;  %v8837_v43 = vld [vmem:[#allocation13_spill] sm:$0xff] }
 0x2ce   : > { %v6056_v28 = vpop.f32.mrf.mxu0  ;;  %v6095_v32 = vadd.f32 %v6094_v53, %v6093_v11  ;;  %v4349_v15 = vadd.f32 %v8557_v62, %v8565_v54  ;;  %v3913_v11 = vadd.f32 %v5987_v34, %v8836_v63  ;;  %v4010_v1 = vadd.f32 %v6027_v0, %v8837_v43 }
 0x2cf   : > { %v6096_v50 = vpop.f32.mrf.mxu1  ;;  %v8561_v21 = vadd.f32 %v6055_v30, %v3909_v33 }
 0x2d0   : > { %v6057_v58 = vpop.f32.mrf.mxu0 }
 0x2d1   : > { %v6097_v9 = vpop.f32.mrf.mxu1  ;;  %v6058_v14 = vadd.f32 %v6057_v58, %v6056_v28  ;;  %v8567_v58 = vadd.f32 %v6095_v32, %v4006_v4 }
 0x2d2   : > { %v6059_v49 = vpop.f32.mrf.mxu0  ;;  %v6098_v31 = vadd.f32 %v6097_v9, %v6096_v50  ;;  %v4335_v9 = vadd.f32 %v8555_v55, %v8559_v35 }
 0x2d3   : > { %v6099_v7 = vpop.f32.mrf.mxu1  ;;  %v8572_v36 = vadd.f32 %v6058_v14, %v3910_v8  ;;  %v4350_v56 = vadd.f32 %v4349_v15, %v8567_v58  ;;  %v8841_v8 = vld [vmem:[#allocation19_spill] sm:$0xff] }
 0x2d4   : > { %v6060_v17 = vpop.f32.mrf.mxu0  ;;  %v8577_v10 = vadd.f32 %v6098_v31, %v4007_v60  ;;  %v4336_v5 = vadd.f32 %v4335_v9, %v8561_v21  ;;  %v6030_v41 = vadd.f32 %v8841_v8, %v8840_v39  ;;  %v3688_v31 = vadd.f32 %v8545_v2, %v8843_v59 }
 0x2d5   : > { %v6100_v46 = vpop.f32.mrf.mxu1  ;;  %v6061_v57 = vadd.f32 %v6060_v17, %v6059_v49  ;;  %v8839_v49 = vld [vmem:[#allocation17_spill] sm:$0xff] }
 0x2d6   : > { %v6062_v25 = vpop.f32.mrf.mxu0  ;;  %v6101_v28 = vadd.f32 %v6100_v46, %v6099_v7  ;;  %v5990_v33 = vadd.f32 %v8839_v49, %v8838_v48  ;;  %v4337_v4 = vadd.f32 %v4336_v5, %v8572_v36  ;;  %v4351_v60 = vadd.f32 %v4350_v56, %v8577_v10 }
 0x2d7   : > { %v6102_v53 = vpop.f32.mrf.mxu1  ;;  %v8582_v44 = vadd.f32 %v6061_v57, %v3911_v22 }
 0x2d8   : > { %v6063_v45 = vpop.f32.mrf.mxu0  ;;  %v8587_v42 = vadd.f32 %v6101_v28, %v4008_v38  ;;  %v4011_v28 = vadd.f32 %v6030_v41, %v3688_v31 }
 0x2d9   : > { %v6064_v61 = vadd.f32 %v6063_v45, %v6062_v25  ;;  %v6103_v40 = vpop.f32.mrf.mxu1  ;;  %v4338_v14 = vadd.f32 %v4337_v4, %v8582_v44 }
 0x2da   : > { %v6104_v50 = vadd.f32 %v6103_v40, %v6102_v53  ;;  %v6065_v6 = vpop.f32.mrf.mxu0  ;;  %v4352_v25 = vadd.f32 %v4351_v60, %v8587_v42  ;;  %v3914_v53 = vadd.f32 %v5990_v33, %v3591_v51 }
 0x2db   : > { %v6105_v29 = vpop.f32.mrf.mxu1  ;;  %v8592_v20 = vadd.f32 %v6064_v61, %v3912_v16 }
 0x2dc   : > { %v6066_v12 = vpop.f32.mrf.mxu0  ;;  %v8597_v18 = vadd.f32 %v6104_v50, %v4009_v26 }
 0x2dd   : > { %v6067_v30 = vadd.f32 %v6066_v12, %v6065_v6  ;;  %v6106_v7 = vpop.f32.mrf.mxu1  ;;  %v4339_v3 = vadd.f32 %v4338_v14, %v8592_v20 }
 0x2de   : > { %v6107_v32 = vadd.f32 %v6106_v7, %v6105_v29  ;;  %v6068_v17 = vpop.f32.mrf.mxu0  ;;  %v4353_v37 = vadd.f32 %v4352_v25, %v8597_v18 }
 0x2df   : > { %v8602_v46 = vadd.f32 %v6067_v30, %v3913_v11  ;;  %v6108_v13 = vpop.f32.mrf.mxu1 }
 0x2e0   : > { %v8607_v34 = vadd.f32 %v6107_v32, %v4010_v1  ;;  %v6069_v57 = vpop.f32.mrf.mxu0 }
 0x2e1   : > { %v6070_v19 = vadd.f32 %v6069_v57, %v6068_v17  ;;  %v6109_v0 = vpop.f32.mrf.mxu1  ;;  %v4340_v47 = vadd.f32 %v4339_v3, %v8602_v46 }
 0x2e2   : > { %v6110_v45 = vadd.f32 %v6109_v0, %v6108_v13  ;;  %v4354_v2 = vadd.f32 %v4353_v37, %v8607_v34 }
 0x2e3   : > { %v8612_v22 = vadd.f32 %v6070_v19, %v3914_v53 }
 0x2e4   : > { %v8615_v9 = vadd.f32 %v6110_v45, %v4011_v28 }
 0x2e5   : > { %v4341_v61 = vadd.f32 %v4340_v47, %v8612_v22 }
 0x2e6   : > { %v4355_v40 = vadd.f32 %v4354_v2, %v8615_v9 }
 0x2e7   : > { %v4342_v27 = vrot.slane %v4341_v61, 4 }
 0x2e8   : > { %v4356_v38 = vrot.slane %v4355_v40, 4 }
 0x2e9   : > { %v4343_v15 = vadd.f32 %v4342_v27, %v4341_v61 }
 0x2ea   : > { %v4357_v50 = vadd.f32 %v4356_v38, %v4355_v40 }
 0x2eb   : > { %v4344_v6 = vrot.slane %v4343_v15, 2 }
 0x2ec   : > { %v4358_v23 = vrot.slane %v4357_v50, 2 }
 0x2ed   : > { %v4345_v16 = vadd.f32 %v4344_v6, %v4343_v15 }
 0x2ee   : > { %v4359_v52 = vadd.f32 %v4358_v23, %v4357_v50 }
 0x2ef   : > { %v4346_v26 = vrot.slane %v4345_v16, 1 }
 0x2f0   : > { %v4360_v5 = vrot.slane %v4359_v52, 1 }
 0x2f1   : > { %v4347_v29 = vadd.f32 %v4346_v26, %v4345_v16 }
 0x2f2   : > { %v4361_v63 = vadd.f32 %v4360_v5, %v4359_v52 }
 0x2f4   : > { %v4362_v11 = vadd.f32 %v4361_v63, %v4347_v29 }
 0x2f6   : > { %v8619_v43 = vmul.f32 0.0078125, %v4362_v11 }
 0x2f8   : > { %v4364_v1 = vsub.f32 %v8559_v35, %v8619_v43  ;;  %v4365_v56 = vsub.f32 %v8555_v55, %v8619_v43  ;;  %v4366_v12 = vsub.f32 %v8561_v21, %v8619_v43  ;;  %v4367_v48 = vsub.f32 %v8572_v36, %v8619_v43 }
 0x2f9   : > { %v4368_v4 = vsub.f32 %v8582_v44, %v8619_v43  ;;  %v4394_v39 = vsub.f32 %v8565_v54, %v8619_v43  ;;  %v4395_v8 = vsub.f32 %v8557_v62, %v8619_v43  ;;  %v4396_v41 = vsub.f32 %v8567_v58, %v8619_v43 }
 0x2fa   : > { %v4372_v49 = vmul.f32 %v4364_v1, %v4364_v1  ;;  %v4373_v33 = vmul.f32 %v4365_v56, %v4365_v56  ;;  %v4374_v30 = vmul.f32 %v4366_v12, %v4366_v12  ;;  %v4369_v60 = vsub.f32 %v8592_v20, %v8619_v43 }
 0x2fb   : > { %v4375_v32 = vmul.f32 %v4367_v48, %v4367_v48  ;;  %v4397_v24 = vsub.f32 %v8577_v10, %v8619_v43  ;;  %v4402_v51 = vmul.f32 %v4394_v39, %v4394_v39  ;;  %v4403_v14 = vmul.f32 %v4395_v8, %v4395_v8 }
 0x2fc   : > { %v4380_v7 = vadd.f32 %v4373_v33, %v4372_v49  ;;  %v4370_v13 = vsub.f32 %v8602_v46, %v8619_v43  ;;  %v4376_v59 = vmul.f32 %v4368_v4, %v4368_v4  ;;  %v4398_v25 = vsub.f32 %v8587_v42, %v8619_v43 }
 0x2fd   : > { %v4404_v57 = vmul.f32 %v4396_v41, %v4396_v41  ;;  %v4410_v53 = vadd.f32 %v4403_v14, %v4402_v51  ;;  %v4371_v3 = vsub.f32 %v8612_v22, %v8619_v43  ;;  %v4377_v19 = vmul.f32 %v4369_v60, %v4369_v60 }
 0x2fe   : > { %v4381_v17 = vadd.f32 %v4380_v7, %v4374_v30  ;;  %v4399_v28 = vsub.f32 %v8597_v18, %v8619_v43  ;;  %v4405_v37 = vmul.f32 %v4397_v24, %v4397_v24  ;;  %v4378_v47 = vmul.f32 %v4370_v13, %v4370_v13 }
 0x2ff   : > { %v4411_v45 = vadd.f32 %v4410_v53, %v4404_v57  ;;  %v4400_v61 = vsub.f32 %v8607_v34, %v8619_v43  ;;  %v4406_v40 = vmul.f32 %v4398_v25, %v4398_v25  ;;  %v4379_v38 = vmul.f32 %v4371_v3, %v4371_v3  ;;  %v4427_v53 = vld [vmem:[%s1447_s20] sm:$0x1] }
 0x300   : > { %v4382_v31 = vadd.f32 %v4381_v17, %v4375_v32  ;;  %v4401_v50 = vsub.f32 %v8615_v9, %v8619_v43  ;;  %v4407_v6 = vmul.f32 %v4399_v28, %v4399_v28  ;;  %v4435_v41 = vlaneseq  ;;  %v4429_v28 = vld [vmem:[%s1450_s28] sm:$0x1] }
 0x301   : > { %v4412_v27 = vadd.f32 %v4411_v45, %v4405_v37  ;;  %v4408_v52 = vmul.f32 %v4400_v61, %v4400_v61  ;;  %v6310_v60 = vmov 1966171168  }
 0x302   : > { %v4383_v0 = vadd.f32 %v4382_v31, %v4376_v59  ;;  %v4409_v29 = vmul.f32 %v4401_v50, %v4401_v50  ;;  %v4481_v32 = vunpack.c.l.s4 %v6310_v60  ;;  %v4436_v51 = vshrl.u32 %v4435_v41, 7  ;;  %v4432_v31 = vld [vmem:[%s1454_s27] sm:$0x3] }
 0x303   : > { %v4413_v23 = vadd.f32 %v4412_v27, %v4406_v40 }
 0x304   : > { %v4384_v2 = vadd.f32 %v4383_v0, %v4377_v19  ;;  %v4482_v14 = vunpack.c.0.s8 %v4481_v32  ;;  %v4437_v37 = vsub.s32 0, %v4436_v51 }
 0x305   : > { %v4414_v26 = vadd.f32 %v4413_v23, %v4407_v6 }
 0x306   : > { %v4385_v15 = vadd.f32 %v4384_v2, %v4378_v47  ;;  %v4485_v59 = vsub.s32 %v4482_v14, %v4436_v51 }
 0x307   : > { %v4415_v63 = vadd.f32 %v4414_v26, %v4408_v52 }
 0x308   : > { %v4386_v16 = vadd.f32 %v4385_v15, %v4379_v38  ;;  %v4486_v25 = vrot.slane %v4432_v31, %v4485_v59 }
 0x309   : > { %v4416_v1 = vadd.f32 %v4415_v63, %v4409_v29 }
 0x30a   : > { %v4387_v5 = vrot.slane %v4386_v16, 4  ;;  %v4487_v57 = vcombine.high %v4486_v25, %v4486_v25 }
 0x30b   : > { %v4417_v12 = vrot.slane %v4416_v1, 4 }
 0x30c   : > { %v4388_v11 = vadd.f32 %v4387_v5, %v4386_v16  ;;  %v4494_v19 = vrot.slane %v4487_v57, %v4485_v59 }
 0x30d   : > { %v4418_v49 = vadd.f32 %v4417_v12, %v4416_v1 }
 0x30e   : > { %v4389_v56 = vrot.slane %v4388_v11, 2 }
 0x30f   : > { %v4419_v4 = vrot.slane %v4418_v49, 2 }
 0x310   : > { %v4390_v48 = vadd.f32 %v4389_v56, %v4388_v11 }
 0x311   : > { %v4420_v30 = vadd.f32 %v4419_v4, %v4418_v49 }
 0x312   : > { %v4391_v33 = vrot.slane %v4390_v48, 1 }
 0x313   : > { %v4421_v39 = vrot.slane %v4420_v30, 1 }
 0x314   : > { %v4392_v7 = vadd.f32 %v4391_v33, %v4390_v48 }
 0x315   : > { %v4422_v8 = vadd.f32 %v4421_v39, %v4420_v30 }
 0x317   : > { %v4423_v17 = vadd.f32 %v4422_v8, %v4392_v7 }
 0x319   : > { %v4424_v24 = vmul.f32 0.0078125, %v4423_v17 }
 0x31b   : > { %v4425_v13 = vadd.f32 1e-05, %v4424_v24 }
 0x31d   : > { %6282 = vrsqrt.f32 %v4425_v13 }
 0x32a   : > { %v6283_v3 = vpop.eup %6282 }
 0x32b   : > { %v4428_v0 = vmul.f32 %v6283_v3, %v4427_v53 }
 0x32d   : > { %v4430_v45 = vmul.f32 %v4428_v0, %v8619_v43  ;;  %v4433_v47 = vmul.f32 %v4432_v31, %v4428_v0  ;;  %v4496_v2 = vmul.f32 %v4494_v19, %v4428_v0 }
 0x32f   : > { %v4431_v61 = vsub.f32 %v4429_v28, %v4430_v45  ;;  %v4438_v40 = vrot.slane %v4433_v47, %v4437_v37  ;;  %v4501_v27 = vrot.slane %v4496_v2, %v4437_v37 }
 0x331   : > { %v4448_v38 = vmul.f32 %v4432_v31, %v4431_v61  ;;  %v4440_v15 = vmul.f32 %v4438_v40, %v8559_v35  ;;  %v4441_v50 = vmul.f32 %v4438_v40, %v8555_v55  ;;  %v4442_v6 = vmul.f32 %v4438_v40, %v8561_v21 }
 0x332   : > { %v4443_v23 = vmul.f32 %v4438_v40, %v8572_v36  ;;  %v4444_v16 = vmul.f32 %v4438_v40, %v8582_v44  ;;  %v4445_v43 = vmul.f32 %v4438_v40, %v8592_v20  ;;  %v4446_v26 = vmul.f32 %v4438_v40, %v8602_v46 }
 0x333   : > { %v4453_v52 = vrot.slane %v4448_v38, %v4437_v37  ;;  %v4447_v5 = vmul.f32 %v4438_v40, %v8612_v22  ;;  %v4503_v29 = vmul.f32 %v4501_v27, %v8565_v54  ;;  %v4511_v35 = vmul.f32 %v4494_v19, %v4431_v61 }
 0x334   : > { %v4504_v54 = vmul.f32 %v4501_v27, %v8557_v62  ;;  %v4505_v22 = vmul.f32 %v4501_v27, %v8567_v58  ;;  %v4506_v7 = vmul.f32 %v4501_v27, %v8577_v10  ;;  %v4507_v8 = vmul.f32 %v4501_v27, %v8587_v42 }
 0x335   : > { %v4455_v63 = vadd.f32 %v4453_v52, %v4440_v15  ;;  %v4456_v55 = vadd.f32 %v4453_v52, %v4441_v50  ;;  %v4457_v11 = vadd.f32 %v4453_v52, %v4442_v6  ;;  %v4458_v21 = vadd.f32 %v4453_v52, %v4443_v23 }
 0x336   : > { %v4459_v1 = vadd.f32 %v4453_v52, %v4444_v16  ;;  %v4460_v56 = vadd.f32 %v4453_v52, %v4445_v43  ;;  %v4461_v12 = vadd.f32 %v4453_v52, %v4446_v26  ;;  %v4462_v36 = vadd.f32 %v4453_v52, %v4447_v5 }
 0x337   : > { %v4463_v48 = vmax.f32 %v4455_v63, 0.0  ;;  %v4464_v44 = vmax.f32 %v4456_v55, 0.0  ;;  %v4465_v49 = vmax.f32 %v4457_v11, 0.0  ;;  %v4466_v20 = vmax.f32 %v4458_v21, 0.0 }
 0x338   : > { %v4467_v33 = vmax.f32 %v4459_v1, 0.0  ;;  %v4468_v4 = vmax.f32 %v4460_v56, 0.0  ;;  %v4469_v46 = vmax.f32 %v4461_v12, 0.0  ;;  %v4470_v30 = vmax.f32 %v4462_v36, 0.0 }
 0x339   : > { %4471 = vst [vmem:[%s8676_s18] sm:$0xff] %v4463_v48  ;;  %4472 = vst [vmem:[%s8676_s18 + $0x8] sm:$0xff] %v4464_v44  ;;  %v4516_v39 = vrot.slane %v4511_v35, %v4437_v37  ;;  %v4508_v41 = vmul.f32 %v4501_v27, %v8597_v18  ;;  %v4509_v60 = vmul.f32 %v4501_v27, %v8607_v34 }
 0x33a   : > { %4473 = vst [vmem:[%s8676_s18 + $0x10] sm:$0xff] %v4465_v49  ;;  %4474 = vst [vmem:[%s8676_s18 + $0x18] sm:$0xff] %v4466_v20  ;;  %v4510_v32 = vmul.f32 %v4501_v27, %v8615_v9 }
 0x33b   : > { %4475 = vst [vmem:[%s8676_s18 + $0x20] sm:$0xff] %v4467_v33  ;;  %4476 = vst [vmem:[%s8676_s18 + $0x28] sm:$0xff] %v4468_v4  ;;  %v4518_v17 = vadd.f32 %v4516_v39, %v4503_v29  ;;  %v4519_v62 = vadd.f32 %v4516_v39, %v4504_v54  ;;  %v4520_v58 = vadd.f32 %v4516_v39, %v4505_v22 }
 0x33c   : > { %4477 = vst [vmem:[%s8676_s18 + $0x30] sm:$0xff] %v4469_v46  ;;  %4478 = vst [vmem:[%s8676_s18 + $0x38] sm:$0xff] %v4470_v30  ;;  %v4521_v10 = vadd.f32 %v4516_v39, %v4506_v7  ;;  %v4522_v24 = vadd.f32 %v4516_v39, %v4507_v8  ;;  %v4523_v51 = vadd.f32 %v4516_v39, %v4508_v41 }
 0x33d   : > { %v4524_v14 = vadd.f32 %v4516_v39, %v4509_v60  ;;  %v4525_v42 = vadd.f32 %v4516_v39, %v4510_v32  ;;  %v4526_v18 = vmax.f32 %v4518_v17, 0.0  ;;  %v4527_v34 = vmax.f32 %v4519_v62, 0.0 }
 0x33e   : > { %v4528_v13 = vmax.f32 %v4520_v58, 0.0  ;;  %v4529_v9 = vmax.f32 %v4521_v10, 0.0  ;;  %v4530_v59 = vmax.f32 %v4522_v24, 0.0  ;;  %v4531_v31 = vmax.f32 %v4523_v51, 0.0  ;;  %4549 = sbr.rel (!%p6372_p5) target bundleno = 843 (0x34b), region = 85 }
 0x33f   : > { %v4532_v25 = vmax.f32 %v4524_v14, 0.0  ;;  %v4533_v57 = vmax.f32 %v4525_v42, 0.0  ;;  %5379 = vst [vmem:[%s8676_s18 + $0x40] sm:$0xff] %v4526_v18  ;;  %5380 = vst [vmem:[%s8676_s18 + $0x48] sm:$0xff] %v4527_v34 }
 0x340   : > { %5381 = vst [vmem:[%s8676_s18 + $0x50] sm:$0xff] %v4528_v13  ;;  %5382 = vst [vmem:[%s8676_s18 + $0x58] sm:$0xff] %v4529_v9  ;;  %v4610_v53 = vld [vmem:[%s8676_s18] sm:$0xff] (%p6372_p5)  ;;  %v4612_v3 = vld [vmem:[%s8676_s18 + $0x8] sm:$0xff] (%p6372_p5) }
 0x341   : > { %5383 = vst [vmem:[%s8676_s18 + $0x60] sm:$0xff] %v4530_v59  ;;  %5384 = vst [vmem:[%s8676_s18 + $0x68] sm:$0xff] %v4531_v31  ;;  %v4614_v19 = vld [vmem:[%s8676_s18 + $0x10] sm:$0xff] (%p6372_p5)  ;;  %v4616_v0 = vld [vmem:[%s8676_s18 + $0x18] sm:$0xff] (%p6372_p5) }
 0x342   : > { %5385 = vst [vmem:[%s8676_s18 + $0x70] sm:$0xff] %v4532_v25  ;;  %5386 = vst [vmem:[%s8676_s18 + $0x78] sm:$0xff] %v4533_v57  ;;  %v4618_v28 = vld [vmem:[%s8676_s18 + $0x20] sm:$0xff] (%p6372_p5)  ;;  %v4620_v37 = vld [vmem:[%s8676_s18 + $0x28] sm:$0xff] (%p6372_p5) }
 0x343   : > { %4611 = vst [vmem:[%s4551_s7] sm:$0xff] %v4610_v53  ;;  %4613 = vst [vmem:[%s4551_s7 + $0x10] sm:$0xff] %v4612_v3  ;;  %v4622_v45 = vld [vmem:[%s8676_s18 + $0x30] sm:$0xff]  ;;  %v4624_v47 = vld [vmem:[%s8676_s18 + $0x38] sm:$0xff] }
 0x344   : > { %4615 = vst [vmem:[%s4551_s7 + $0x20] sm:$0xff] %v4614_v19  ;;  %4617 = vst [vmem:[%s4551_s7 + $0x30] sm:$0xff] %v4616_v0 }
 0x345   : > { %4619 = vst [vmem:[%s4551_s7 + $0x40] sm:$0xff] %v4618_v28  ;;  %4621 = vst [vmem:[%s4551_s7 + $0x50] sm:$0xff] %v4620_v37 }
 0x346   : > { %v4626_v2 = vld [vmem:[%s8676_s18 + $0x40] sm:$0xff]  ;;  %4623 = vst [vmem:[%s4551_s7 + $0x60] sm:$0xff] %v4622_v45  ;;  %4625 = vst [vmem:[%s4551_s7 + $0x70] sm:$0xff] %v4624_v47  ;;  %v4628_v61 = vld [vmem:[%s8676_s18 + $0x48] sm:$0xff] }
 0x347   : > { %4627 = vst [vmem:[%s4551_s7 + $0x80] sm:$0xff] %v4626_v2  ;;  %v4630_v40 = vld [vmem:[%s8676_s18 + $0x50] sm:$0xff]  ;;  %v4632_v27 = vld [vmem:[%s8676_s18 + $0x58] sm:$0xff]  ;;  %4629 = vst [vmem:[%s4551_s7 + $0x90] sm:$0xff] %v4628_v61 }
 0x348   : > { %4631 = vst [vmem:[%s4551_s7 + $0xa0] sm:$0xff] %v4630_v40  ;;  %4633 = vst [vmem:[%s4551_s7 + $0xb0] sm:$0xff] %v4632_v27  ;;  %v4634_v38 = vld [vmem:[%s8676_s18 + $0x60] sm:$0xff]  ;;  %v4636_v15 = vld [vmem:[%s8676_s18 + $0x68] sm:$0xff] }
 0x349   : > { %v4638_v50 = vld [vmem:[%s8676_s18 + $0x70] sm:$0xff]  ;;  %4635 = vst [vmem:[%s4551_s7 + $0xc0] sm:$0xff] %v4634_v38  ;;  %4637 = vst [vmem:[%s4551_s7 + $0xd0] sm:$0xff] %v4636_v15  ;;  %v4640_v6 = vld [vmem:[%s8676_s18 + $0x78] sm:$0xff] }
 0x34a   : > { %4639 = vst [vmem:[%s4551_s7 + $0xe0] sm:$0xff] %v4638_v50  ;;  %4641 = vst [vmem:[%s4551_s7 + $0xf0] sm:$0xff] %v4640_v6 }
 0x34b PF: > { %p12_p11 = scmp.ge.s32.totalorder %s6360_s22, 4   ;;  %s8844_s18 = smov %s6304_s19 }
 0x34c   : > { %s8845_s19 = smov %s6370_s25  ;;  %s8846_s20 = smov %s6360_s22 }
 0x34d   :  { %14 = sbr.rel (!%p12_p11) target bundleno = 2 (0x2), region = 177 }

// kernel: dropout_head_forward.10
= control target key start
LH: loop header
LB: loop body
LE: loop exit
PB: predicated region body
PF: predicated region fallthrough
CT: control target
= control target key end

     0   :  { %s3240_s18 = smov 0   ;;  %s3242_s19 = smov 0   ;;  %s4252_s0 = inlined_call_operand.vmem [shape: bf16[128,256], index: 0, kind: input, shape index: {}]   ;;  %s4253_s1 = inlined_call_operand.vmem [shape: bf16[256,1024], index: 1, kind: input, shape index: {}]   ;;  %s4254_s2 = inlined_call_operand.vmem [shape: f32[1,256], index: 2, kind: input, shape index: {}]   ;;  %s4255_s3 = inlined_call_operand.vmem [shape: f32[1,256], index: 3, kind: input, shape index: {}]   ;;  %s4256_s4 = inlined_call_operand.vmem [shape: f32[2,256], index: 4, kind: input, shape index: {}]   ;;  %s4257_s5 = inlined_call_operand.vmem [shape: bf16[4,2,64,256], index: 5, kind: output, shape index: {}]  }
   0x1   :  { %s3244_s20 = smov 0  }
   0x2 LB: > { %s3256_s21 = sadd.s32 4294967295, %s3207_s20   ;;  %s3259_s22 = sadd.s32 1, %s3207_s20   ;;  %s3207_s20 = sphi %s3244_s20, %s4416_s20   ;;  %s3203_s19 = sphi %s3242_s19, %s4415_s19   ;;  %s3199_s18 = sphi %s3240_s18, %s4414_s18  }
   0x3   : > { %s40_s23 = ssub.s32 %s3207_s20, %s3259_s22  ;;  %s43_s24 = sadd.s32 1, %s3203_s19 }
   0x4   : > { %p41_p0 = scmp.eq.s32.totalorder %s40_s23, 0  ;;  %p50_p1 = scmp.ne.s32.totalorder %s3203_s19, %s3199_s18 }
   0x5   : > { %p51_p2 = scmp.eq.s32.totalorder %s3207_s20, 0  ;;  %p158_p3 = scmp.eq.s32.totalorder %s3256_s21, 1 }
   0x6   : > { %s3269_s25 = scalar_select %p41_p0, %s3203_s19, %s43_s24  }
   0x7   : > { %p52_p4 = por %p51_p2, %p50_p1  ;;  %p3271_p5 = por %p158_p3, %p50_p1 }
   0x8   : > { %p2570_p6 = scmp.ge.s32.totalorder %s3207_s20, 2 }
   0xa   : > { %183 = sbr.rel (%p2570_p6) target bundleno = 51 (0x33), region = 20 }
   0xf   : > { %186 = sbr.rel (!%p52_p4) target bundleno = 51 (0x33), region = 24  ;;  %s188_s27 = sand.u32 (%p52_p4), 1, %s3203_s19  }
  0x10   : > { %s2782_s28 = sshll.u32 (%p52_p4), %s3207_s20, 4  ;;  %s2571_s29 = sshll.u32 (%p52_p4), %s188_s27, 9 }
  0x11   : > { %s3281_s7 = scalar_lea.vmem (%p52_p4), %s4253_s1, %s2782_s28  ;;  %s3286_s8 = scalar_lea.vmem (%p52_p4), [#allocation3], %s2571_s29 }
  0x12   : > { %v206_v0 = vld [vmem:[%s3281_s7] sm:$0xff] (%p52_p4)  ;;  %v208_v1 = vld [vmem:[%s3281_s7 + $0x8] sm:$0xff] (%p52_p4) }
  0x13   : > { %v210_v2 = vld [vmem:[%s3281_s7 + $0x20] sm:$0xff] (%p52_p4)  ;;  %207 = vst [vmem:[%s3286_s8] sm:$0xff] (%p52_p4), %v206_v0  ;;  %209 = vst [vmem:[%s3286_s8 + $0x8] sm:$0xff] (%p52_p4), %v208_v1  ;;  %v212_v3 = vld [vmem:[%s3281_s7 + $0x28] sm:$0xff] (%p52_p4) }
  0x14   : > { %211 = vst [vmem:[%s3286_s8 + $0x10] sm:$0xff] %v210_v2  ;;  %v214_v4 = vld [vmem:[%s3281_s7 + $0x40] sm:$0xff]  ;;  %v216_v5 = vld [vmem:[%s3281_s7 + $0x48] sm:$0xff]  ;;  %213 = vst [vmem:[%s3286_s8 + $0x18] sm:$0xff] %v212_v3 }
  0x15   : > { %215 = vst [vmem:[%s3286_s8 + $0x20] sm:$0xff] %v214_v4  ;;  %217 = vst [vmem:[%s3286_s8 + $0x28] sm:$0xff] %v216_v5  ;;  %v218_v6 = vld [vmem:[%s3281_s7 + $0x60] sm:$0xff]  ;;  %v220_v7 = vld [vmem:[%s3281_s7 + $0x68] sm:$0xff] }
  0x16   : > { %v222_v8 = vld [vmem:[%s3281_s7 + $0x80] sm:$0xff]  ;;  %219 = vst [vmem:[%s3286_s8 + $0x30] sm:$0xff] %v218_v6  ;;  %221 = vst [vmem:[%s3286_s8 + $0x38] sm:$0xff] %v220_v7  ;;  %v224_v9 = vld [vmem:[%s3281_s7 + $0x88] sm:$0xff] }
  0x17   : > { %223 = vst [vmem:[%s3286_s8 + $0x40] sm:$0xff] %v222_v8  ;;  %v226_v10 = vld [vmem:[%s3281_s7 + $0xa0] sm:$0xff]  ;;  %v228_v11 = vld [vmem:[%s3281_s7 + $0xa8] sm:$0xff]  ;;  %225 = vst [vmem:[%s3286_s8 + $0x48] sm:$0xff] %v224_v9 }
  0x18   : > { %227 = vst [vmem:[%s3286_s8 + $0x50] sm:$0xff] %v226_v10  ;;  %229 = vst [vmem:[%s3286_s8 + $0x58] sm:$0xff] %v228_v11  ;;  %v230_v12 = vld [vmem:[%s3281_s7 + $0xc0] sm:$0xff]  ;;  %v232_v13 = vld [vmem:[%s3281_s7 + $0xc8] sm:$0xff] }
  0x19   : > { %v234_v14 = vld [vmem:[%s3281_s7 + $0xe0] sm:$0xff]  ;;  %231 = vst [vmem:[%s3286_s8 + $0x60] sm:$0xff] %v230_v12  ;;  %233 = vst [vmem:[%s3286_s8 + $0x68] sm:$0xff] %v232_v13  ;;  %v236_v15 = vld [vmem:[%s3281_s7 + $0xe8] sm:$0xff] }
  0x1a   : > { %235 = vst [vmem:[%s3286_s8 + $0x70] sm:$0xff] %v234_v14  ;;  %v238_v16 = vld [vmem:[%s3281_s7 + $0x100] sm:$0xff]  ;;  %v240_v17 = vld [vmem:[%s3281_s7 + $0x108] sm:$0xff]  ;;  %237 = vst [vmem:[%s3286_s8 + $0x78] sm:$0xff] %v236_v15 }
  0x1b   : > { %239 = vst [vmem:[%s3286_s8 + $0x80] sm:$0xff] %v238_v16  ;;  %241 = vst [vmem:[%s3286_s8 + $0x88] sm:$0xff] %v240_v17  ;;  %v242_v18 = vld [vmem:[%s3281_s7 + $0x120] sm:$0xff]  ;;  %v244_v19 = vld [vmem:[%s3281_s7 + $0x128] sm:$0xff] }
  0x1c   : > { %v246_v20 = vld [vmem:[%s3281_s7 + $0x140] sm:$0xff]  ;;  %243 = vst [vmem:[%s3286_s8 + $0x90] sm:$0xff] %v242_v18  ;;  %245 = vst [vmem:[%s3286_s8 + $0x98] sm:$0xff] %v244_v19  ;;  %v248_v21 = vld [vmem:[%s3281_s7 + $0x148] sm:$0xff] }
  0x1d   : > { %247 = vst [vmem:[%s3286_s8 + $0xa0] sm:$0xff] %v246_v20  ;;  %v250_v22 = vld [vmem:[%s3281_s7 + $0x160] sm:$0xff]  ;;  %v252_v23 = vld [vmem:[%s3281_s7 + $0x168] sm:$0xff]  ;;  %249 = vst [vmem:[%s3286_s8 + $0xa8] sm:$0xff] %v248_v21 }
  0x1e   : > { %251 = vst [vmem:[%s3286_s8 + $0xb0] sm:$0xff] %v250_v22  ;;  %253 = vst [vmem:[%s3286_s8 + $0xb8] sm:$0xff] %v252_v23  ;;  %v254_v24 = vld [vmem:[%s3281_s7 + $0x180] sm:$0xff]  ;;  %v256_v25 = vld [vmem:[%s3281_s7 + $0x188] sm:$0xff] }
  0x1f   : > { %v258_v26 = vld [vmem:[%s3281_s7 + $0x1a0] sm:$0xff]  ;;  %255 = vst [vmem:[%s3286_s8 + $0xc0] sm:$0xff] %v254_v24  ;;  %257 = vst [vmem:[%s3286_s8 + $0xc8] sm:$0xff] %v256_v25  ;;  %v260_v27 = vld [vmem:[%s3281_s7 + $0x1a8] sm:$0xff] }
  0x20   : > { %259 = vst [vmem:[%s3286_s8 + $0xd0] sm:$0xff] %v258_v26  ;;  %v262_v28 = vld [vmem:[%s3281_s7 + $0x1c0] sm:$0xff]  ;;  %v264_v29 = vld [vmem:[%s3281_s7 + $0x1c8] sm:$0xff]  ;;  %261 = vst [vmem:[%s3286_s8 + $0xd8] sm:$0xff] %v260_v27 }
  0x21   : > { %263 = vst [vmem:[%s3286_s8 + $0xe0] sm:$0xff] %v262_v28  ;;  %265 = vst [vmem:[%s3286_s8 + $0xe8] sm:$0xff] %v264_v29  ;;  %v266_v30 = vld [vmem:[%s3281_s7 + $0x1e0] sm:$0xff]  ;;  %v268_v31 = vld [vmem:[%s3281_s7 + $0x1e8] sm:$0xff] }
  0x22   : > { %v270_v32 = vld [vmem:[%s3281_s7 + $0x200] sm:$0xff]  ;;  %267 = vst [vmem:[%s3286_s8 + $0xf0] sm:$0xff] %v266_v30  ;;  %269 = vst [vmem:[%s3286_s8 + $0xf8] sm:$0xff] %v268_v31  ;;  %v272_v33 = vld [vmem:[%s3281_s7 + $0x208] sm:$0xff] }
  0x23   : > { %271 = vst [vmem:[%s3286_s8 + $0x100] sm:$0xff] %v270_v32  ;;  %v274_v34 = vld [vmem:[%s3281_s7 + $0x220] sm:$0xff]  ;;  %v276_v35 = vld [vmem:[%s3281_s7 + $0x228] sm:$0xff]  ;;  %273 = vst [vmem:[%s3286_s8 + $0x108] sm:$0xff] %v272_v33 }
  0x24   : > { %275 = vst [vmem:[%s3286_s8 + $0x110] sm:$0xff] %v274_v34  ;;  %277 = vst [vmem:[%s3286_s8 + $0x118] sm:$0xff] %v276_v35  ;;  %v278_v36 = vld [vmem:[%s3281_s7 + $0x240] sm:$0xff]  ;;  %v280_v37 = vld [vmem:[%s3281_s7 + $0x248] sm:$0xff] }
  0x25   : > { %v282_v38 = vld [vmem:[%s3281_s7 + $0x260] sm:$0xff]  ;;  %279 = vst [vmem:[%s3286_s8 + $0x120] sm:$0xff] %v278_v36  ;;  %281 = vst [vmem:[%s3286_s8 + $0x128] sm:$0xff] %v280_v37  ;;  %v284_v39 = vld [vmem:[%s3281_s7 + $0x268] sm:$0xff] }
  0x26   : > { %283 = vst [vmem:[%s3286_s8 + $0x130] sm:$0xff] %v282_v38  ;;  %v286_v40 = vld [vmem:[%s3281_s7 + $0x280] sm:$0xff]  ;;  %v288_v41 = vld [vmem:[%s3281_s7 + $0x288] sm:$0xff]  ;;  %285 = vst [vmem:[%s3286_s8 + $0x138] sm:$0xff] %v284_v39 }
  0x27   : > { %287 = vst [vmem:[%s3286_s8 + $0x140] sm:$0xff] %v286_v40  ;;  %289 = vst [vmem:[%s3286_s8 + $0x148] sm:$0xff] %v288_v41  ;;  %v290_v42 = vld [vmem:[%s3281_s7 + $0x2a0] sm:$0xff]  ;;  %v292_v43 = vld [vmem:[%s3281_s7 + $0x2a8] sm:$0xff] }
  0x28   : > { %v294_v44 = vld [vmem:[%s3281_s7 + $0x2c0] sm:$0xff]  ;;  %291 = vst [vmem:[%s3286_s8 + $0x150] sm:$0xff] %v290_v42  ;;  %293 = vst [vmem:[%s3286_s8 + $0x158] sm:$0xff] %v292_v43  ;;  %v296_v45 = vld [vmem:[%s3281_s7 + $0x2c8] sm:$0xff] }
  0x29   : > { %295 = vst [vmem:[%s3286_s8 + $0x160] sm:$0xff] %v294_v44  ;;  %v298_v46 = vld [vmem:[%s3281_s7 + $0x2e0] sm:$0xff]  ;;  %v300_v47 = vld [vmem:[%s3281_s7 + $0x2e8] sm:$0xff]  ;;  %297 = vst [vmem:[%s3286_s8 + $0x168] sm:$0xff] %v296_v45 }
  0x2a   : > { %299 = vst [vmem:[%s3286_s8 + $0x170] sm:$0xff] %v298_v46  ;;  %301 = vst [vmem:[%s3286_s8 + $0x178] sm:$0xff] %v300_v47  ;;  %v302_v48 = vld [vmem:[%s3281_s7 + $0x300] sm:$0xff]  ;;  %v304_v49 = vld [vmem:[%s3281_s7 + $0x308] sm:$0xff] }
  0x2b   : > { %v306_v50 = vld [vmem:[%s3281_s7 + $0x320] sm:$0xff]  ;;  %303 = vst [vmem:[%s3286_s8 + $0x180] sm:$0xff] %v302_v48  ;;  %305 = vst [vmem:[%s3286_s8 + $0x188] sm:$0xff] %v304_v49  ;;  %v308_v51 = vld [vmem:[%s3281_s7 + $0x328] sm:$0xff] }
  0x2c   : > { %307 = vst [vmem:[%s3286_s8 + $0x190] sm:$0xff] %v306_v50  ;;  %v310_v52 = vld [vmem:[%s3281_s7 + $0x340] sm:$0xff]  ;;  %v312_v53 = vld [vmem:[%s3281_s7 + $0x348] sm:$0xff]  ;;  %309 = vst [vmem:[%s3286_s8 + $0x198] sm:$0xff] %v308_v51 }
  0x2d   : > { %311 = vst [vmem:[%s3286_s8 + $0x1a0] sm:$0xff] %v310_v52  ;;  %313 = vst [vmem:[%s3286_s8 + $0x1a8] sm:$0xff] %v312_v53  ;;  %v314_v54 = vld [vmem:[%s3281_s7 + $0x360] sm:$0xff]  ;;  %v316_v55 = vld [vmem:[%s3281_s7 + $0x368] sm:$0xff] }
  0x2e   : > { %v318_v56 = vld [vmem:[%s3281_s7 + $0x380] sm:$0xff]  ;;  %315 = vst [vmem:[%s3286_s8 + $0x1b0] sm:$0xff] %v314_v54  ;;  %317 = vst [vmem:[%s3286_s8 + $0x1b8] sm:$0xff] %v316_v55  ;;  %v320_v57 = vld [vmem:[%s3281_s7 + $0x388] sm:$0xff] }
  0x2f   : > { %319 = vst [vmem:[%s3286_s8 + $0x1c0] sm:$0xff] %v318_v56  ;;  %v322_v58 = vld [vmem:[%s3281_s7 + $0x3a0] sm:$0xff]  ;;  %v324_v59 = vld [vmem:[%s3281_s7 + $0x3a8] sm:$0xff]  ;;  %321 = vst [vmem:[%s3286_s8 + $0x1c8] sm:$0xff] %v320_v57 }
  0x30   : > { %323 = vst [vmem:[%s3286_s8 + $0x1d0] sm:$0xff] %v322_v58  ;;  %325 = vst [vmem:[%s3286_s8 + $0x1d8] sm:$0xff] %v324_v59  ;;  %v326_v60 = vld [vmem:[%s3281_s7 + $0x3c0] sm:$0xff]  ;;  %v328_v61 = vld [vmem:[%s3281_s7 + $0x3c8] sm:$0xff] }
  0x31   : > { %v330_v62 = vld [vmem:[%s3281_s7 + $0x3e0] sm:$0xff]  ;;  %327 = vst [vmem:[%s3286_s8 + $0x1e0] sm:$0xff] %v326_v60  ;;  %329 = vst [vmem:[%s3286_s8 + $0x1e8] sm:$0xff] %v328_v61  ;;  %v332_v63 = vld [vmem:[%s3281_s7 + $0x3e8] sm:$0xff] }
  0x32   : > { %331 = vst [vmem:[%s3286_s8 + $0x1f0] sm:$0xff] %v330_v62  ;;  %333 = vst [vmem:[%s3286_s8 + $0x1f8] sm:$0xff] %v332_v63 }
  0x33 PF: > { %p2574_p7 = scmp.ge.s32.totalorder %s3207_s20, 1  ;;  %p357_p8 = scmp.lt.s32.totalorder %s3207_s20, 3 }
  0x35   : > { %p358_p9 = pnand %p2574_p7, %p357_p8 }
  0x37   : > { %361 = sbr.rel (%p358_p9) target bundleno = 598 (0x256), region = 59 }
  0x3c   : > { %s364_s9 = sand.u32 1, %s3199_s18   ;;  %v3161_v0 = vld [vmem:[%s4252_s0 + $0x4] ss:$8 sps:$4 sm:$0xff]   ;;  %p401_p10 = scmp.lt.s32.totalorder %s3256_s21, 1 }
  0x3d   : > { %s2575_s10 = sshll.u32 %s364_s9, 9  ;;  %923 = vmatprep.mubr.bf16.mxu0 %v3161_v0  ;;  %1036 = vmatprep.mubr.bf16.mxu1 %v3161_v0  ;;  %s2576_s23 = sshll.u32 %s364_s9, 8 }
  0x3e   : > { %s3421_s13 = scalar_lea.vmem [#allocation3], %s2575_s10  ;;  %s3936_s18 = scalar_lea.vmem [#allocation4], %s2576_s23 }
  0x3f   : > { %v3063_v1 = vld [vmem:[%s3421_s13 + $0xe4] ss:$16 sps:$4 sm:$0xff]   ;;  %v3065_v2 = vld [vmem:[%s3421_s13 + $0xec] ss:$16 sps:$4 sm:$0xff]   ;;  %v3067_v3 = vld [vmem:[%s3421_s13 + $0xe0] ss:$16 sps:$4 sm:$0xff]  }
  0x40   : > { %891 = vmatprep.subr.bf16.mxu0 %v3063_v1  ;;  %v3068_v4 = vld [vmem:[%s3421_s13 + $0xe8] ss:$16 sps:$4 sm:$0xff]   ;;  %1004 = vmatprep.subr.bf16.mxu1 %v3065_v2  ;;  %v3069_v5 = vld [vmem:[%s3421_s13 + $0xc4] ss:$16 sps:$4 sm:$0xff]   ;;  %v3071_v6 = vld [vmem:[%s3421_s13 + $0xcc] ss:$16 sps:$4 sm:$0xff]  }
  0x41   : > { %892 = vmatpush1.bf16.msra.mxu0 %v3067_v3  ;;  %1005 = vmatpush1.bf16.msra.mxu1 %v3068_v4  ;;  %v3073_v7 = vld [vmem:[%s3421_s13 + $0xc0] ss:$16 sps:$4 sm:$0xff]   ;;  %v3074_v8 = vld [vmem:[%s3421_s13 + $0xc8] ss:$16 sps:$4 sm:$0xff]   ;;  %v3075_v9 = vld [vmem:[%s3421_s13 + $0xa4] ss:$16 sps:$4 sm:$0xff]  }
  0x42   : > { %893 = vmatprep.subr.bf16.mxu0 %v3069_v5  ;;  %1006 = vmatprep.subr.bf16.mxu1 %v3071_v6  ;;  %v3077_v10 = vld [vmem:[%s3421_s13 + $0xac] ss:$16 sps:$4 sm:$0xff]   ;;  %v3079_v11 = vld [vmem:[%s3421_s13 + $0xa0] ss:$16 sps:$4 sm:$0xff]   ;;  %v3080_v12 = vld [vmem:[%s3421_s13 + $0xa8] ss:$16 sps:$4 sm:$0xff]  }
  0x43   : > { %v3081_v13 = vld [vmem:[%s3421_s13 + $0x84] ss:$16 sps:$4 sm:$0xff]   ;;  %v3083_v14 = vld [vmem:[%s3421_s13 + $0x8c] ss:$16 sps:$4 sm:$0xff]   ;;  %v3085_v15 = vld [vmem:[%s3421_s13 + $0x80] ss:$16 sps:$4 sm:$0xff]  }
  0x44   : > { %v3086_v16 = vld [vmem:[%s3421_s13 + $0x88] ss:$16 sps:$4 sm:$0xff]   ;;  %v3087_v17 = vld [vmem:[%s3421_s13 + $0x64] ss:$16 sps:$4 sm:$0xff]   ;;  %v3089_v18 = vld [vmem:[%s3421_s13 + $0x6c] ss:$16 sps:$4 sm:$0xff]  }
  0x45   : > { %894 = vmatpush1.bf16.msra.mxu0 %v3073_v7  ;;  %1007 = vmatpush1.bf16.msra.mxu1 %v3074_v8  ;;  %v3091_v19 = vld [vmem:[%s3421_s13 + $0x60] ss:$16 sps:$4 sm:$0xff]   ;;  %v3092_v20 = vld [vmem:[%s3421_s13 + $0x68] ss:$16 sps:$4 sm:$0xff]   ;;  %v3093_v21 = vld [vmem:[%s3421_s13 + $0x44] ss:$16 sps:$4 sm:$0xff]  }
  0x46   : > { %895 = vmatprep.subr.bf16.mxu0 %v3075_v9  ;;  %1008 = vmatprep.subr.bf16.mxu1 %v3077_v10  ;;  %v3095_v22 = vld [vmem:[%s3421_s13 + $0x4c] ss:$16 sps:$4 sm:$0xff]   ;;  %v3097_v23 = vld [vmem:[%s3421_s13 + $0x40] ss:$16 sps:$4 sm:$0xff]   ;;  %v3098_v24 = vld [vmem:[%s3421_s13 + $0x48] ss:$16 sps:$4 sm:$0xff]  }
  0x47   : > { %v3099_v25 = vld [vmem:[%s3421_s13 + $0x24] ss:$16 sps:$4 sm:$0xff]   ;;  %v3101_v26 = vld [vmem:[%s3421_s13 + $0x2c] ss:$16 sps:$4 sm:$0xff]   ;;  %v3103_v27 = vld [vmem:[%s3421_s13 + $0x20] ss:$16 sps:$4 sm:$0xff]  }
  0x48   : > { %v3104_v28 = vld [vmem:[%s3421_s13 + $0x28] ss:$16 sps:$4 sm:$0xff]   ;;  %v3105_v29 = vld [vmem:[%s3421_s13 + $0x4] ss:$16 sps:$4 sm:$0xff]   ;;  %v3107_v30 = vld [vmem:[%s3421_s13 + $0xc] ss:$16 sps:$4 sm:$0xff]  }
  0x49   : > { %896 = vmatpush1.bf16.msra.mxu0 %v3079_v11  ;;  %1009 = vmatpush1.bf16.msra.mxu1 %v3080_v12  ;;  %v3109_v31 = vld [vmem:[%s3421_s13] ss:$16 sps:$4 sm:$0xff]   ;;  %v3110_v32 = vld [vmem:[%s3421_s13 + $0x8] ss:$16 sps:$4 sm:$0xff]   ;;  %v3111_v33 = vld [vmem:[%s3421_s13 + $0x1e4] ss:$16 sps:$4 sm:$0xff]  }
  0x4a   : > { %897 = vmatprep.subr.bf16.mxu0 %v3081_v13  ;;  %1010 = vmatprep.subr.bf16.mxu1 %v3083_v14  ;;  %v3113_v34 = vld [vmem:[%s3421_s13 + $0x1ec] ss:$16 sps:$4 sm:$0xff]   ;;  %v3115_v35 = vld [vmem:[%s3421_s13 + $0x1e0] ss:$16 sps:$4 sm:$0xff]   ;;  %v3116_v36 = vld [vmem:[%s3421_s13 + $0x1e8] ss:$16 sps:$4 sm:$0xff]  }
  0x4b   : > { %v3117_v37 = vld [vmem:[%s3421_s13 + $0x1c4] ss:$16 sps:$4 sm:$0xff]   ;;  %v3119_v38 = vld [vmem:[%s3421_s13 + $0x1cc] ss:$16 sps:$4 sm:$0xff]   ;;  %v3121_v39 = vld [vmem:[%s3421_s13 + $0x1c0] ss:$16 sps:$4 sm:$0xff]  }
  0x4c   : > { %v3122_v40 = vld [vmem:[%s3421_s13 + $0x1c8] ss:$16 sps:$4 sm:$0xff]   ;;  %v3123_v41 = vld [vmem:[%s3421_s13 + $0x1a4] ss:$16 sps:$4 sm:$0xff]   ;;  %v3125_v42 = vld [vmem:[%s3421_s13 + $0x1ac] ss:$16 sps:$4 sm:$0xff]  }
  0x4d   : > { %898 = vmatpush1.bf16.msra.mxu0 %v3085_v15  ;;  %1011 = vmatpush1.bf16.msra.mxu1 %v3086_v16  ;;  %v3127_v43 = vld [vmem:[%s3421_s13 + $0x1a0] ss:$16 sps:$4 sm:$0xff]   ;;  %v3128_v44 = vld [vmem:[%s3421_s13 + $0x1a8] ss:$16 sps:$4 sm:$0xff]   ;;  %v3129_v45 = vld [vmem:[%s3421_s13 + $0x184] ss:$16 sps:$4 sm:$0xff]  }
  0x4e   : > { %899 = vmatprep.subr.bf16.mxu0 %v3087_v17  ;;  %1012 = vmatprep.subr.bf16.mxu1 %v3089_v18  ;;  %v3131_v46 = vld [vmem:[%s3421_s13 + $0x18c] ss:$16 sps:$4 sm:$0xff]   ;;  %v3133_v47 = vld [vmem:[%s3421_s13 + $0x180] ss:$16 sps:$4 sm:$0xff]   ;;  %v3134_v48 = vld [vmem:[%s3421_s13 + $0x188] ss:$16 sps:$4 sm:$0xff]  }
  0x4f   : > { %v3135_v49 = vld [vmem:[%s3421_s13 + $0x164] ss:$16 sps:$4 sm:$0xff]   ;;  %v3137_v50 = vld [vmem:[%s3421_s13 + $0x16c] ss:$16 sps:$4 sm:$0xff]   ;;  %v3139_v51 = vld [vmem:[%s3421_s13 + $0x160] ss:$16 sps:$4 sm:$0xff]  }
  0x50   : > { %v3140_v52 = vld [vmem:[%s3421_s13 + $0x168] ss:$16 sps:$4 sm:$0xff]   ;;  %v3141_v53 = vld [vmem:[%s3421_s13 + $0x144] ss:$16 sps:$4 sm:$0xff]   ;;  %v3143_v54 = vld [vmem:[%s3421_s13 + $0x14c] ss:$16 sps:$4 sm:$0xff]  }
  0x51   : > { %900 = vmatpush1.bf16.msra.mxu0 %v3091_v19  ;;  %1013 = vmatpush1.bf16.msra.mxu1 %v3092_v20  ;;  %v3145_v55 = vld [vmem:[%s3421_s13 + $0x140] ss:$16 sps:$4 sm:$0xff]   ;;  %v3146_v56 = vld [vmem:[%s3421_s13 + $0x148] ss:$16 sps:$4 sm:$0xff]   ;;  %v3147_v57 = vld [vmem:[%s3421_s13 + $0x124] ss:$16 sps:$4 sm:$0xff]  }
  0x52   : > { %901 = vmatprep.subr.bf16.mxu0 %v3093_v21  ;;  %1014 = vmatprep.subr.bf16.mxu1 %v3095_v22  ;;  %v3149_v58 = vld [vmem:[%s3421_s13 + $0x12c] ss:$16 sps:$4 sm:$0xff]   ;;  %v3151_v59 = vld [vmem:[%s3421_s13 + $0x120] ss:$16 sps:$4 sm:$0xff]   ;;  %v3152_v60 = vld [vmem:[%s3421_s13 + $0x128] ss:$16 sps:$4 sm:$0xff]  }
  0x53   : > { %v3153_v61 = vld [vmem:[%s3421_s13 + $0x104] ss:$16 sps:$4 sm:$0xff]   ;;  %v3155_v62 = vld [vmem:[%s3421_s13 + $0x10c] ss:$16 sps:$4 sm:$0xff]   ;;  %v3157_v63 = vld [vmem:[%s3421_s13 + $0x100] ss:$16 sps:$4 sm:$0xff]  }
  0x54   : > { %v3158_v0 = vld [vmem:[%s3421_s13 + $0x108] ss:$16 sps:$4 sm:$0xff]   ;;  %v3162_v2 = vld [vmem:[%s4252_s0 + $0x14] ss:$8 sps:$4 sm:$0xff]   ;;  %v3165_v4 = vld [vmem:[%s4252_s0 + $0x24] ss:$8 sps:$4 sm:$0xff]  }
  0x55   : > { %902 = vmatpush1.bf16.msra.mxu0 %v3097_v23  ;;  %1015 = vmatpush1.bf16.msra.mxu1 %v3098_v24  ;;  %v3159_v1 = vld [vmem:[%s4252_s0] ss:$8 sps:$4 sm:$0xff]   ;;  %v3164_v3 = vld [vmem:[%s4252_s0 + $0x10] ss:$8 sps:$4 sm:$0xff]   ;;  %v3168_v6 = vld [vmem:[%s4252_s0 + $0x34] ss:$8 sps:$4 sm:$0xff]  }
  0x56   : > { %903 = vmatprep.subr.bf16.mxu0 %v3099_v25  ;;  %1016 = vmatprep.subr.bf16.mxu1 %v3101_v26  ;;  %v3167_v5 = vld [vmem:[%s4252_s0 + $0x20] ss:$8 sps:$4 sm:$0xff]   ;;  %v3170_v7 = vld [vmem:[%s4252_s0 + $0x30] ss:$8 sps:$4 sm:$0xff]   ;;  %v3171_v8 = vld [vmem:[%s4252_s0 + $0x44] ss:$8 sps:$4 sm:$0xff]  }
  0x57   : > { %v3173_v9 = vld [vmem:[%s4252_s0 + $0x40] ss:$8 sps:$4 sm:$0xff]   ;;  %v3174_v10 = vld [vmem:[%s4252_s0 + $0x54] ss:$8 sps:$4 sm:$0xff]   ;;  %v3176_v11 = vld [vmem:[%s4252_s0 + $0x50] ss:$8 sps:$4 sm:$0xff]  }
  0x58   : > { %v3177_v12 = vld [vmem:[%s4252_s0 + $0x64] ss:$8 sps:$4 sm:$0xff]   ;;  %v3179_v13 = vld [vmem:[%s4252_s0 + $0x60] ss:$8 sps:$4 sm:$0xff]   ;;  %v3180_v14 = vld [vmem:[%s4252_s0 + $0x74] ss:$8 sps:$4 sm:$0xff]  }
  0x59   : > { %904 = vmatpush1.bf16.msra.mxu0 %v3103_v27  ;;  %1017 = vmatpush1.bf16.msra.mxu1 %v3104_v28  ;;  %v3182_v15 = vld [vmem:[%s4252_s0 + $0x70] ss:$8 sps:$4 sm:$0xff]   ;;  %s402_s7 = scalar_select %p401_p10, %s3256_s21, 1 }
  0x5a   : > { %905 = vmatprep.subr.bf16.mxu0 %v3105_v29  ;;  %1018 = vmatprep.subr.bf16.mxu1 %v3107_v30  ;;  %s2779_s9 = sshll.u32 (%p3271_p5), %s3256_s21, 2 }
  0x5b   : > { %s2577_s8 = sshll.u32 %s402_s7, 1  ;;  %s403_s15 = scalar_lea.vmem %s4254_s2, %s402_s7 }
  0x5c   : > { %s410_s12 = scalar_lea.vmem %s4256_s4, %s2577_s8  ;;  %s406_s20 = scalar_lea.vmem %s4255_s3, %s402_s7 }
  0x5d   : > { %906 = vmatpush1.bf16.msra.mxu0 %v3109_v31  ;;  %1019 = vmatpush1.bf16.msra.mxu1 %v3110_v32  ;;  %s4114_s28 = scalar_lea.vmem (%p3271_p5), %s4257_s5, %s2779_s9 }
  0x5e   : > { %907 = vmatprep.subr.bf16.mxu0 %v3111_v33  ;;  %1020 = vmatprep.subr.bf16.mxu1 %v3113_v34 }
  0x61   : > { %908 = vmatpush2.bf16.msra.mxu0 %v3115_v35  ;;  %1021 = vmatpush2.bf16.msra.mxu1 %v3116_v36 }
  0x62   : > { %909 = vmatprep.subr.bf16.mxu0 %v3117_v37  ;;  %1022 = vmatprep.subr.bf16.mxu1 %v3119_v38 }
  0x65   : > { %910 = vmatpush2.bf16.msra.mxu0 %v3121_v39  ;;  %1023 = vmatpush2.bf16.msra.mxu1 %v3122_v40 }
  0x66   : > { %911 = vmatprep.subr.bf16.mxu0 %v3123_v41  ;;  %1024 = vmatprep.subr.bf16.mxu1 %v3125_v42 }
  0x69   : > { %912 = vmatpush2.bf16.msra.mxu0 %v3127_v43  ;;  %1025 = vmatpush2.bf16.msra.mxu1 %v3128_v44 }
  0x6a   : > { %913 = vmatprep.subr.bf16.mxu0 %v3129_v45  ;;  %1026 = vmatprep.subr.bf16.mxu1 %v3131_v46 }
  0x6d   : > { %914 = vmatpush2.bf16.msra.mxu0 %v3133_v47  ;;  %1027 = vmatpush2.bf16.msra.mxu1 %v3134_v48 }
  0x6e   : > { %915 = vmatprep.subr.bf16.mxu0 %v3135_v49  ;;  %1028 = vmatprep.subr.bf16.mxu1 %v3137_v50 }
  0x71   : > { %916 = vmatpush2.bf16.msra.mxu0 %v3139_v51  ;;  %1029 = vmatpush2.bf16.msra.mxu1 %v3140_v52 }
  0x72   : > { %917 = vmatprep.subr.bf16.mxu0 %v3141_v53  ;;  %1030 = vmatprep.subr.bf16.mxu1 %v3143_v54 }
  0x75   : > { %918 = vmatpush2.bf16.msra.mxu0 %v3145_v55  ;;  %1031 = vmatpush2.bf16.msra.mxu1 %v3146_v56 }
  0x76   : > { %919 = vmatprep.subr.bf16.mxu0 %v3147_v57  ;;  %1032 = vmatprep.subr.bf16.mxu1 %v3149_v58 }
  0x79   : > { %920 = vmatpush2.bf16.msra.mxu0 %v3151_v59  ;;  %1033 = vmatpush2.bf16.msra.mxu1 %v3152_v60 }
  0x7a   : > { %921 = vmatprep.subr.bf16.mxu0 %v3153_v61  ;;  %1034 = vmatprep.subr.bf16.mxu1 %v3155_v62 }
  0x7d   : > { %922 = vmatpush2.bf16.msra.mxu0 %v3157_v63  ;;  %1035 = vmatpush2.bf16.msra.mxu1 %v3158_v0 }
  0x80   : > { %924 = vmatmul.mubr.bf16.vlgmr.msra.gmra.mxu0 %v3159_v1  ;;  %1037 = vmatmul.mubr.bf16.vlgmr.msra.gmra.mxu1 %v3159_v1 }
  0x81   : > { %933 = vmatprep.mubr.bf16.mxu0 %v3162_v2  ;;  %1046 = vmatprep.mubr.bf16.mxu1 %v3162_v2 }
  0x88   : > { %934 = vmatmul.mubr.bf16.gmra.mxu0 %v3164_v3  ;;  %1047 = vmatmul.mubr.bf16.gmra.mxu1 %v3164_v3 }
  0x89   : > { %943 = vmatprep.mubr.bf16.mxu0 %v3165_v4  ;;  %1056 = vmatprep.mubr.bf16.mxu1 %v3165_v4 }
  0x90   : > { %944 = vmatmul.mubr.bf16.gmra.mxu0 %v3167_v5  ;;  %1057 = vmatmul.mubr.bf16.gmra.mxu1 %v3167_v5 }
  0x91   : > { %953 = vmatprep.mubr.bf16.mxu0 %v3168_v6  ;;  %1066 = vmatprep.mubr.bf16.mxu1 %v3168_v6 }
  0x98   : > { %954 = vmatmul.mubr.bf16.gmra.mxu0 %v3170_v7  ;;  %1067 = vmatmul.mubr.bf16.gmra.mxu1 %v3170_v7 }
  0x99   : > { %963 = vmatprep.mubr.bf16.mxu0 %v3171_v8  ;;  %1076 = vmatprep.mubr.bf16.mxu1 %v3171_v8 }
  0xa0   : > { %964 = vmatmul.mubr.bf16.gmra.mxu0 %v3173_v9  ;;  %1077 = vmatmul.mubr.bf16.gmra.mxu1 %v3173_v9 }
  0xa1   : > { %973 = vmatprep.mubr.bf16.mxu0 %v3174_v10  ;;  %1086 = vmatprep.mubr.bf16.mxu1 %v3174_v10 }
  0xa8   : > { %974 = vmatmul.mubr.bf16.gmra.mxu0 %v3176_v11  ;;  %1087 = vmatmul.mubr.bf16.gmra.mxu1 %v3176_v11 }
  0xa9   : > { %983 = vmatprep.mubr.bf16.mxu0 %v3177_v12  ;;  %1096 = vmatprep.mubr.bf16.mxu1 %v3177_v12 }
  0xb0   : > { %984 = vmatmul.mubr.bf16.gmra.mxu0 %v3179_v13  ;;  %1097 = vmatmul.mubr.bf16.gmra.mxu1 %v3179_v13 }
  0xb1   : > { %993 = vmatprep.mubr.bf16.mxu0 %v3180_v14  ;;  %1106 = vmatprep.mubr.bf16.mxu1 %v3180_v14 }
  0xb8   : > { %994 = vmatmul.mubr.bf16.gmra.mxu0 %v3182_v15  ;;  %1107 = vmatmul.mubr.bf16.gmra.mxu1 %v3182_v15 }
 0x140   : > { %v3532_v16 = vpop.f32.mrf.mxu0  ;;  %v3534_v17 = vpop.f32.mrf.mxu1 }
 0x141   : > { %4322 = vst [vmem:[#allocation5_spill] sm:$0xff] %v3534_v17 }
 0x142   : > { %v3536_v18 = vpop.f32.mrf.mxu0  ;;  %v3538_v19 = vpop.f32.mrf.mxu1 }
 0x143   : > { %4323 = vst [vmem:[#allocation6_spill] sm:$0xff] %v3538_v19 }
 0x144   : > { %v3540_v20 = vpop.f32.mrf.mxu0  ;;  %v3542_v21 = vpop.f32.mrf.mxu1 }
 0x145   : > { %4324 = vst [vmem:[#allocation7_spill] sm:$0xff] %v3542_v21  ;;  %v1197_v50 = vadd.f32 %v3540_v20, %v3532_v16  ;;  %v1273_v51 = vadd.f32 %v3542_v21, %v3534_v17 }
 0x146   : > { %v3544_v22 = vpop.f32.mrf.mxu0  ;;  %v3546_v23 = vpop.f32.mrf.mxu1 }
 0x147   : > { %4325 = vst [vmem:[#allocation8_spill] sm:$0xff] %v3546_v23  ;;  %v1235_v54 = vadd.f32 %v3544_v22, %v3536_v18  ;;  %v1311_v55 = vadd.f32 %v3546_v23, %v3538_v19 }
 0x148   : > { %v3548_v24 = vpop.f32.mrf.mxu0  ;;  %v3550_v25 = vpop.f32.mrf.mxu1 }
 0x149   : > { %4326 = vst [vmem:[#allocation9_spill] sm:$0xff] %v3550_v25  ;;  %v1198_v56 = vadd.f32 %v1197_v50, %v3548_v24  ;;  %v1274_v57 = vadd.f32 %v1273_v51, %v3550_v25 }
 0x14a   : > { %v3552_v26 = vpop.f32.mrf.mxu0  ;;  %v3554_v27 = vpop.f32.mrf.mxu1 }
 0x14b   : > { %4327 = vst [vmem:[#allocation10_spill] sm:$0xff] %v3554_v27  ;;  %v1236_v60 = vadd.f32 %v1235_v54, %v3552_v26  ;;  %v1312_v61 = vadd.f32 %v1311_v55, %v3554_v27 }
 0x14c   : > { %v3556_v28 = vpop.f32.mrf.mxu0  ;;  %v3558_v29 = vpop.f32.mrf.mxu1 }
 0x14d   : > { %4328 = vst [vmem:[#allocation11_spill] sm:$0xff] %v3558_v29  ;;  %v1199_v62 = vadd.f32 %v1198_v56, %v3556_v28  ;;  %v1275_v63 = vadd.f32 %v1274_v57, %v3558_v29 }
 0x14e   : > { %v3560_v30 = vpop.f32.mrf.mxu0  ;;  %v3562_v31 = vpop.f32.mrf.mxu1 }
 0x14f   : > { %4329 = vst [vmem:[#allocation12_spill] sm:$0xff] %v3562_v31  ;;  %v1237_v2 = vadd.f32 %v1236_v60, %v3560_v30  ;;  %v1313_v3 = vadd.f32 %v1312_v61, %v3562_v31 }
 0x150   : > { %v3564_v32 = vpop.f32.mrf.mxu0  ;;  %v3566_v33 = vpop.f32.mrf.mxu1 }
 0x151   : > { %4330 = vst [vmem:[#allocation13_spill] sm:$0xff] %v3566_v33  ;;  %v1200_v4 = vadd.f32 %v1199_v62, %v3564_v32  ;;  %v1276_v5 = vadd.f32 %v1275_v63, %v3566_v33 }
 0x152   : > { %v3568_v34 = vpop.f32.mrf.mxu0  ;;  %v3570_v35 = vpop.f32.mrf.mxu1 }
 0x153   : > { %4331 = vst [vmem:[#allocation14_spill] sm:$0xff] %v3570_v35  ;;  %v1238_v8 = vadd.f32 %v1237_v2, %v3568_v34  ;;  %v1314_v9 = vadd.f32 %v1313_v3, %v3570_v35 }
 0x154   : > { %v3572_v36 = vpop.f32.mrf.mxu0  ;;  %v3574_v37 = vpop.f32.mrf.mxu1 }
 0x155   : > { %4332 = vst [vmem:[#allocation15_spill] sm:$0xff] %v3574_v37  ;;  %v1201_v10 = vadd.f32 %v1200_v4, %v3572_v36  ;;  %v1277_v11 = vadd.f32 %v1276_v5, %v3574_v37 }
 0x156   : > { %v3576_v38 = vpop.f32.mrf.mxu0  ;;  %v3578_v39 = vpop.f32.mrf.mxu1 }
 0x157   : > { %4333 = vst [vmem:[#allocation16_spill] sm:$0xff] %v3578_v39  ;;  %v1239_v14 = vadd.f32 %v1238_v8, %v3576_v38  ;;  %v1315_v15 = vadd.f32 %v1314_v9, %v3578_v39 }
 0x158   : > { %v3580_v40 = vpop.f32.mrf.mxu0  ;;  %v3582_v41 = vpop.f32.mrf.mxu1 }
 0x159   : > { %4334 = vst [vmem:[#allocation17_spill] sm:$0xff] %v3582_v41  ;;  %v1202_v50 = vadd.f32 %v1201_v10, %v3580_v40  ;;  %v1278_v51 = vadd.f32 %v1277_v11, %v3582_v41 }
 0x15a   : > { %v3584_v42 = vpop.f32.mrf.mxu0  ;;  %v3586_v43 = vpop.f32.mrf.mxu1 }
 0x15b   : > { %4335 = vst [vmem:[#allocation18_spill] sm:$0xff] %v3586_v43  ;;  %v1240_v56 = vadd.f32 %v1239_v14, %v3584_v42  ;;  %v1316_v57 = vadd.f32 %v1315_v15, %v3586_v43 }
 0x15c   : > { %v3588_v44 = vpop.f32.mrf.mxu0  ;;  %v3590_v45 = vpop.f32.mrf.mxu1 }
 0x15d   : > { %4336 = vst [vmem:[#allocation19_spill] sm:$0xff] %v3590_v45  ;;  %v1203_v60 = vadd.f32 %v1202_v50, %v3588_v44  ;;  %v1279_v61 = vadd.f32 %v1278_v51, %v3590_v45 }
 0x15e   : > { %v3592_v46 = vpop.f32.mrf.mxu0  ;;  %v3594_v47 = vpop.f32.mrf.mxu1 }
 0x15f   : > { %4337 = vst [vmem:[#allocation20_spill] sm:$0xff] %v3594_v47  ;;  %v1241_v2 = vadd.f32 %v1240_v56, %v3592_v46  ;;  %v1317_v3 = vadd.f32 %v1316_v57, %v3594_v47 }
 0x160   : > { %v3596_v48 = vpop.f32.mrf.mxu0  ;;  %v3598_v49 = vpop.f32.mrf.mxu1 }
 0x161   : > { %4338 = vst [vmem:[#allocation21_spill] sm:$0xff] %v3598_v49  ;;  %v1204_v4 = vadd.f32 %v1203_v60, %v3596_v48  ;;  %v1280_v5 = vadd.f32 %v1279_v61, %v3598_v49 }
 0x162   : > { %v3604_v52 = vpop.f32.mrf.mxu0  ;;  %v3606_v53 = vpop.f32.mrf.mxu1 }
 0x163   : > { %4339 = vst [vmem:[#allocation22_spill] sm:$0xff] %v3606_v53  ;;  %v1242_v10 = vadd.f32 %v1241_v2, %v3604_v52  ;;  %v1318_v11 = vadd.f32 %v1317_v3, %v3606_v53 }
 0x164   : > { %v3614_v58 = vpop.f32.mrf.mxu0  ;;  %v3616_v59 = vpop.f32.mrf.mxu1 }
 0x165   : > { %4340 = vst [vmem:[#allocation23_spill] sm:$0xff] %v3616_v59  ;;  %v1205_v14 = vadd.f32 %v1204_v4, %v3614_v58  ;;  %v1281_v15 = vadd.f32 %v1280_v5, %v3616_v59 }
 0x166   : > { %v3622_v0 = vpop.f32.mrf.mxu0  ;;  %v3624_v1 = vpop.f32.mrf.mxu1 }
 0x167   : > { %4341 = vst [vmem:[#allocation24_spill] sm:$0xff] %v3624_v1  ;;  %v1243_v56 = vadd.f32 %v1242_v10, %v3622_v0  ;;  %v1319_v57 = vadd.f32 %v1318_v11, %v3624_v1 }
 0x168   : > { %v3630_v6 = vpop.f32.mrf.mxu0  ;;  %v3632_v7 = vpop.f32.mrf.mxu1 }
 0x169   : > { %4342 = vst [vmem:[#allocation25_spill] sm:$0xff] %v3632_v7  ;;  %v1206_v60 = vadd.f32 %v1205_v14, %v3630_v6  ;;  %v1282_v61 = vadd.f32 %v1281_v15, %v3632_v7 }
 0x16a   : > { %v3638_v12 = vpop.f32.mrf.mxu0  ;;  %v3640_v13 = vpop.f32.mrf.mxu1 }
 0x16b   : > { %4343 = vst [vmem:[#allocation26_spill] sm:$0xff] %v3640_v13  ;;  %v1244_v3 = vadd.f32 %v1243_v56, %v3638_v12  ;;  %v1320_v4 = vadd.f32 %v1319_v57, %v3640_v13 }
 0x16c   : > { %v3646_v54 = vpop.f32.mrf.mxu0  ;;  %v3648_v55 = vpop.f32.mrf.mxu1 }
 0x16d   : > { %4344 = vst [vmem:[#allocation27_spill] sm:$0xff] %v3648_v55  ;;  %v1207_v5 = vadd.f32 %v1206_v60, %v3646_v54  ;;  %v1283_v53 = vadd.f32 %v1282_v61, %v3648_v55 }
 0x16e   : > { %v3654_v62 = vpop.f32.mrf.mxu0  ;;  %v3656_v63 = vpop.f32.mrf.mxu1 }
 0x16f   : > { %4345 = vst [vmem:[#allocation28_spill] sm:$0xff] %v3656_v63  ;;  %v1245_v11 = vadd.f32 %v1244_v3, %v3654_v62  ;;  %v1321_v14 = vadd.f32 %v1320_v4, %v3656_v63 }
 0x170   : > { %v3662_v8 = vpop.f32.mrf.mxu0  ;;  %v3664_v9 = vpop.f32.mrf.mxu1 }
 0x171   : > { %4346 = vst [vmem:[#allocation29_spill] sm:$0xff] %v3664_v9  ;;  %v1208_v15 = vadd.f32 %v1207_v5, %v3662_v8  ;;  %v1284_v1 = vadd.f32 %v1283_v53, %v3664_v9 }
 0x172   : > { %v3670_v50 = vpop.f32.mrf.mxu0  ;;  %v3672_v51 = vpop.f32.mrf.mxu1 }
 0x173   : > { %4347 = vst [vmem:[#allocation30_spill] sm:$0xff] %v3672_v51  ;;  %v1246_v57 = vadd.f32 %v1245_v11, %v3670_v50  ;;  %v1322_v60 = vadd.f32 %v1321_v14, %v3672_v51 }
 0x174   : > { %v3678_v47 = vpop.f32.mrf.mxu0  ;;  %v3680_v2 = vpop.f32.mrf.mxu1 }
 0x175   : > { %4348 = vst [vmem:[#allocation31_spill] sm:$0xff] %v3680_v2  ;;  %v1209_v61 = vadd.f32 %v1208_v15, %v3678_v47  ;;  %v1285_v13 = vadd.f32 %v1284_v1, %v3680_v2 }
 0x176   : > { %v3686_v43 = vpop.f32.mrf.mxu0  ;;  %v3688_v10 = vpop.f32.mrf.mxu1 }
 0x177   : > { %4349 = vst [vmem:[#allocation32_spill] sm:$0xff] %v3686_v43  ;;  %4350 = vst [vmem:[#allocation33_spill] sm:$0xff] %v3688_v10  ;;  %v1247_v4 = vadd.f32 %v1246_v57, %v3686_v43  ;;  %v1323_v53 = vadd.f32 %v1322_v60, %v3688_v10 }
 0x178   : > { %v3694_v39 = vpop.f32.mrf.mxu0  ;;  %v3696_v56 = vpop.f32.mrf.mxu1 }
 0x179   : > { %4351 = vst [vmem:[#allocation34_spill] sm:$0xff] %v3696_v56  ;;  %v1210_v5 = vadd.f32 %v1209_v61, %v3694_v39  ;;  %v1286_v63 = vadd.f32 %v1285_v13, %v3696_v56 }
 0x17a   : > { %v3702_v55 = vpop.f32.mrf.mxu0  ;;  %v3704_v3 = vpop.f32.mrf.mxu1 }
 0x17b   : > { %4352 = vst [vmem:[#allocation35_spill] sm:$0xff] %v3702_v55  ;;  %4353 = vst [vmem:[#allocation36_spill] sm:$0xff] %v3704_v3  ;;  %v1248_v14 = vadd.f32 %v1247_v4, %v3702_v55  ;;  %v1324_v1 = vadd.f32 %v1323_v53, %v3704_v3 }
 0x17c   : > { %v3710_v9 = vpop.f32.mrf.mxu0  ;;  %v3712_v11 = vpop.f32.mrf.mxu1 }
 0x17d   : > { %4354 = vst [vmem:[#allocation37_spill] sm:$0xff] %v3712_v11  ;;  %v1211_v15 = vadd.f32 %v1210_v5, %v3710_v9  ;;  %v1287_v51 = vadd.f32 %v1286_v63, %v3712_v11 }
 0x17e   : > { %v3718_v2 = vpop.f32.mrf.mxu0  ;;  %v3720_v57 = vpop.f32.mrf.mxu1 }
 0x17f   : > { %4355 = vst [vmem:[#allocation38_spill] sm:$0xff] %v3718_v2  ;;  %4356 = vst [vmem:[#allocation39_spill] sm:$0xff] %v3720_v57  ;;  %v1212_v60 = vrot.slane %v1211_v15, 4  ;;  %v1288_v61 = vrot.slane %v1287_v51, 4  ;;  %v1249_v13 = vadd.f32 %v1248_v14, %v3718_v2  ;;  %v1325_v10 = vadd.f32 %v1324_v1, %v3720_v57 }
 0x181   : > { %v1213_v56 = vadd.f32 %v1212_v60, %v1211_v15  ;;  %v1289_v35 = vadd.f32 %v1288_v61, %v1287_v51  ;;  %v1250_v7 = vrot.slane %v1249_v13, 4  ;;  %v1326_v4 = vrot.slane %v1325_v10, 4 }
 0x183   : > { %v1214_v31 = vrot.slane %v1213_v56, 2  ;;  %v1290_v53 = vrot.slane %v1289_v35, 2  ;;  %v1251_v3 = vadd.f32 %v1250_v7, %v1249_v13  ;;  %v1327_v5 = vadd.f32 %v1326_v4, %v1325_v10 }
 0x185   : > { %v1215_v59 = vadd.f32 %v1214_v31, %v1213_v56  ;;  %v1291_v63 = vadd.f32 %v1290_v53, %v1289_v35  ;;  %v1252_v11 = vrot.slane %v1251_v3, 2  ;;  %v1328_v27 = vrot.slane %v1327_v5, 2 }
 0x187   : > { %v1216_v49 = vrot.slane %v1215_v59, 1  ;;  %v1253_v55 = vadd.f32 %v1252_v11, %v1251_v3  ;;  %v1329_v45 = vadd.f32 %v1328_v27, %v1327_v5  ;;  %v1292_v43 = vrot.slane %v1291_v63, 1 }
 0x189   : > { %v1254_v23 = vrot.slane %v1253_v55, 1  ;;  %v1217_v14 = vadd.f32 %v1216_v49, %v1215_v59  ;;  %v1330_v1 = vrot.slane %v1329_v45, 1  ;;  %v1293_v15 = vadd.f32 %v1292_v43, %v1291_v63 }
 0x18b   : > { %v1255_v2 = vadd.f32 %v1254_v23, %v1253_v55  ;;  %v1331_v61 = vadd.f32 %v1330_v1, %v1329_v45 }
 0x18d   : > { %v1256_v51 = vadd.f32 %v1255_v2, %v1217_v14 }
 0x18f   : > { %v1294_v60 = vadd.f32 %v1293_v15, %v1256_v51 }
 0x191   : > { %v1332_v57 = vadd.f32 %v1331_v61, %v1294_v60 }
 0x193   : > { %v3724_v19 = vmul.f32 0.001953125, %v1332_v57 }
 0x195   : > { %v1334_v31 = vsub.f32 %v3532_v16, %v3724_v19  ;;  %v1335_v35 = vsub.f32 %v3540_v20, %v3724_v19  ;;  %v1336_v27 = vsub.f32 %v3548_v24, %v3724_v19  ;;  %v1337_v23 = vsub.f32 %v3556_v28, %v3724_v19 }
 0x196   : > { %v1338_v43 = vsub.f32 %v3564_v32, %v3724_v19  ;;  %v1388_v55 = vsub.f32 %v3536_v18, %v3724_v19  ;;  %v1389_v2 = vsub.f32 %v3544_v22, %v3724_v19  ;;  %v1339_v10 = vsub.f32 %v3572_v36, %v3724_v19 }
 0x197   : > { %v1350_v7 = vmul.f32 %v1334_v31, %v1334_v31  ;;  %v1351_v49 = vmul.f32 %v1335_v35, %v1335_v35  ;;  %v1352_v45 = vmul.f32 %v1336_v27, %v1336_v27  ;;  %v1353_v56 = vmul.f32 %v1337_v23, %v1337_v23 }
 0x198   : > { %v1340_v11 = vsub.f32 %v3580_v40, %v3724_v19  ;;  %v1354_v57 = vmul.f32 %v1338_v43, %v1338_v43  ;;  %v1390_v4 = vsub.f32 %v3552_v26, %v3724_v19  ;;  %v1404_v53 = vmul.f32 %v1388_v55, %v1388_v55 }
 0x199   : > { %v1366_v59 = vadd.f32 %v1351_v49, %v1350_v7  ;;  %v1405_v5 = vmul.f32 %v1389_v2, %v1389_v2  ;;  %v1341_v63 = vsub.f32 %v3588_v44, %v3724_v19  ;;  %v1355_v14 = vmul.f32 %v1339_v10, %v1339_v10 }
 0x19a   : > { %v1391_v15 = vsub.f32 %v3560_v30, %v3724_v19  ;;  %v1342_v51 = vsub.f32 %v3596_v48, %v3724_v19  ;;  %v1356_v60 = vmul.f32 %v1340_v11, %v1340_v11  ;;  %v1392_v31 = vsub.f32 %v3568_v34, %v3724_v19 }
 0x19b   : > { %v1367_v3 = vadd.f32 %v1366_v59, %v1352_v45  ;;  %v1406_v35 = vmul.f32 %v1390_v4, %v1390_v4  ;;  %v1420_v27 = vadd.f32 %v1405_v5, %v1404_v53  ;;  %v1343_v7 = vsub.f32 %v3614_v58, %v3724_v19 }
 0x19c   : > { %v1357_v49 = vmul.f32 %v1341_v63, %v1341_v63  ;;  %v1393_v43 = vsub.f32 %v3576_v38, %v3724_v19  ;;  %v1407_v45 = vmul.f32 %v1391_v15, %v1391_v15  ;;  %v1358_v55 = vmul.f32 %v1342_v51, %v1342_v51 }
 0x19d   : > { %v1368_v13 = vadd.f32 %v1367_v3, %v1353_v56  ;;  %v1421_v59 = vadd.f32 %v1420_v27, %v1406_v35  ;;  %v1442_v10 = vsub.f32 %v3534_v17, %v3724_v19  ;;  %v1443_v56 = vsub.f32 %v3542_v21, %v3724_v19  ;;  %v4363_v21 = vld [vmem:[#allocation10_spill] sm:$0xff] }
 0x19e   : > { %v1344_v3 = vsub.f32 %v3630_v6, %v3724_v19  ;;  %v1394_v11 = vsub.f32 %v3584_v42, %v3724_v19  ;;  %v1345_v4 = vsub.f32 %v3646_v54, %v3724_v19  ;;  %v1346_v53 = vsub.f32 %v3662_v8, %v3724_v19 }
 0x19f   : > { %v1369_v1 = vadd.f32 %v1368_v13, %v1354_v57  ;;  %v1408_v57 = vmul.f32 %v1392_v31, %v1392_v31  ;;  %v1422_v13 = vadd.f32 %v1421_v59, %v1407_v45  ;;  %v1359_v5 = vmul.f32 %v1343_v7, %v1343_v7 }
 0x1a0   : > { %v1409_v15 = vmul.f32 %v1393_v43, %v1393_v43  ;;  %v1458_v31 = vmul.f32 %v1442_v10, %v1442_v10  ;;  %v1459_v35 = vmul.f32 %v1443_v56, %v1443_v56  ;;  %v1360_v27 = vmul.f32 %v1344_v3, %v1344_v3 }
 0x1a1   : > { %v1370_v61 = vadd.f32 %v1369_v1, %v1355_v14  ;;  %v1347_v14 = vsub.f32 %v3678_v47, %v3724_v19  ;;  %v1395_v1 = vsub.f32 %v3592_v46, %v3724_v19  ;;  %v1423_v51 = vadd.f32 %v1422_v13, %v1408_v57 }
 0x1a2   : > { %v1410_v7 = vmul.f32 %v1394_v11, %v1394_v11  ;;  %v1348_v45 = vsub.f32 %v3694_v39, %v3724_v19  ;;  %v3782_v59 = vsub.f32 %v3710_v9, %v3724_v19  ;;  %v1361_v43 = vmul.f32 %v1345_v4, %v1345_v4 }
 0x1a3   : > { %v1371_v23 = vadd.f32 %v1370_v61, %v1356_v60  ;;  %v1444_v61 = vsub.f32 %v3550_v25, %v3724_v19  ;;  %v1397_v10 = vsub.f32 %v3622_v0, %v3724_v19  ;;  %v1411_v56 = vmul.f32 %v1395_v1, %v1395_v1 }
 0x1a4   : > { %v1362_v57 = vmul.f32 %v1346_v53, %v1346_v53  ;;  %v1446_v11 = vsub.f32 %v3566_v33, %v3724_v19  ;;  %v1364_v25 = vmul.f32 %v1348_v45, %v1348_v45  ;;  %v1399_v53 = vsub.f32 %v3654_v62, %v3724_v19 }
 0x1a5   : > { %v1372_v2 = vadd.f32 %v1371_v23, %v1357_v49  ;;  %v1396_v49 = vsub.f32 %v3604_v52, %v3724_v19  ;;  %v1424_v23 = vadd.f32 %v1423_v51, %v1409_v15  ;;  %v1460_v13 = vmul.f32 %v1444_v61, %v1444_v61 }
 0x1a6   : > { %v1398_v15 = vsub.f32 %v3638_v12, %v3724_v19  ;;  %v1448_v61 = vsub.f32 %v3582_v41, %v3724_v19  ;;  %v1498_v17 = vsub.f32 %v4363_v21, %v3724_v19 }
 0x1a7   : > { %v1373_v63 = vadd.f32 %v1372_v2, %v1358_v55  ;;  %v1445_v55 = vsub.f32 %v3558_v29, %v3724_v19  ;;  %v1425_v3 = vadd.f32 %v1424_v23, %v1410_v7  ;;  %v1412_v4 = vmul.f32 %v1396_v49, %v1396_v49 }
 0x1a8   : > { %v1413_v7 = vmul.f32 %v1397_v10, %v1397_v10  ;;  %v1414_v49 = vmul.f32 %v1398_v15, %v1398_v15  ;;  %v1415_v15 = vmul.f32 %v1399_v53, %v1399_v53  ;;  %v1464_v41 = vmul.f32 %v1448_v61, %v1448_v61  ;;  %v4366_v61 = vld [vmem:[#allocation12_spill] sm:$0xff] }
 0x1a9   : > { %v1374_v60 = vadd.f32 %v1373_v63, %v1359_v5  ;;  %v1474_v5 = vadd.f32 %v1459_v35, %v1458_v31  ;;  %v1363_v63 = vmul.f32 %v1347_v14, %v1347_v14  ;;  %v1426_v51 = vadd.f32 %v1425_v3, %v1411_v56  ;;  %v4357_v56 = vld [vmem:[#allocation6_spill] sm:$0xff]  ;;  %v4359_v3 = vld [vmem:[#allocation32_spill] sm:$0xff] }
 0x1aa   : > { %v1400_v14 = vsub.f32 %v3670_v50, %v3724_v19  ;;  %v1462_v31 = vmul.f32 %v1446_v11, %v1446_v11  ;;  %v1401_v10 = vsub.f32 %v4359_v3, %v3724_v19  ;;  %v4361_v11 = vld [vmem:[#allocation35_spill] sm:$0xff] }
 0x1ab   : > { %v1375_v2 = vadd.f32 %v1374_v60, %v1360_v27  ;;  %v1447_v60 = vsub.f32 %v3574_v37, %v3724_v19  ;;  %v1461_v27 = vmul.f32 %v1445_v55, %v1445_v55  ;;  %v1475_v29 = vadd.f32 %v1474_v5, %v1460_v13  ;;  %v4360_v13 = vld [vmem:[#allocation19_spill] sm:$0xff] }
 0x1ac   : > { %v1427_v23 = vadd.f32 %v1426_v51, %v1412_v4  ;;  %v1496_v55 = vsub.f32 %v4357_v56, %v3724_v19  ;;  %v1449_v5 = vsub.f32 %v4360_v13, %v3724_v19 }
 0x1ad   : > { %v1376_v1 = vadd.f32 %v1375_v2, %v1361_v43  ;;  %v1476_v35 = vadd.f32 %v1475_v29, %v1461_v27  ;;  %v4358_v43 = vld [vmem:[#allocation8_spill] sm:$0xff]  ;;  %v1463_v4 = vmul.f32 %v1447_v60, %v1447_v60  ;;  %v1402_v29 = vsub.f32 %v4361_v11, %v3724_v19  ;;  %v4364_v60 = vld [vmem:[#allocation38_spill] sm:$0xff] }
 0x1ae   : > { %v1428_v45 = vadd.f32 %v1427_v23, %v1413_v7  ;;  %v1497_v2 = vsub.f32 %v4358_v43, %v3724_v19  ;;  %v1416_v7 = vmul.f32 %v1400_v14, %v1400_v14  ;;  %v4362_v23 = vld [vmem:[#allocation21_spill] sm:$0xff]  ;;  %v1512_v3 = vmul.f32 %v1496_v55, %v1496_v55 }
 0x1af   : > { %v1477_v51 = vadd.f32 %v1476_v35, %v1462_v31  ;;  %v1377_v37 = vadd.f32 %v1376_v1, %v1362_v57  ;;  %v1450_v56 = vsub.f32 %v4362_v23, %v3724_v19  ;;  %v1403_v57 = vsub.f32 %v4364_v60, %v3724_v19  ;;  %v4365_v1 = vld [vmem:[#allocation23_spill] sm:$0xff]  ;;  %v4368_v23 = vld [vmem:[#allocation14_spill] sm:$0xff] }
 0x1b0   : > { %v1429_v27 = vadd.f32 %v1428_v45, %v1414_v49  ;;  %v1513_v13 = vmul.f32 %v1497_v2, %v1497_v2  ;;  %v1451_v31 = vsub.f32 %v4365_v1, %v3724_v19  ;;  %v1465_v53 = vmul.f32 %v1449_v5, %v1449_v5 }
 0x1b1   : > { %v1478_v43 = vadd.f32 %v1477_v51, %v1463_v4  ;;  %v1378_v14 = vadd.f32 %v1377_v37, %v1363_v63  ;;  %v1417_v49 = vmul.f32 %v1401_v10, %v1401_v10  ;;  %v1499_v4 = vsub.f32 %v4366_v61, %v3724_v19 }
 0x1b2   : > { %v1430_v33 = vadd.f32 %v1429_v27, %v1415_v15  ;;  %v1418_v51 = vmul.f32 %v1402_v29, %v1402_v29  ;;  %v4367_v15 = vld [vmem:[#allocation25_spill] sm:$0xff]  ;;  %v1466_v55 = vmul.f32 %v1450_v56, %v1450_v56  ;;  %v1500_v60 = vsub.f32 %v4368_v23, %v3724_v19 }
 0x1b3   : > { %v1479_v35 = vadd.f32 %v1478_v43, %v1464_v41  ;;  %v1452_v27 = vsub.f32 %v4367_v15, %v3724_v19  ;;  %v1514_v11 = vmul.f32 %v1498_v17, %v1498_v17  ;;  %v1528_v1 = vadd.f32 %v1513_v13, %v1512_v3  ;;  %v4369_v41 = vld [vmem:[#allocation27_spill] sm:$0xff]  ;;  %v4370_v43 = vld [vmem:[#allocation16_spill] sm:$0xff] }
 0x1b4   : > { %v1431_v45 = vadd.f32 %v1430_v33, %v1416_v7  ;;  %v1453_v37 = vsub.f32 %v4369_v41, %v3724_v19  ;;  %v1467_v63 = vmul.f32 %v1451_v31, %v1451_v31  ;;  %v1501_v10 = vsub.f32 %v4370_v43, %v3724_v19 }
 0x1b5   : > { %v1480_v2 = vadd.f32 %v1479_v35, %v1465_v53  ;;  %v1379_v5 = vadd.f32 %v1378_v14, %v1364_v25  ;;  %v1515_v7 = vmul.f32 %v1499_v4, %v1499_v4  ;;  %v1529_v61 = vadd.f32 %v1528_v1, %v1514_v11  ;;  %v4371_v53 = vld [vmem:[#allocation29_spill] sm:$0xff]  ;;  %v4374_v11 = vld [vmem:[#allocation20_spill] sm:$0xff] }
 0x1b6   : > { %v1432_v21 = vadd.f32 %v1431_v45, %v1417_v49  ;;  %v1365_v56 = vmul.f32 %v3782_v59, %v3782_v59  ;;  %v1454_v35 = vsub.f32 %v4371_v53, %v3724_v19  ;;  %v1468_v17 = vmul.f32 %v1452_v27, %v1452_v27  ;;  %v4372_v49 = vld [vmem:[#allocation18_spill] sm:$0xff] }
 0x1b7   : > { %v1481_v33 = vadd.f32 %v1480_v2, %v1466_v55  ;;  %v1419_v13 = vmul.f32 %v1403_v57, %v1403_v57  ;;  %v1502_v31 = vsub.f32 %v4372_v49, %v3724_v19  ;;  %v1516_v45 = vmul.f32 %v1500_v60, %v1500_v60  ;;  %v4373_v2 = vld [vmem:[#allocation31_spill] sm:$0xff]  ;;  %v4375_v27 = vld [vmem:[#allocation34_spill] sm:$0xff] }
 0x1b8   : > { %v1433_v29 = vadd.f32 %v1432_v21, %v1418_v51  ;;  %v1530_v55 = vadd.f32 %v1529_v61, %v1515_v7  ;;  %v1455_v25 = vsub.f32 %v4373_v2, %v3724_v19  ;;  %v1469_v21 = vmul.f32 %v1453_v37, %v1453_v37  ;;  %v4376_v60 = vld [vmem:[#allocation22_spill] sm:$0xff]  ;;  %v4377_v37 = vld [vmem:[#allocation37_spill] sm:$0xff] }
 0x1b9   : > { %v1482_v3 = vadd.f32 %v1481_v33, %v1467_v63  ;;  %v1503_v1 = vsub.f32 %v4374_v11, %v3724_v19  ;;  %v1380_v59 = vadd.f32 %v1379_v5, %v1365_v56  ;;  %v1517_v51 = vmul.f32 %v1501_v10, %v1501_v10  ;;  %v4378_v5 = vld [vmem:[#allocation24_spill] sm:$0xff] }
 0x1ba   : > { %v1434_v4 = vadd.f32 %v1433_v29, %v1419_v13  ;;  %v1531_v43 = vadd.f32 %v1530_v55, %v1516_v45  ;;  %v1456_v57 = vsub.f32 %v4375_v27, %v3724_v19  ;;  %v1470_v63 = vmul.f32 %v1454_v35, %v1454_v35  ;;  %v4380_v11 = vld [vmem:[#allocation28_spill] sm:$0xff] }
 0x1bb   : > { %v1483_v14 = vadd.f32 %v1482_v3, %v1468_v17  ;;  %v1504_v61 = vsub.f32 %v4376_v60, %v3724_v19  ;;  %v1518_v7 = vmul.f32 %v1502_v31, %v1502_v31  ;;  %v1457_v17 = vsub.f32 %v4377_v37, %v3724_v19 }
 0x1bc   : > { %v1532_v49 = vadd.f32 %v1531_v43, %v1517_v51  ;;  %v1471_v3 = vmul.f32 %v1455_v25, %v1455_v25  ;;  %v1505_v29 = vsub.f32 %v4378_v5, %v3724_v19  ;;  %v1381_v10 = vrot.slane %v1380_v59, 4 }
 0x1bd   : > { %v1484_v33 = vadd.f32 %v1483_v14, %v1469_v21  ;;  %v1435_v56 = vrot.slane %v1434_v4, 4  ;;  %v1519_v13 = vmul.f32 %v1503_v1, %v1503_v1  ;;  %v1472_v55 = vmul.f32 %v1456_v57, %v1456_v57  ;;  %v4379_v21 = vld [vmem:[#allocation26_spill] sm:$0xff] }
 0x1be   : > { %v1533_v45 = vadd.f32 %v1532_v49, %v1518_v7  ;;  %v1506_v14 = vsub.f32 %v4379_v21, %v3724_v19  ;;  %v1520_v60 = vmul.f32 %v1504_v61, %v1504_v61  ;;  %v1473_v43 = vmul.f32 %v1457_v17, %v1457_v17  ;;  %v4381_v1 = vld [vmem:[#allocation30_spill] sm:$0xff] }
 0x1bf   : > { %v1485_v23 = vadd.f32 %v1484_v33, %v1470_v63  ;;  %v1507_v25 = vsub.f32 %v4380_v11, %v3724_v19  ;;  %v1382_v63 = vadd.f32 %v1381_v10, %v1380_v59  ;;  %v1436_v33 = vadd.f32 %v1435_v56, %v1434_v4  ;;  %v4383_v59 = vld [vmem:[#allocation36_spill] sm:$0xff]  ;;  %v4384_v10 = vld [vmem:[#allocation39_spill] sm:$0xff] }
 0x1c0   : > { %v1534_v31 = vadd.f32 %v1533_v45, %v1519_v13  ;;  %v1521_v37 = vmul.f32 %v1505_v29, %v1505_v29  ;;  %v1508_v49 = vsub.f32 %v4381_v1, %v3724_v19  ;;  %v1522_v57 = vmul.f32 %v1506_v14, %v1506_v14 }
 0x1c1   : > { %v1486_v35 = vadd.f32 %v1485_v23, %v1471_v3  ;;  %v4382_v3 = vld [vmem:[#allocation33_spill] sm:$0xff]  ;;  %v1383_v13 = vrot.slane %v1382_v63, 2  ;;  %v1437_v17 = vrot.slane %v1436_v33, 2  ;;  %v1523_v45 = vmul.f32 %v1507_v25, %v1507_v25 }
 0x1c2   : > { %v1535_v5 = vadd.f32 %v1534_v31, %v1520_v60  ;;  %v1509_v61 = vsub.f32 %v4382_v3, %v3724_v19  ;;  %v1510_v4 = vsub.f32 %v4383_v59, %v3724_v19  ;;  %v1524_v29 = vmul.f32 %v1508_v49, %v1508_v49 }
 0x1c3   : > { %v1487_v51 = vadd.f32 %v1486_v35, %v1472_v55  ;;  %v1511_v56 = vsub.f32 %v4384_v10, %v3724_v19  ;;  %v1384_v31 = vadd.f32 %v1383_v13, %v1382_v63  ;;  %v1438_v14 = vadd.f32 %v1437_v17, %v1436_v33 }
 0x1c4   : > { %v1536_v23 = vadd.f32 %v1535_v5, %v1521_v37  ;;  %v1525_v37 = vmul.f32 %v1509_v61, %v1509_v61 }
 0x1c5   : > { %v1488_v27 = vadd.f32 %v1487_v51, %v1473_v43  ;;  %v1526_v51 = vmul.f32 %v1510_v4, %v1510_v4  ;;  %v1385_v1 = vrot.slane %v1384_v31, 1  ;;  %v1439_v25 = vrot.slane %v1438_v14, 1 }
 0x1c6   : > { %v1537_v55 = vadd.f32 %v1536_v23, %v1522_v57  ;;  %v1527_v57 = vmul.f32 %v1511_v56, %v1511_v56  ;;  %v3209_v56 = vmov 1966171168  }
 0x1c7   : > { %v1489_v7 = vrot.slane %v1488_v27, 4  ;;  %v1386_v49 = vadd.f32 %v1385_v1, %v1384_v31 }
 0x1c8   : > { %v1538_v60 = vadd.f32 %v1537_v55, %v1523_v45  ;;  %v1440_v45 = vadd.f32 %v1439_v25, %v1438_v14 }
 0x1c9   : > { %v1490_v35 = vadd.f32 %v1489_v7, %v1488_v27 }
 0x1ca   : > { %v1539_v5 = vadd.f32 %v1538_v60, %v1524_v29  ;;  %v1441_v63 = vadd.f32 %v1440_v45, %v1386_v49  ;;  %v1561_v60 = vlaneseq }
 0x1cb   : > { %v1491_v43 = vrot.slane %v1490_v35, 2 }
 0x1cc   : > { %v1540_v3 = vadd.f32 %v1539_v5, %v1525_v37  ;;  %v1647_v37 = vunpack.c.l.s4 %v3209_v56  ;;  %v1562_v1 = vshrl.u32 %v1561_v60, 7 }
 0x1cd   : > { %v1492_v23 = vadd.f32 %v1491_v43, %v1490_v35 }
 0x1ce   : > { %v1541_v27 = vadd.f32 %v1540_v3, %v1526_v51  ;;  %v1648_v31 = vunpack.c.0.s8 %v1647_v37  ;;  %v1553_v51 = vld [vmem:[%s403_s15] sm:$0x1] }
 0x1cf   : > { %v1493_v59 = vrot.slane %v1492_v23, 1 }
 0x1d0   : > { %v1542_v7 = vadd.f32 %v1541_v27, %v1527_v57 }
 0x1d1   : > { %v1494_v61 = vadd.f32 %v1493_v59, %v1492_v23  ;;  %v1651_v59 = vsub.s32 %v1648_v31, %v1562_v1  ;;  %v1563_v23 = vsub.s32 0, %v1562_v1 }
 0x1d2   : > { %v1543_v55 = vrot.slane %v1542_v7, 4 }
 0x1d3   : > { %v1495_v17 = vadd.f32 %v1494_v61, %v1441_v63 }
 0x1d4   : > { %v1544_v10 = vadd.f32 %v1543_v55, %v1542_v7  ;;  %v1555_v7 = vld [vmem:[%s406_s20] sm:$0x1] }
 0x1d6   : > { %v1545_v33 = vrot.slane %v1544_v10, 2 }
 0x1d8   : > { %v1546_v13 = vadd.f32 %v1545_v33, %v1544_v10  ;;  %v1558_v10 = vld [vmem:[%s410_s12] sm:$0x3] }
 0x1d9   : > { %v1652_v5 = vrot.slane %v1558_v10, %v1651_v59 }
 0x1da   : > { %v1547_v4 = vrot.slane %v1546_v13, 1 }
 0x1db   : > { %v1653_v43 = vcombine.high %v1652_v5, %v1652_v5 }
 0x1dc   : > { %v1548_v29 = vadd.f32 %v1547_v4, %v1546_v13 }
 0x1dd   : > { %v1660_v25 = vrot.slane %v1653_v43, %v1651_v59 }
 0x1de   : > { %v1549_v3 = vadd.f32 %v1548_v29, %v1495_v17 }
 0x1e0   : > { %v1550_v35 = vmul.f32 0.001953125, %v1549_v3 }
 0x1e2   : > { %v1551_v14 = vadd.f32 1e-05, %v1550_v35 }
 0x1e4   : > { %3183 = vrsqrt.f32 %v1551_v14 }
 0x1f1   : > { %v3184_v57 = vpop.eup %3183 }
 0x1f2   : > { %v1554_v27 = vmul.f32 %v3184_v57, %v1553_v51 }
 0x1f4   : > { %v1556_v49 = vmul.f32 %v1554_v27, %v3724_v19  ;;  %v1559_v45 = vmul.f32 %v1558_v10, %v1554_v27  ;;  %v1662_v55 = vmul.f32 %v1660_v25, %v1554_v27 }
 0x1f6   : > { %v1557_v63 = vsub.f32 %v1555_v7, %v1556_v49  ;;  %v3870_v33 = vrot.slane %v1559_v45, %v1563_v23  ;;  %v3872_v61 = vrot.slane %v1662_v55, %v1563_v23 }
 0x1f8   : > { %v1566_v13 = vmul.f32 %v3870_v33, %v3532_v16  ;;  %v1567_v17 = vmul.f32 %v3870_v33, %v3540_v20  ;;  %v1568_v4 = vmul.f32 %v3870_v33, %v3548_v24  ;;  %v1569_v29 = vmul.f32 %v3870_v33, %v3556_v28 }
 0x1f9   : > { %v1570_v19 = vmul.f32 %v3870_v33, %v3564_v32  ;;  %v1571_v60 = vmul.f32 %v3870_v33, %v3572_v36  ;;  %v1572_v56 = vmul.f32 %v3870_v33, %v3580_v40  ;;  %v1573_v16 = vmul.f32 %v3870_v33, %v3588_v44 }
 0x1fa   : > { %v1574_v37 = vmul.f32 %v1558_v10, %v1557_v63  ;;  %v1669_v20 = vmul.f32 %v3872_v61, %v3596_v48  ;;  %v1670_v24 = vmul.f32 %v3872_v61, %v3614_v58  ;;  %v1671_v28 = vmul.f32 %v3872_v61, %v3630_v6 }
 0x1fb   : > { %v1672_v32 = vmul.f32 %v3872_v61, %v3646_v54  ;;  %v1673_v36 = vmul.f32 %v3872_v61, %v3662_v8  ;;  %v1674_v40 = vmul.f32 %v3872_v61, %v3678_v47  ;;  %v1675_v44 = vmul.f32 %v3872_v61, %v3694_v39 }
 0x1fc   : > { %v3904_v3 = vrot.slane %v1574_v37, %v1563_v23  ;;  %v1676_v48 = vmul.f32 %v3872_v61, %v3710_v9  ;;  %v1677_v58 = vmul.f32 %v1660_v25, %v1557_v63  ;;  %v1749_v6 = vmul.f32 %v3870_v33, %v3536_v18 }
 0x1fd   : > { %v1750_v54 = vmul.f32 %v3870_v33, %v3544_v22  ;;  %v1751_v8 = vmul.f32 %v3870_v33, %v3552_v26  ;;  %v1752_v47 = vmul.f32 %v3870_v33, %v3560_v30  ;;  %v1753_v39 = vmul.f32 %v3870_v33, %v3568_v34 }
 0x1fe   : > { %v1581_v9 = vadd.f32 %v3904_v3, %v1566_v13  ;;  %v1582_v35 = vadd.f32 %v3904_v3, %v1567_v17  ;;  %v1583_v18 = vadd.f32 %v3904_v3, %v1568_v4  ;;  %v1584_v1 = vadd.f32 %v3904_v3, %v1569_v29 }
 0x1ff   : > { %v1585_v22 = vadd.f32 %v3904_v3, %v1570_v19  ;;  %v1586_v26 = vadd.f32 %v3904_v3, %v1571_v60  ;;  %v1587_v31 = vadd.f32 %v3904_v3, %v1572_v56  ;;  %v1588_v30 = vadd.f32 %v3904_v3, %v1573_v16 }
 0x200   : > { %v1589_v14 = vmax.f32 %v1581_v9, 0.0  ;;  %v1590_v34 = vmax.f32 %v1582_v35, 0.0  ;;  %v1591_v59 = vmax.f32 %v1583_v18, 0.0  ;;  %v1592_v10 = vmax.f32 %v1584_v1, 0.0 }
 0x201   : > { %v1593_v5 = vmax.f32 %v1585_v22, 0.0  ;;  %v1594_v43 = vmax.f32 %v1586_v26, 0.0  ;;  %v1595_v51 = vmax.f32 %v1587_v31, 0.0  ;;  %v1596_v25 = vmax.f32 %v1588_v30, 0.0 }
 0x202   : > { %v2850_v57 = vpack.c.bf16 %v1590_v34, %v1589_v14  ;;  %v2855_v27 = vpack.c.bf16 %v1592_v10, %v1591_v59  ;;  %v3928_v7 = vrot.slane %v1677_v58, %v1563_v23  ;;  %v1754_v49 = vmul.f32 %v3870_v33, %v3576_v38 }
 0x203   : > { %v2860_v45 = vpack.c.bf16 %v1594_v43, %v1593_v5  ;;  %v2865_v55 = vpack.c.bf16 %v1596_v25, %v1595_v51  ;;  %v1755_v63 = vmul.f32 %v3870_v33, %v3584_v42  ;;  %v1756_v13 = vmul.f32 %v3870_v33, %v3592_v46 }
 0x204   : > { %2851 = vst [vmem:[%s3936_s18] sm:$0xff] %v2850_v57   ;;  %3007 = vst [vmem:[%s3936_s18 + $0x8] sm:$0xff] %v2855_v27   ;;  %v1684_v23 = vadd.f32 %v3928_v7, %v1669_v20  ;;  %v1685_v38 = vadd.f32 %v3928_v7, %v1670_v24  ;;  %v1686_v17 = vadd.f32 %v3928_v7, %v1671_v28 }
 0x205   : > { %v1687_v4 = vadd.f32 %v3928_v7, %v1672_v32  ;;  %3008 = vst [vmem:[%s3936_s18 + $0x10] sm:$0xff] %v2860_v45   ;;  %3009 = vst [vmem:[%s3936_s18 + $0x18] sm:$0xff] %v2865_v55   ;;  %v1688_v42 = vadd.f32 %v3928_v7, %v1673_v36  ;;  %v1689_v46 = vadd.f32 %v3928_v7, %v1674_v40  ;;  %v4385_v45 = vld [vmem:[#allocation32_spill] sm:$0xff] }
 0x206   : > { %v1690_v29 = vadd.f32 %v3928_v7, %v1675_v44  ;;  %v1691_v19 = vadd.f32 %v3928_v7, %v1676_v48  ;;  %v1692_v60 = vmax.f32 %v1684_v23, 0.0  ;;  %v1693_v56 = vmax.f32 %v1685_v38, 0.0 }
 0x207   : > { %v1694_v16 = vmax.f32 %v1686_v17, 0.0  ;;  %v1695_v37 = vmax.f32 %v1687_v4, 0.0  ;;  %v1696_v20 = vmax.f32 %v1688_v42, 0.0  ;;  %v1697_v24 = vmax.f32 %v1689_v46, 0.0 }
 0x208   : > { %v1698_v28 = vmax.f32 %v1690_v29, 0.0  ;;  %v1699_v32 = vmax.f32 %v1691_v19, 0.0  ;;  %v2870_v58 = vpack.c.bf16 %v1693_v56, %v1692_v60  ;;  %v1757_v40 = vadd.f32 %v1749_v6, %v3904_v3 }
 0x209   : > { %v2875_v36 = vpack.c.bf16 %v1695_v37, %v1694_v16  ;;  %v1758_v44 = vadd.f32 %v1750_v54, %v3904_v3  ;;  %v2880_v9 = vpack.c.bf16 %v1697_v24, %v1696_v20  ;;  %v1759_v35 = vadd.f32 %v1751_v8, %v3904_v3 }
 0x20a   : > { %v2885_v48 = vpack.c.bf16 %v1699_v32, %v1698_v28  ;;  %v1760_v18 = vadd.f32 %v1752_v47, %v3904_v3  ;;  %3010 = vst [vmem:[%s3936_s18 + $0x20] sm:$0xff] %v2870_v58   ;;  %v1761_v1 = vadd.f32 %v1753_v39, %v3904_v3  ;;  %v1762_v22 = vadd.f32 %v1754_v49, %v3904_v3  ;;  %v4388_v32 = vld [vmem:[#allocation5_spill] sm:$0xff] }
 0x20b   : > { %3011 = vst [vmem:[%s3936_s18 + $0x28] sm:$0xff] %v2875_v36   ;;  %v1763_v26 = vadd.f32 %v1755_v63, %v3904_v3  ;;  %v1764_v31 = vadd.f32 %v1756_v13, %v3904_v3  ;;  %3012 = vst [vmem:[%s3936_s18 + $0x30] sm:$0xff] %v2880_v9   ;;  %v1765_v6 = vmax.f32 %v1757_v40, 0.0  ;;  %v1766_v54 = vmax.f32 %v1758_v44, 0.0  ;;  %v4389_v36 = vld [vmem:[#allocation7_spill] sm:$0xff] }
 0x20c   : > { %3013 = vst [vmem:[%s3936_s18 + $0x38] sm:$0xff] %v2885_v48   ;;  %v1767_v30 = vmax.f32 %v1759_v35, 0.0  ;;  %v1768_v8 = vmax.f32 %v1760_v18, 0.0  ;;  %v1769_v14 = vmax.f32 %v1761_v1, 0.0  ;;  %v1770_v47 = vmax.f32 %v1762_v22, 0.0  ;;  %v4390_v48 = vld [vmem:[#allocation9_spill] sm:$0xff] }
 0x20d   : > { %v1771_v34 = vmax.f32 %v1763_v26, 0.0  ;;  %v1772_v59 = vmax.f32 %v1764_v31, 0.0  ;;  %v2890_v39 = vpack.c.bf16 %v1766_v54, %v1765_v6  ;;  %v1822_v5 = vmul.f32 %v3872_v61, %v3604_v52  ;;  %v4386_v52 = vld [vmem:[#allocation35_spill] sm:$0xff]  ;;  %v4392_v22 = vld [vmem:[#allocation13_spill] sm:$0xff] }
 0x20e   : > { %v2895_v10 = vpack.c.bf16 %v1768_v8, %v1767_v30  ;;  %v1823_v43 = vmul.f32 %v3872_v61, %v3622_v0  ;;  %v2900_v51 = vpack.c.bf16 %v1770_v47, %v1769_v14  ;;  %v1824_v57 = vmul.f32 %v3872_v61, %v3638_v12  ;;  %v4387_v0 = vld [vmem:[#allocation38_spill] sm:$0xff]  ;;  %v4391_v18 = vld [vmem:[#allocation11_spill] sm:$0xff]  ;;  %v4394_v54 = vld [vmem:[#allocation17_spill] sm:$0xff] }
 0x20f   : > { %v2905_v25 = vpack.c.bf16 %v1772_v59, %v1771_v34  ;;  %v1825_v27 = vmul.f32 %v3872_v61, %v3654_v62  ;;  %3014 = vst [vmem:[%s3936_s18 + $0x40] sm:$0xff] %v2890_v39   ;;  %v1826_v49 = vmul.f32 %v3872_v61, %v3670_v50  ;;  %v1827_v55 = vmul.f32 %v3872_v61, %v4385_v45  ;;  %v4393_v31 = vld [vmem:[#allocation15_spill] sm:$0xff] }
 0x210   : > { %3015 = vst [vmem:[%s3936_s18 + $0x48] sm:$0xff] %v2895_v10   ;;  %v1828_v63 = vmul.f32 %v3872_v61, %v4386_v52  ;;  %v1829_v13 = vmul.f32 %v3872_v61, %v4387_v0  ;;  %3016 = vst [vmem:[%s3936_s18 + $0x50] sm:$0xff] %v2900_v51   ;;  %v1830_v12 = vadd.f32 %v1822_v5, %v3928_v7  ;;  %v4395_v8 = vld [vmem:[#allocation19_spill] sm:$0xff] }
 0x211   : > { %3017 = vst [vmem:[%s3936_s18 + $0x58] sm:$0xff] %v2905_v25   ;;  %v1831_v62 = vadd.f32 %v1823_v43, %v3928_v7  ;;  %v1832_v23 = vadd.f32 %v1824_v57, %v3928_v7  ;;  %v1833_v38 = vadd.f32 %v1825_v27, %v3928_v7  ;;  %v1834_v50 = vadd.f32 %v1826_v49, %v3928_v7 }
 0x212   : > { %v1835_v17 = vadd.f32 %v1827_v55, %v3928_v7  ;;  %v1836_v4 = vadd.f32 %v1828_v63, %v3928_v7  ;;  %v1837_v42 = vadd.f32 %v1829_v13, %v3928_v7  ;;  %v1838_v46 = vmax.f32 %v1830_v12, 0.0  ;;  %v4396_v12 = vld [vmem:[#allocation21_spill] sm:$0xff] }
 0x213   : > { %v1839_v29 = vmax.f32 %v1831_v62, 0.0  ;;  %v1840_v19 = vmax.f32 %v1832_v23, 0.0  ;;  %v1841_v60 = vmax.f32 %v1833_v38, 0.0  ;;  %v1842_v56 = vmax.f32 %v1834_v50, 0.0  ;;  %v4397_v23 = vld [vmem:[#allocation23_spill] sm:$0xff] }
 0x214   : > { %v1843_v16 = vmax.f32 %v1835_v17, 0.0  ;;  %v1844_v37 = vmax.f32 %v1836_v4, 0.0  ;;  %v1845_v20 = vmax.f32 %v1837_v42, 0.0  ;;  %v1895_v58 = vmul.f32 %v3870_v33, %v4388_v32 }
 0x215   : > { %v2910_v24 = vpack.c.bf16 %v1839_v29, %v1838_v46  ;;  %v2915_v28 = vpack.c.bf16 %v1841_v60, %v1840_v19  ;;  %v1896_v40 = vmul.f32 %v3870_v33, %v4389_v36  ;;  %v1897_v35 = vmul.f32 %v3870_v33, %v4390_v48  ;;  %v4398_v19 = vld [vmem:[#allocation34_spill] sm:$0xff] }
 0x216   : > { %v2920_v44 = vpack.c.bf16 %v1843_v16, %v1842_v56  ;;  %v2925_v9 = vpack.c.bf16 %v1845_v20, %v1844_v37  ;;  %v1898_v1 = vmul.f32 %v3870_v33, %v4391_v18  ;;  %v1899_v26 = vmul.f32 %v3870_v33, %v4392_v22  ;;  %v4399_v56 = vld [vmem:[#allocation37_spill] sm:$0xff]  ;;  %v4400_v22 = vld [vmem:[#allocation6_spill] sm:$0xff] }
 0x217   : > { %3018 = vst [vmem:[%s3936_s18 + $0x60] sm:$0xff] %v2910_v24   ;;  %3019 = vst [vmem:[%s3936_s18 + $0x68] sm:$0xff] %v2915_v28   ;;  %v1900_v6 = vmul.f32 %v3870_v33, %v4393_v31  ;;  %v1901_v30 = vmul.f32 %v3870_v33, %v4394_v54  ;;  %v1902_v14 = vmul.f32 %v3870_v33, %v4395_v8  ;;  %v4401_v31 = vld [vmem:[#allocation8_spill] sm:$0xff]  ;;  %v4402_v8 = vld [vmem:[#allocation10_spill] sm:$0xff] }
 0x218   : > { %3020 = vst [vmem:[%s3936_s18 + $0x70] sm:$0xff] %v2920_v44   ;;  %3021 = vst [vmem:[%s3936_s18 + $0x78] sm:$0xff] %v2925_v9   ;;  %v1903_v47 = vadd.f32 %v1895_v58, %v3904_v3  ;;  %v1904_v34 = vadd.f32 %v1896_v40, %v3904_v3  ;;  %v1905_v59 = vadd.f32 %v1897_v35, %v3904_v3 }
 0x219   : > { %v1906_v39 = vadd.f32 %v1898_v1, %v3904_v3  ;;  %v1907_v10 = vadd.f32 %v1899_v26, %v3904_v3  ;;  %v1908_v5 = vadd.f32 %v1900_v6, %v3904_v3  ;;  %v1909_v43 = vadd.f32 %v1901_v30, %v3904_v3 }
 0x21a   : > { %v1910_v51 = vadd.f32 %v1902_v14, %v3904_v3  ;;  %v1911_v25 = vmax.f32 %v1903_v47, 0.0  ;;  %v1912_v57 = vmax.f32 %v1904_v34, 0.0  ;;  %v1913_v27 = vmax.f32 %v1905_v59, 0.0  ;;  %v4403_v47 = vld [vmem:[#allocation12_spill] sm:$0xff]  ;;  %v4404_v59 = vld [vmem:[#allocation14_spill] sm:$0xff] }
 0x21b   : > { %v1914_v49 = vmax.f32 %v1906_v39, 0.0  ;;  %v1915_v45 = vmax.f32 %v1907_v10, 0.0  ;;  %v1916_v55 = vmax.f32 %v1908_v5, 0.0  ;;  %v1917_v52 = vmax.f32 %v1909_v43, 0.0  ;;  %v4405_v10 = vld [vmem:[#allocation16_spill] sm:$0xff]  ;;  %v4406_v43 = vld [vmem:[#allocation18_spill] sm:$0xff] }
 0x21c   : > { %v1918_v63 = vmax.f32 %v1910_v51, 0.0  ;;  %v2930_v0 = vpack.c.bf16 %v1912_v57, %v1911_v25  ;;  %v1968_v62 = vmul.f32 %v3872_v61, %v4396_v12  ;;  %v1969_v38 = vmul.f32 %v3872_v61, %v4397_v23  ;;  %v4407_v25 = vld [vmem:[#allocation20_spill] sm:$0xff] }
 0x21d   : > { %v2935_v13 = vpack.c.bf16 %v1914_v49, %v1913_v27  ;;  %v2940_v50 = vpack.c.bf16 %v1916_v55, %v1915_v45  ;;  %v1970_v4 = vmul.f32 %v3872_v61, %v4367_v15  ;;  %v1971_v42 = vmul.f32 %v3872_v61, %v4369_v41 }
 0x21e   : > { %v2945_v17 = vpack.c.bf16 %v1918_v63, %v1917_v52  ;;  %3022 = vst [vmem:[%s3936_s18 + $0x80] sm:$0xff] %v2930_v0   ;;  %v1972_v46 = vmul.f32 %v3872_v61, %v4371_v53  ;;  %v1973_v29 = vmul.f32 %v3872_v61, %v4373_v2  ;;  %v1974_v60 = vmul.f32 %v3872_v61, %v4398_v19 }
 0x21f   : > { %3023 = vst [vmem:[%s3936_s18 + $0x88] sm:$0xff] %v2935_v13   ;;  %v1975_v16 = vmul.f32 %v3872_v61, %v4399_v56  ;;  %3024 = vst [vmem:[%s3936_s18 + $0x90] sm:$0xff] %v2940_v50   ;;  %v1976_v15 = vadd.f32 %v1968_v62, %v3928_v7  ;;  %v1977_v41 = vadd.f32 %v1969_v38, %v3928_v7 }
 0x220   : > { %3025 = vst [vmem:[%s3936_s18 + $0x98] sm:$0xff] %v2945_v17   ;;  %v1978_v37 = vadd.f32 %v1970_v4, %v3928_v7  ;;  %v1979_v20 = vadd.f32 %v1971_v42, %v3928_v7  ;;  %v1980_v53 = vadd.f32 %v1972_v46, %v3928_v7  ;;  %v1981_v2 = vadd.f32 %v1973_v29, %v3928_v7  ;;  %v4408_v29 = vld [vmem:[#allocation22_spill] sm:$0xff] }
 0x221   : > { %v1982_v24 = vadd.f32 %v1974_v60, %v3928_v7  ;;  %v1983_v28 = vadd.f32 %v1975_v16, %v3928_v7  ;;  %v1984_v32 = vmax.f32 %v1976_v15, 0.0  ;;  %v1985_v58 = vmax.f32 %v1977_v41, 0.0  ;;  %v4409_v60 = vld [vmem:[#allocation24_spill] sm:$0xff] }
 0x222   : > { %v1986_v36 = vmax.f32 %v1978_v37, 0.0  ;;  %v1987_v40 = vmax.f32 %v1979_v20, 0.0  ;;  %v1988_v44 = vmax.f32 %v1980_v53, 0.0  ;;  %v1989_v9 = vmax.f32 %v1981_v2, 0.0  ;;  %v4410_v37 = vld [vmem:[#allocation30_spill] sm:$0xff]  ;;  %v4411_v53 = vld [vmem:[#allocation33_spill] sm:$0xff] }
 0x223   : > { %v1990_v48 = vmax.f32 %v1982_v24, 0.0  ;;  %v1991_v35 = vmax.f32 %v1983_v28, 0.0  ;;  %v2950_v18 = vpack.c.bf16 %v1985_v58, %v1984_v32  ;;  %v2041_v26 = vmul.f32 %v3870_v33, %v4400_v22  ;;  %v4412_v24 = vld [vmem:[#allocation36_spill] sm:$0xff]  ;;  %v4413_v32 = vld [vmem:[#allocation39_spill] sm:$0xff] }
 0x224   : > { %v2955_v1 = vpack.c.bf16 %v1987_v40, %v1986_v36  ;;  %v2042_v6 = vmul.f32 %v3870_v33, %v4401_v31  ;;  %v2960_v54 = vpack.c.bf16 %v1989_v9, %v1988_v44  ;;  %v2043_v14 = vmul.f32 %v3870_v33, %v4402_v8 }
 0x225   : > { %v2965_v30 = vpack.c.bf16 %v1991_v35, %v1990_v48  ;;  %v2044_v34 = vmul.f32 %v3870_v33, %v4403_v47  ;;  %3026 = vst [vmem:[%s3936_s18 + $0xa0] sm:$0xff] %v2950_v18   ;;  %v2045_v39 = vmul.f32 %v3870_v33, %v4404_v59  ;;  %v2046_v5 = vmul.f32 %v3870_v33, %v4405_v10  ;;  %v2208_v59 = vld [vmem:[%s3936_s18 + $0x8] sm:$0xf] (%p3271_p5)  ;;  %v2212_v10 = vld [vmem:[%s3936_s18 + $0x10] sm:$0xf] (%p3271_p5) }
 0x226   : > { %3027 = vst [vmem:[%s3936_s18 + $0xa8] sm:$0xff] %v2955_v1   ;;  %v2047_v51 = vmul.f32 %v3870_v33, %v4406_v43  ;;  %v2048_v57 = vmul.f32 %v3870_v33, %v4407_v25  ;;  %3028 = vst [vmem:[%s3936_s18 + $0xb0] sm:$0xff] %v2960_v54   ;;  %v2049_v27 = vadd.f32 %v2041_v26, %v3904_v3  ;;  %v2216_v43 = vld [vmem:[%s3936_s18 + $0x18] sm:$0xf] (%p3271_p5)  ;;  %v2220_v25 = vld [vmem:[%s3936_s18 + $0x20] sm:$0xf] (%p3271_p5) }
 0x227   : > { %3029 = vst [vmem:[%s3936_s18 + $0xb8] sm:$0xff] %v2965_v30   ;;  %v2050_v49 = vadd.f32 %v2042_v6, %v3904_v3  ;;  %v2051_v45 = vadd.f32 %v2043_v14, %v3904_v3  ;;  %v2052_v55 = vadd.f32 %v2044_v34, %v3904_v3  ;;  %v2053_v52 = vadd.f32 %v2045_v39, %v3904_v3  ;;  %v2206_v34 = vld [vmem:[%s3936_s18 + $0x4] sm:$0xf] (%p3271_p5)  ;;  %v2210_v39 = vld [vmem:[%s3936_s18 + $0xc] sm:$0xf] (%p3271_p5) }
 0x228   : > { %v2054_v63 = vadd.f32 %v2046_v5, %v3904_v3  ;;  %v2055_v0 = vadd.f32 %v2047_v51, %v3904_v3  ;;  %v2056_v13 = vadd.f32 %v2048_v57, %v3904_v3  ;;  %v2057_v12 = vmax.f32 %v2049_v27, 0.0  ;;  %2207 = vst [vmem:[%s4114_s28 + $0x8] sm:$0xf] (%p3271_p5), %v2206_v34  ;;  %2209 = vst [vmem:[%s4114_s28 + $0x10] sm:$0xf] (%p3271_p5), %v2208_v59 }
 0x229   : > { %v2058_v33 = vmax.f32 %v2050_v49, 0.0  ;;  %v2059_v62 = vmax.f32 %v2051_v45, 0.0  ;;  %v2060_v23 = vmax.f32 %v2052_v55, 0.0  ;;  %v2061_v38 = vmax.f32 %v2053_v52, 0.0  ;;  %2211 = vst [vmem:[%s4114_s28 + $0x18] sm:$0xf] (%p3271_p5), %v2210_v39 }
 0x22a   : > { %v2062_v50 = vmax.f32 %v2054_v63, 0.0  ;;  %v2063_v17 = vmax.f32 %v2055_v0, 0.0  ;;  %v2064_v4 = vmax.f32 %v2056_v13, 0.0  ;;  %v2114_v19 = vmul.f32 %v3872_v61, %v4408_v29  ;;  %2213 = vst [vmem:[%s4114_s28 + $0x20] sm:$0xf] (%p3271_p5), %v2212_v10 }
 0x22b   : > { %v2970_v42 = vpack.c.bf16 %v2058_v33, %v2057_v12  ;;  %v2975_v46 = vpack.c.bf16 %v2060_v23, %v2059_v62  ;;  %v2115_v3 = vmul.f32 %v3872_v61, %v4409_v60  ;;  %v2116_v15 = vmul.f32 %v3872_v61, %v4379_v21  ;;  %v2214_v5 = vld [vmem:[%s3936_s18 + $0x14] sm:$0xf] (%p3271_p5)  ;;  %v2218_v51 = vld [vmem:[%s3936_s18 + $0x1c] sm:$0xf] (%p3271_p5)  ;;  %2217 = vst [vmem:[%s4114_s28 + $0x30] sm:$0xf] (%p3271_p5), %v2216_v43 }
 0x22c   : > { %v2980_v56 = vpack.c.bf16 %v2062_v50, %v2061_v38  ;;  %v2985_v16 = vpack.c.bf16 %v2064_v4, %v2063_v17  ;;  %v2117_v41 = vmul.f32 %v3872_v61, %v4380_v11  ;;  %v2118_v20 = vmul.f32 %v3872_v61, %v4410_v37  ;;  %2215 = vst [vmem:[%s4114_s28 + $0x28] sm:$0xf] (%p3271_p5), %v2214_v5  ;;  %v2222_v57 = vld [vmem:[%s3936_s18 + $0x24] sm:$0xf] (%p3271_p5)  ;;  %v2224_v27 = vld [vmem:[%s3936_s18 + $0x28] sm:$0xf] (%p3271_p5) }
 0x22d   : > { %3030 = vst [vmem:[%s3936_s18 + $0xc0] sm:$0xff] %v2970_v42   ;;  %3031 = vst [vmem:[%s3936_s18 + $0xc8] sm:$0xff] %v2975_v46   ;;  %v2119_v2 = vmul.f32 %v3872_v61, %v4411_v53  ;;  %v2120_v28 = vmul.f32 %v3872_v61, %v4412_v24  ;;  %v2121_v58 = vmul.f32 %v3872_v61, %v4413_v32  ;;  %v2226_v49 = vld [vmem:[%s3936_s18 + $0x2c] sm:$0xf] (%p3271_p5)  ;;  %v2228_v45 = vld [vmem:[%s3936_s18 + $0x30] sm:$0xf] (%p3271_p5) }
 0x22e   : > { %3032 = vst [vmem:[%s3936_s18 + $0xd0] sm:$0xff] %v2980_v56   ;;  %3033 = vst [vmem:[%s3936_s18 + $0xd8] sm:$0xff] %v2985_v16   ;;  %v2122_v21 = vadd.f32 %v2114_v19, %v3928_v7  ;;  %v2123_v11 = vadd.f32 %v2115_v3, %v3928_v7  ;;  %v2124_v36 = vadd.f32 %v2116_v15, %v3928_v7  ;;  %v2230_v55 = vld [vmem:[%s3936_s18 + $0x34] sm:$0xf] (%p3271_p5)  ;;  %v2232_v52 = vld [vmem:[%s3936_s18 + $0x38] sm:$0xf] (%p3271_p5) }
 0x22f   : > { %v2125_v40 = vadd.f32 %v2117_v41, %v3928_v7  ;;  %v2126_v44 = vadd.f32 %v2118_v20, %v3928_v7  ;;  %v2127_v9 = vadd.f32 %v2119_v2, %v3928_v7  ;;  %v2128_v48 = vadd.f32 %v2120_v28, %v3928_v7  ;;  %2219 = vst [vmem:[%s4114_s28 + $0x38] sm:$0xf] (%p3271_p5), %v2218_v51  ;;  %v2234_v63 = vld [vmem:[%s3936_s18 + $0x3c] sm:$0xf] (%p3271_p5)  ;;  %v2236_v0 = vld [vmem:[%s3936_s18 + $0x40] sm:$0xf] (%p3271_p5) }
 0x230   : > { %v2129_v61 = vadd.f32 %v2121_v58, %v3928_v7  ;;  %v2130_v35 = vmax.f32 %v2122_v21, 0.0  ;;  %v2131_v18 = vmax.f32 %v2123_v11, 0.0  ;;  %v2132_v1 = vmax.f32 %v2124_v36, 0.0  ;;  %v2204_v7 = vld [vmem:[%s3936_s18] sm:$0xf] (%p3271_p5) }
 0x231   : > { %v2133_v22 = vmax.f32 %v2125_v40, 0.0  ;;  %v2134_v26 = vmax.f32 %v2126_v44, 0.0  ;;  %v2135_v31 = vmax.f32 %v2127_v9, 0.0  ;;  %v2136_v6 = vmax.f32 %v2128_v48, 0.0  ;;  %2205 = vst [vmem:[%s4114_s28] sm:$0xf] (%p3271_p5), %v2204_v7 }
 0x232   : > { %v2137_v54 = vmax.f32 %v2129_v61, 0.0  ;;  %v2990_v30 = vpack.c.bf16 %v2131_v18, %v2130_v35  ;;  %2185 = sbr.rel (!%p3271_p5) target bundleno = 598 (0x256), region = 67  ;;  %2221 = vst [vmem:[%s4114_s28 + $0x40] sm:$0xf] (%p3271_p5), %v2220_v25  ;;  %2223 = vst [vmem:[%s4114_s28 + $0x48] sm:$0xf] (%p3271_p5), %v2222_v57 }
 0x233   : > { %v2995_v8 = vpack.c.bf16 %v2133_v22, %v2132_v1  ;;  %v3000_v14 = vpack.c.bf16 %v2135_v31, %v2134_v26  ;;  %2225 = vst [vmem:[%s4114_s28 + $0x50] sm:$0xf] (%p3271_p5), %v2224_v27  ;;  %2227 = vst [vmem:[%s4114_s28 + $0x58] sm:$0xf] (%p3271_p5), %v2226_v49  ;;  %v2238_v13 = vld [vmem:[%s3936_s18 + $0x44] sm:$0xf] (%p3271_p5) }
 0x234   : > { %v3005_v47 = vpack.c.bf16 %v2137_v54, %v2136_v6  ;;  %3034 = vst [vmem:[%s3936_s18 + $0xe0] sm:$0xff] %v2990_v30   ;;  %2229 = vst [vmem:[%s4114_s28 + $0x60] sm:$0xf] (%p3271_p5), %v2228_v45  ;;  %v2240_v12 = vld [vmem:[%s3936_s18 + $0x48] sm:$0xf] (%p3271_p5) }
 0x235   : > { %3035 = vst [vmem:[%s3936_s18 + $0xe8] sm:$0xff] %v2995_v8   ;;  %3036 = vst [vmem:[%s3936_s18 + $0xf0] sm:$0xff] %v3000_v14   ;;  %v2242_v33 = vld [vmem:[%s3936_s18 + $0x4c] sm:$0xf] (%p3271_p5)  ;;  %v2244_v62 = vld [vmem:[%s3936_s18 + $0x50] sm:$0xf] (%p3271_p5) }
 0x236   : > { %3037 = vst [vmem:[%s3936_s18 + $0xf8] sm:$0xff] %v3005_v47   ;;  %2231 = vst [vmem:[%s4114_s28 + $0x68] sm:$0xf] (%p3271_p5), %v2230_v55  ;;  %v2246_v23 = vld [vmem:[%s3936_s18 + $0x54] sm:$0xf] (%p3271_p5) }
 0x237   : > { %2233 = vst [vmem:[%s4114_s28 + $0x70] sm:$0xf] %v2232_v52  ;;  %2235 = vst [vmem:[%s4114_s28 + $0x78] sm:$0xf] %v2234_v63  ;;  %v2248_v38 = vld [vmem:[%s3936_s18 + $0x58] sm:$0xf] }
 0x238   : > { %2237 = vst [vmem:[%s4114_s28 + $0x80] sm:$0xf] %v2236_v0  ;;  %2239 = vst [vmem:[%s4114_s28 + $0x88] sm:$0xf] %v2238_v13  ;;  %v2250_v50 = vld [vmem:[%s3936_s18 + $0x5c] sm:$0xf] }
 0x239   : > { %2241 = vst [vmem:[%s4114_s28 + $0x90] sm:$0xf] %v2240_v12  ;;  %2243 = vst [vmem:[%s4114_s28 + $0x98] sm:$0xf] %v2242_v33  ;;  %v2252_v17 = vld [vmem:[%s3936_s18 + $0x60] sm:$0xf] }
 0x23a   : > { %2245 = vst [vmem:[%s4114_s28 + $0xa0] sm:$0xf] %v2244_v62  ;;  %2247 = vst [vmem:[%s4114_s28 + $0xa8] sm:$0xf] %v2246_v23  ;;  %v2254_v4 = vld [vmem:[%s3936_s18 + $0x64] sm:$0xf] }
 0x23b   : > { %2249 = vst [vmem:[%s4114_s28 + $0xb0] sm:$0xf] %v2248_v38  ;;  %2251 = vst [vmem:[%s4114_s28 + $0xb8] sm:$0xf] %v2250_v50  ;;  %v2256_v42 = vld [vmem:[%s3936_s18 + $0x68] sm:$0xf] }
 0x23c   : > { %2253 = vst [vmem:[%s4114_s28 + $0xc0] sm:$0xf] %v2252_v17  ;;  %2255 = vst [vmem:[%s4114_s28 + $0xc8] sm:$0xf] %v2254_v4  ;;  %v2258_v46 = vld [vmem:[%s3936_s18 + $0x6c] sm:$0xf] }
 0x23d   : > { %v2260_v29 = vld [vmem:[%s3936_s18 + $0x70] sm:$0xf]  ;;  %2257 = vst [vmem:[%s4114_s28 + $0xd0] sm:$0xf] %v2256_v42  ;;  %2259 = vst [vmem:[%s4114_s28 + $0xd8] sm:$0xf] %v2258_v46 }
 0x23e   : > { %2261 = vst [vmem:[%s4114_s28 + $0xe0] sm:$0xf] %v2260_v29  ;;  %v2262_v19 = vld [vmem:[%s3936_s18 + $0x74] sm:$0xf]  ;;  %v2264_v60 = vld [vmem:[%s3936_s18 + $0x78] sm:$0xf] }
 0x23f   : > { %v2266_v3 = vld [vmem:[%s3936_s18 + $0x7c] sm:$0xf]  ;;  %2263 = vst [vmem:[%s4114_s28 + $0xe8] sm:$0xf] %v2262_v19  ;;  %2265 = vst [vmem:[%s4114_s28 + $0xf0] sm:$0xf] %v2264_v60 }
 0x240   : > { %2267 = vst [vmem:[%s4114_s28 + $0xf8] sm:$0xf] %v2266_v3  ;;  %v2268_v56 = vld [vmem:[%s3936_s18 + $0x80] sm:$0xf]  ;;  %v2270_v16 = vld [vmem:[%s3936_s18 + $0x84] sm:$0xf] }
 0x241   : > { %v2272_v15 = vld [vmem:[%s3936_s18 + $0x88] sm:$0xf]  ;;  %2269 = vst [vmem:[%s4114_s28 + $0x100] sm:$0xf] %v2268_v56  ;;  %2271 = vst [vmem:[%s4114_s28 + $0x108] sm:$0xf] %v2270_v16 }
 0x242   : > { %2273 = vst [vmem:[%s4114_s28 + $0x110] sm:$0xf] %v2272_v15  ;;  %v2274_v41 = vld [vmem:[%s3936_s18 + $0x8c] sm:$0xf]  ;;  %v2276_v37 = vld [vmem:[%s3936_s18 + $0x90] sm:$0xf] }
 0x243   : > { %v2278_v20 = vld [vmem:[%s3936_s18 + $0x94] sm:$0xf]  ;;  %2275 = vst [vmem:[%s4114_s28 + $0x118] sm:$0xf] %v2274_v41  ;;  %2277 = vst [vmem:[%s4114_s28 + $0x120] sm:$0xf] %v2276_v37 }
 0x244   : > { %2279 = vst [vmem:[%s4114_s28 + $0x128] sm:$0xf] %v2278_v20  ;;  %v2280_v53 = vld [vmem:[%s3936_s18 + $0x98] sm:$0xf]  ;;  %v2282_v2 = vld [vmem:[%s3936_s18 + $0x9c] sm:$0xf] }
 0x245   : > { %v2284_v24 = vld [vmem:[%s3936_s18 + $0xa0] sm:$0xf]  ;;  %2281 = vst [vmem:[%s4114_s28 + $0x130] sm:$0xf] %v2280_v53  ;;  %2283 = vst [vmem:[%s4114_s28 + $0x138] sm:$0xf] %v2282_v2 }
 0x246   : > { %2285 = vst [vmem:[%s4114_s28 + $0x140] sm:$0xf] %v2284_v24  ;;  %v2286_v28 = vld [vmem:[%s3936_s18 + $0xa4] sm:$0xf]  ;;  %v2288_v32 = vld [vmem:[%s3936_s18 + $0xa8] sm:$0xf] }
 0x247   : > { %v2290_v58 = vld [vmem:[%s3936_s18 + $0xac] sm:$0xf]  ;;  %2287 = vst [vmem:[%s4114_s28 + $0x148] sm:$0xf] %v2286_v28  ;;  %2289 = vst [vmem:[%s4114_s28 + $0x150] sm:$0xf] %v2288_v32 }
 0x248   : > { %2291 = vst [vmem:[%s4114_s28 + $0x158] sm:$0xf] %v2290_v58  ;;  %v2292_v21 = vld [vmem:[%s3936_s18 + $0xb0] sm:$0xf]  ;;  %v2294_v11 = vld [vmem:[%s3936_s18 + $0xb4] sm:$0xf] }
 0x249   : > { %v2296_v36 = vld [vmem:[%s3936_s18 + $0xb8] sm:$0xf]  ;;  %2293 = vst [vmem:[%s4114_s28 + $0x160] sm:$0xf] %v2292_v21  ;;  %2295 = vst [vmem:[%s4114_s28 + $0x168] sm:$0xf] %v2294_v11 }
 0x24a   : > { %2297 = vst [vmem:[%s4114_s28 + $0x170] sm:$0xf] %v2296_v36  ;;  %v2298_v40 = vld [vmem:[%s3936_s18 + $0xbc] sm:$0xf]  ;;  %v2300_v44 = vld [vmem:[%s3936_s18 + $0xc0] sm:$0xf] }
 0x24b   : > { %v2302_v9 = vld [vmem:[%s3936_s18 + $0xc4] sm:$0xf]  ;;  %2299 = vst [vmem:[%s4114_s28 + $0x178] sm:$0xf] %v2298_v40  ;;  %2301 = vst [vmem:[%s4114_s28 + $0x180] sm:$0xf] %v2300_v44 }
 0x24c   : > { %2303 = vst [vmem:[%s4114_s28 + $0x188] sm:$0xf] %v2302_v9  ;;  %v2304_v48 = vld [vmem:[%s3936_s18 + $0xc8] sm:$0xf]  ;;  %v2306_v61 = vld [vmem:[%s3936_s18 + $0xcc] sm:$0xf] }
 0x24d   : > { %v2308_v35 = vld [vmem:[%s3936_s18 + $0xd0] sm:$0xf]  ;;  %2305 = vst [vmem:[%s4114_s28 + $0x190] sm:$0xf] %v2304_v48  ;;  %2307 = vst [vmem:[%s4114_s28 + $0x198] sm:$0xf] %v2306_v61 }
 0x24e   : > { %2309 = vst [vmem:[%s4114_s28 + $0x1a0] sm:$0xf] %v2308_v35  ;;  %v2310_v18 = vld [vmem:[%s3936_s18 + $0xd4] sm:$0xf]  ;;  %v2312_v1 = vld [vmem:[%s3936_s18 + $0xd8] sm:$0xf] }
 0x24f   : > { %v2314_v22 = vld [vmem:[%s3936_s18 + $0xdc] sm:$0xf]  ;;  %2311 = vst [vmem:[%s4114_s28 + $0x1a8] sm:$0xf] %v2310_v18  ;;  %2313 = vst [vmem:[%s4114_s28 + $0x1b0] sm:$0xf] %v2312_v1 }
 0x250   : > { %2315 = vst [vmem:[%s4114_s28 + $0x1b8] sm:$0xf] %v2314_v22  ;;  %v2316_v26 = vld [vmem:[%s3936_s18 + $0xe0] sm:$0xf]  ;;  %v2318_v31 = vld [vmem:[%s3936_s18 + $0xe4] sm:$0xf] }
 0x251   : > { %v2320_v6 = vld [vmem:[%s3936_s18 + $0xe8] sm:$0xf]  ;;  %2317 = vst [vmem:[%s4114_s28 + $0x1c0] sm:$0xf] %v2316_v26  ;;  %2319 = vst [vmem:[%s4114_s28 + $0x1c8] sm:$0xf] %v2318_v31 }
 0x252   : > { %2321 = vst [vmem:[%s4114_s28 + $0x1d0] sm:$0xf] %v2320_v6  ;;  %v2322_v54 = vld [vmem:[%s3936_s18 + $0xec] sm:$0xf]  ;;  %v2324_v30 = vld [vmem:[%s3936_s18 + $0xf0] sm:$0xf] }
 0x253   : > { %v2326_v8 = vld [vmem:[%s3936_s18 + $0xf4] sm:$0xf]  ;;  %2323 = vst [vmem:[%s4114_s28 + $0x1d8] sm:$0xf] %v2322_v54  ;;  %2325 = vst [vmem:[%s4114_s28 + $0x1e0] sm:$0xf] %v2324_v30 }
 0x254   : > { %2327 = vst [vmem:[%s4114_s28 + $0x1e8] sm:$0xf] %v2326_v8  ;;  %v2328_v14 = vld [vmem:[%s3936_s18 + $0xf8] sm:$0xf]  ;;  %v2330_v47 = vld [vmem:[%s3936_s18 + $0xfc] sm:$0xf] }
 0x255   : > { %2329 = vst [vmem:[%s4114_s28 + $0x1f0] sm:$0xf] %v2328_v14  ;;  %2331 = vst [vmem:[%s4114_s28 + $0x1f8] sm:$0xf] %v2330_v47 }
 0x256 PF: > { %p12_p11 = scmp.ge.s32.totalorder %s3259_s22, 4   ;;  %s4414_s18 = smov %s3203_s19 }
 0x257   : > { %s4415_s19 = smov %s3269_s25  ;;  %s4416_s20 = smov %s3259_s22 }
 0x258   :  { %14 = sbr.rel (!%p12_p11) target bundleno = 2 (0x2), region = 155 }

// kernel: dropout_head_forward.11
= control target key start
LH: loop header
LB: loop body
LE: loop exit
PB: predicated region body
PF: predicated region fallthrough
CT: control target
= control target key end

     0   :  { %s1044_s12 = smov 0   ;;  %s1221_s0 = inlined_call_operand.vmem [shape: bf16[512,256], index: 0, kind: input, shape index: {}]   ;;  %s1222_s1 = inlined_call_operand.vmem [shape: bf16[256,128], index: 1, kind: input, shape index: {}]   ;;  %s1223_s2 = inlined_call_operand.vmem [shape: f32[1,128], index: 2, kind: input, shape index: {}]   ;;  %s1224_s3 = inlined_call_operand.vmem [shape: f32[512,128], index: 3, kind: output, shape index: {}]  }
   0x1 LB: > { %s754_s13 = sadd.s32 4294967295, %s1022_s12   ;;  %p758_p0 = scmp.ge.s32.totalorder %s1022_s12, 1  ;;  %s1022_s12 = sphi %s1044_s12, %s13_s12  }
   0x2   : > { %p139_p1 = scmp.lt.s32.totalorder %s1022_s12, 3 }
   0x4   : > { %p140_p2 = pnand %p758_p0, %p139_p1 }
   0x5   : > { %s759_s16 = sshll.u32 (!%p140_p2), %s754_s13, 5 }
   0x6   : > { %143 = sbr.rel (%p140_p2) target bundleno = 304 (0x130), region = 32  ;;  %p165_p3 = scmp.lt.s32.totalorder (!%p140_p2), %s759_s16, 63 }
   0xb   : > { %v952_v0 = vld [vmem:[%s1222_s1 + $0x78] sm:$0xff]   ;;  %v954_v2 = vld [vmem:[%s1222_s1 + $0x70] sm:$0xff]   ;;  %v956_v4 = vld [vmem:[%s1222_s1 + $0x68] sm:$0xff]   ;;  %s1226_s16 = smov (!%p165_p3, %s759_s16), 63 }
   0xc   : > { %v953_v1 = vld [vmem:[%s1222_s1 + $0x38] sm:$0xff]   ;;  %816 = vmatprep.subr.bf16.mxu0 %v952_v0  ;;  %928 = vmatprep.subr.bf16.mxu1 %v952_v0  ;;  %v955_v3 = vld [vmem:[%s1222_s1 + $0x30] sm:$0xff]   ;;  %v957_v5 = vld [vmem:[%s1222_s1 + $0x28] sm:$0xff]   ;;  %s815_s4 = sshll.u32 %s1226_s16, 3 }
   0xd   : > { %817 = vmatpush3.bf16.msra.mxu0 %v953_v1  ;;  %936 = vmatpush3.bf16.msra.mxu1 %v953_v1  ;;  %v958_v6 = vld [vmem:[%s1222_s1 + $0x60] sm:$0xff]   ;;  %v960_v8 = vld [vmem:[%s1222_s1 + $0x58] sm:$0xff]   ;;  %s1087_s9 = scalar_lea.vmem %s1221_s0, %s815_s4  ;;  %v962_v10 = vld [vmem:[%s1222_s1 + $0x50] sm:$0xff]   ;;  %s1152_s30 = scalar_lea.vmem %s1224_s3, %s815_s4 }
   0xe   : > { %818 = vmatprep.subr.bf16.mxu0 %v954_v2  ;;  %929 = vmatprep.subr.bf16.mxu1 %v954_v2  ;;  %v959_v7 = vld [vmem:[%s1222_s1 + $0x20] sm:$0xff]   ;;  %v961_v9 = vld [vmem:[%s1222_s1 + $0x18] sm:$0xff]   ;;  %v963_v13 = vld [vmem:[%s1222_s1 + $0x10] sm:$0xff]  }
   0xf   : > { %v970_v11 = vld [vmem:[%s1087_s9 + $0x4] ss:$8 sps:$4 sm:$0xff]   ;;  %v968_v18 = vld [vmem:[%s1087_s9] ss:$8 sps:$4 sm:$0xff]   ;;  %v974_v20 = vld [vmem:[%s1087_s9 + $0x14] ss:$8 sps:$4 sm:$0xff]  }
  0x10   : > { %v973_v12 = vld [vmem:[%s1087_s9 + $0x84] ss:$8 sps:$4 sm:$0xff]   ;;  %537 = vmatprep.mubr.bf16.mxu0 %v970_v11  ;;  %v971_v19 = vld [vmem:[%s1087_s9 + $0x80] ss:$8 sps:$4 sm:$0xff]   ;;  %v976_v21 = vld [vmem:[%s1087_s9 + $0x94] ss:$8 sps:$4 sm:$0xff]  }
  0x11   : > { %819 = vmatpush3.bf16.msra.mxu0 %v955_v3  ;;  %937 = vmatpush3.bf16.msra.mxu1 %v955_v3  ;;  %v964_v14 = vld [vmem:[%s1222_s1 + $0x48] sm:$0xff]   ;;  %v966_v16 = vld [vmem:[%s1222_s1 + $0x40] sm:$0xff]   ;;  %v978_v22 = vld [vmem:[%s1087_s9 + $0x10] ss:$8 sps:$4 sm:$0xff]  }
  0x12   : > { %820 = vmatprep.subr.bf16.mxu0 %v956_v4  ;;  %930 = vmatprep.subr.bf16.mxu1 %v956_v4  ;;  %v965_v15 = vld [vmem:[%s1222_s1 + $0x8] sm:$0xff]   ;;  %v967_v17 = vld [vmem:[%s1222_s1] sm:$0xff]   ;;  %v979_v23 = vld [vmem:[%s1087_s9 + $0x90] ss:$8 sps:$4 sm:$0xff]  }
  0x13   : > { %601 = vmatprep.mubr.bf16.mxu1 %v973_v12  ;;  %v980_v24 = vld [vmem:[%s1087_s9 + $0x24] ss:$8 sps:$4 sm:$0xff]   ;;  %v984_v26 = vld [vmem:[%s1087_s9 + $0x20] ss:$8 sps:$4 sm:$0xff]   ;;  %v986_v28 = vld [vmem:[%s1087_s9 + $0x34] ss:$8 sps:$4 sm:$0xff]  }
  0x14   : > { %v982_v25 = vld [vmem:[%s1087_s9 + $0xa4] ss:$8 sps:$4 sm:$0xff]   ;;  %v985_v27 = vld [vmem:[%s1087_s9 + $0xa0] ss:$8 sps:$4 sm:$0xff]   ;;  %v988_v29 = vld [vmem:[%s1087_s9 + $0xb4] ss:$8 sps:$4 sm:$0xff]  }
  0x15   : > { %821 = vmatpush3.bf16.msra.mxu0 %v957_v5  ;;  %938 = vmatpush3.bf16.msra.mxu1 %v957_v5  ;;  %v990_v30 = vld [vmem:[%s1087_s9 + $0x30] ss:$8 sps:$4 sm:$0xff]   ;;  %v992_v32 = vld [vmem:[%s1087_s9 + $0x44] ss:$8 sps:$4 sm:$0xff]   ;;  %v996_v34 = vld [vmem:[%s1087_s9 + $0x40] ss:$8 sps:$4 sm:$0xff]  }
  0x16   : > { %822 = vmatprep.subr.bf16.mxu0 %v958_v6  ;;  %931 = vmatprep.subr.bf16.mxu1 %v958_v6  ;;  %v991_v31 = vld [vmem:[%s1087_s9 + $0xb0] ss:$8 sps:$4 sm:$0xff]   ;;  %v994_v33 = vld [vmem:[%s1087_s9 + $0xc4] ss:$8 sps:$4 sm:$0xff]   ;;  %v997_v35 = vld [vmem:[%s1087_s9 + $0xc0] ss:$8 sps:$4 sm:$0xff]  }
  0x17   : > { %v998_v36 = vld [vmem:[%s1087_s9 + $0x54] ss:$8 sps:$4 sm:$0xff]   ;;  %v1002_v38 = vld [vmem:[%s1087_s9 + $0x50] ss:$8 sps:$4 sm:$0xff]   ;;  %v1004_v40 = vld [vmem:[%s1087_s9 + $0x64] ss:$8 sps:$4 sm:$0xff]  }
  0x18   : > { %v1000_v37 = vld [vmem:[%s1087_s9 + $0xd4] ss:$8 sps:$4 sm:$0xff]   ;;  %v1003_v39 = vld [vmem:[%s1087_s9 + $0xd0] ss:$8 sps:$4 sm:$0xff]   ;;  %v1006_v41 = vld [vmem:[%s1087_s9 + $0xe4] ss:$8 sps:$4 sm:$0xff]  }
  0x19   : > { %823 = vmatpush3.bf16.msra.mxu0 %v959_v7  ;;  %939 = vmatpush3.bf16.msra.mxu1 %v959_v7  ;;  %v1008_v42 = vld [vmem:[%s1087_s9 + $0x60] ss:$8 sps:$4 sm:$0xff]   ;;  %v1010_v44 = vld [vmem:[%s1087_s9 + $0x74] ss:$8 sps:$4 sm:$0xff]   ;;  %v1014_v46 = vld [vmem:[%s1087_s9 + $0x70] ss:$8 sps:$4 sm:$0xff]  }
  0x1a   : > { %824 = vmatprep.subr.bf16.mxu0 %v960_v8  ;;  %932 = vmatprep.subr.bf16.mxu1 %v960_v8  ;;  %v1009_v43 = vld [vmem:[%s1087_s9 + $0xe0] ss:$8 sps:$4 sm:$0xff]   ;;  %v1012_v45 = vld [vmem:[%s1087_s9 + $0xf4] ss:$8 sps:$4 sm:$0xff]   ;;  %v1015_v47 = vld [vmem:[%s1087_s9 + $0xf0] ss:$8 sps:$4 sm:$0xff]  }
  0x1b   : > { %v1145_v50 = vld [vmem:[%s1223_s2] ss:$0 sm:$0xff] }
  0x1d   : > { %825 = vmatpush3.bf16.msra.mxu0 %v961_v9  ;;  %940 = vmatpush3.bf16.msra.mxu1 %v961_v9 }
  0x1e   : > { %826 = vmatprep.subr.bf16.mxu0 %v962_v10  ;;  %933 = vmatprep.subr.bf16.mxu1 %v962_v10 }
  0x21   : > { %827 = vmatpush3.bf16.msra.mxu0 %v963_v13  ;;  %941 = vmatpush3.bf16.msra.mxu1 %v963_v13 }
  0x22   : > { %828 = vmatprep.subr.bf16.mxu0 %v964_v14  ;;  %934 = vmatprep.subr.bf16.mxu1 %v964_v14 }
  0x25   : > { %829 = vmatpush3.bf16.msra.mxu0 %v965_v15  ;;  %942 = vmatpush3.bf16.msra.mxu1 %v965_v15 }
  0x26   : > { %830 = vmatprep.subr.bf16.mxu0 %v966_v16  ;;  %935 = vmatprep.subr.bf16.mxu1 %v966_v16 }
  0x29   : > { %831 = vmatpush3.bf16.msra.mxu0 %v967_v17  ;;  %943 = vmatpush3.bf16.msra.mxu1 %v967_v17 }
  0x2c   : > { %538 = vmatmul.mubr.bf16.vlgmr.msra.gmra.mxu0 %v968_v18  ;;  %602 = vmatmul.mubr.bf16.vlgmr.msra.gmra.mxu1 %v971_v19 }
  0x2d   : > { %545 = vmatprep.mubr.bf16.mxu0 %v974_v20  ;;  %609 = vmatprep.mubr.bf16.mxu1 %v976_v21 }
  0x34   : > { %546 = vmatmul.mubr.bf16.gmra.mxu0 %v978_v22  ;;  %610 = vmatmul.mubr.bf16.gmra.mxu1 %v979_v23 }
  0x35   : > { %553 = vmatprep.mubr.bf16.mxu0 %v980_v24  ;;  %617 = vmatprep.mubr.bf16.mxu1 %v982_v25 }
  0x3c   : > { %554 = vmatmul.mubr.bf16.gmra.mxu0 %v984_v26  ;;  %618 = vmatmul.mubr.bf16.gmra.mxu1 %v985_v27 }
  0x3d   : > { %561 = vmatprep.mubr.bf16.mxu0 %v986_v28  ;;  %625 = vmatprep.mubr.bf16.mxu1 %v988_v29 }
  0x44   : > { %562 = vmatmul.mubr.bf16.gmra.mxu0 %v990_v30  ;;  %626 = vmatmul.mubr.bf16.gmra.mxu1 %v991_v31 }
  0x45   : > { %569 = vmatprep.mubr.bf16.mxu0 %v992_v32  ;;  %633 = vmatprep.mubr.bf16.mxu1 %v994_v33 }
  0x4c   : > { %570 = vmatmul.mubr.bf16.gmra.mxu0 %v996_v34  ;;  %634 = vmatmul.mubr.bf16.gmra.mxu1 %v997_v35 }
  0x4d   : > { %577 = vmatprep.mubr.bf16.mxu0 %v998_v36  ;;  %641 = vmatprep.mubr.bf16.mxu1 %v1000_v37 }
  0x54   : > { %578 = vmatmul.mubr.bf16.gmra.mxu0 %v1002_v38  ;;  %642 = vmatmul.mubr.bf16.gmra.mxu1 %v1003_v39 }
  0x55   : > { %585 = vmatprep.mubr.bf16.mxu0 %v1004_v40  ;;  %649 = vmatprep.mubr.bf16.mxu1 %v1006_v41 }
  0x5c   : > { %586 = vmatmul.mubr.bf16.gmra.mxu0 %v1008_v42  ;;  %650 = vmatmul.mubr.bf16.gmra.mxu1 %v1009_v43 }
  0x5d   : > { %593 = vmatprep.mubr.bf16.mxu0 %v1010_v44  ;;  %657 = vmatprep.mubr.bf16.mxu1 %v1012_v45 }
  0x64   : > { %594 = vmatmul.mubr.bf16.gmra.mxu0 %v1014_v46  ;;  %658 = vmatmul.mubr.bf16.gmra.mxu1 %v1015_v47 }
  0xec   : > { %v832_v48 = vpop.f32.mrf.mxu0  ;;  %v880_v49 = vpop.f32.mrf.mxu1 }
  0xee   : > { %v833_v51 = vpop.f32.mrf.mxu0  ;;  %v881_v52 = vpop.f32.mrf.mxu1 }
  0xef   : > { %v834_v53 = vadd.f32 %v833_v51, %v832_v48  ;;  %v882_v54 = vadd.f32 %v881_v52, %v880_v49 }
  0xf0   : > { %v835_v55 = vpop.f32.mrf.mxu0  ;;  %v883_v56 = vpop.f32.mrf.mxu1 }
  0xf1   : > { %v540_v57 = vadd.f32 %v834_v53, %v1145_v50  ;;  %v604_v58 = vadd.f32 %v882_v54, %v1145_v50 }
  0xf2   : > { %v836_v59 = vpop.f32.mrf.mxu0  ;;  %v884_v60 = vpop.f32.mrf.mxu1 }
  0xf3   : > { %666 = vst [vmem:[%s1152_s30] sm:$0xff] %v540_v57  ;;  %682 = vst [vmem:[%s1152_s30 + $0x80] sm:$0xff] %v604_v58  ;;  %v837_v61 = vadd.f32 %v836_v59, %v835_v55  ;;  %v885_v62 = vadd.f32 %v884_v60, %v883_v56 }
  0xf4   : > { %v838_v63 = vpop.f32.mrf.mxu0  ;;  %v886_v0 = vpop.f32.mrf.mxu1 }
  0xf5   : > { %v543_v1 = vadd.f32 %v837_v61, %v1145_v50  ;;  %v607_v2 = vadd.f32 %v885_v62, %v1145_v50 }
  0xf6   : > { %v839_v3 = vpop.f32.mrf.mxu0  ;;  %v887_v4 = vpop.f32.mrf.mxu1 }
  0xf7   : > { %667 = vst [vmem:[%s1152_s30 + $0x8] sm:$0xff] %v543_v1  ;;  %683 = vst [vmem:[%s1152_s30 + $0x88] sm:$0xff] %v607_v2  ;;  %v840_v5 = vadd.f32 %v839_v3, %v838_v63  ;;  %v888_v6 = vadd.f32 %v887_v4, %v886_v0 }
  0xf8   : > { %v841_v7 = vpop.f32.mrf.mxu0  ;;  %v889_v8 = vpop.f32.mrf.mxu1 }
  0xf9   : > { %v548_v9 = vadd.f32 %v840_v5, %v1145_v50  ;;  %v612_v10 = vadd.f32 %v888_v6, %v1145_v50 }
  0xfa   : > { %v842_v11 = vpop.f32.mrf.mxu0  ;;  %v890_v12 = vpop.f32.mrf.mxu1 }
  0xfb   : > { %668 = vst [vmem:[%s1152_s30 + $0x10] sm:$0xff] %v548_v9  ;;  %684 = vst [vmem:[%s1152_s30 + $0x90] sm:$0xff] %v612_v10  ;;  %v843_v13 = vadd.f32 %v842_v11, %v841_v7  ;;  %v891_v14 = vadd.f32 %v890_v12, %v889_v8 }
  0xfc   : > { %v844_v15 = vpop.f32.mrf.mxu0  ;;  %v892_v16 = vpop.f32.mrf.mxu1 }
  0xfd   : > { %v551_v17 = vadd.f32 %v843_v13, %v1145_v50  ;;  %v615_v18 = vadd.f32 %v891_v14, %v1145_v50 }
  0xfe   : > { %v845_v19 = vpop.f32.mrf.mxu0  ;;  %v893_v20 = vpop.f32.mrf.mxu1 }
  0xff   : > { %669 = vst [vmem:[%s1152_s30 + $0x18] sm:$0xff] %v551_v17  ;;  %685 = vst [vmem:[%s1152_s30 + $0x98] sm:$0xff] %v615_v18  ;;  %v846_v21 = vadd.f32 %v845_v19, %v844_v15  ;;  %v894_v22 = vadd.f32 %v893_v20, %v892_v16 }
 0x100   : > { %v847_v23 = vpop.f32.mrf.mxu0  ;;  %v895_v24 = vpop.f32.mrf.mxu1 }
 0x101   : > { %v556_v25 = vadd.f32 %v846_v21, %v1145_v50  ;;  %v620_v26 = vadd.f32 %v894_v22, %v1145_v50 }
 0x102   : > { %v848_v27 = vpop.f32.mrf.mxu0  ;;  %v896_v28 = vpop.f32.mrf.mxu1 }
 0x103   : > { %670 = vst [vmem:[%s1152_s30 + $0x20] sm:$0xff] %v556_v25  ;;  %686 = vst [vmem:[%s1152_s30 + $0xa0] sm:$0xff] %v620_v26  ;;  %v849_v29 = vadd.f32 %v848_v27, %v847_v23  ;;  %v897_v30 = vadd.f32 %v896_v28, %v895_v24 }
 0x104   : > { %v850_v31 = vpop.f32.mrf.mxu0  ;;  %v898_v32 = vpop.f32.mrf.mxu1 }
 0x105   : > { %v559_v33 = vadd.f32 %v849_v29, %v1145_v50  ;;  %v623_v34 = vadd.f32 %v897_v30, %v1145_v50 }
 0x106   : > { %v851_v35 = vpop.f32.mrf.mxu0  ;;  %v899_v36 = vpop.f32.mrf.mxu1 }
 0x107   : > { %671 = vst [vmem:[%s1152_s30 + $0x28] sm:$0xff] %v559_v33  ;;  %687 = vst [vmem:[%s1152_s30 + $0xa8] sm:$0xff] %v623_v34  ;;  %v852_v37 = vadd.f32 %v851_v35, %v850_v31  ;;  %v900_v38 = vadd.f32 %v899_v36, %v898_v32 }
 0x108   : > { %v853_v39 = vpop.f32.mrf.mxu0  ;;  %v901_v40 = vpop.f32.mrf.mxu1 }
 0x109   : > { %v564_v41 = vadd.f32 %v852_v37, %v1145_v50  ;;  %v628_v42 = vadd.f32 %v900_v38, %v1145_v50 }
 0x10a   : > { %v854_v43 = vpop.f32.mrf.mxu0  ;;  %v902_v44 = vpop.f32.mrf.mxu1 }
 0x10b   : > { %672 = vst [vmem:[%s1152_s30 + $0x30] sm:$0xff] %v564_v41  ;;  %688 = vst [vmem:[%s1152_s30 + $0xb0] sm:$0xff] %v628_v42  ;;  %v855_v45 = vadd.f32 %v854_v43, %v853_v39  ;;  %v903_v46 = vadd.f32 %v902_v44, %v901_v40 }
 0x10c   : > { %v856_v47 = vpop.f32.mrf.mxu0  ;;  %v904_v48 = vpop.f32.mrf.mxu1 }
 0x10d   : > { %v567_v49 = vadd.f32 %v855_v45, %v1145_v50  ;;  %v631_v51 = vadd.f32 %v903_v46, %v1145_v50 }
 0x10e   : > { %v857_v52 = vpop.f32.mrf.mxu0  ;;  %v905_v53 = vpop.f32.mrf.mxu1 }
 0x10f   : > { %673 = vst [vmem:[%s1152_s30 + $0x38] sm:$0xff] %v567_v49  ;;  %689 = vst [vmem:[%s1152_s30 + $0xb8] sm:$0xff] %v631_v51  ;;  %v858_v54 = vadd.f32 %v857_v52, %v856_v47  ;;  %v906_v55 = vadd.f32 %v905_v53, %v904_v48 }
 0x110   : > { %v859_v56 = vpop.f32.mrf.mxu0  ;;  %v907_v57 = vpop.f32.mrf.mxu1 }
 0x111   : > { %v572_v58 = vadd.f32 %v858_v54, %v1145_v50  ;;  %v636_v59 = vadd.f32 %v906_v55, %v1145_v50 }
 0x112   : > { %v860_v60 = vpop.f32.mrf.mxu0  ;;  %v908_v61 = vpop.f32.mrf.mxu1 }
 0x113   : > { %674 = vst [vmem:[%s1152_s30 + $0x40] sm:$0xff] %v572_v58  ;;  %690 = vst [vmem:[%s1152_s30 + $0xc0] sm:$0xff] %v636_v59  ;;  %v861_v62 = vadd.f32 %v860_v60, %v859_v56  ;;  %v909_v63 = vadd.f32 %v908_v61, %v907_v57 }
 0x114   : > { %v862_v0 = vpop.f32.mrf.mxu0  ;;  %v910_v1 = vpop.f32.mrf.mxu1 }
 0x115   : > { %v575_v2 = vadd.f32 %v861_v62, %v1145_v50  ;;  %v639_v3 = vadd.f32 %v909_v63, %v1145_v50 }
 0x116   : > { %v863_v4 = vpop.f32.mrf.mxu0  ;;  %v911_v5 = vpop.f32.mrf.mxu1 }
 0x117   : > { %675 = vst [vmem:[%s1152_s30 + $0x48] sm:$0xff] %v575_v2  ;;  %691 = vst [vmem:[%s1152_s30 + $0xc8] sm:$0xff] %v639_v3  ;;  %v864_v6 = vadd.f32 %v863_v4, %v862_v0  ;;  %v912_v7 = vadd.f32 %v911_v5, %v910_v1 }
 0x118   : > { %v865_v8 = vpop.f32.mrf.mxu0  ;;  %v913_v9 = vpop.f32.mrf.mxu1 }
 0x119   : > { %v580_v10 = vadd.f32 %v864_v6, %v1145_v50  ;;  %v644_v11 = vadd.f32 %v912_v7, %v1145_v50 }
 0x11a   : > { %v866_v12 = vpop.f32.mrf.mxu0  ;;  %v914_v13 = vpop.f32.mrf.mxu1 }
 0x11b   : > { %676 = vst [vmem:[%s1152_s30 + $0x50] sm:$0xff] %v580_v10  ;;  %692 = vst [vmem:[%s1152_s30 + $0xd0] sm:$0xff] %v644_v11  ;;  %v867_v14 = vadd.f32 %v866_v12, %v865_v8  ;;  %v915_v15 = vadd.f32 %v914_v13, %v913_v9 }
 0x11c   : > { %v868_v16 = vpop.f32.mrf.mxu0  ;;  %v916_v17 = vpop.f32.mrf.mxu1 }
 0x11d   : > { %v583_v18 = vadd.f32 %v867_v14, %v1145_v50  ;;  %v647_v19 = vadd.f32 %v915_v15, %v1145_v50 }
 0x11e   : > { %v869_v20 = vpop.f32.mrf.mxu0  ;;  %v917_v21 = vpop.f32.mrf.mxu1 }
 0x11f   : > { %677 = vst [vmem:[%s1152_s30 + $0x58] sm:$0xff] %v583_v18  ;;  %693 = vst [vmem:[%s1152_s30 + $0xd8] sm:$0xff] %v647_v19  ;;  %v870_v22 = vadd.f32 %v869_v20, %v868_v16  ;;  %v918_v23 = vadd.f32 %v917_v21, %v916_v17 }
 0x120   : > { %v871_v24 = vpop.f32.mrf.mxu0  ;;  %v919_v25 = vpop.f32.mrf.mxu1 }
 0x121   : > { %v588_v26 = vadd.f32 %v870_v22, %v1145_v50  ;;  %v652_v27 = vadd.f32 %v918_v23, %v1145_v50 }
 0x122   : > { %v872_v28 = vpop.f32.mrf.mxu0  ;;  %v920_v29 = vpop.f32.mrf.mxu1 }
 0x123   : > { %678 = vst [vmem:[%s1152_s30 + $0x60] sm:$0xff] %v588_v26  ;;  %694 = vst [vmem:[%s1152_s30 + $0xe0] sm:$0xff] %v652_v27  ;;  %v873_v30 = vadd.f32 %v872_v28, %v871_v24  ;;  %v921_v31 = vadd.f32 %v920_v29, %v919_v25 }
 0x124   : > { %v874_v32 = vpop.f32.mrf.mxu0  ;;  %v922_v33 = vpop.f32.mrf.mxu1 }
 0x125   : > { %v591_v34 = vadd.f32 %v873_v30, %v1145_v50  ;;  %v655_v35 = vadd.f32 %v921_v31, %v1145_v50 }
 0x126   : > { %v875_v36 = vpop.f32.mrf.mxu0  ;;  %v923_v37 = vpop.f32.mrf.mxu1 }
 0x127   : > { %679 = vst [vmem:[%s1152_s30 + $0x68] sm:$0xff] %v591_v34  ;;  %695 = vst [vmem:[%s1152_s30 + $0xe8] sm:$0xff] %v655_v35  ;;  %v876_v38 = vadd.f32 %v875_v36, %v874_v32  ;;  %v924_v39 = vadd.f32 %v923_v37, %v922_v33 }
 0x128   : > { %v877_v40 = vpop.f32.mrf.mxu0  ;;  %v925_v41 = vpop.f32.mrf.mxu1 }
 0x129   : > { %v596_v42 = vadd.f32 %v876_v38, %v1145_v50  ;;  %v660_v43 = vadd.f32 %v924_v39, %v1145_v50 }
 0x12a   : > { %v878_v44 = vpop.f32.mrf.mxu0  ;;  %v926_v45 = vpop.f32.mrf.mxu1 }
 0x12b   : > { %680 = vst [vmem:[%s1152_s30 + $0x70] sm:$0xff] %v596_v42  ;;  %696 = vst [vmem:[%s1152_s30 + $0xf0] sm:$0xff] %v660_v43  ;;  %v879_v46 = vadd.f32 %v878_v44, %v877_v40  ;;  %v927_v47 = vadd.f32 %v926_v45, %v925_v41 }
 0x12d   : > { %v599_v48 = vadd.f32 %v879_v46, %v1145_v50  ;;  %v663_v49 = vadd.f32 %v927_v47, %v1145_v50 }
 0x12f   : > { %681 = vst [vmem:[%s1152_s30 + $0x78] sm:$0xff] %v599_v48  ;;  %697 = vst [vmem:[%s1152_s30 + $0xf8] sm:$0xff] %v663_v49 }
 0x130 PF: > { %s13_s12 = sadd.s32 1, %s1022_s12  }
 0x131   : > { %p10_p4 = scmp.ge.s32.totalorder %s13_s12, 4  }
 0x133   :  { %12 = sbr.rel (!%p10_p4) target bundleno = 1 (0x1), region = 62 }

</bundles_post_ra>
